<compile_context>
chip_gen: v5e
topology: v5e:2x2
jax: 0.10.0
libtpu: 0.0.40
codegen_flags: <defaults>
</compile_context>

<pallas_src>
import functools

import jax
import jax.numpy as jnp
from jax.experimental import pallas as pl
from jax.experimental.pallas import tpu as pltpu


# ----------------------------------------------------------------------------
# Host-side constant 0/1 matrices (consumed by the MXU inside the kernel)
# ----------------------------------------------------------------------------
def _downsample_matrix(h, w):
    """S (h*w, h*w//4): S[(2yo)*w + 2xo, yo*(w//2)+xo] = 1  (stride-2 sampling)."""
    ho, wo = h // 2, w // 2
    yo = jnp.arange(ho)
    xo = jnp.arange(wo)
    src = (2 * yo[:, None] * w + 2 * xo[None, :]).reshape(-1)
    return jax.nn.one_hot(src, h * w, dtype=jnp.float32).T


def _scatter_matrices(h, w):
    """P (4, h*w, 4*h*w): phase p=2*py+px scatters (y,x) -> (2y+py, 2x+px)."""
    y = jnp.arange(h)
    x = jnp.arange(w)
    mats = []
    for py in (0, 1):
        for px in (0, 1):
            dst = ((2 * y[:, None] + py) * (2 * w) + 2 * x[None, :] + px).reshape(-1)
            mats.append(jax.nn.one_hot(dst, 4 * h * w, dtype=jnp.float32))
    return jnp.stack(mats, axis=0)


def _pack_conv_w(w_oihw):
    """nn.Conv2d weight (Cout, Cin, 3, 3) -> (9, Cout, Cin), tap k = 3*dy + dx."""
    co, ci = w_oihw.shape[0], w_oihw.shape[1]
    return jnp.transpose(w_oihw, (2, 3, 0, 1)).reshape(9, co, ci).astype(jnp.float32)


def _pack_deconv_w(wt_iohw):
    """ConvTranspose2d weight (Cin, Cout, 3, 3) -> (9, Cout, Cin), k = 3*ky + kx."""
    ci, co = wt_iohw.shape[0], wt_iohw.shape[1]
    return jnp.transpose(wt_iohw, (2, 3, 1, 0)).reshape(9, co, ci).astype(jnp.float32)


# ----------------------------------------------------------------------------
# Fused forward (Initial_LadderBlock)
# ----------------------------------------------------------------------------
def initial_ladder_block_forward(x_nchw, params, layers):
    n, cin0, H, W = x_nchw.shape
    planes = params["inconv_w"].shape[0]
    hw0 = H * W
    x3 = x_nchw.reshape(n, cin0, hw0).astype(jnp.float32)   # free reshape, no transpose

    # ----- weights packed for (Cout, Cin) @ (Cin, H*W) dots -----
    w_in = _pack_conv_w(params["inconv_w"])
    wdb = [_pack_conv_w(params["down_block"][i]["w"]) for i in range(layers)]
    wdc = [_pack_conv_w(params["down_conv_w"][i]) for i in range(layers)]
    wbot = _pack_conv_w(params["bottom"]["w"])
    wuc = [_pack_deconv_w(params["up_conv_w"][j]) for j in range(layers)]
    wud = [_pack_conv_w(params["up_dense"][j]["w"]) for j in range(layers)]

    # ----- all per-channel epilogue vectors packed into one (L, 1) operand -----
    parts = []
    offsets = {}
    off = 0

    def add(name, v):
        nonlocal off
        c = int(v.shape[0])
        offsets[name] = (off, c)
        parts.append(v.reshape(c, 1).astype(jnp.float32))
        off += c

    add("in_s", params["in_bn_s"])
    add("in_t", params["inconv_b"] * params["in_bn_s"] + params["in_bn_t"])

    def add_block(prefix, bp):
        add(prefix + "_s1", bp["bn1_s"])
        add(prefix + "_t1", bp["b"] * bp["bn1_s"] + bp["bn1_t"])   # conv bias folded
        add(prefix + "_s2", bp["bn2_s"])
        add(prefix + "_t2", bp["b"] * bp["bn2_s"] + bp["bn2_t"])

    for i in range(layers):
        add_block("db%d" % i, params["down_block"][i])
        add("dc%d_b" % i, params["down_conv_b"][i])
    add_block("bot", params["bottom"])
    for j in range(layers):
        add("uc%d_b" % j, params["up_conv_b"][j])
        add_block("ud%d" % j, params["up_dense"][j])
    vec = jnp.concatenate(parts, axis=0)                      # (L, 1)

    # ----- spatial 0/1 matrices -----
    hs = [(H >> k, W >> k) for k in range(layers + 1)]
    S_mats = [_downsample_matrix(*hs[i]) for i in range(layers)]
    P_mats = [_scatter_matrices(*hs[layers - j]) for j in range(layers)]

    chans = [planes * (2 ** k) for k in range(layers + 1)]

    out_shapes = []
    for k in range(layers + 1):
        lev = layers - k
        hh, ww = hs[lev]
        out_shapes.append(jax.ShapeDtypeStruct((n, chans[lev], hh * ww), jnp.float32))

    # ------------------------------------------------------------------
    # Kernel: one grid step == one image == the whole network in VMEM.
    # ------------------------------------------------------------------
    def kernel(*refs):
        x_ref, w_in_ref, vec_ref = refs[0], refs[1], refs[2]
        pos = 3
        s_refs = refs[pos:pos + layers]; pos += layers
        p_refs = refs[pos:pos + layers]; pos += layers
        wdb_refs = refs[pos:pos + layers]; pos += layers
        wdc_refs = refs[pos:pos + layers]; pos += layers
        wbot_ref = refs[pos]; pos += 1
        wuc_refs = refs[pos:pos + layers]; pos += layers
        wud_refs = refs[pos:pos + layers]; pos += layers
        out_refs = refs[pos:]

        mask_cache = {}

        def col_masks(wdim, hw):
            if (wdim, hw) not in mask_cache:
                idx = jax.lax.broadcasted_iota(jnp.int32, (1, hw), 1)
                if (wdim & (wdim - 1)) == 0:
                    col = jnp.bitwise_and(idx, wdim - 1)
                else:
                    col = jax.lax.rem(idx, wdim)
                mask_cache[(wdim, hw)] = (
                    (col < (wdim - 1)).astype(jnp.float32),   # valid for sx = +1
                    (col >= 1).astype(jnp.float32),           # valid for sx = -1
                )
            return mask_cache[(wdim, hw)]

        def vecp(name):
            o, c = offsets[name]
            return vec_ref[pl.ds(o, c), :]                    # (c, 1) f32

        def shift2d(a, sy, sx, wdim, hw):
            # shifted[c, y*wdim + x] = a[c, (y+sy)*wdim + (x+sx)], zero outside.
            cc = a.shape[0]
            s = sy * wdim + sx
            if s > 0:
                sh = jnp.concatenate([a[:, s:], jnp.zeros((cc, s), a.dtype)], axis=1)
            elif s < 0:
                sh = jnp.concatenate([jnp.zeros((cc, -s), a.dtype), a[:, :s]], axis=1)
            else:
                sh = a
            mp, mm = col_masks(wdim, hw)
            if sx > 0:
                sh = sh * mp
            elif sx < 0:
                sh = sh * mm
            return sh

        def conv3x3(a, w_ref, wdim, hw):
            # 3x3 / stride-1 / pad-1 conv: 9 shifted taps, 9 accumulating MXU dots.
            acc = None
            for dy in range(3):
                for dx in range(3):
                    tap = shift2d(a, dy - 1, dx - 1, wdim, hw)
                    part = jnp.dot(w_ref[3 * dy + dx], tap,
                                   preferred_element_type=jnp.float32)
                    acc = part if acc is None else acc + part
            return acc

        def basic_block(a, w_ref, pre, wdim, hw):
            # relu(bn2(conv(drop(relu(bn1(conv(x)))))) + x); same conv weight twice.
            y = conv3x3(a, w_ref, wdim, hw)
            y = jnp.maximum(y * vecp(pre + "_s1") + vecp(pre + "_t1"), 0.0)
            # TODO(synk): Dropout2d is identity (eval mode); training mode not implemented.
            y = conv3x3(y, w_ref, wdim, hw)
            y = y * vecp(pre + "_s2") + vecp(pre + "_t2")
            return jnp.maximum(y + a, 0.0)

        # ---------------- forward ----------------
        ww = W
        hw = H * W
        a = x_ref[0]                                           # (Cin0, H*W) f32
        a = conv3x3(a, w_in_ref, ww, hw)
        a = jnp.maximum(a * vecp("in_s") + vecp("in_t"), 0.0)

        skips = []
        for i in range(layers):
            a = basic_block(a, wdb_refs[i], "db%d" % i, ww, hw)
            skips.append(a)
            # stride-2 conv + bias + relu: full-res conv, MXU 0/1 column-select to 1/4 res.
            acc = conv3x3(a, wdc_refs[i], ww, hw)
            acc = jnp.dot(acc, s_refs[i][...], preferred_element_type=jnp.float32)
            a = jnp.maximum(acc + vecp("dc%d_b" % i), 0.0)
            ww //= 2
            hw //= 4

        a = basic_block(a, wbot_ref, "bot", ww, hw)
        out_refs[0][0] = a.astype(out_refs[0].dtype)

        for j in range(layers):
            # ConvTranspose2d(k=3, s=2, p=1, op=1): 4-phase sub-pixel decomposition;
            # phases interleaved to full resolution by 0/1 MXU matmuls (in-kernel).
            w_ref = wuc_refs[j]
            x00 = a
            x01 = shift2d(a, 0, 1, ww, hw)
            x10 = shift2d(a, 1, 0, ww, hw)
            x11 = shift2d(a, 1, 1, ww, hw)

            def dd(k, v, _w=w_ref):
                return jnp.dot(_w[k], v, preferred_element_type=jnp.float32)

            p00 = dd(4, x00)
            p01 = dd(5, x00) + dd(3, x01)
            p10 = dd(7, x00) + dd(1, x10)
            p11 = dd(8, x00) + dd(6, x01) + dd(2, x10) + dd(0, x11)
            pref = p_refs[j]
            up = (jnp.dot(p00, pref[0], preferred_element_type=jnp.float32)
                  + jnp.dot(p01, pref[1], preferred_element_type=jnp.float32)
                  + jnp.dot(p10, pref[2], preferred_element_type=jnp.float32)
                  + jnp.dot(p11, pref[3], preferred_element_type=jnp.float32))
            ww *= 2
            hw *= 4
            a = up + vecp("uc%d_b" % j) + skips[layers - j - 1]
            a = basic_block(a, wud_refs[j], "ud%d" % j, ww, hw)
            out_refs[j + 1][0] = a.astype(out_refs[j + 1].dtype)

    # ------------------------------------------------------------------
    inputs = [x3, w_in, vec] + S_mats + P_mats + wdb + wdc + [wbot] + wuc + wud

    def const_spec(arr):
        nd = arr.ndim
        return pl.BlockSpec(arr.shape, lambda i, _nd=nd: (0,) * _nd)

    in_specs = ([pl.BlockSpec((1, cin0, hw0), lambda i: (i, 0, 0))]
                + [const_spec(arr) for arr in inputs[1:]])
    out_specs = [pl.BlockSpec((1,) + s.shape[1:], lambda i: (i, 0, 0))
                 for s in out_shapes]

    outs = pl.pallas_call(
        kernel,
        grid=(n,),
        in_specs=in_specs,
        out_specs=out_specs,
        out_shape=out_shapes,
        compiler_params=pltpu.CompilerParams(
            dimension_semantics=("parallel",)),
    )(*inputs)

    results = []
    for k in range(layers + 1):
        lev = layers - k
        hh, ww = hs[lev]
        results.append(outs[k].reshape(n, chans[lev], hh, ww))   # free reshape (NCHW)
    return results


# ----------------------------------------------------------------------------
# Pure-JAX reference (for numerical verification)
# ----------------------------------------------------------------------------
_HI = jax.lax.Precision.HIGHEST


def _ref_conv(x, w, b, stride=1):
    y = jax.lax.conv_general_dilated(
        x, w, window_strides=(stride, stride), padding=((1, 1), (1, 1)),
        dimension_numbers=("NCHW", "OIHW", "NCHW"), precision=_HI)
    return y + b[None, :, None, None]


def _ref_deconv(x, wt, b):
    wc = jnp.transpose(wt, (1, 0, 2, 3))[:, :, ::-1, ::-1]
    y = jax.lax.conv_general_dilated(
        x, wc, window_strides=(1, 1), padding=((1, 2), (1, 2)), lhs_dilation=(2, 2),
        dimension_numbers=("NCHW", "OIHW", "NCHW"), precision=_HI)
    return y + b[None, :, None, None]


def _ref_bn(x, s, t):
    return x * s[None, :, None, None] + t[None, :, None, None]


def _ref_block(x, p):
    out = jax.nn.relu(_ref_bn(_ref_conv(x, p["w"], p["b"]), p["bn1_s"], p["bn1_t"]))
    out1 = _ref_bn(_ref_conv(out, p["w"], p["b"]), p["bn2_s"], p["bn2_t"])
    return jax.nn.relu(out1 + x)


def reference_forward(x, params, layers):
    out = jax.nn.relu(_ref_bn(_ref_conv(x, params["inconv_w"], params["inconv_b"]),
                              params["in_bn_s"], params["in_bn_t"]))
    down = []
    for i in range(layers):
        out = _ref_block(out, params["down_block"][i])
        down.append(out)
        out = jax.nn.relu(_ref_conv(out, params["down_conv_w"][i],
                                    params["down_conv_b"][i], stride=2))
    out = _ref_block(out, params["bottom"])
    ups = [out]
    for j in range(layers):
        out = _ref_deconv(out, params["up_conv_w"][j], params["up_conv_b"][j]) \
              + down[layers - j - 1]
        out = _ref_block(out, params["up_dense"][j])
        ups.append(out)
    return ups


# ----------------------------------------------------------------------------
# Deterministic parameter construction
# ----------------------------------------------------------------------------
class _ParamGen:
    def __init__(self, key):
        self.key = key

    def normal(self, shape, scale=0.1):
        self.key, sub = jax.random.split(self.key)
        return scale * jax.random.normal(sub, shape, jnp.float32)

    def uniform(self, shape, lo, hi):
        self.key, sub = jax.random.split(self.key)
        return jax.random.uniform(sub, shape, jnp.float32, lo, hi)


def _bn_params(gen, c, eps=1e-5):
    gamma = 1.0 + gen.normal((c,))
    beta = gen.normal((c,))
    mean = gen.normal((c,))
    var = gen.uniform((c,), 0.5, 1.5)
    scale = gamma * jax.lax.rsqrt(var + eps)
    shift = beta - mean * scale
    return scale, shift


def _block_params(gen, c):
    bn1_s, bn1_t = _bn_params(gen, c)
    bn2_s, bn2_t = _bn_params(gen, c)
    return {"w": gen.normal((c, c, 3, 3)), "b": gen.normal((c,)),
            "bn1_s": bn1_s, "bn1_t": bn1_t, "bn2_s": bn2_s, "bn2_t": bn2_t}


def init_ladder_params(key, planes, layers, inplanes):
    gen = _ParamGen(key)
    p = {}
    p["inconv_w"] = gen.normal((planes, inplanes, 3, 3))
    p["inconv_b"] = gen.normal((planes,))
    p["in_bn_s"], p["in_bn_t"] = _bn_params(gen, planes)
    p["down_block"] = [_block_params(gen, planes * 2 ** i) for i in range(layers)]
    p["down_conv_w"] = [gen.normal((planes * 2 ** (i + 1), planes * 2 ** i, 3, 3))
                        for i in range(layers)]
    p["down_conv_b"] = [gen.normal((planes * 2 ** (i + 1),)) for i in range(layers)]
    p["bottom"] = _block_params(gen, planes * 2 ** layers)
    p["up_conv_w"] = []
    p["up_conv_b"] = []
    p["up_dense"] = []
    for i in range(layers):
        cin = planes * 2 ** (layers - i)
        cout = planes * 2 ** max(0, layers - i - 1)
        p["up_conv_w"].append(gen.normal((cin, cout, 3, 3)))  # ConvTranspose2d: (in, out, kH, kW)
        p["up_conv_b"].append(gen.normal((cout,)))
        p["up_dense"].append(_block_params(gen, cout))
    return p


# ----------------------------------------------------------------------------
if __name__ == "__main__":
    planes, layers, inplanes = 4, 2, 3
    key = jax.random.PRNGKey(0)
    kx, kp = jax.random.split(key)

    x = jax.random.normal(kx, (2, inplanes, 16, 16), jnp.float32)   # NCHW, like PyTorch
    params = init_ladder_params(kp, planes, layers, inplanes)

    fwd = jax.jit(functools.partial(initial_ladder_block_forward, layers=layers))
    up_out = [jax.block_until_ready(o) for o in fwd(x, params)]

    # expected shapes (NCHW): [(2,16,4,4), (2,8,8,8), (2,4,16,16)]
    expected = [(2, planes * 2 ** layers, 4, 4),
                (2, planes * 2, 8, 8),
                (2, planes, 16, 16)]
    assert [tuple(o.shape) for o in up_out] == expected, [tuple(o.shape) for o in up_out]
    assert all(bool(jnp.all(jnp.isfinite(o))) for o in up_out)

    # end-to-end numerical check of the actual compute path vs pure-JAX reference
    ref = reference_forward(x, params, layers)
    for g, r in zip(up_out, ref):
        rel = float(jnp.linalg.norm(g - r) / (jnp.linalg.norm(r) + 1e-6))
        assert rel < 5e-2, rel

    print("KERNEL_OK")
</pallas_src>

<mosaic_0001>
module attributes {stable_mosaic.version = 11 : i64} {
  func.func @kernel(%arg0: i32, %arg1: memref<1x3x256xf32, #tpu.memory_space<vmem>>, %arg2: memref<9x4x3xf32, #tpu.memory_space<vmem>>, %arg3: memref<204x1xf32, #tpu.memory_space<vmem>>, %arg4: memref<256x64xf32, #tpu.memory_space<vmem>>, %arg5: memref<64x16xf32, #tpu.memory_space<vmem>>, %arg6: memref<4x16x64xf32, #tpu.memory_space<vmem>>, %arg7: memref<4x64x256xf32, #tpu.memory_space<vmem>>, %arg8: memref<9x4x4xf32, #tpu.memory_space<vmem>>, %arg9: memref<9x8x8xf32, #tpu.memory_space<vmem>>, %arg10: memref<9x8x4xf32, #tpu.memory_space<vmem>>, %arg11: memref<9x16x8xf32, #tpu.memory_space<vmem>>, %arg12: memref<9x16x16xf32, #tpu.memory_space<vmem>>, %arg13: memref<9x8x16xf32, #tpu.memory_space<vmem>>, %arg14: memref<9x4x8xf32, #tpu.memory_space<vmem>>, %arg15: memref<9x8x8xf32, #tpu.memory_space<vmem>>, %arg16: memref<9x4x4xf32, #tpu.memory_space<vmem>>, %arg17: memref<1x16x16xf32, #tpu.memory_space<vmem>>, %arg18: memref<1x8x64xf32, #tpu.memory_space<vmem>>, %arg19: memref<1x4x256xf32, #tpu.memory_space<vmem>>) attributes {dimension_semantics = [#tpu.dimension_semantics<parallel>], iteration_bounds = array<i64: 2>, scalar_prefetch = 0 : i64, scratch_operands = 0 : i64, tpu.core_type = #tpu.core_type<tc>, window_params = [{transform_indices = @transform_0, window_bounds = array<i64: 1, 3, 256>}, {pipeline_mode = #tpu.pipeline_mode<synchronous>, transform_indices = @transform_1, window_bounds = array<i64: 9, 4, 3>}, {pipeline_mode = #tpu.pipeline_mode<synchronous>, transform_indices = @transform_2, window_bounds = array<i64: 204, 1>}, {pipeline_mode = #tpu.pipeline_mode<synchronous>, transform_indices = @transform_3, window_bounds = array<i64: 256, 64>}, {pipeline_mode = #tpu.pipeline_mode<synchronous>, transform_indices = @transform_4, window_bounds = array<i64: 64, 16>}, {pipeline_mode = #tpu.pipeline_mode<synchronous>, transform_indices = @transform_5, window_bounds = array<i64: 4, 16, 64>}, {pipeline_mode = #tpu.pipeline_mode<synchronous>, transform_indices = @transform_6, window_bounds = array<i64: 4, 64, 256>}, {pipeline_mode = #tpu.pipeline_mode<synchronous>, transform_indices = @transform_7, window_bounds = array<i64: 9, 4, 4>}, {pipeline_mode = #tpu.pipeline_mode<synchronous>, transform_indices = @transform_8, window_bounds = array<i64: 9, 8, 8>}, {pipeline_mode = #tpu.pipeline_mode<synchronous>, transform_indices = @transform_9, window_bounds = array<i64: 9, 8, 4>}, {pipeline_mode = #tpu.pipeline_mode<synchronous>, transform_indices = @transform_10, window_bounds = array<i64: 9, 16, 8>}, {pipeline_mode = #tpu.pipeline_mode<synchronous>, transform_indices = @transform_11, window_bounds = array<i64: 9, 16, 16>}, {pipeline_mode = #tpu.pipeline_mode<synchronous>, transform_indices = @transform_12, window_bounds = array<i64: 9, 8, 16>}, {pipeline_mode = #tpu.pipeline_mode<synchronous>, transform_indices = @transform_13, window_bounds = array<i64: 9, 4, 8>}, {pipeline_mode = #tpu.pipeline_mode<synchronous>, transform_indices = @transform_14, window_bounds = array<i64: 9, 8, 8>}, {pipeline_mode = #tpu.pipeline_mode<synchronous>, transform_indices = @transform_15, window_bounds = array<i64: 9, 4, 4>}, {transform_indices = @transform_16, window_bounds = array<i64: 1, 16, 16>}, {transform_indices = @transform_17, window_bounds = array<i64: 1, 8, 64>}, {transform_indices = @transform_18, window_bounds = array<i64: 1, 4, 256>}]} {
    %c0 = arith.constant 0 : index
    %c0_0 = arith.constant 0 : index
    %c0_1 = arith.constant 0 : index
    %0 = vector.load %arg1[%c0, %c0_0, %c0_1] : memref<1x3x256xf32, #tpu.memory_space<vmem>>, vector<1x3x256xf32>
    %1 = vector.shape_cast %0 : vector<1x3x256xf32> to vector<3x256xf32>
    %cst = arith.constant 0.000000e+00 : f32
    %2 = vector.broadcast %cst : f32 to vector<3x17xf32>
    %3 = vector.extract_strided_slice %1 {offsets = [0, 0], sizes = [3, 239], strides = [1, 1]} : vector<3x256xf32> to vector<3x239xf32>
    %4 = tpu.concatenate %2, %3 in 1 : vector<3x17xf32>, vector<3x239xf32> -> vector<3x256xf32>
    %5 = tpu.iota {dimensions = array<i32: 1>} : vector<1x256xi32>
    %c15_i32 = arith.constant 15 : i32
    %6 = vector.broadcast %c15_i32 : i32 to vector<1x256xi32>
    %7 = arith.andi %5, %6 : vector<1x256xi32>
    %c15_i32_2 = arith.constant 15 : i32
    %8 = vector.broadcast %c15_i32_2 : i32 to vector<1x256xi32>
    %9 = arith.cmpi slt, %7, %8 : vector<1x256xi32>
    %10 = arith.extui %9 : vector<1x256xi1> to vector<1x256xi32>
    %11 = arith.sitofp %10 : vector<1x256xi32> to vector<1x256xf32>
    %c1_i32 = arith.constant 1 : i32
    %12 = vector.broadcast %c1_i32 : i32 to vector<1x256xi32>
    %13 = arith.cmpi sge, %7, %12 : vector<1x256xi32>
    %14 = arith.extui %13 : vector<1x256xi1> to vector<1x256xi32>
    %15 = arith.sitofp %14 : vector<1x256xi32> to vector<1x256xf32>
    %16 = vector.broadcast %15 : vector<1x256xf32> to vector<3x256xf32>
    %17 = arith.mulf %4, %16 : vector<3x256xf32>
    %c0_3 = arith.constant 0 : index
    %c0_4 = arith.constant 0 : index
    %c0_5 = arith.constant 0 : index
    %18 = vector.load %arg2[%c0_3, %c0_4, %c0_5] : memref<9x4x3xf32, #tpu.memory_space<vmem>>, vector<1x4x3xf32>
    %19 = vector.shape_cast %18 : vector<1x4x3xf32> to vector<4x3xf32>
    %cst_6 = arith.constant dense<0.000000e+00> : vector<4x256xf32>
    %20 = tpu.matmul %19, %17, %cst_6 {dimension_numbers = #tpu.dot_dimension_numbers<[1], [0], [0], [1], [0, 0, 1, 1], [], []>} : vector<4x3xf32>, vector<3x256xf32>, vector<4x256xf32> -> vector<4x256xf32>
    %cst_7 = arith.constant 0.000000e+00 : f32
    %21 = vector.broadcast %cst_7 : f32 to vector<3x16xf32>
    %22 = vector.extract_strided_slice %1 {offsets = [0, 0], sizes = [3, 240], strides = [1, 1]} : vector<3x256xf32> to vector<3x240xf32>
    %23 = tpu.concatenate %21, %22 in 1 : vector<3x16xf32>, vector<3x240xf32> -> vector<3x256xf32>
    %c1 = arith.constant 1 : index
    %c0_8 = arith.constant 0 : index
    %c0_9 = arith.constant 0 : index
    %24 = vector.load %arg2[%c1, %c0_8, %c0_9] : memref<9x4x3xf32, #tpu.memory_space<vmem>>, vector<1x4x3xf32>
    %25 = vector.shape_cast %24 : vector<1x4x3xf32> to vector<4x3xf32>
    %cst_10 = arith.constant dense<0.000000e+00> : vector<4x256xf32>
    %26 = tpu.matmul %25, %23, %cst_10 {dimension_numbers = #tpu.dot_dimension_numbers<[1], [0], [0], [1], [0, 0, 1, 1], [], []>} : vector<4x3xf32>, vector<3x256xf32>, vector<4x256xf32> -> vector<4x256xf32>
    %27 = arith.addf %20, %26 : vector<4x256xf32>
    %cst_11 = arith.constant 0.000000e+00 : f32
    %28 = vector.broadcast %cst_11 : f32 to vector<3x15xf32>
    %29 = vector.extract_strided_slice %1 {offsets = [0, 0], sizes = [3, 241], strides = [1, 1]} : vector<3x256xf32> to vector<3x241xf32>
    %30 = tpu.concatenate %28, %29 in 1 : vector<3x15xf32>, vector<3x241xf32> -> vector<3x256xf32>
    %31 = vector.broadcast %11 : vector<1x256xf32> to vector<3x256xf32>
    %32 = arith.mulf %30, %31 : vector<3x256xf32>
    %c2 = arith.constant 2 : index
    %c0_12 = arith.constant 0 : index
    %c0_13 = arith.constant 0 : index
    %33 = vector.load %arg2[%c2, %c0_12, %c0_13] : memref<9x4x3xf32, #tpu.memory_space<vmem>>, vector<1x4x3xf32>
    %34 = vector.shape_cast %33 : vector<1x4x3xf32> to vector<4x3xf32>
    %cst_14 = arith.constant dense<0.000000e+00> : vector<4x256xf32>
    %35 = tpu.matmul %34, %32, %cst_14 {dimension_numbers = #tpu.dot_dimension_numbers<[1], [0], [0], [1], [0, 0, 1, 1], [], []>} : vector<4x3xf32>, vector<3x256xf32>, vector<4x256xf32> -> vector<4x256xf32>
    %36 = arith.addf %27, %35 : vector<4x256xf32>
    %cst_15 = arith.constant 0.000000e+00 : f32
    %37 = vector.broadcast %cst_15 : f32 to vector<3x1xf32>
    %38 = vector.extract_strided_slice %1 {offsets = [0, 0], sizes = [3, 255], strides = [1, 1]} : vector<3x256xf32> to vector<3x255xf32>
    %39 = tpu.concatenate %37, %38 in 1 : vector<3x1xf32>, vector<3x255xf32> -> vector<3x256xf32>
    %40 = vector.broadcast %15 : vector<1x256xf32> to vector<3x256xf32>
    %41 = arith.mulf %39, %40 : vector<3x256xf32>
    %c3 = arith.constant 3 : index
    %c0_16 = arith.constant 0 : index
    %c0_17 = arith.constant 0 : index
    %42 = vector.load %arg2[%c3, %c0_16, %c0_17] : memref<9x4x3xf32, #tpu.memory_space<vmem>>, vector<1x4x3xf32>
    %43 = vector.shape_cast %42 : vector<1x4x3xf32> to vector<4x3xf32>
    %cst_18 = arith.constant dense<0.000000e+00> : vector<4x256xf32>
    %44 = tpu.matmul %43, %41, %cst_18 {dimension_numbers = #tpu.dot_dimension_numbers<[1], [0], [0], [1], [0, 0, 1, 1], [], []>} : vector<4x3xf32>, vector<3x256xf32>, vector<4x256xf32> -> vector<4x256xf32>
    %45 = arith.addf %36, %44 : vector<4x256xf32>
    %c4 = arith.constant 4 : index
    %c0_19 = arith.constant 0 : index
    %c0_20 = arith.constant 0 : index
    %46 = vector.load %arg2[%c4, %c0_19, %c0_20] : memref<9x4x3xf32, #tpu.memory_space<vmem>>, vector<1x4x3xf32>
    %47 = vector.shape_cast %46 : vector<1x4x3xf32> to vector<4x3xf32>
    %cst_21 = arith.constant dense<0.000000e+00> : vector<4x256xf32>
    %48 = tpu.matmul %47, %1, %cst_21 {dimension_numbers = #tpu.dot_dimension_numbers<[1], [0], [0], [1], [0, 0, 1, 1], [], []>} : vector<4x3xf32>, vector<3x256xf32>, vector<4x256xf32> -> vector<4x256xf32>
    %49 = arith.addf %45, %48 : vector<4x256xf32>
    %50 = vector.extract_strided_slice %1 {offsets = [0, 1], sizes = [3, 255], strides = [1, 1]} : vector<3x256xf32> to vector<3x255xf32>
    %cst_22 = arith.constant 0.000000e+00 : f32
    %51 = vector.broadcast %cst_22 : f32 to vector<3x1xf32>
    %52 = tpu.concatenate %50, %51 in 1 : vector<3x255xf32>, vector<3x1xf32> -> vector<3x256xf32>
    %53 = vector.broadcast %11 : vector<1x256xf32> to vector<3x256xf32>
    %54 = arith.mulf %52, %53 : vector<3x256xf32>
    %c5 = arith.constant 5 : index
    %c0_23 = arith.constant 0 : index
    %c0_24 = arith.constant 0 : index
    %55 = vector.load %arg2[%c5, %c0_23, %c0_24] : memref<9x4x3xf32, #tpu.memory_space<vmem>>, vector<1x4x3xf32>
    %56 = vector.shape_cast %55 : vector<1x4x3xf32> to vector<4x3xf32>
    %cst_25 = arith.constant dense<0.000000e+00> : vector<4x256xf32>
    %57 = tpu.matmul %56, %54, %cst_25 {dimension_numbers = #tpu.dot_dimension_numbers<[1], [0], [0], [1], [0, 0, 1, 1], [], []>} : vector<4x3xf32>, vector<3x256xf32>, vector<4x256xf32> -> vector<4x256xf32>
    %58 = arith.addf %49, %57 : vector<4x256xf32>
    %59 = vector.extract_strided_slice %1 {offsets = [0, 15], sizes = [3, 241], strides = [1, 1]} : vector<3x256xf32> to vector<3x241xf32>
    %cst_26 = arith.constant 0.000000e+00 : f32
    %60 = vector.broadcast %cst_26 : f32 to vector<3x15xf32>
    %61 = tpu.concatenate %59, %60 in 1 : vector<3x241xf32>, vector<3x15xf32> -> vector<3x256xf32>
    %62 = vector.broadcast %15 : vector<1x256xf32> to vector<3x256xf32>
    %63 = arith.mulf %61, %62 : vector<3x256xf32>
    %c6 = arith.constant 6 : index
    %c0_27 = arith.constant 0 : index
    %c0_28 = arith.constant 0 : index
    %64 = vector.load %arg2[%c6, %c0_27, %c0_28] : memref<9x4x3xf32, #tpu.memory_space<vmem>>, vector<1x4x3xf32>
    %65 = vector.shape_cast %64 : vector<1x4x3xf32> to vector<4x3xf32>
    %cst_29 = arith.constant dense<0.000000e+00> : vector<4x256xf32>
    %66 = tpu.matmul %65, %63, %cst_29 {dimension_numbers = #tpu.dot_dimension_numbers<[1], [0], [0], [1], [0, 0, 1, 1], [], []>} : vector<4x3xf32>, vector<3x256xf32>, vector<4x256xf32> -> vector<4x256xf32>
    %67 = arith.addf %58, %66 : vector<4x256xf32>
    %68 = vector.extract_strided_slice %1 {offsets = [0, 16], sizes = [3, 240], strides = [1, 1]} : vector<3x256xf32> to vector<3x240xf32>
    %cst_30 = arith.constant 0.000000e+00 : f32
    %69 = vector.broadcast %cst_30 : f32 to vector<3x16xf32>
    %70 = tpu.concatenate %68, %69 in 1 : vector<3x240xf32>, vector<3x16xf32> -> vector<3x256xf32>
    %c7 = arith.constant 7 : index
    %c0_31 = arith.constant 0 : index
    %c0_32 = arith.constant 0 : index
    %71 = vector.load %arg2[%c7, %c0_31, %c0_32] : memref<9x4x3xf32, #tpu.memory_space<vmem>>, vector<1x4x3xf32>
    %72 = vector.shape_cast %71 : vector<1x4x3xf32> to vector<4x3xf32>
    %cst_33 = arith.constant dense<0.000000e+00> : vector<4x256xf32>
    %73 = tpu.matmul %72, %70, %cst_33 {dimension_numbers = #tpu.dot_dimension_numbers<[1], [0], [0], [1], [0, 0, 1, 1], [], []>} : vector<4x3xf32>, vector<3x256xf32>, vector<4x256xf32> -> vector<4x256xf32>
    %74 = arith.addf %67, %73 : vector<4x256xf32>
    %75 = vector.extract_strided_slice %1 {offsets = [0, 17], sizes = [3, 239], strides = [1, 1]} : vector<3x256xf32> to vector<3x239xf32>
    %cst_34 = arith.constant 0.000000e+00 : f32
    %76 = vector.broadcast %cst_34 : f32 to vector<3x17xf32>
    %77 = tpu.concatenate %75, %76 in 1 : vector<3x239xf32>, vector<3x17xf32> -> vector<3x256xf32>
    %78 = vector.broadcast %11 : vector<1x256xf32> to vector<3x256xf32>
    %79 = arith.mulf %77, %78 : vector<3x256xf32>
    %c8 = arith.constant 8 : index
    %c0_35 = arith.constant 0 : index
    %c0_36 = arith.constant 0 : index
    %80 = vector.load %arg2[%c8, %c0_35, %c0_36] : memref<9x4x3xf32, #tpu.memory_space<vmem>>, vector<1x4x3xf32>
    %81 = vector.shape_cast %80 : vector<1x4x3xf32> to vector<4x3xf32>
    %cst_37 = arith.constant dense<0.000000e+00> : vector<4x256xf32>
    %82 = tpu.matmul %81, %79, %cst_37 {dimension_numbers = #tpu.dot_dimension_numbers<[1], [0], [0], [1], [0, 0, 1, 1], [], []>} : vector<4x3xf32>, vector<3x256xf32>, vector<4x256xf32> -> vector<4x256xf32>
    %83 = arith.addf %74, %82 : vector<4x256xf32>
    %c0_38 = arith.constant 0 : index
    %c0_39 = arith.constant 0 : index
    %84 = vector.load %arg3[%c0_38, %c0_39] : memref<204x1xf32, #tpu.memory_space<vmem>>, vector<4x1xf32>
    %85 = vector.broadcast %84 : vector<4x1xf32> to vector<4x256xf32>
    %86 = arith.mulf %83, %85 : vector<4x256xf32>
    %c4_40 = arith.constant 4 : index
    %c0_41 = arith.constant 0 : index
    %87 = vector.load %arg3[%c4_40, %c0_41] : memref<204x1xf32, #tpu.memory_space<vmem>>, vector<4x1xf32>
    %88 = vector.broadcast %87 : vector<4x1xf32> to vector<4x256xf32>
    %89 = arith.addf %86, %88 : vector<4x256xf32>
    %cst_42 = arith.constant 0.000000e+00 : f32
    %90 = vector.broadcast %cst_42 : f32 to vector<4x256xf32>
    %91 = arith.maximumf %89, %90 : vector<4x256xf32>
    %cst_43 = arith.constant 0.000000e+00 : f32
    %92 = vector.broadcast %cst_43 : f32 to vector<4x17xf32>
    %93 = vector.extract_strided_slice %91 {offsets = [0, 0], sizes = [4, 239], strides = [1, 1]} : vector<4x256xf32> to vector<4x239xf32>
    %94 = tpu.concatenate %92, %93 in 1 : vector<4x17xf32>, vector<4x239xf32> -> vector<4x256xf32>
    %95 = vector.broadcast %15 : vector<1x256xf32> to vector<4x256xf32>
    %96 = arith.mulf %94, %95 : vector<4x256xf32>
    %c0_44 = arith.constant 0 : index
    %c0_45 = arith.constant 0 : index
    %c0_46 = arith.constant 0 : index
    %97 = vector.load %arg8[%c0_44, %c0_45, %c0_46] : memref<9x4x4xf32, #tpu.memory_space<vmem>>, vector<1x4x4xf32>
    %98 = vector.shape_cast %97 : vector<1x4x4xf32> to vector<4x4xf32>
    %cst_47 = arith.constant dense<0.000000e+00> : vector<4x256xf32>
    %99 = tpu.matmul %98, %96, %cst_47 {dimension_numbers = #tpu.dot_dimension_numbers<[1], [0], [0], [1], [0, 0, 1, 1], [], []>} : vector<4x4xf32>, vector<4x256xf32>, vector<4x256xf32> -> vector<4x256xf32>
    %cst_48 = arith.constant 0.000000e+00 : f32
    %100 = vector.broadcast %cst_48 : f32 to vector<4x16xf32>
    %101 = vector.extract_strided_slice %91 {offsets = [0, 0], sizes = [4, 240], strides = [1, 1]} : vector<4x256xf32> to vector<4x240xf32>
    %102 = tpu.concatenate %100, %101 in 1 : vector<4x16xf32>, vector<4x240xf32> -> vector<4x256xf32>
    %c1_49 = arith.constant 1 : index
    %c0_50 = arith.constant 0 : index
    %c0_51 = arith.constant 0 : index
    %103 = vector.load %arg8[%c1_49, %c0_50, %c0_51] : memref<9x4x4xf32, #tpu.memory_space<vmem>>, vector<1x4x4xf32>
    %104 = vector.shape_cast %103 : vector<1x4x4xf32> to vector<4x4xf32>
    %cst_52 = arith.constant dense<0.000000e+00> : vector<4x256xf32>
    %105 = tpu.matmul %104, %102, %cst_52 {dimension_numbers = #tpu.dot_dimension_numbers<[1], [0], [0], [1], [0, 0, 1, 1], [], []>} : vector<4x4xf32>, vector<4x256xf32>, vector<4x256xf32> -> vector<4x256xf32>
    %106 = arith.addf %99, %105 : vector<4x256xf32>
    %cst_53 = arith.constant 0.000000e+00 : f32
    %107 = vector.broadcast %cst_53 : f32 to vector<4x15xf32>
    %108 = vector.extract_strided_slice %91 {offsets = [0, 0], sizes = [4, 241], strides = [1, 1]} : vector<4x256xf32> to vector<4x241xf32>
    %109 = tpu.concatenate %107, %108 in 1 : vector<4x15xf32>, vector<4x241xf32> -> vector<4x256xf32>
    %110 = vector.broadcast %11 : vector<1x256xf32> to vector<4x256xf32>
    %111 = arith.mulf %109, %110 : vector<4x256xf32>
    %c2_54 = arith.constant 2 : index
    %c0_55 = arith.constant 0 : index
    %c0_56 = arith.constant 0 : index
    %112 = vector.load %arg8[%c2_54, %c0_55, %c0_56] : memref<9x4x4xf32, #tpu.memory_space<vmem>>, vector<1x4x4xf32>
    %113 = vector.shape_cast %112 : vector<1x4x4xf32> to vector<4x4xf32>
    %cst_57 = arith.constant dense<0.000000e+00> : vector<4x256xf32>
    %114 = tpu.matmul %113, %111, %cst_57 {dimension_numbers = #tpu.dot_dimension_numbers<[1], [0], [0], [1], [0, 0, 1, 1], [], []>} : vector<4x4xf32>, vector<4x256xf32>, vector<4x256xf32> -> vector<4x256xf32>
    %115 = arith.addf %106, %114 : vector<4x256xf32>
    %cst_58 = arith.constant 0.000000e+00 : f32
    %116 = vector.broadcast %cst_58 : f32 to vector<4x1xf32>
    %117 = vector.extract_strided_slice %91 {offsets = [0, 0], sizes = [4, 255], strides = [1, 1]} : vector<4x256xf32> to vector<4x255xf32>
    %118 = tpu.concatenate %116, %117 in 1 : vector<4x1xf32>, vector<4x255xf32> -> vector<4x256xf32>
    %119 = vector.broadcast %15 : vector<1x256xf32> to vector<4x256xf32>
    %120 = arith.mulf %118, %119 : vector<4x256xf32>
    %c3_59 = arith.constant 3 : index
    %c0_60 = arith.constant 0 : index
    %c0_61 = arith.constant 0 : index
    %121 = vector.load %arg8[%c3_59, %c0_60, %c0_61] : memref<9x4x4xf32, #tpu.memory_space<vmem>>, vector<1x4x4xf32>
    %122 = vector.shape_cast %121 : vector<1x4x4xf32> to vector<4x4xf32>
    %cst_62 = arith.constant dense<0.000000e+00> : vector<4x256xf32>
    %123 = tpu.matmul %122, %120, %cst_62 {dimension_numbers = #tpu.dot_dimension_numbers<[1], [0], [0], [1], [0, 0, 1, 1], [], []>} : vector<4x4xf32>, vector<4x256xf32>, vector<4x256xf32> -> vector<4x256xf32>
    %124 = arith.addf %115, %123 : vector<4x256xf32>
    %c4_63 = arith.constant 4 : index
    %c0_64 = arith.constant 0 : index
    %c0_65 = arith.constant 0 : index
    %125 = vector.load %arg8[%c4_63, %c0_64, %c0_65] : memref<9x4x4xf32, #tpu.memory_space<vmem>>, vector<1x4x4xf32>
    %126 = vector.shape_cast %125 : vector<1x4x4xf32> to vector<4x4xf32>
    %cst_66 = arith.constant dense<0.000000e+00> : vector<4x256xf32>
    %127 = tpu.matmul %126, %91, %cst_66 {dimension_numbers = #tpu.dot_dimension_numbers<[1], [0], [0], [1], [0, 0, 1, 1], [], []>} : vector<4x4xf32>, vector<4x256xf32>, vector<4x256xf32> -> vector<4x256xf32>
    %128 = arith.addf %124, %127 : vector<4x256xf32>
    %129 = vector.extract_strided_slice %91 {offsets = [0, 1], sizes = [4, 255], strides = [1, 1]} : vector<4x256xf32> to vector<4x255xf32>
    %cst_67 = arith.constant 0.000000e+00 : f32
    %130 = vector.broadcast %cst_67 : f32 to vector<4x1xf32>
    %131 = tpu.concatenate %129, %130 in 1 : vector<4x255xf32>, vector<4x1xf32> -> vector<4x256xf32>
    %132 = vector.broadcast %11 : vector<1x256xf32> to vector<4x256xf32>
    %133 = arith.mulf %131, %132 : vector<4x256xf32>
    %c5_68 = arith.constant 5 : index
    %c0_69 = arith.constant 0 : index
    %c0_70 = arith.constant 0 : index
    %134 = vector.load %arg8[%c5_68, %c0_69, %c0_70] : memref<9x4x4xf32, #tpu.memory_space<vmem>>, vector<1x4x4xf32>
    %135 = vector.shape_cast %134 : vector<1x4x4xf32> to vector<4x4xf32>
    %cst_71 = arith.constant dense<0.000000e+00> : vector<4x256xf32>
    %136 = tpu.matmul %135, %133, %cst_71 {dimension_numbers = #tpu.dot_dimension_numbers<[1], [0], [0], [1], [0, 0, 1, 1], [], []>} : vector<4x4xf32>, vector<4x256xf32>, vector<4x256xf32> -> vector<4x256xf32>
    %137 = arith.addf %128, %136 : vector<4x256xf32>
    %138 = vector.extract_strided_slice %91 {offsets = [0, 15], sizes = [4, 241], strides = [1, 1]} : vector<4x256xf32> to vector<4x241xf32>
    %cst_72 = arith.constant 0.000000e+00 : f32
    %139 = vector.broadcast %cst_72 : f32 to vector<4x15xf32>
    %140 = tpu.concatenate %138, %139 in 1 : vector<4x241xf32>, vector<4x15xf32> -> vector<4x256xf32>
    %141 = vector.broadcast %15 : vector<1x256xf32> to vector<4x256xf32>
    %142 = arith.mulf %140, %141 : vector<4x256xf32>
    %c6_73 = arith.constant 6 : index
    %c0_74 = arith.constant 0 : index
    %c0_75 = arith.constant 0 : index
    %143 = vector.load %arg8[%c6_73, %c0_74, %c0_75] : memref<9x4x4xf32, #tpu.memory_space<vmem>>, vector<1x4x4xf32>
    %144 = vector.shape_cast %143 : vector<1x4x4xf32> to vector<4x4xf32>
    %cst_76 = arith.constant dense<0.000000e+00> : vector<4x256xf32>
    %145 = tpu.matmul %144, %142, %cst_76 {dimension_numbers = #tpu.dot_dimension_numbers<[1], [0], [0], [1], [0, 0, 1, 1], [], []>} : vector<4x4xf32>, vector<4x256xf32>, vector<4x256xf32> -> vector<4x256xf32>
    %146 = arith.addf %137, %145 : vector<4x256xf32>
    %147 = vector.extract_strided_slice %91 {offsets = [0, 16], sizes = [4, 240], strides = [1, 1]} : vector<4x256xf32> to vector<4x240xf32>
    %cst_77 = arith.constant 0.000000e+00 : f32
    %148 = vector.broadcast %cst_77 : f32 to vector<4x16xf32>
    %149 = tpu.concatenate %147, %148 in 1 : vector<4x240xf32>, vector<4x16xf32> -> vector<4x256xf32>
    %c7_78 = arith.constant 7 : index
    %c0_79 = arith.constant 0 : index
    %c0_80 = arith.constant 0 : index
    %150 = vector.load %arg8[%c7_78, %c0_79, %c0_80] : memref<9x4x4xf32, #tpu.memory_space<vmem>>, vector<1x4x4xf32>
    %151 = vector.shape_cast %150 : vector<1x4x4xf32> to vector<4x4xf32>
    %cst_81 = arith.constant dense<0.000000e+00> : vector<4x256xf32>
    %152 = tpu.matmul %151, %149, %cst_81 {dimension_numbers = #tpu.dot_dimension_numbers<[1], [0], [0], [1], [0, 0, 1, 1], [], []>} : vector<4x4xf32>, vector<4x256xf32>, vector<4x256xf32> -> vector<4x256xf32>
    %153 = arith.addf %146, %152 : vector<4x256xf32>
    %154 = vector.extract_strided_slice %91 {offsets = [0, 17], sizes = [4, 239], strides = [1, 1]} : vector<4x256xf32> to vector<4x239xf32>
    %cst_82 = arith.constant 0.000000e+00 : f32
    %155 = vector.broadcast %cst_82 : f32 to vector<4x17xf32>
    %156 = tpu.concatenate %154, %155 in 1 : vector<4x239xf32>, vector<4x17xf32> -> vector<4x256xf32>
    %157 = vector.broadcast %11 : vector<1x256xf32> to vector<4x256xf32>
    %158 = arith.mulf %156, %157 : vector<4x256xf32>
    %c8_83 = arith.constant 8 : index
    %c0_84 = arith.constant 0 : index
    %c0_85 = arith.constant 0 : index
    %159 = vector.load %arg8[%c8_83, %c0_84, %c0_85] : memref<9x4x4xf32, #tpu.memory_space<vmem>>, vector<1x4x4xf32>
    %160 = vector.shape_cast %159 : vector<1x4x4xf32> to vector<4x4xf32>
    %cst_86 = arith.constant dense<0.000000e+00> : vector<4x256xf32>
    %161 = tpu.matmul %160, %158, %cst_86 {dimension_numbers = #tpu.dot_dimension_numbers<[1], [0], [0], [1], [0, 0, 1, 1], [], []>} : vector<4x4xf32>, vector<4x256xf32>, vector<4x256xf32> -> vector<4x256xf32>
    %162 = arith.addf %153, %161 : vector<4x256xf32>
    %c8_87 = arith.constant 8 : index
    %c0_88 = arith.constant 0 : index
    %163 = vector.load %arg3[%c8_87, %c0_88] : memref<204x1xf32, #tpu.memory_space<vmem>>, vector<4x1xf32>
    %164 = vector.broadcast %163 : vector<4x1xf32> to vector<4x256xf32>
    %165 = arith.mulf %162, %164 : vector<4x256xf32>
    %c12 = arith.constant 12 : index
    %c0_89 = arith.constant 0 : index
    %166 = vector.load %arg3[%c12, %c0_89] : memref<204x1xf32, #tpu.memory_space<vmem>>, vector<4x1xf32>
    %167 = vector.broadcast %166 : vector<4x1xf32> to vector<4x256xf32>
    %168 = arith.addf %165, %167 : vector<4x256xf32>
    %cst_90 = arith.constant 0.000000e+00 : f32
    %169 = vector.broadcast %cst_90 : f32 to vector<4x256xf32>
    %170 = arith.maximumf %168, %169 : vector<4x256xf32>
    %cst_91 = arith.constant 0.000000e+00 : f32
    %171 = vector.broadcast %cst_91 : f32 to vector<4x17xf32>
    %172 = vector.extract_strided_slice %170 {offsets = [0, 0], sizes = [4, 239], strides = [1, 1]} : vector<4x256xf32> to vector<4x239xf32>
    %173 = tpu.concatenate %171, %172 in 1 : vector<4x17xf32>, vector<4x239xf32> -> vector<4x256xf32>
    %174 = vector.broadcast %15 : vector<1x256xf32> to vector<4x256xf32>
    %175 = arith.mulf %173, %174 : vector<4x256xf32>
    %c0_92 = arith.constant 0 : index
    %c0_93 = arith.constant 0 : index
    %c0_94 = arith.constant 0 : index
    %176 = vector.load %arg8[%c0_92, %c0_93, %c0_94] : memref<9x4x4xf32, #tpu.memory_space<vmem>>, vector<1x4x4xf32>
    %177 = vector.shape_cast %176 : vector<1x4x4xf32> to vector<4x4xf32>
    %cst_95 = arith.constant dense<0.000000e+00> : vector<4x256xf32>
    %178 = tpu.matmul %177, %175, %cst_95 {dimension_numbers = #tpu.dot_dimension_numbers<[1], [0], [0], [1], [0, 0, 1, 1], [], []>} : vector<4x4xf32>, vector<4x256xf32>, vector<4x256xf32> -> vector<4x256xf32>
    %cst_96 = arith.constant 0.000000e+00 : f32
    %179 = vector.broadcast %cst_96 : f32 to vector<4x16xf32>
    %180 = vector.extract_strided_slice %170 {offsets = [0, 0], sizes = [4, 240], strides = [1, 1]} : vector<4x256xf32> to vector<4x240xf32>
    %181 = tpu.concatenate %179, %180 in 1 : vector<4x16xf32>, vector<4x240xf32> -> vector<4x256xf32>
    %c1_97 = arith.constant 1 : index
    %c0_98 = arith.constant 0 : index
    %c0_99 = arith.constant 0 : index
    %182 = vector.load %arg8[%c1_97, %c0_98, %c0_99] : memref<9x4x4xf32, #tpu.memory_space<vmem>>, vector<1x4x4xf32>
    %183 = vector.shape_cast %182 : vector<1x4x4xf32> to vector<4x4xf32>
    %cst_100 = arith.constant dense<0.000000e+00> : vector<4x256xf32>
    %184 = tpu.matmul %183, %181, %cst_100 {dimension_numbers = #tpu.dot_dimension_numbers<[1], [0], [0], [1], [0, 0, 1, 1], [], []>} : vector<4x4xf32>, vector<4x256xf32>, vector<4x256xf32> -> vector<4x256xf32>
    %185 = arith.addf %178, %184 : vector<4x256xf32>
    %cst_101 = arith.constant 0.000000e+00 : f32
    %186 = vector.broadcast %cst_101 : f32 to vector<4x15xf32>
    %187 = vector.extract_strided_slice %170 {offsets = [0, 0], sizes = [4, 241], strides = [1, 1]} : vector<4x256xf32> to vector<4x241xf32>
    %188 = tpu.concatenate %186, %187 in 1 : vector<4x15xf32>, vector<4x241xf32> -> vector<4x256xf32>
    %189 = vector.broadcast %11 : vector<1x256xf32> to vector<4x256xf32>
    %190 = arith.mulf %188, %189 : vector<4x256xf32>
    %c2_102 = arith.constant 2 : index
    %c0_103 = arith.constant 0 : index
    %c0_104 = arith.constant 0 : index
    %191 = vector.load %arg8[%c2_102, %c0_103, %c0_104] : memref<9x4x4xf32, #tpu.memory_space<vmem>>, vector<1x4x4xf32>
    %192 = vector.shape_cast %191 : vector<1x4x4xf32> to vector<4x4xf32>
    %cst_105 = arith.constant dense<0.000000e+00> : vector<4x256xf32>
    %193 = tpu.matmul %192, %190, %cst_105 {dimension_numbers = #tpu.dot_dimension_numbers<[1], [0], [0], [1], [0, 0, 1, 1], [], []>} : vector<4x4xf32>, vector<4x256xf32>, vector<4x256xf32> -> vector<4x256xf32>
    %194 = arith.addf %185, %193 : vector<4x256xf32>
    %cst_106 = arith.constant 0.000000e+00 : f32
    %195 = vector.broadcast %cst_106 : f32 to vector<4x1xf32>
    %196 = vector.extract_strided_slice %170 {offsets = [0, 0], sizes = [4, 255], strides = [1, 1]} : vector<4x256xf32> to vector<4x255xf32>
    %197 = tpu.concatenate %195, %196 in 1 : vector<4x1xf32>, vector<4x255xf32> -> vector<4x256xf32>
    %198 = vector.broadcast %15 : vector<1x256xf32> to vector<4x256xf32>
    %199 = arith.mulf %197, %198 : vector<4x256xf32>
    %c3_107 = arith.constant 3 : index
    %c0_108 = arith.constant 0 : index
    %c0_109 = arith.constant 0 : index
    %200 = vector.load %arg8[%c3_107, %c0_108, %c0_109] : memref<9x4x4xf32, #tpu.memory_space<vmem>>, vector<1x4x4xf32>
    %201 = vector.shape_cast %200 : vector<1x4x4xf32> to vector<4x4xf32>
    %cst_110 = arith.constant dense<0.000000e+00> : vector<4x256xf32>
    %202 = tpu.matmul %201, %199, %cst_110 {dimension_numbers = #tpu.dot_dimension_numbers<[1], [0], [0], [1], [0, 0, 1, 1], [], []>} : vector<4x4xf32>, vector<4x256xf32>, vector<4x256xf32> -> vector<4x256xf32>
    %203 = arith.addf %194, %202 : vector<4x256xf32>
    %c4_111 = arith.constant 4 : index
    %c0_112 = arith.constant 0 : index
    %c0_113 = arith.constant 0 : index
    %204 = vector.load %arg8[%c4_111, %c0_112, %c0_113] : memref<9x4x4xf32, #tpu.memory_space<vmem>>, vector<1x4x4xf32>
    %205 = vector.shape_cast %204 : vector<1x4x4xf32> to vector<4x4xf32>
    %cst_114 = arith.constant dense<0.000000e+00> : vector<4x256xf32>
    %206 = tpu.matmul %205, %170, %cst_114 {dimension_numbers = #tpu.dot_dimension_numbers<[1], [0], [0], [1], [0, 0, 1, 1], [], []>} : vector<4x4xf32>, vector<4x256xf32>, vector<4x256xf32> -> vector<4x256xf32>
    %207 = arith.addf %203, %206 : vector<4x256xf32>
    %208 = vector.extract_strided_slice %170 {offsets = [0, 1], sizes = [4, 255], strides = [1, 1]} : vector<4x256xf32> to vector<4x255xf32>
    %cst_115 = arith.constant 0.000000e+00 : f32
    %209 = vector.broadcast %cst_115 : f32 to vector<4x1xf32>
    %210 = tpu.concatenate %208, %209 in 1 : vector<4x255xf32>, vector<4x1xf32> -> vector<4x256xf32>
    %211 = vector.broadcast %11 : vector<1x256xf32> to vector<4x256xf32>
    %212 = arith.mulf %210, %211 : vector<4x256xf32>
    %c5_116 = arith.constant 5 : index
    %c0_117 = arith.constant 0 : index
    %c0_118 = arith.constant 0 : index
    %213 = vector.load %arg8[%c5_116, %c0_117, %c0_118] : memref<9x4x4xf32, #tpu.memory_space<vmem>>, vector<1x4x4xf32>
    %214 = vector.shape_cast %213 : vector<1x4x4xf32> to vector<4x4xf32>
    %cst_119 = arith.constant dense<0.000000e+00> : vector<4x256xf32>
    %215 = tpu.matmul %214, %212, %cst_119 {dimension_numbers = #tpu.dot_dimension_numbers<[1], [0], [0], [1], [0, 0, 1, 1], [], []>} : vector<4x4xf32>, vector<4x256xf32>, vector<4x256xf32> -> vector<4x256xf32>
    %216 = arith.addf %207, %215 : vector<4x256xf32>
    %217 = vector.extract_strided_slice %170 {offsets = [0, 15], sizes = [4, 241], strides = [1, 1]} : vector<4x256xf32> to vector<4x241xf32>
    %cst_120 = arith.constant 0.000000e+00 : f32
    %218 = vector.broadcast %cst_120 : f32 to vector<4x15xf32>
    %219 = tpu.concatenate %217, %218 in 1 : vector<4x241xf32>, vector<4x15xf32> -> vector<4x256xf32>
    %220 = vector.broadcast %15 : vector<1x256xf32> to vector<4x256xf32>
    %221 = arith.mulf %219, %220 : vector<4x256xf32>
    %c6_121 = arith.constant 6 : index
    %c0_122 = arith.constant 0 : index
    %c0_123 = arith.constant 0 : index
    %222 = vector.load %arg8[%c6_121, %c0_122, %c0_123] : memref<9x4x4xf32, #tpu.memory_space<vmem>>, vector<1x4x4xf32>
    %223 = vector.shape_cast %222 : vector<1x4x4xf32> to vector<4x4xf32>
    %cst_124 = arith.constant dense<0.000000e+00> : vector<4x256xf32>
    %224 = tpu.matmul %223, %221, %cst_124 {dimension_numbers = #tpu.dot_dimension_numbers<[1], [0], [0], [1], [0, 0, 1, 1], [], []>} : vector<4x4xf32>, vector<4x256xf32>, vector<4x256xf32> -> vector<4x256xf32>
    %225 = arith.addf %216, %224 : vector<4x256xf32>
    %226 = vector.extract_strided_slice %170 {offsets = [0, 16], sizes = [4, 240], strides = [1, 1]} : vector<4x256xf32> to vector<4x240xf32>
    %cst_125 = arith.constant 0.000000e+00 : f32
    %227 = vector.broadcast %cst_125 : f32 to vector<4x16xf32>
    %228 = tpu.concatenate %226, %227 in 1 : vector<4x240xf32>, vector<4x16xf32> -> vector<4x256xf32>
    %c7_126 = arith.constant 7 : index
    %c0_127 = arith.constant 0 : index
    %c0_128 = arith.constant 0 : index
    %229 = vector.load %arg8[%c7_126, %c0_127, %c0_128] : memref<9x4x4xf32, #tpu.memory_space<vmem>>, vector<1x4x4xf32>
    %230 = vector.shape_cast %229 : vector<1x4x4xf32> to vector<4x4xf32>
    %cst_129 = arith.constant dense<0.000000e+00> : vector<4x256xf32>
    %231 = tpu.matmul %230, %228, %cst_129 {dimension_numbers = #tpu.dot_dimension_numbers<[1], [0], [0], [1], [0, 0, 1, 1], [], []>} : vector<4x4xf32>, vector<4x256xf32>, vector<4x256xf32> -> vector<4x256xf32>
    %232 = arith.addf %225, %231 : vector<4x256xf32>
    %233 = vector.extract_strided_slice %170 {offsets = [0, 17], sizes = [4, 239], strides = [1, 1]} : vector<4x256xf32> to vector<4x239xf32>
    %cst_130 = arith.constant 0.000000e+00 : f32
    %234 = vector.broadcast %cst_130 : f32 to vector<4x17xf32>
    %235 = tpu.concatenate %233, %234 in 1 : vector<4x239xf32>, vector<4x17xf32> -> vector<4x256xf32>
    %236 = vector.broadcast %11 : vector<1x256xf32> to vector<4x256xf32>
    %237 = arith.mulf %235, %236 : vector<4x256xf32>
    %c8_131 = arith.constant 8 : index
    %c0_132 = arith.constant 0 : index
    %c0_133 = arith.constant 0 : index
    %238 = vector.load %arg8[%c8_131, %c0_132, %c0_133] : memref<9x4x4xf32, #tpu.memory_space<vmem>>, vector<1x4x4xf32>
    %239 = vector.shape_cast %238 : vector<1x4x4xf32> to vector<4x4xf32>
    %cst_134 = arith.constant dense<0.000000e+00> : vector<4x256xf32>
    %240 = tpu.matmul %239, %237, %cst_134 {dimension_numbers = #tpu.dot_dimension_numbers<[1], [0], [0], [1], [0, 0, 1, 1], [], []>} : vector<4x4xf32>, vector<4x256xf32>, vector<4x256xf32> -> vector<4x256xf32>
    %241 = arith.addf %232, %240 : vector<4x256xf32>
    %c16 = arith.constant 16 : index
    %c0_135 = arith.constant 0 : index
    %242 = vector.load %arg3[%c16, %c0_135] : memref<204x1xf32, #tpu.memory_space<vmem>>, vector<4x1xf32>
    %243 = vector.broadcast %242 : vector<4x1xf32> to vector<4x256xf32>
    %244 = arith.mulf %241, %243 : vector<4x256xf32>
    %c20 = arith.constant 20 : index
    %c0_136 = arith.constant 0 : index
    %245 = vector.load %arg3[%c20, %c0_136] : memref<204x1xf32, #tpu.memory_space<vmem>>, vector<4x1xf32>
    %246 = vector.broadcast %245 : vector<4x1xf32> to vector<4x256xf32>
    %247 = arith.addf %244, %246 : vector<4x256xf32>
    %248 = arith.addf %247, %91 : vector<4x256xf32>
    %cst_137 = arith.constant 0.000000e+00 : f32
    %249 = vector.broadcast %cst_137 : f32 to vector<4x256xf32>
    %250 = arith.maximumf %248, %249 : vector<4x256xf32>
    %cst_138 = arith.constant 0.000000e+00 : f32
    %251 = vector.broadcast %cst_138 : f32 to vector<4x17xf32>
    %252 = vector.extract_strided_slice %250 {offsets = [0, 0], sizes = [4, 239], strides = [1, 1]} : vector<4x256xf32> to vector<4x239xf32>
    %253 = tpu.concatenate %251, %252 in 1 : vector<4x17xf32>, vector<4x239xf32> -> vector<4x256xf32>
    %254 = vector.broadcast %15 : vector<1x256xf32> to vector<4x256xf32>
    %255 = arith.mulf %253, %254 : vector<4x256xf32>
    %c0_139 = arith.constant 0 : index
    %c0_140 = arith.constant 0 : index
    %c0_141 = arith.constant 0 : index
    %256 = vector.load %arg10[%c0_139, %c0_140, %c0_141] : memref<9x8x4xf32, #tpu.memory_space<vmem>>, vector<1x8x4xf32>
    %257 = vector.shape_cast %256 : vector<1x8x4xf32> to vector<8x4xf32>
    %cst_142 = arith.constant dense<0.000000e+00> : vector<8x256xf32>
    %258 = tpu.matmul %257, %255, %cst_142 {dimension_numbers = #tpu.dot_dimension_numbers<[1], [0], [0], [1], [0, 0, 1, 1], [], []>} : vector<8x4xf32>, vector<4x256xf32>, vector<8x256xf32> -> vector<8x256xf32>
    %cst_143 = arith.constant 0.000000e+00 : f32
    %259 = vector.broadcast %cst_143 : f32 to vector<4x16xf32>
    %260 = vector.extract_strided_slice %250 {offsets = [0, 0], sizes = [4, 240], strides = [1, 1]} : vector<4x256xf32> to vector<4x240xf32>
    %261 = tpu.concatenate %259, %260 in 1 : vector<4x16xf32>, vector<4x240xf32> -> vector<4x256xf32>
    %c1_144 = arith.constant 1 : index
    %c0_145 = arith.constant 0 : index
    %c0_146 = arith.constant 0 : index
    %262 = vector.load %arg10[%c1_144, %c0_145, %c0_146] : memref<9x8x4xf32, #tpu.memory_space<vmem>>, vector<1x8x4xf32>
    %263 = vector.shape_cast %262 : vector<1x8x4xf32> to vector<8x4xf32>
    %cst_147 = arith.constant dense<0.000000e+00> : vector<8x256xf32>
    %264 = tpu.matmul %263, %261, %cst_147 {dimension_numbers = #tpu.dot_dimension_numbers<[1], [0], [0], [1], [0, 0, 1, 1], [], []>} : vector<8x4xf32>, vector<4x256xf32>, vector<8x256xf32> -> vector<8x256xf32>
    %265 = arith.addf %258, %264 : vector<8x256xf32>
    %cst_148 = arith.constant 0.000000e+00 : f32
    %266 = vector.broadcast %cst_148 : f32 to vector<4x15xf32>
    %267 = vector.extract_strided_slice %250 {offsets = [0, 0], sizes = [4, 241], strides = [1, 1]} : vector<4x256xf32> to vector<4x241xf32>
    %268 = tpu.concatenate %266, %267 in 1 : vector<4x15xf32>, vector<4x241xf32> -> vector<4x256xf32>
    %269 = vector.broadcast %11 : vector<1x256xf32> to vector<4x256xf32>
    %270 = arith.mulf %268, %269 : vector<4x256xf32>
    %c2_149 = arith.constant 2 : index
    %c0_150 = arith.constant 0 : index
    %c0_151 = arith.constant 0 : index
    %271 = vector.load %arg10[%c2_149, %c0_150, %c0_151] : memref<9x8x4xf32, #tpu.memory_space<vmem>>, vector<1x8x4xf32>
    %272 = vector.shape_cast %271 : vector<1x8x4xf32> to vector<8x4xf32>
    %cst_152 = arith.constant dense<0.000000e+00> : vector<8x256xf32>
    %273 = tpu.matmul %272, %270, %cst_152 {dimension_numbers = #tpu.dot_dimension_numbers<[1], [0], [0], [1], [0, 0, 1, 1], [], []>} : vector<8x4xf32>, vector<4x256xf32>, vector<8x256xf32> -> vector<8x256xf32>
    %274 = arith.addf %265, %273 : vector<8x256xf32>
    %cst_153 = arith.constant 0.000000e+00 : f32
    %275 = vector.broadcast %cst_153 : f32 to vector<4x1xf32>
    %276 = vector.extract_strided_slice %250 {offsets = [0, 0], sizes = [4, 255], strides = [1, 1]} : vector<4x256xf32> to vector<4x255xf32>
    %277 = tpu.concatenate %275, %276 in 1 : vector<4x1xf32>, vector<4x255xf32> -> vector<4x256xf32>
    %278 = vector.broadcast %15 : vector<1x256xf32> to vector<4x256xf32>
    %279 = arith.mulf %277, %278 : vector<4x256xf32>
    %c3_154 = arith.constant 3 : index
    %c0_155 = arith.constant 0 : index
    %c0_156 = arith.constant 0 : index
    %280 = vector.load %arg10[%c3_154, %c0_155, %c0_156] : memref<9x8x4xf32, #tpu.memory_space<vmem>>, vector<1x8x4xf32>
    %281 = vector.shape_cast %280 : vector<1x8x4xf32> to vector<8x4xf32>
    %cst_157 = arith.constant dense<0.000000e+00> : vector<8x256xf32>
    %282 = tpu.matmul %281, %279, %cst_157 {dimension_numbers = #tpu.dot_dimension_numbers<[1], [0], [0], [1], [0, 0, 1, 1], [], []>} : vector<8x4xf32>, vector<4x256xf32>, vector<8x256xf32> -> vector<8x256xf32>
    %283 = arith.addf %274, %282 : vector<8x256xf32>
    %c4_158 = arith.constant 4 : index
    %c0_159 = arith.constant 0 : index
    %c0_160 = arith.constant 0 : index
    %284 = vector.load %arg10[%c4_158, %c0_159, %c0_160] : memref<9x8x4xf32, #tpu.memory_space<vmem>>, vector<1x8x4xf32>
    %285 = vector.shape_cast %284 : vector<1x8x4xf32> to vector<8x4xf32>
    %cst_161 = arith.constant dense<0.000000e+00> : vector<8x256xf32>
    %286 = tpu.matmul %285, %250, %cst_161 {dimension_numbers = #tpu.dot_dimension_numbers<[1], [0], [0], [1], [0, 0, 1, 1], [], []>} : vector<8x4xf32>, vector<4x256xf32>, vector<8x256xf32> -> vector<8x256xf32>
    %287 = arith.addf %283, %286 : vector<8x256xf32>
    %288 = vector.extract_strided_slice %250 {offsets = [0, 1], sizes = [4, 255], strides = [1, 1]} : vector<4x256xf32> to vector<4x255xf32>
    %cst_162 = arith.constant 0.000000e+00 : f32
    %289 = vector.broadcast %cst_162 : f32 to vector<4x1xf32>
    %290 = tpu.concatenate %288, %289 in 1 : vector<4x255xf32>, vector<4x1xf32> -> vector<4x256xf32>
    %291 = vector.broadcast %11 : vector<1x256xf32> to vector<4x256xf32>
    %292 = arith.mulf %290, %291 : vector<4x256xf32>
    %c5_163 = arith.constant 5 : index
    %c0_164 = arith.constant 0 : index
    %c0_165 = arith.constant 0 : index
    %293 = vector.load %arg10[%c5_163, %c0_164, %c0_165] : memref<9x8x4xf32, #tpu.memory_space<vmem>>, vector<1x8x4xf32>
    %294 = vector.shape_cast %293 : vector<1x8x4xf32> to vector<8x4xf32>
    %cst_166 = arith.constant dense<0.000000e+00> : vector<8x256xf32>
    %295 = tpu.matmul %294, %292, %cst_166 {dimension_numbers = #tpu.dot_dimension_numbers<[1], [0], [0], [1], [0, 0, 1, 1], [], []>} : vector<8x4xf32>, vector<4x256xf32>, vector<8x256xf32> -> vector<8x256xf32>
    %296 = arith.addf %287, %295 : vector<8x256xf32>
    %297 = vector.extract_strided_slice %250 {offsets = [0, 15], sizes = [4, 241], strides = [1, 1]} : vector<4x256xf32> to vector<4x241xf32>
    %cst_167 = arith.constant 0.000000e+00 : f32
    %298 = vector.broadcast %cst_167 : f32 to vector<4x15xf32>
    %299 = tpu.concatenate %297, %298 in 1 : vector<4x241xf32>, vector<4x15xf32> -> vector<4x256xf32>
    %300 = vector.broadcast %15 : vector<1x256xf32> to vector<4x256xf32>
    %301 = arith.mulf %299, %300 : vector<4x256xf32>
    %c6_168 = arith.constant 6 : index
    %c0_169 = arith.constant 0 : index
    %c0_170 = arith.constant 0 : index
    %302 = vector.load %arg10[%c6_168, %c0_169, %c0_170] : memref<9x8x4xf32, #tpu.memory_space<vmem>>, vector<1x8x4xf32>
    %303 = vector.shape_cast %302 : vector<1x8x4xf32> to vector<8x4xf32>
    %cst_171 = arith.constant dense<0.000000e+00> : vector<8x256xf32>
    %304 = tpu.matmul %303, %301, %cst_171 {dimension_numbers = #tpu.dot_dimension_numbers<[1], [0], [0], [1], [0, 0, 1, 1], [], []>} : vector<8x4xf32>, vector<4x256xf32>, vector<8x256xf32> -> vector<8x256xf32>
    %305 = arith.addf %296, %304 : vector<8x256xf32>
    %306 = vector.extract_strided_slice %250 {offsets = [0, 16], sizes = [4, 240], strides = [1, 1]} : vector<4x256xf32> to vector<4x240xf32>
    %cst_172 = arith.constant 0.000000e+00 : f32
    %307 = vector.broadcast %cst_172 : f32 to vector<4x16xf32>
    %308 = tpu.concatenate %306, %307 in 1 : vector<4x240xf32>, vector<4x16xf32> -> vector<4x256xf32>
    %c7_173 = arith.constant 7 : index
    %c0_174 = arith.constant 0 : index
    %c0_175 = arith.constant 0 : index
    %309 = vector.load %arg10[%c7_173, %c0_174, %c0_175] : memref<9x8x4xf32, #tpu.memory_space<vmem>>, vector<1x8x4xf32>
    %310 = vector.shape_cast %309 : vector<1x8x4xf32> to vector<8x4xf32>
    %cst_176 = arith.constant dense<0.000000e+00> : vector<8x256xf32>
    %311 = tpu.matmul %310, %308, %cst_176 {dimension_numbers = #tpu.dot_dimension_numbers<[1], [0], [0], [1], [0, 0, 1, 1], [], []>} : vector<8x4xf32>, vector<4x256xf32>, vector<8x256xf32> -> vector<8x256xf32>
    %312 = arith.addf %305, %311 : vector<8x256xf32>
    %313 = vector.extract_strided_slice %250 {offsets = [0, 17], sizes = [4, 239], strides = [1, 1]} : vector<4x256xf32> to vector<4x239xf32>
    %cst_177 = arith.constant 0.000000e+00 : f32
    %314 = vector.broadcast %cst_177 : f32 to vector<4x17xf32>
    %315 = tpu.concatenate %313, %314 in 1 : vector<4x239xf32>, vector<4x17xf32> -> vector<4x256xf32>
    %316 = vector.broadcast %11 : vector<1x256xf32> to vector<4x256xf32>
    %317 = arith.mulf %315, %316 : vector<4x256xf32>
    %c8_178 = arith.constant 8 : index
    %c0_179 = arith.constant 0 : index
    %c0_180 = arith.constant 0 : index
    %318 = vector.load %arg10[%c8_178, %c0_179, %c0_180] : memref<9x8x4xf32, #tpu.memory_space<vmem>>, vector<1x8x4xf32>
    %319 = vector.shape_cast %318 : vector<1x8x4xf32> to vector<8x4xf32>
    %cst_181 = arith.constant dense<0.000000e+00> : vector<8x256xf32>
    %320 = tpu.matmul %319, %317, %cst_181 {dimension_numbers = #tpu.dot_dimension_numbers<[1], [0], [0], [1], [0, 0, 1, 1], [], []>} : vector<8x4xf32>, vector<4x256xf32>, vector<8x256xf32> -> vector<8x256xf32>
    %321 = arith.addf %312, %320 : vector<8x256xf32>
    %c0_182 = arith.constant 0 : index
    %c0_183 = arith.constant 0 : index
    %322 = vector.load %arg4[%c0_182, %c0_183] : memref<256x64xf32, #tpu.memory_space<vmem>>, vector<256x64xf32>
    %cst_184 = arith.constant dense<0.000000e+00> : vector<8x64xf32>
    %323 = tpu.matmul %321, %322, %cst_184 {dimension_numbers = #tpu.dot_dimension_numbers<[1], [0], [0], [1], [0, 0, 1, 1], [], []>} : vector<8x256xf32>, vector<256x64xf32>, vector<8x64xf32> -> vector<8x64xf32>
    %c24 = arith.constant 24 : index
    %c0_185 = arith.constant 0 : index
    %324 = vector.load %arg3[%c24, %c0_185] : memref<204x1xf32, #tpu.memory_space<vmem>>, vector<8x1xf32>
    %325 = vector.broadcast %324 : vector<8x1xf32> to vector<8x64xf32>
    %326 = arith.addf %323, %325 : vector<8x64xf32>
    %cst_186 = arith.constant 0.000000e+00 : f32
    %327 = vector.broadcast %cst_186 : f32 to vector<8x64xf32>
    %328 = arith.maximumf %326, %327 : vector<8x64xf32>
    %cst_187 = arith.constant 0.000000e+00 : f32
    %329 = vector.broadcast %cst_187 : f32 to vector<8x9xf32>
    %330 = vector.extract_strided_slice %328 {offsets = [0, 0], sizes = [8, 55], strides = [1, 1]} : vector<8x64xf32> to vector<8x55xf32>
    %331 = tpu.concatenate %329, %330 in 1 : vector<8x9xf32>, vector<8x55xf32> -> vector<8x64xf32>
    %332 = tpu.iota {dimensions = array<i32: 1>} : vector<1x64xi32>
    %c7_i32 = arith.constant 7 : i32
    %333 = vector.broadcast %c7_i32 : i32 to vector<1x64xi32>
    %334 = arith.andi %332, %333 : vector<1x64xi32>
    %c7_i32_188 = arith.constant 7 : i32
    %335 = vector.broadcast %c7_i32_188 : i32 to vector<1x64xi32>
    %336 = arith.cmpi slt, %334, %335 : vector<1x64xi32>
    %337 = arith.extui %336 : vector<1x64xi1> to vector<1x64xi32>
    %338 = arith.sitofp %337 : vector<1x64xi32> to vector<1x64xf32>
    %c1_i32_189 = arith.constant 1 : i32
    %339 = vector.broadcast %c1_i32_189 : i32 to vector<1x64xi32>
    %340 = arith.cmpi sge, %334, %339 : vector<1x64xi32>
    %341 = arith.extui %340 : vector<1x64xi1> to vector<1x64xi32>
    %342 = arith.sitofp %341 : vector<1x64xi32> to vector<1x64xf32>
    %343 = vector.broadcast %342 : vector<1x64xf32> to vector<8x64xf32>
    %344 = arith.mulf %331, %343 : vector<8x64xf32>
    %c0_190 = arith.constant 0 : index
    %c0_191 = arith.constant 0 : index
    %c0_192 = arith.constant 0 : index
    %345 = vector.load %arg9[%c0_190, %c0_191, %c0_192] : memref<9x8x8xf32, #tpu.memory_space<vmem>>, vector<1x8x8xf32>
    %346 = vector.shape_cast %345 : vector<1x8x8xf32> to vector<8x8xf32>
    %cst_193 = arith.constant dense<0.000000e+00> : vector<8x64xf32>
    %347 = tpu.matmul %346, %344, %cst_193 {dimension_numbers = #tpu.dot_dimension_numbers<[1], [0], [0], [1], [0, 0, 1, 1], [], []>} : vector<8x8xf32>, vector<8x64xf32>, vector<8x64xf32> -> vector<8x64xf32>
    %cst_194 = arith.constant 0.000000e+00 : f32
    %348 = vector.broadcast %cst_194 : f32 to vector<8x8xf32>
    %349 = vector.extract_strided_slice %328 {offsets = [0, 0], sizes = [8, 56], strides = [1, 1]} : vector<8x64xf32> to vector<8x56xf32>
    %350 = tpu.concatenate %348, %349 in 1 : vector<8x8xf32>, vector<8x56xf32> -> vector<8x64xf32>
    %c1_195 = arith.constant 1 : index
    %c0_196 = arith.constant 0 : index
    %c0_197 = arith.constant 0 : index
    %351 = vector.load %arg9[%c1_195, %c0_196, %c0_197] : memref<9x8x8xf32, #tpu.memory_space<vmem>>, vector<1x8x8xf32>
    %352 = vector.shape_cast %351 : vector<1x8x8xf32> to vector<8x8xf32>
    %cst_198 = arith.constant dense<0.000000e+00> : vector<8x64xf32>
    %353 = tpu.matmul %352, %350, %cst_198 {dimension_numbers = #tpu.dot_dimension_numbers<[1], [0], [0], [1], [0, 0, 1, 1], [], []>} : vector<8x8xf32>, vector<8x64xf32>, vector<8x64xf32> -> vector<8x64xf32>
    %354 = arith.addf %347, %353 : vector<8x64xf32>
    %cst_199 = arith.constant 0.000000e+00 : f32
    %355 = vector.broadcast %cst_199 : f32 to vector<8x7xf32>
    %356 = vector.extract_strided_slice %328 {offsets = [0, 0], sizes = [8, 57], strides = [1, 1]} : vector<8x64xf32> to vector<8x57xf32>
    %357 = tpu.concatenate %355, %356 in 1 : vector<8x7xf32>, vector<8x57xf32> -> vector<8x64xf32>
    %358 = vector.broadcast %338 : vector<1x64xf32> to vector<8x64xf32>
    %359 = arith.mulf %357, %358 : vector<8x64xf32>
    %c2_200 = arith.constant 2 : index
    %c0_201 = arith.constant 0 : index
    %c0_202 = arith.constant 0 : index
    %360 = vector.load %arg9[%c2_200, %c0_201, %c0_202] : memref<9x8x8xf32, #tpu.memory_space<vmem>>, vector<1x8x8xf32>
    %361 = vector.shape_cast %360 : vector<1x8x8xf32> to vector<8x8xf32>
    %cst_203 = arith.constant dense<0.000000e+00> : vector<8x64xf32>
    %362 = tpu.matmul %361, %359, %cst_203 {dimension_numbers = #tpu.dot_dimension_numbers<[1], [0], [0], [1], [0, 0, 1, 1], [], []>} : vector<8x8xf32>, vector<8x64xf32>, vector<8x64xf32> -> vector<8x64xf32>
    %363 = arith.addf %354, %362 : vector<8x64xf32>
    %cst_204 = arith.constant 0.000000e+00 : f32
    %364 = vector.broadcast %cst_204 : f32 to vector<8x1xf32>
    %365 = vector.extract_strided_slice %328 {offsets = [0, 0], sizes = [8, 63], strides = [1, 1]} : vector<8x64xf32> to vector<8x63xf32>
    %366 = tpu.concatenate %364, %365 in 1 : vector<8x1xf32>, vector<8x63xf32> -> vector<8x64xf32>
    %367 = vector.broadcast %342 : vector<1x64xf32> to vector<8x64xf32>
    %368 = arith.mulf %366, %367 : vector<8x64xf32>
    %c3_205 = arith.constant 3 : index
    %c0_206 = arith.constant 0 : index
    %c0_207 = arith.constant 0 : index
    %369 = vector.load %arg9[%c3_205, %c0_206, %c0_207] : memref<9x8x8xf32, #tpu.memory_space<vmem>>, vector<1x8x8xf32>
    %370 = vector.shape_cast %369 : vector<1x8x8xf32> to vector<8x8xf32>
    %cst_208 = arith.constant dense<0.000000e+00> : vector<8x64xf32>
    %371 = tpu.matmul %370, %368, %cst_208 {dimension_numbers = #tpu.dot_dimension_numbers<[1], [0], [0], [1], [0, 0, 1, 1], [], []>} : vector<8x8xf32>, vector<8x64xf32>, vector<8x64xf32> -> vector<8x64xf32>
    %372 = arith.addf %363, %371 : vector<8x64xf32>
    %c4_209 = arith.constant 4 : index
    %c0_210 = arith.constant 0 : index
    %c0_211 = arith.constant 0 : index
    %373 = vector.load %arg9[%c4_209, %c0_210, %c0_211] : memref<9x8x8xf32, #tpu.memory_space<vmem>>, vector<1x8x8xf32>
    %374 = vector.shape_cast %373 : vector<1x8x8xf32> to vector<8x8xf32>
    %cst_212 = arith.constant dense<0.000000e+00> : vector<8x64xf32>
    %375 = tpu.matmul %374, %328, %cst_212 {dimension_numbers = #tpu.dot_dimension_numbers<[1], [0], [0], [1], [0, 0, 1, 1], [], []>} : vector<8x8xf32>, vector<8x64xf32>, vector<8x64xf32> -> vector<8x64xf32>
    %376 = arith.addf %372, %375 : vector<8x64xf32>
    %377 = vector.extract_strided_slice %328 {offsets = [0, 1], sizes = [8, 63], strides = [1, 1]} : vector<8x64xf32> to vector<8x63xf32>
    %cst_213 = arith.constant 0.000000e+00 : f32
    %378 = vector.broadcast %cst_213 : f32 to vector<8x1xf32>
    %379 = tpu.concatenate %377, %378 in 1 : vector<8x63xf32>, vector<8x1xf32> -> vector<8x64xf32>
    %380 = vector.broadcast %338 : vector<1x64xf32> to vector<8x64xf32>
    %381 = arith.mulf %379, %380 : vector<8x64xf32>
    %c5_214 = arith.constant 5 : index
    %c0_215 = arith.constant 0 : index
    %c0_216 = arith.constant 0 : index
    %382 = vector.load %arg9[%c5_214, %c0_215, %c0_216] : memref<9x8x8xf32, #tpu.memory_space<vmem>>, vector<1x8x8xf32>
    %383 = vector.shape_cast %382 : vector<1x8x8xf32> to vector<8x8xf32>
    %cst_217 = arith.constant dense<0.000000e+00> : vector<8x64xf32>
    %384 = tpu.matmul %383, %381, %cst_217 {dimension_numbers = #tpu.dot_dimension_numbers<[1], [0], [0], [1], [0, 0, 1, 1], [], []>} : vector<8x8xf32>, vector<8x64xf32>, vector<8x64xf32> -> vector<8x64xf32>
    %385 = arith.addf %376, %384 : vector<8x64xf32>
    %386 = vector.extract_strided_slice %328 {offsets = [0, 7], sizes = [8, 57], strides = [1, 1]} : vector<8x64xf32> to vector<8x57xf32>
    %cst_218 = arith.constant 0.000000e+00 : f32
    %387 = vector.broadcast %cst_218 : f32 to vector<8x7xf32>
    %388 = tpu.concatenate %386, %387 in 1 : vector<8x57xf32>, vector<8x7xf32> -> vector<8x64xf32>
    %389 = vector.broadcast %342 : vector<1x64xf32> to vector<8x64xf32>
    %390 = arith.mulf %388, %389 : vector<8x64xf32>
    %c6_219 = arith.constant 6 : index
    %c0_220 = arith.constant 0 : index
    %c0_221 = arith.constant 0 : index
    %391 = vector.load %arg9[%c6_219, %c0_220, %c0_221] : memref<9x8x8xf32, #tpu.memory_space<vmem>>, vector<1x8x8xf32>
    %392 = vector.shape_cast %391 : vector<1x8x8xf32> to vector<8x8xf32>
    %cst_222 = arith.constant dense<0.000000e+00> : vector<8x64xf32>
    %393 = tpu.matmul %392, %390, %cst_222 {dimension_numbers = #tpu.dot_dimension_numbers<[1], [0], [0], [1], [0, 0, 1, 1], [], []>} : vector<8x8xf32>, vector<8x64xf32>, vector<8x64xf32> -> vector<8x64xf32>
    %394 = arith.addf %385, %393 : vector<8x64xf32>
    %395 = vector.extract_strided_slice %328 {offsets = [0, 8], sizes = [8, 56], strides = [1, 1]} : vector<8x64xf32> to vector<8x56xf32>
    %cst_223 = arith.constant 0.000000e+00 : f32
    %396 = vector.broadcast %cst_223 : f32 to vector<8x8xf32>
    %397 = tpu.concatenate %395, %396 in 1 : vector<8x56xf32>, vector<8x8xf32> -> vector<8x64xf32>
    %c7_224 = arith.constant 7 : index
    %c0_225 = arith.constant 0 : index
    %c0_226 = arith.constant 0 : index
    %398 = vector.load %arg9[%c7_224, %c0_225, %c0_226] : memref<9x8x8xf32, #tpu.memory_space<vmem>>, vector<1x8x8xf32>
    %399 = vector.shape_cast %398 : vector<1x8x8xf32> to vector<8x8xf32>
    %cst_227 = arith.constant dense<0.000000e+00> : vector<8x64xf32>
    %400 = tpu.matmul %399, %397, %cst_227 {dimension_numbers = #tpu.dot_dimension_numbers<[1], [0], [0], [1], [0, 0, 1, 1], [], []>} : vector<8x8xf32>, vector<8x64xf32>, vector<8x64xf32> -> vector<8x64xf32>
    %401 = arith.addf %394, %400 : vector<8x64xf32>
    %402 = vector.extract_strided_slice %328 {offsets = [0, 9], sizes = [8, 55], strides = [1, 1]} : vector<8x64xf32> to vector<8x55xf32>
    %cst_228 = arith.constant 0.000000e+00 : f32
    %403 = vector.broadcast %cst_228 : f32 to vector<8x9xf32>
    %404 = tpu.concatenate %402, %403 in 1 : vector<8x55xf32>, vector<8x9xf32> -> vector<8x64xf32>
    %405 = vector.broadcast %338 : vector<1x64xf32> to vector<8x64xf32>
    %406 = arith.mulf %404, %405 : vector<8x64xf32>
    %c8_229 = arith.constant 8 : index
    %c0_230 = arith.constant 0 : index
    %c0_231 = arith.constant 0 : index
    %407 = vector.load %arg9[%c8_229, %c0_230, %c0_231] : memref<9x8x8xf32, #tpu.memory_space<vmem>>, vector<1x8x8xf32>
    %408 = vector.shape_cast %407 : vector<1x8x8xf32> to vector<8x8xf32>
    %cst_232 = arith.constant dense<0.000000e+00> : vector<8x64xf32>
    %409 = tpu.matmul %408, %406, %cst_232 {dimension_numbers = #tpu.dot_dimension_numbers<[1], [0], [0], [1], [0, 0, 1, 1], [], []>} : vector<8x8xf32>, vector<8x64xf32>, vector<8x64xf32> -> vector<8x64xf32>
    %410 = arith.addf %401, %409 : vector<8x64xf32>
    %c32 = arith.constant 32 : index
    %c0_233 = arith.constant 0 : index
    %411 = vector.load %arg3[%c32, %c0_233] : memref<204x1xf32, #tpu.memory_space<vmem>>, vector<8x1xf32>
    %412 = vector.broadcast %411 : vector<8x1xf32> to vector<8x64xf32>
    %413 = arith.mulf %410, %412 : vector<8x64xf32>
    %c40 = arith.constant 40 : index
    %c0_234 = arith.constant 0 : index
    %414 = vector.load %arg3[%c40, %c0_234] : memref<204x1xf32, #tpu.memory_space<vmem>>, vector<8x1xf32>
    %415 = vector.broadcast %414 : vector<8x1xf32> to vector<8x64xf32>
    %416 = arith.addf %413, %415 : vector<8x64xf32>
    %cst_235 = arith.constant 0.000000e+00 : f32
    %417 = vector.broadcast %cst_235 : f32 to vector<8x64xf32>
    %418 = arith.maximumf %416, %417 : vector<8x64xf32>
    %cst_236 = arith.constant 0.000000e+00 : f32
    %419 = vector.broadcast %cst_236 : f32 to vector<8x9xf32>
    %420 = vector.extract_strided_slice %418 {offsets = [0, 0], sizes = [8, 55], strides = [1, 1]} : vector<8x64xf32> to vector<8x55xf32>
    %421 = tpu.concatenate %419, %420 in 1 : vector<8x9xf32>, vector<8x55xf32> -> vector<8x64xf32>
    %422 = vector.broadcast %342 : vector<1x64xf32> to vector<8x64xf32>
    %423 = arith.mulf %421, %422 : vector<8x64xf32>
    %c0_237 = arith.constant 0 : index
    %c0_238 = arith.constant 0 : index
    %c0_239 = arith.constant 0 : index
    %424 = vector.load %arg9[%c0_237, %c0_238, %c0_239] : memref<9x8x8xf32, #tpu.memory_space<vmem>>, vector<1x8x8xf32>
    %425 = vector.shape_cast %424 : vector<1x8x8xf32> to vector<8x8xf32>
    %cst_240 = arith.constant dense<0.000000e+00> : vector<8x64xf32>
    %426 = tpu.matmul %425, %423, %cst_240 {dimension_numbers = #tpu.dot_dimension_numbers<[1], [0], [0], [1], [0, 0, 1, 1], [], []>} : vector<8x8xf32>, vector<8x64xf32>, vector<8x64xf32> -> vector<8x64xf32>
    %cst_241 = arith.constant 0.000000e+00 : f32
    %427 = vector.broadcast %cst_241 : f32 to vector<8x8xf32>
    %428 = vector.extract_strided_slice %418 {offsets = [0, 0], sizes = [8, 56], strides = [1, 1]} : vector<8x64xf32> to vector<8x56xf32>
    %429 = tpu.concatenate %427, %428 in 1 : vector<8x8xf32>, vector<8x56xf32> -> vector<8x64xf32>
    %c1_242 = arith.constant 1 : index
    %c0_243 = arith.constant 0 : index
    %c0_244 = arith.constant 0 : index
    %430 = vector.load %arg9[%c1_242, %c0_243, %c0_244] : memref<9x8x8xf32, #tpu.memory_space<vmem>>, vector<1x8x8xf32>
    %431 = vector.shape_cast %430 : vector<1x8x8xf32> to vector<8x8xf32>
    %cst_245 = arith.constant dense<0.000000e+00> : vector<8x64xf32>
    %432 = tpu.matmul %431, %429, %cst_245 {dimension_numbers = #tpu.dot_dimension_numbers<[1], [0], [0], [1], [0, 0, 1, 1], [], []>} : vector<8x8xf32>, vector<8x64xf32>, vector<8x64xf32> -> vector<8x64xf32>
    %433 = arith.addf %426, %432 : vector<8x64xf32>
    %cst_246 = arith.constant 0.000000e+00 : f32
    %434 = vector.broadcast %cst_246 : f32 to vector<8x7xf32>
    %435 = vector.extract_strided_slice %418 {offsets = [0, 0], sizes = [8, 57], strides = [1, 1]} : vector<8x64xf32> to vector<8x57xf32>
    %436 = tpu.concatenate %434, %435 in 1 : vector<8x7xf32>, vector<8x57xf32> -> vector<8x64xf32>
    %437 = vector.broadcast %338 : vector<1x64xf32> to vector<8x64xf32>
    %438 = arith.mulf %436, %437 : vector<8x64xf32>
    %c2_247 = arith.constant 2 : index
    %c0_248 = arith.constant 0 : index
    %c0_249 = arith.constant 0 : index
    %439 = vector.load %arg9[%c2_247, %c0_248, %c0_249] : memref<9x8x8xf32, #tpu.memory_space<vmem>>, vector<1x8x8xf32>
    %440 = vector.shape_cast %439 : vector<1x8x8xf32> to vector<8x8xf32>
    %cst_250 = arith.constant dense<0.000000e+00> : vector<8x64xf32>
    %441 = tpu.matmul %440, %438, %cst_250 {dimension_numbers = #tpu.dot_dimension_numbers<[1], [0], [0], [1], [0, 0, 1, 1], [], []>} : vector<8x8xf32>, vector<8x64xf32>, vector<8x64xf32> -> vector<8x64xf32>
    %442 = arith.addf %433, %441 : vector<8x64xf32>
    %cst_251 = arith.constant 0.000000e+00 : f32
    %443 = vector.broadcast %cst_251 : f32 to vector<8x1xf32>
    %444 = vector.extract_strided_slice %418 {offsets = [0, 0], sizes = [8, 63], strides = [1, 1]} : vector<8x64xf32> to vector<8x63xf32>
    %445 = tpu.concatenate %443, %444 in 1 : vector<8x1xf32>, vector<8x63xf32> -> vector<8x64xf32>
    %446 = vector.broadcast %342 : vector<1x64xf32> to vector<8x64xf32>
    %447 = arith.mulf %445, %446 : vector<8x64xf32>
    %c3_252 = arith.constant 3 : index
    %c0_253 = arith.constant 0 : index
    %c0_254 = arith.constant 0 : index
    %448 = vector.load %arg9[%c3_252, %c0_253, %c0_254] : memref<9x8x8xf32, #tpu.memory_space<vmem>>, vector<1x8x8xf32>
    %449 = vector.shape_cast %448 : vector<1x8x8xf32> to vector<8x8xf32>
    %cst_255 = arith.constant dense<0.000000e+00> : vector<8x64xf32>
    %450 = tpu.matmul %449, %447, %cst_255 {dimension_numbers = #tpu.dot_dimension_numbers<[1], [0], [0], [1], [0, 0, 1, 1], [], []>} : vector<8x8xf32>, vector<8x64xf32>, vector<8x64xf32> -> vector<8x64xf32>
    %451 = arith.addf %442, %450 : vector<8x64xf32>
    %c4_256 = arith.constant 4 : index
    %c0_257 = arith.constant 0 : index
    %c0_258 = arith.constant 0 : index
    %452 = vector.load %arg9[%c4_256, %c0_257, %c0_258] : memref<9x8x8xf32, #tpu.memory_space<vmem>>, vector<1x8x8xf32>
    %453 = vector.shape_cast %452 : vector<1x8x8xf32> to vector<8x8xf32>
    %cst_259 = arith.constant dense<0.000000e+00> : vector<8x64xf32>
    %454 = tpu.matmul %453, %418, %cst_259 {dimension_numbers = #tpu.dot_dimension_numbers<[1], [0], [0], [1], [0, 0, 1, 1], [], []>} : vector<8x8xf32>, vector<8x64xf32>, vector<8x64xf32> -> vector<8x64xf32>
    %455 = arith.addf %451, %454 : vector<8x64xf32>
    %456 = vector.extract_strided_slice %418 {offsets = [0, 1], sizes = [8, 63], strides = [1, 1]} : vector<8x64xf32> to vector<8x63xf32>
    %cst_260 = arith.constant 0.000000e+00 : f32
    %457 = vector.broadcast %cst_260 : f32 to vector<8x1xf32>
    %458 = tpu.concatenate %456, %457 in 1 : vector<8x63xf32>, vector<8x1xf32> -> vector<8x64xf32>
    %459 = vector.broadcast %338 : vector<1x64xf32> to vector<8x64xf32>
    %460 = arith.mulf %458, %459 : vector<8x64xf32>
    %c5_261 = arith.constant 5 : index
    %c0_262 = arith.constant 0 : index
    %c0_263 = arith.constant 0 : index
    %461 = vector.load %arg9[%c5_261, %c0_262, %c0_263] : memref<9x8x8xf32, #tpu.memory_space<vmem>>, vector<1x8x8xf32>
    %462 = vector.shape_cast %461 : vector<1x8x8xf32> to vector<8x8xf32>
    %cst_264 = arith.constant dense<0.000000e+00> : vector<8x64xf32>
    %463 = tpu.matmul %462, %460, %cst_264 {dimension_numbers = #tpu.dot_dimension_numbers<[1], [0], [0], [1], [0, 0, 1, 1], [], []>} : vector<8x8xf32>, vector<8x64xf32>, vector<8x64xf32> -> vector<8x64xf32>
    %464 = arith.addf %455, %463 : vector<8x64xf32>
    %465 = vector.extract_strided_slice %418 {offsets = [0, 7], sizes = [8, 57], strides = [1, 1]} : vector<8x64xf32> to vector<8x57xf32>
    %cst_265 = arith.constant 0.000000e+00 : f32
    %466 = vector.broadcast %cst_265 : f32 to vector<8x7xf32>
    %467 = tpu.concatenate %465, %466 in 1 : vector<8x57xf32>, vector<8x7xf32> -> vector<8x64xf32>
    %468 = vector.broadcast %342 : vector<1x64xf32> to vector<8x64xf32>
    %469 = arith.mulf %467, %468 : vector<8x64xf32>
    %c6_266 = arith.constant 6 : index
    %c0_267 = arith.constant 0 : index
    %c0_268 = arith.constant 0 : index
    %470 = vector.load %arg9[%c6_266, %c0_267, %c0_268] : memref<9x8x8xf32, #tpu.memory_space<vmem>>, vector<1x8x8xf32>
    %471 = vector.shape_cast %470 : vector<1x8x8xf32> to vector<8x8xf32>
    %cst_269 = arith.constant dense<0.000000e+00> : vector<8x64xf32>
    %472 = tpu.matmul %471, %469, %cst_269 {dimension_numbers = #tpu.dot_dimension_numbers<[1], [0], [0], [1], [0, 0, 1, 1], [], []>} : vector<8x8xf32>, vector<8x64xf32>, vector<8x64xf32> -> vector<8x64xf32>
    %473 = arith.addf %464, %472 : vector<8x64xf32>
    %474 = vector.extract_strided_slice %418 {offsets = [0, 8], sizes = [8, 56], strides = [1, 1]} : vector<8x64xf32> to vector<8x56xf32>
    %cst_270 = arith.constant 0.000000e+00 : f32
    %475 = vector.broadcast %cst_270 : f32 to vector<8x8xf32>
    %476 = tpu.concatenate %474, %475 in 1 : vector<8x56xf32>, vector<8x8xf32> -> vector<8x64xf32>
    %c7_271 = arith.constant 7 : index
    %c0_272 = arith.constant 0 : index
    %c0_273 = arith.constant 0 : index
    %477 = vector.load %arg9[%c7_271, %c0_272, %c0_273] : memref<9x8x8xf32, #tpu.memory_space<vmem>>, vector<1x8x8xf32>
    %478 = vector.shape_cast %477 : vector<1x8x8xf32> to vector<8x8xf32>
    %cst_274 = arith.constant dense<0.000000e+00> : vector<8x64xf32>
    %479 = tpu.matmul %478, %476, %cst_274 {dimension_numbers = #tpu.dot_dimension_numbers<[1], [0], [0], [1], [0, 0, 1, 1], [], []>} : vector<8x8xf32>, vector<8x64xf32>, vector<8x64xf32> -> vector<8x64xf32>
    %480 = arith.addf %473, %479 : vector<8x64xf32>
    %481 = vector.extract_strided_slice %418 {offsets = [0, 9], sizes = [8, 55], strides = [1, 1]} : vector<8x64xf32> to vector<8x55xf32>
    %cst_275 = arith.constant 0.000000e+00 : f32
    %482 = vector.broadcast %cst_275 : f32 to vector<8x9xf32>
    %483 = tpu.concatenate %481, %482 in 1 : vector<8x55xf32>, vector<8x9xf32> -> vector<8x64xf32>
    %484 = vector.broadcast %338 : vector<1x64xf32> to vector<8x64xf32>
    %485 = arith.mulf %483, %484 : vector<8x64xf32>
    %c8_276 = arith.constant 8 : index
    %c0_277 = arith.constant 0 : index
    %c0_278 = arith.constant 0 : index
    %486 = vector.load %arg9[%c8_276, %c0_277, %c0_278] : memref<9x8x8xf32, #tpu.memory_space<vmem>>, vector<1x8x8xf32>
    %487 = vector.shape_cast %486 : vector<1x8x8xf32> to vector<8x8xf32>
    %cst_279 = arith.constant dense<0.000000e+00> : vector<8x64xf32>
    %488 = tpu.matmul %487, %485, %cst_279 {dimension_numbers = #tpu.dot_dimension_numbers<[1], [0], [0], [1], [0, 0, 1, 1], [], []>} : vector<8x8xf32>, vector<8x64xf32>, vector<8x64xf32> -> vector<8x64xf32>
    %489 = arith.addf %480, %488 : vector<8x64xf32>
    %c48 = arith.constant 48 : index
    %c0_280 = arith.constant 0 : index
    %490 = vector.load %arg3[%c48, %c0_280] : memref<204x1xf32, #tpu.memory_space<vmem>>, vector<8x1xf32>
    %491 = vector.broadcast %490 : vector<8x1xf32> to vector<8x64xf32>
    %492 = arith.mulf %489, %491 : vector<8x64xf32>
    %c56 = arith.constant 56 : index
    %c0_281 = arith.constant 0 : index
    %493 = vector.load %arg3[%c56, %c0_281] : memref<204x1xf32, #tpu.memory_space<vmem>>, vector<8x1xf32>
    %494 = vector.broadcast %493 : vector<8x1xf32> to vector<8x64xf32>
    %495 = arith.addf %492, %494 : vector<8x64xf32>
    %496 = arith.addf %495, %328 : vector<8x64xf32>
    %cst_282 = arith.constant 0.000000e+00 : f32
    %497 = vector.broadcast %cst_282 : f32 to vector<8x64xf32>
    %498 = arith.maximumf %496, %497 : vector<8x64xf32>
    %cst_283 = arith.constant 0.000000e+00 : f32
    %499 = vector.broadcast %cst_283 : f32 to vector<8x9xf32>
    %500 = vector.extract_strided_slice %498 {offsets = [0, 0], sizes = [8, 55], strides = [1, 1]} : vector<8x64xf32> to vector<8x55xf32>
    %501 = tpu.concatenate %499, %500 in 1 : vector<8x9xf32>, vector<8x55xf32> -> vector<8x64xf32>
    %502 = vector.broadcast %342 : vector<1x64xf32> to vector<8x64xf32>
    %503 = arith.mulf %501, %502 : vector<8x64xf32>
    %c0_284 = arith.constant 0 : index
    %c0_285 = arith.constant 0 : index
    %c0_286 = arith.constant 0 : index
    %504 = vector.load %arg11[%c0_284, %c0_285, %c0_286] : memref<9x16x8xf32, #tpu.memory_space<vmem>>, vector<1x16x8xf32>
    %505 = vector.shape_cast %504 : vector<1x16x8xf32> to vector<16x8xf32>
    %cst_287 = arith.constant dense<0.000000e+00> : vector<16x64xf32>
    %506 = tpu.matmul %505, %503, %cst_287 {dimension_numbers = #tpu.dot_dimension_numbers<[1], [0], [0], [1], [0, 0, 1, 1], [], []>} : vector<16x8xf32>, vector<8x64xf32>, vector<16x64xf32> -> vector<16x64xf32>
    %cst_288 = arith.constant 0.000000e+00 : f32
    %507 = vector.broadcast %cst_288 : f32 to vector<8x8xf32>
    %508 = vector.extract_strided_slice %498 {offsets = [0, 0], sizes = [8, 56], strides = [1, 1]} : vector<8x64xf32> to vector<8x56xf32>
    %509 = tpu.concatenate %507, %508 in 1 : vector<8x8xf32>, vector<8x56xf32> -> vector<8x64xf32>
    %c1_289 = arith.constant 1 : index
    %c0_290 = arith.constant 0 : index
    %c0_291 = arith.constant 0 : index
    %510 = vector.load %arg11[%c1_289, %c0_290, %c0_291] : memref<9x16x8xf32, #tpu.memory_space<vmem>>, vector<1x16x8xf32>
    %511 = vector.shape_cast %510 : vector<1x16x8xf32> to vector<16x8xf32>
    %cst_292 = arith.constant dense<0.000000e+00> : vector<16x64xf32>
    %512 = tpu.matmul %511, %509, %cst_292 {dimension_numbers = #tpu.dot_dimension_numbers<[1], [0], [0], [1], [0, 0, 1, 1], [], []>} : vector<16x8xf32>, vector<8x64xf32>, vector<16x64xf32> -> vector<16x64xf32>
    %513 = arith.addf %506, %512 : vector<16x64xf32>
    %cst_293 = arith.constant 0.000000e+00 : f32
    %514 = vector.broadcast %cst_293 : f32 to vector<8x7xf32>
    %515 = vector.extract_strided_slice %498 {offsets = [0, 0], sizes = [8, 57], strides = [1, 1]} : vector<8x64xf32> to vector<8x57xf32>
    %516 = tpu.concatenate %514, %515 in 1 : vector<8x7xf32>, vector<8x57xf32> -> vector<8x64xf32>
    %517 = vector.broadcast %338 : vector<1x64xf32> to vector<8x64xf32>
    %518 = arith.mulf %516, %517 : vector<8x64xf32>
    %c2_294 = arith.constant 2 : index
    %c0_295 = arith.constant 0 : index
    %c0_296 = arith.constant 0 : index
    %519 = vector.load %arg11[%c2_294, %c0_295, %c0_296] : memref<9x16x8xf32, #tpu.memory_space<vmem>>, vector<1x16x8xf32>
    %520 = vector.shape_cast %519 : vector<1x16x8xf32> to vector<16x8xf32>
    %cst_297 = arith.constant dense<0.000000e+00> : vector<16x64xf32>
    %521 = tpu.matmul %520, %518, %cst_297 {dimension_numbers = #tpu.dot_dimension_numbers<[1], [0], [0], [1], [0, 0, 1, 1], [], []>} : vector<16x8xf32>, vector<8x64xf32>, vector<16x64xf32> -> vector<16x64xf32>
    %522 = arith.addf %513, %521 : vector<16x64xf32>
    %cst_298 = arith.constant 0.000000e+00 : f32
    %523 = vector.broadcast %cst_298 : f32 to vector<8x1xf32>
    %524 = vector.extract_strided_slice %498 {offsets = [0, 0], sizes = [8, 63], strides = [1, 1]} : vector<8x64xf32> to vector<8x63xf32>
    %525 = tpu.concatenate %523, %524 in 1 : vector<8x1xf32>, vector<8x63xf32> -> vector<8x64xf32>
    %526 = vector.broadcast %342 : vector<1x64xf32> to vector<8x64xf32>
    %527 = arith.mulf %525, %526 : vector<8x64xf32>
    %c3_299 = arith.constant 3 : index
    %c0_300 = arith.constant 0 : index
    %c0_301 = arith.constant 0 : index
    %528 = vector.load %arg11[%c3_299, %c0_300, %c0_301] : memref<9x16x8xf32, #tpu.memory_space<vmem>>, vector<1x16x8xf32>
    %529 = vector.shape_cast %528 : vector<1x16x8xf32> to vector<16x8xf32>
    %cst_302 = arith.constant dense<0.000000e+00> : vector<16x64xf32>
    %530 = tpu.matmul %529, %527, %cst_302 {dimension_numbers = #tpu.dot_dimension_numbers<[1], [0], [0], [1], [0, 0, 1, 1], [], []>} : vector<16x8xf32>, vector<8x64xf32>, vector<16x64xf32> -> vector<16x64xf32>
    %531 = arith.addf %522, %530 : vector<16x64xf32>
    %c4_303 = arith.constant 4 : index
    %c0_304 = arith.constant 0 : index
    %c0_305 = arith.constant 0 : index
    %532 = vector.load %arg11[%c4_303, %c0_304, %c0_305] : memref<9x16x8xf32, #tpu.memory_space<vmem>>, vector<1x16x8xf32>
    %533 = vector.shape_cast %532 : vector<1x16x8xf32> to vector<16x8xf32>
    %cst_306 = arith.constant dense<0.000000e+00> : vector<16x64xf32>
    %534 = tpu.matmul %533, %498, %cst_306 {dimension_numbers = #tpu.dot_dimension_numbers<[1], [0], [0], [1], [0, 0, 1, 1], [], []>} : vector<16x8xf32>, vector<8x64xf32>, vector<16x64xf32> -> vector<16x64xf32>
    %535 = arith.addf %531, %534 : vector<16x64xf32>
    %536 = vector.extract_strided_slice %498 {offsets = [0, 1], sizes = [8, 63], strides = [1, 1]} : vector<8x64xf32> to vector<8x63xf32>
    %cst_307 = arith.constant 0.000000e+00 : f32
    %537 = vector.broadcast %cst_307 : f32 to vector<8x1xf32>
    %538 = tpu.concatenate %536, %537 in 1 : vector<8x63xf32>, vector<8x1xf32> -> vector<8x64xf32>
    %539 = vector.broadcast %338 : vector<1x64xf32> to vector<8x64xf32>
    %540 = arith.mulf %538, %539 : vector<8x64xf32>
    %c5_308 = arith.constant 5 : index
    %c0_309 = arith.constant 0 : index
    %c0_310 = arith.constant 0 : index
    %541 = vector.load %arg11[%c5_308, %c0_309, %c0_310] : memref<9x16x8xf32, #tpu.memory_space<vmem>>, vector<1x16x8xf32>
    %542 = vector.shape_cast %541 : vector<1x16x8xf32> to vector<16x8xf32>
    %cst_311 = arith.constant dense<0.000000e+00> : vector<16x64xf32>
    %543 = tpu.matmul %542, %540, %cst_311 {dimension_numbers = #tpu.dot_dimension_numbers<[1], [0], [0], [1], [0, 0, 1, 1], [], []>} : vector<16x8xf32>, vector<8x64xf32>, vector<16x64xf32> -> vector<16x64xf32>
    %544 = arith.addf %535, %543 : vector<16x64xf32>
    %545 = vector.extract_strided_slice %498 {offsets = [0, 7], sizes = [8, 57], strides = [1, 1]} : vector<8x64xf32> to vector<8x57xf32>
    %cst_312 = arith.constant 0.000000e+00 : f32
    %546 = vector.broadcast %cst_312 : f32 to vector<8x7xf32>
    %547 = tpu.concatenate %545, %546 in 1 : vector<8x57xf32>, vector<8x7xf32> -> vector<8x64xf32>
    %548 = vector.broadcast %342 : vector<1x64xf32> to vector<8x64xf32>
    %549 = arith.mulf %547, %548 : vector<8x64xf32>
    %c6_313 = arith.constant 6 : index
    %c0_314 = arith.constant 0 : index
    %c0_315 = arith.constant 0 : index
    %550 = vector.load %arg11[%c6_313, %c0_314, %c0_315] : memref<9x16x8xf32, #tpu.memory_space<vmem>>, vector<1x16x8xf32>
    %551 = vector.shape_cast %550 : vector<1x16x8xf32> to vector<16x8xf32>
    %cst_316 = arith.constant dense<0.000000e+00> : vector<16x64xf32>
    %552 = tpu.matmul %551, %549, %cst_316 {dimension_numbers = #tpu.dot_dimension_numbers<[1], [0], [0], [1], [0, 0, 1, 1], [], []>} : vector<16x8xf32>, vector<8x64xf32>, vector<16x64xf32> -> vector<16x64xf32>
    %553 = arith.addf %544, %552 : vector<16x64xf32>
    %554 = vector.extract_strided_slice %498 {offsets = [0, 8], sizes = [8, 56], strides = [1, 1]} : vector<8x64xf32> to vector<8x56xf32>
    %cst_317 = arith.constant 0.000000e+00 : f32
    %555 = vector.broadcast %cst_317 : f32 to vector<8x8xf32>
    %556 = tpu.concatenate %554, %555 in 1 : vector<8x56xf32>, vector<8x8xf32> -> vector<8x64xf32>
    %c7_318 = arith.constant 7 : index
    %c0_319 = arith.constant 0 : index
    %c0_320 = arith.constant 0 : index
    %557 = vector.load %arg11[%c7_318, %c0_319, %c0_320] : memref<9x16x8xf32, #tpu.memory_space<vmem>>, vector<1x16x8xf32>
    %558 = vector.shape_cast %557 : vector<1x16x8xf32> to vector<16x8xf32>
    %cst_321 = arith.constant dense<0.000000e+00> : vector<16x64xf32>
    %559 = tpu.matmul %558, %556, %cst_321 {dimension_numbers = #tpu.dot_dimension_numbers<[1], [0], [0], [1], [0, 0, 1, 1], [], []>} : vector<16x8xf32>, vector<8x64xf32>, vector<16x64xf32> -> vector<16x64xf32>
    %560 = arith.addf %553, %559 : vector<16x64xf32>
    %561 = vector.extract_strided_slice %498 {offsets = [0, 9], sizes = [8, 55], strides = [1, 1]} : vector<8x64xf32> to vector<8x55xf32>
    %cst_322 = arith.constant 0.000000e+00 : f32
    %562 = vector.broadcast %cst_322 : f32 to vector<8x9xf32>
    %563 = tpu.concatenate %561, %562 in 1 : vector<8x55xf32>, vector<8x9xf32> -> vector<8x64xf32>
    %564 = vector.broadcast %338 : vector<1x64xf32> to vector<8x64xf32>
    %565 = arith.mulf %563, %564 : vector<8x64xf32>
    %c8_323 = arith.constant 8 : index
    %c0_324 = arith.constant 0 : index
    %c0_325 = arith.constant 0 : index
    %566 = vector.load %arg11[%c8_323, %c0_324, %c0_325] : memref<9x16x8xf32, #tpu.memory_space<vmem>>, vector<1x16x8xf32>
    %567 = vector.shape_cast %566 : vector<1x16x8xf32> to vector<16x8xf32>
    %cst_326 = arith.constant dense<0.000000e+00> : vector<16x64xf32>
    %568 = tpu.matmul %567, %565, %cst_326 {dimension_numbers = #tpu.dot_dimension_numbers<[1], [0], [0], [1], [0, 0, 1, 1], [], []>} : vector<16x8xf32>, vector<8x64xf32>, vector<16x64xf32> -> vector<16x64xf32>
    %569 = arith.addf %560, %568 : vector<16x64xf32>
    %c0_327 = arith.constant 0 : index
    %c0_328 = arith.constant 0 : index
    %570 = vector.load %arg5[%c0_327, %c0_328] : memref<64x16xf32, #tpu.memory_space<vmem>>, vector<64x16xf32>
    %cst_329 = arith.constant dense<0.000000e+00> : vector<16x16xf32>
    %571 = tpu.matmul %569, %570, %cst_329 {dimension_numbers = #tpu.dot_dimension_numbers<[1], [0], [0], [1], [0, 0, 1, 1], [], []>} : vector<16x64xf32>, vector<64x16xf32>, vector<16x16xf32> -> vector<16x16xf32>
    %c64 = arith.constant 64 : index
    %c0_330 = arith.constant 0 : index
    %572 = vector.load %arg3[%c64, %c0_330] : memref<204x1xf32, #tpu.memory_space<vmem>>, vector<16x1xf32>
    %573 = vector.broadcast %572 : vector<16x1xf32> to vector<16x16xf32>
    %574 = arith.addf %571, %573 : vector<16x16xf32>
    %cst_331 = arith.constant 0.000000e+00 : f32
    %575 = vector.broadcast %cst_331 : f32 to vector<16x16xf32>
    %576 = arith.maximumf %574, %575 : vector<16x16xf32>
    %cst_332 = arith.constant 0.000000e+00 : f32
    %577 = vector.broadcast %cst_332 : f32 to vector<16x5xf32>
    %578 = vector.extract_strided_slice %576 {offsets = [0, 0], sizes = [16, 11], strides = [1, 1]} : vector<16x16xf32> to vector<16x11xf32>
    %579 = tpu.concatenate %577, %578 in 1 : vector<16x5xf32>, vector<16x11xf32> -> vector<16x16xf32>
    %580 = tpu.iota {dimensions = array<i32: 1>} : vector<1x16xi32>
    %c3_i32 = arith.constant 3 : i32
    %581 = vector.broadcast %c3_i32 : i32 to vector<1x16xi32>
    %582 = arith.andi %580, %581 : vector<1x16xi32>
    %c3_i32_333 = arith.constant 3 : i32
    %583 = vector.broadcast %c3_i32_333 : i32 to vector<1x16xi32>
    %584 = arith.cmpi slt, %582, %583 : vector<1x16xi32>
    %585 = arith.extui %584 : vector<1x16xi1> to vector<1x16xi32>
    %586 = arith.sitofp %585 : vector<1x16xi32> to vector<1x16xf32>
    %c1_i32_334 = arith.constant 1 : i32
    %587 = vector.broadcast %c1_i32_334 : i32 to vector<1x16xi32>
    %588 = arith.cmpi sge, %582, %587 : vector<1x16xi32>
    %589 = arith.extui %588 : vector<1x16xi1> to vector<1x16xi32>
    %590 = arith.sitofp %589 : vector<1x16xi32> to vector<1x16xf32>
    %591 = vector.broadcast %590 : vector<1x16xf32> to vector<16x16xf32>
    %592 = arith.mulf %579, %591 : vector<16x16xf32>
    %c0_335 = arith.constant 0 : index
    %c0_336 = arith.constant 0 : index
    %c0_337 = arith.constant 0 : index
    %593 = vector.load %arg12[%c0_335, %c0_336, %c0_337] : memref<9x16x16xf32, #tpu.memory_space<vmem>>, vector<1x16x16xf32>
    %594 = vector.shape_cast %593 : vector<1x16x16xf32> to vector<16x16xf32>
    %cst_338 = arith.constant dense<0.000000e+00> : vector<16x16xf32>
    %595 = tpu.matmul %594, %592, %cst_338 {dimension_numbers = #tpu.dot_dimension_numbers<[1], [0], [0], [1], [0, 0, 1, 1], [], []>} : vector<16x16xf32>, vector<16x16xf32>, vector<16x16xf32> -> vector<16x16xf32>
    %cst_339 = arith.constant 0.000000e+00 : f32
    %596 = vector.broadcast %cst_339 : f32 to vector<16x4xf32>
    %597 = vector.extract_strided_slice %576 {offsets = [0, 0], sizes = [16, 12], strides = [1, 1]} : vector<16x16xf32> to vector<16x12xf32>
    %598 = tpu.concatenate %596, %597 in 1 : vector<16x4xf32>, vector<16x12xf32> -> vector<16x16xf32>
    %c1_340 = arith.constant 1 : index
    %c0_341 = arith.constant 0 : index
    %c0_342 = arith.constant 0 : index
    %599 = vector.load %arg12[%c1_340, %c0_341, %c0_342] : memref<9x16x16xf32, #tpu.memory_space<vmem>>, vector<1x16x16xf32>
    %600 = vector.shape_cast %599 : vector<1x16x16xf32> to vector<16x16xf32>
    %cst_343 = arith.constant dense<0.000000e+00> : vector<16x16xf32>
    %601 = tpu.matmul %600, %598, %cst_343 {dimension_numbers = #tpu.dot_dimension_numbers<[1], [0], [0], [1], [0, 0, 1, 1], [], []>} : vector<16x16xf32>, vector<16x16xf32>, vector<16x16xf32> -> vector<16x16xf32>
    %602 = arith.addf %595, %601 : vector<16x16xf32>
    %cst_344 = arith.constant 0.000000e+00 : f32
    %603 = vector.broadcast %cst_344 : f32 to vector<16x3xf32>
    %604 = vector.extract_strided_slice %576 {offsets = [0, 0], sizes = [16, 13], strides = [1, 1]} : vector<16x16xf32> to vector<16x13xf32>
    %605 = tpu.concatenate %603, %604 in 1 : vector<16x3xf32>, vector<16x13xf32> -> vector<16x16xf32>
    %606 = vector.broadcast %586 : vector<1x16xf32> to vector<16x16xf32>
    %607 = arith.mulf %605, %606 : vector<16x16xf32>
    %c2_345 = arith.constant 2 : index
    %c0_346 = arith.constant 0 : index
    %c0_347 = arith.constant 0 : index
    %608 = vector.load %arg12[%c2_345, %c0_346, %c0_347] : memref<9x16x16xf32, #tpu.memory_space<vmem>>, vector<1x16x16xf32>
    %609 = vector.shape_cast %608 : vector<1x16x16xf32> to vector<16x16xf32>
    %cst_348 = arith.constant dense<0.000000e+00> : vector<16x16xf32>
    %610 = tpu.matmul %609, %607, %cst_348 {dimension_numbers = #tpu.dot_dimension_numbers<[1], [0], [0], [1], [0, 0, 1, 1], [], []>} : vector<16x16xf32>, vector<16x16xf32>, vector<16x16xf32> -> vector<16x16xf32>
    %611 = arith.addf %602, %610 : vector<16x16xf32>
    %cst_349 = arith.constant 0.000000e+00 : f32
    %612 = vector.broadcast %cst_349 : f32 to vector<16x1xf32>
    %613 = vector.extract_strided_slice %576 {offsets = [0, 0], sizes = [16, 15], strides = [1, 1]} : vector<16x16xf32> to vector<16x15xf32>
    %614 = tpu.concatenate %612, %613 in 1 : vector<16x1xf32>, vector<16x15xf32> -> vector<16x16xf32>
    %615 = vector.broadcast %590 : vector<1x16xf32> to vector<16x16xf32>
    %616 = arith.mulf %614, %615 : vector<16x16xf32>
    %c3_350 = arith.constant 3 : index
    %c0_351 = arith.constant 0 : index
    %c0_352 = arith.constant 0 : index
    %617 = vector.load %arg12[%c3_350, %c0_351, %c0_352] : memref<9x16x16xf32, #tpu.memory_space<vmem>>, vector<1x16x16xf32>
    %618 = vector.shape_cast %617 : vector<1x16x16xf32> to vector<16x16xf32>
    %cst_353 = arith.constant dense<0.000000e+00> : vector<16x16xf32>
    %619 = tpu.matmul %618, %616, %cst_353 {dimension_numbers = #tpu.dot_dimension_numbers<[1], [0], [0], [1], [0, 0, 1, 1], [], []>} : vector<16x16xf32>, vector<16x16xf32>, vector<16x16xf32> -> vector<16x16xf32>
    %620 = arith.addf %611, %619 : vector<16x16xf32>
    %c4_354 = arith.constant 4 : index
    %c0_355 = arith.constant 0 : index
    %c0_356 = arith.constant 0 : index
    %621 = vector.load %arg12[%c4_354, %c0_355, %c0_356] : memref<9x16x16xf32, #tpu.memory_space<vmem>>, vector<1x16x16xf32>
    %622 = vector.shape_cast %621 : vector<1x16x16xf32> to vector<16x16xf32>
    %cst_357 = arith.constant dense<0.000000e+00> : vector<16x16xf32>
    %623 = tpu.matmul %622, %576, %cst_357 {dimension_numbers = #tpu.dot_dimension_numbers<[1], [0], [0], [1], [0, 0, 1, 1], [], []>} : vector<16x16xf32>, vector<16x16xf32>, vector<16x16xf32> -> vector<16x16xf32>
    %624 = arith.addf %620, %623 : vector<16x16xf32>
    %625 = vector.extract_strided_slice %576 {offsets = [0, 1], sizes = [16, 15], strides = [1, 1]} : vector<16x16xf32> to vector<16x15xf32>
    %cst_358 = arith.constant 0.000000e+00 : f32
    %626 = vector.broadcast %cst_358 : f32 to vector<16x1xf32>
    %627 = tpu.concatenate %625, %626 in 1 : vector<16x15xf32>, vector<16x1xf32> -> vector<16x16xf32>
    %628 = vector.broadcast %586 : vector<1x16xf32> to vector<16x16xf32>
    %629 = arith.mulf %627, %628 : vector<16x16xf32>
    %c5_359 = arith.constant 5 : index
    %c0_360 = arith.constant 0 : index
    %c0_361 = arith.constant 0 : index
    %630 = vector.load %arg12[%c5_359, %c0_360, %c0_361] : memref<9x16x16xf32, #tpu.memory_space<vmem>>, vector<1x16x16xf32>
    %631 = vector.shape_cast %630 : vector<1x16x16xf32> to vector<16x16xf32>
    %cst_362 = arith.constant dense<0.000000e+00> : vector<16x16xf32>
    %632 = tpu.matmul %631, %629, %cst_362 {dimension_numbers = #tpu.dot_dimension_numbers<[1], [0], [0], [1], [0, 0, 1, 1], [], []>} : vector<16x16xf32>, vector<16x16xf32>, vector<16x16xf32> -> vector<16x16xf32>
    %633 = arith.addf %624, %632 : vector<16x16xf32>
    %634 = vector.extract_strided_slice %576 {offsets = [0, 3], sizes = [16, 13], strides = [1, 1]} : vector<16x16xf32> to vector<16x13xf32>
    %cst_363 = arith.constant 0.000000e+00 : f32
    %635 = vector.broadcast %cst_363 : f32 to vector<16x3xf32>
    %636 = tpu.concatenate %634, %635 in 1 : vector<16x13xf32>, vector<16x3xf32> -> vector<16x16xf32>
    %637 = vector.broadcast %590 : vector<1x16xf32> to vector<16x16xf32>
    %638 = arith.mulf %636, %637 : vector<16x16xf32>
    %c6_364 = arith.constant 6 : index
    %c0_365 = arith.constant 0 : index
    %c0_366 = arith.constant 0 : index
    %639 = vector.load %arg12[%c6_364, %c0_365, %c0_366] : memref<9x16x16xf32, #tpu.memory_space<vmem>>, vector<1x16x16xf32>
    %640 = vector.shape_cast %639 : vector<1x16x16xf32> to vector<16x16xf32>
    %cst_367 = arith.constant dense<0.000000e+00> : vector<16x16xf32>
    %641 = tpu.matmul %640, %638, %cst_367 {dimension_numbers = #tpu.dot_dimension_numbers<[1], [0], [0], [1], [0, 0, 1, 1], [], []>} : vector<16x16xf32>, vector<16x16xf32>, vector<16x16xf32> -> vector<16x16xf32>
    %642 = arith.addf %633, %641 : vector<16x16xf32>
    %643 = vector.extract_strided_slice %576 {offsets = [0, 4], sizes = [16, 12], strides = [1, 1]} : vector<16x16xf32> to vector<16x12xf32>
    %cst_368 = arith.constant 0.000000e+00 : f32
    %644 = vector.broadcast %cst_368 : f32 to vector<16x4xf32>
    %645 = tpu.concatenate %643, %644 in 1 : vector<16x12xf32>, vector<16x4xf32> -> vector<16x16xf32>
    %c7_369 = arith.constant 7 : index
    %c0_370 = arith.constant 0 : index
    %c0_371 = arith.constant 0 : index
    %646 = vector.load %arg12[%c7_369, %c0_370, %c0_371] : memref<9x16x16xf32, #tpu.memory_space<vmem>>, vector<1x16x16xf32>
    %647 = vector.shape_cast %646 : vector<1x16x16xf32> to vector<16x16xf32>
    %cst_372 = arith.constant dense<0.000000e+00> : vector<16x16xf32>
    %648 = tpu.matmul %647, %645, %cst_372 {dimension_numbers = #tpu.dot_dimension_numbers<[1], [0], [0], [1], [0, 0, 1, 1], [], []>} : vector<16x16xf32>, vector<16x16xf32>, vector<16x16xf32> -> vector<16x16xf32>
    %649 = arith.addf %642, %648 : vector<16x16xf32>
    %650 = vector.extract_strided_slice %576 {offsets = [0, 5], sizes = [16, 11], strides = [1, 1]} : vector<16x16xf32> to vector<16x11xf32>
    %cst_373 = arith.constant 0.000000e+00 : f32
    %651 = vector.broadcast %cst_373 : f32 to vector<16x5xf32>
    %652 = tpu.concatenate %650, %651 in 1 : vector<16x11xf32>, vector<16x5xf32> -> vector<16x16xf32>
    %653 = vector.broadcast %586 : vector<1x16xf32> to vector<16x16xf32>
    %654 = arith.mulf %652, %653 : vector<16x16xf32>
    %c8_374 = arith.constant 8 : index
    %c0_375 = arith.constant 0 : index
    %c0_376 = arith.constant 0 : index
    %655 = vector.load %arg12[%c8_374, %c0_375, %c0_376] : memref<9x16x16xf32, #tpu.memory_space<vmem>>, vector<1x16x16xf32>
    %656 = vector.shape_cast %655 : vector<1x16x16xf32> to vector<16x16xf32>
    %cst_377 = arith.constant dense<0.000000e+00> : vector<16x16xf32>
    %657 = tpu.matmul %656, %654, %cst_377 {dimension_numbers = #tpu.dot_dimension_numbers<[1], [0], [0], [1], [0, 0, 1, 1], [], []>} : vector<16x16xf32>, vector<16x16xf32>, vector<16x16xf32> -> vector<16x16xf32>
    %658 = arith.addf %649, %657 : vector<16x16xf32>
    %c80 = arith.constant 80 : index
    %c0_378 = arith.constant 0 : index
    %659 = vector.load %arg3[%c80, %c0_378] : memref<204x1xf32, #tpu.memory_space<vmem>>, vector<16x1xf32>
    %660 = vector.broadcast %659 : vector<16x1xf32> to vector<16x16xf32>
    %661 = arith.mulf %658, %660 : vector<16x16xf32>
    %c96 = arith.constant 96 : index
    %c0_379 = arith.constant 0 : index
    %662 = vector.load %arg3[%c96, %c0_379] : memref<204x1xf32, #tpu.memory_space<vmem>>, vector<16x1xf32>
    %663 = vector.broadcast %662 : vector<16x1xf32> to vector<16x16xf32>
    %664 = arith.addf %661, %663 : vector<16x16xf32>
    %cst_380 = arith.constant 0.000000e+00 : f32
    %665 = vector.broadcast %cst_380 : f32 to vector<16x16xf32>
    %666 = arith.maximumf %664, %665 : vector<16x16xf32>
    %cst_381 = arith.constant 0.000000e+00 : f32
    %667 = vector.broadcast %cst_381 : f32 to vector<16x5xf32>
    %668 = vector.extract_strided_slice %666 {offsets = [0, 0], sizes = [16, 11], strides = [1, 1]} : vector<16x16xf32> to vector<16x11xf32>
    %669 = tpu.concatenate %667, %668 in 1 : vector<16x5xf32>, vector<16x11xf32> -> vector<16x16xf32>
    %670 = vector.broadcast %590 : vector<1x16xf32> to vector<16x16xf32>
    %671 = arith.mulf %669, %670 : vector<16x16xf32>
    %c0_382 = arith.constant 0 : index
    %c0_383 = arith.constant 0 : index
    %c0_384 = arith.constant 0 : index
    %672 = vector.load %arg12[%c0_382, %c0_383, %c0_384] : memref<9x16x16xf32, #tpu.memory_space<vmem>>, vector<1x16x16xf32>
    %673 = vector.shape_cast %672 : vector<1x16x16xf32> to vector<16x16xf32>
    %cst_385 = arith.constant dense<0.000000e+00> : vector<16x16xf32>
    %674 = tpu.matmul %673, %671, %cst_385 {dimension_numbers = #tpu.dot_dimension_numbers<[1], [0], [0], [1], [0, 0, 1, 1], [], []>} : vector<16x16xf32>, vector<16x16xf32>, vector<16x16xf32> -> vector<16x16xf32>
    %cst_386 = arith.constant 0.000000e+00 : f32
    %675 = vector.broadcast %cst_386 : f32 to vector<16x4xf32>
    %676 = vector.extract_strided_slice %666 {offsets = [0, 0], sizes = [16, 12], strides = [1, 1]} : vector<16x16xf32> to vector<16x12xf32>
    %677 = tpu.concatenate %675, %676 in 1 : vector<16x4xf32>, vector<16x12xf32> -> vector<16x16xf32>
    %c1_387 = arith.constant 1 : index
    %c0_388 = arith.constant 0 : index
    %c0_389 = arith.constant 0 : index
    %678 = vector.load %arg12[%c1_387, %c0_388, %c0_389] : memref<9x16x16xf32, #tpu.memory_space<vmem>>, vector<1x16x16xf32>
    %679 = vector.shape_cast %678 : vector<1x16x16xf32> to vector<16x16xf32>
    %cst_390 = arith.constant dense<0.000000e+00> : vector<16x16xf32>
    %680 = tpu.matmul %679, %677, %cst_390 {dimension_numbers = #tpu.dot_dimension_numbers<[1], [0], [0], [1], [0, 0, 1, 1], [], []>} : vector<16x16xf32>, vector<16x16xf32>, vector<16x16xf32> -> vector<16x16xf32>
    %681 = arith.addf %674, %680 : vector<16x16xf32>
    %cst_391 = arith.constant 0.000000e+00 : f32
    %682 = vector.broadcast %cst_391 : f32 to vector<16x3xf32>
    %683 = vector.extract_strided_slice %666 {offsets = [0, 0], sizes = [16, 13], strides = [1, 1]} : vector<16x16xf32> to vector<16x13xf32>
    %684 = tpu.concatenate %682, %683 in 1 : vector<16x3xf32>, vector<16x13xf32> -> vector<16x16xf32>
    %685 = vector.broadcast %586 : vector<1x16xf32> to vector<16x16xf32>
    %686 = arith.mulf %684, %685 : vector<16x16xf32>
    %c2_392 = arith.constant 2 : index
    %c0_393 = arith.constant 0 : index
    %c0_394 = arith.constant 0 : index
    %687 = vector.load %arg12[%c2_392, %c0_393, %c0_394] : memref<9x16x16xf32, #tpu.memory_space<vmem>>, vector<1x16x16xf32>
    %688 = vector.shape_cast %687 : vector<1x16x16xf32> to vector<16x16xf32>
    %cst_395 = arith.constant dense<0.000000e+00> : vector<16x16xf32>
    %689 = tpu.matmul %688, %686, %cst_395 {dimension_numbers = #tpu.dot_dimension_numbers<[1], [0], [0], [1], [0, 0, 1, 1], [], []>} : vector<16x16xf32>, vector<16x16xf32>, vector<16x16xf32> -> vector<16x16xf32>
    %690 = arith.addf %681, %689 : vector<16x16xf32>
    %cst_396 = arith.constant 0.000000e+00 : f32
    %691 = vector.broadcast %cst_396 : f32 to vector<16x1xf32>
    %692 = vector.extract_strided_slice %666 {offsets = [0, 0], sizes = [16, 15], strides = [1, 1]} : vector<16x16xf32> to vector<16x15xf32>
    %693 = tpu.concatenate %691, %692 in 1 : vector<16x1xf32>, vector<16x15xf32> -> vector<16x16xf32>
    %694 = vector.broadcast %590 : vector<1x16xf32> to vector<16x16xf32>
    %695 = arith.mulf %693, %694 : vector<16x16xf32>
    %c3_397 = arith.constant 3 : index
    %c0_398 = arith.constant 0 : index
    %c0_399 = arith.constant 0 : index
    %696 = vector.load %arg12[%c3_397, %c0_398, %c0_399] : memref<9x16x16xf32, #tpu.memory_space<vmem>>, vector<1x16x16xf32>
    %697 = vector.shape_cast %696 : vector<1x16x16xf32> to vector<16x16xf32>
    %cst_400 = arith.constant dense<0.000000e+00> : vector<16x16xf32>
    %698 = tpu.matmul %697, %695, %cst_400 {dimension_numbers = #tpu.dot_dimension_numbers<[1], [0], [0], [1], [0, 0, 1, 1], [], []>} : vector<16x16xf32>, vector<16x16xf32>, vector<16x16xf32> -> vector<16x16xf32>
    %699 = arith.addf %690, %698 : vector<16x16xf32>
    %c4_401 = arith.constant 4 : index
    %c0_402 = arith.constant 0 : index
    %c0_403 = arith.constant 0 : index
    %700 = vector.load %arg12[%c4_401, %c0_402, %c0_403] : memref<9x16x16xf32, #tpu.memory_space<vmem>>, vector<1x16x16xf32>
    %701 = vector.shape_cast %700 : vector<1x16x16xf32> to vector<16x16xf32>
    %cst_404 = arith.constant dense<0.000000e+00> : vector<16x16xf32>
    %702 = tpu.matmul %701, %666, %cst_404 {dimension_numbers = #tpu.dot_dimension_numbers<[1], [0], [0], [1], [0, 0, 1, 1], [], []>} : vector<16x16xf32>, vector<16x16xf32>, vector<16x16xf32> -> vector<16x16xf32>
    %703 = arith.addf %699, %702 : vector<16x16xf32>
    %704 = vector.extract_strided_slice %666 {offsets = [0, 1], sizes = [16, 15], strides = [1, 1]} : vector<16x16xf32> to vector<16x15xf32>
    %cst_405 = arith.constant 0.000000e+00 : f32
    %705 = vector.broadcast %cst_405 : f32 to vector<16x1xf32>
    %706 = tpu.concatenate %704, %705 in 1 : vector<16x15xf32>, vector<16x1xf32> -> vector<16x16xf32>
    %707 = vector.broadcast %586 : vector<1x16xf32> to vector<16x16xf32>
    %708 = arith.mulf %706, %707 : vector<16x16xf32>
    %c5_406 = arith.constant 5 : index
    %c0_407 = arith.constant 0 : index
    %c0_408 = arith.constant 0 : index
    %709 = vector.load %arg12[%c5_406, %c0_407, %c0_408] : memref<9x16x16xf32, #tpu.memory_space<vmem>>, vector<1x16x16xf32>
    %710 = vector.shape_cast %709 : vector<1x16x16xf32> to vector<16x16xf32>
    %cst_409 = arith.constant dense<0.000000e+00> : vector<16x16xf32>
    %711 = tpu.matmul %710, %708, %cst_409 {dimension_numbers = #tpu.dot_dimension_numbers<[1], [0], [0], [1], [0, 0, 1, 1], [], []>} : vector<16x16xf32>, vector<16x16xf32>, vector<16x16xf32> -> vector<16x16xf32>
    %712 = arith.addf %703, %711 : vector<16x16xf32>
    %713 = vector.extract_strided_slice %666 {offsets = [0, 3], sizes = [16, 13], strides = [1, 1]} : vector<16x16xf32> to vector<16x13xf32>
    %cst_410 = arith.constant 0.000000e+00 : f32
    %714 = vector.broadcast %cst_410 : f32 to vector<16x3xf32>
    %715 = tpu.concatenate %713, %714 in 1 : vector<16x13xf32>, vector<16x3xf32> -> vector<16x16xf32>
    %716 = vector.broadcast %590 : vector<1x16xf32> to vector<16x16xf32>
    %717 = arith.mulf %715, %716 : vector<16x16xf32>
    %c6_411 = arith.constant 6 : index
    %c0_412 = arith.constant 0 : index
    %c0_413 = arith.constant 0 : index
    %718 = vector.load %arg12[%c6_411, %c0_412, %c0_413] : memref<9x16x16xf32, #tpu.memory_space<vmem>>, vector<1x16x16xf32>
    %719 = vector.shape_cast %718 : vector<1x16x16xf32> to vector<16x16xf32>
    %cst_414 = arith.constant dense<0.000000e+00> : vector<16x16xf32>
    %720 = tpu.matmul %719, %717, %cst_414 {dimension_numbers = #tpu.dot_dimension_numbers<[1], [0], [0], [1], [0, 0, 1, 1], [], []>} : vector<16x16xf32>, vector<16x16xf32>, vector<16x16xf32> -> vector<16x16xf32>
    %721 = arith.addf %712, %720 : vector<16x16xf32>
    %722 = vector.extract_strided_slice %666 {offsets = [0, 4], sizes = [16, 12], strides = [1, 1]} : vector<16x16xf32> to vector<16x12xf32>
    %cst_415 = arith.constant 0.000000e+00 : f32
    %723 = vector.broadcast %cst_415 : f32 to vector<16x4xf32>
    %724 = tpu.concatenate %722, %723 in 1 : vector<16x12xf32>, vector<16x4xf32> -> vector<16x16xf32>
    %c7_416 = arith.constant 7 : index
    %c0_417 = arith.constant 0 : index
    %c0_418 = arith.constant 0 : index
    %725 = vector.load %arg12[%c7_416, %c0_417, %c0_418] : memref<9x16x16xf32, #tpu.memory_space<vmem>>, vector<1x16x16xf32>
    %726 = vector.shape_cast %725 : vector<1x16x16xf32> to vector<16x16xf32>
    %cst_419 = arith.constant dense<0.000000e+00> : vector<16x16xf32>
    %727 = tpu.matmul %726, %724, %cst_419 {dimension_numbers = #tpu.dot_dimension_numbers<[1], [0], [0], [1], [0, 0, 1, 1], [], []>} : vector<16x16xf32>, vector<16x16xf32>, vector<16x16xf32> -> vector<16x16xf32>
    %728 = arith.addf %721, %727 : vector<16x16xf32>
    %729 = vector.extract_strided_slice %666 {offsets = [0, 5], sizes = [16, 11], strides = [1, 1]} : vector<16x16xf32> to vector<16x11xf32>
    %cst_420 = arith.constant 0.000000e+00 : f32
    %730 = vector.broadcast %cst_420 : f32 to vector<16x5xf32>
    %731 = tpu.concatenate %729, %730 in 1 : vector<16x11xf32>, vector<16x5xf32> -> vector<16x16xf32>
    %732 = vector.broadcast %586 : vector<1x16xf32> to vector<16x16xf32>
    %733 = arith.mulf %731, %732 : vector<16x16xf32>
    %c8_421 = arith.constant 8 : index
    %c0_422 = arith.constant 0 : index
    %c0_423 = arith.constant 0 : index
    %734 = vector.load %arg12[%c8_421, %c0_422, %c0_423] : memref<9x16x16xf32, #tpu.memory_space<vmem>>, vector<1x16x16xf32>
    %735 = vector.shape_cast %734 : vector<1x16x16xf32> to vector<16x16xf32>
    %cst_424 = arith.constant dense<0.000000e+00> : vector<16x16xf32>
    %736 = tpu.matmul %735, %733, %cst_424 {dimension_numbers = #tpu.dot_dimension_numbers<[1], [0], [0], [1], [0, 0, 1, 1], [], []>} : vector<16x16xf32>, vector<16x16xf32>, vector<16x16xf32> -> vector<16x16xf32>
    %737 = arith.addf %728, %736 : vector<16x16xf32>
    %c112 = arith.constant 112 : index
    %c0_425 = arith.constant 0 : index
    %738 = vector.load %arg3[%c112, %c0_425] : memref<204x1xf32, #tpu.memory_space<vmem>>, vector<16x1xf32>
    %739 = vector.broadcast %738 : vector<16x1xf32> to vector<16x16xf32>
    %740 = arith.mulf %737, %739 : vector<16x16xf32>
    %c128 = arith.constant 128 : index
    %c0_426 = arith.constant 0 : index
    %741 = vector.load %arg3[%c128, %c0_426] : memref<204x1xf32, #tpu.memory_space<vmem>>, vector<16x1xf32>
    %742 = vector.broadcast %741 : vector<16x1xf32> to vector<16x16xf32>
    %743 = arith.addf %740, %742 : vector<16x16xf32>
    %744 = arith.addf %743, %576 : vector<16x16xf32>
    %cst_427 = arith.constant 0.000000e+00 : f32
    %745 = vector.broadcast %cst_427 : f32 to vector<16x16xf32>
    %746 = arith.maximumf %744, %745 : vector<16x16xf32>
    %c0_428 = arith.constant 0 : index
    %c0_429 = arith.constant 0 : index
    %c0_430 = arith.constant 0 : index
    %747 = vector.load %arg17[%c0_428, %c0_429, %c0_430] : memref<1x16x16xf32, #tpu.memory_space<vmem>>, vector<1x16x16xf32>
    %748 = vector.shape_cast %747 : vector<1x16x16xf32> to vector<16x16xf32>
    %749 = vector.shape_cast %746 : vector<16x16xf32> to vector<1x16x16xf32>
    tpu.vector_store %arg17[%c0_428, %c0_429, %c0_430], %749 {strides = array<i32>} : memref<1x16x16xf32, #tpu.memory_space<vmem>>, vector<1x16x16xf32>,
    %750 = vector.extract_strided_slice %746 {offsets = [0, 1], sizes = [16, 15], strides = [1, 1]} : vector<16x16xf32> to vector<16x15xf32>
    %cst_431 = arith.constant 0.000000e+00 : f32
    %751 = vector.broadcast %cst_431 : f32 to vector<16x1xf32>
    %752 = tpu.concatenate %750, %751 in 1 : vector<16x15xf32>, vector<16x1xf32> -> vector<16x16xf32>
    %753 = vector.broadcast %586 : vector<1x16xf32> to vector<16x16xf32>
    %754 = arith.mulf %752, %753 : vector<16x16xf32>
    %755 = vector.extract_strided_slice %746 {offsets = [0, 4], sizes = [16, 12], strides = [1, 1]} : vector<16x16xf32> to vector<16x12xf32>
    %cst_432 = arith.constant 0.000000e+00 : f32
    %756 = vector.broadcast %cst_432 : f32 to vector<16x4xf32>
    %757 = tpu.concatenate %755, %756 in 1 : vector<16x12xf32>, vector<16x4xf32> -> vector<16x16xf32>
    %758 = vector.extract_strided_slice %746 {offsets = [0, 5], sizes = [16, 11], strides = [1, 1]} : vector<16x16xf32> to vector<16x11xf32>
    %cst_433 = arith.constant 0.000000e+00 : f32
    %759 = vector.broadcast %cst_433 : f32 to vector<16x5xf32>
    %760 = tpu.concatenate %758, %759 in 1 : vector<16x11xf32>, vector<16x5xf32> -> vector<16x16xf32>
    %761 = vector.broadcast %586 : vector<1x16xf32> to vector<16x16xf32>
    %762 = arith.mulf %760, %761 : vector<16x16xf32>
    %c4_434 = arith.constant 4 : index
    %c0_435 = arith.constant 0 : index
    %c0_436 = arith.constant 0 : index
    %763 = vector.load %arg13[%c4_434, %c0_435, %c0_436] : memref<9x8x16xf32, #tpu.memory_space<vmem>>, vector<1x8x16xf32>
    %764 = vector.shape_cast %763 : vector<1x8x16xf32> to vector<8x16xf32>
    %cst_437 = arith.constant dense<0.000000e+00> : vector<8x16xf32>
    %765 = tpu.matmul %764, %746, %cst_437 {dimension_numbers = #tpu.dot_dimension_numbers<[1], [0], [0], [1], [0, 0, 1, 1], [], []>} : vector<8x16xf32>, vector<16x16xf32>, vector<8x16xf32> -> vector<8x16xf32>
    %c5_438 = arith.constant 5 : index
    %c0_439 = arith.constant 0 : index
    %c0_440 = arith.constant 0 : index
    %766 = vector.load %arg13[%c5_438, %c0_439, %c0_440] : memref<9x8x16xf32, #tpu.memory_space<vmem>>, vector<1x8x16xf32>
    %767 = vector.shape_cast %766 : vector<1x8x16xf32> to vector<8x16xf32>
    %cst_441 = arith.constant dense<0.000000e+00> : vector<8x16xf32>
    %768 = tpu.matmul %767, %746, %cst_441 {dimension_numbers = #tpu.dot_dimension_numbers<[1], [0], [0], [1], [0, 0, 1, 1], [], []>} : vector<8x16xf32>, vector<16x16xf32>, vector<8x16xf32> -> vector<8x16xf32>
    %c3_442 = arith.constant 3 : index
    %c0_443 = arith.constant 0 : index
    %c0_444 = arith.constant 0 : index
    %769 = vector.load %arg13[%c3_442, %c0_443, %c0_444] : memref<9x8x16xf32, #tpu.memory_space<vmem>>, vector<1x8x16xf32>
    %770 = vector.shape_cast %769 : vector<1x8x16xf32> to vector<8x16xf32>
    %cst_445 = arith.constant dense<0.000000e+00> : vector<8x16xf32>
    %771 = tpu.matmul %770, %754, %cst_445 {dimension_numbers = #tpu.dot_dimension_numbers<[1], [0], [0], [1], [0, 0, 1, 1], [], []>} : vector<8x16xf32>, vector<16x16xf32>, vector<8x16xf32> -> vector<8x16xf32>
    %772 = arith.addf %768, %771 : vector<8x16xf32>
    %c7_446 = arith.constant 7 : index
    %c0_447 = arith.constant 0 : index
    %c0_448 = arith.constant 0 : index
    %773 = vector.load %arg13[%c7_446, %c0_447, %c0_448] : memref<9x8x16xf32, #tpu.memory_space<vmem>>, vector<1x8x16xf32>
    %774 = vector.shape_cast %773 : vector<1x8x16xf32> to vector<8x16xf32>
    %cst_449 = arith.constant dense<0.000000e+00> : vector<8x16xf32>
    %775 = tpu.matmul %774, %746, %cst_449 {dimension_numbers = #tpu.dot_dimension_numbers<[1], [0], [0], [1], [0, 0, 1, 1], [], []>} : vector<8x16xf32>, vector<16x16xf32>, vector<8x16xf32> -> vector<8x16xf32>
    %c1_450 = arith.constant 1 : index
    %c0_451 = arith.constant 0 : index
    %c0_452 = arith.constant 0 : index
    %776 = vector.load %arg13[%c1_450, %c0_451, %c0_452] : memref<9x8x16xf32, #tpu.memory_space<vmem>>, vector<1x8x16xf32>
    %777 = vector.shape_cast %776 : vector<1x8x16xf32> to vector<8x16xf32>
    %cst_453 = arith.constant dense<0.000000e+00> : vector<8x16xf32>
    %778 = tpu.matmul %777, %757, %cst_453 {dimension_numbers = #tpu.dot_dimension_numbers<[1], [0], [0], [1], [0, 0, 1, 1], [], []>} : vector<8x16xf32>, vector<16x16xf32>, vector<8x16xf32> -> vector<8x16xf32>
    %779 = arith.addf %775, %778 : vector<8x16xf32>
    %c8_454 = arith.constant 8 : index
    %c0_455 = arith.constant 0 : index
    %c0_456 = arith.constant 0 : index
    %780 = vector.load %arg13[%c8_454, %c0_455, %c0_456] : memref<9x8x16xf32, #tpu.memory_space<vmem>>, vector<1x8x16xf32>
    %781 = vector.shape_cast %780 : vector<1x8x16xf32> to vector<8x16xf32>
    %cst_457 = arith.constant dense<0.000000e+00> : vector<8x16xf32>
    %782 = tpu.matmul %781, %746, %cst_457 {dimension_numbers = #tpu.dot_dimension_numbers<[1], [0], [0], [1], [0, 0, 1, 1], [], []>} : vector<8x16xf32>, vector<16x16xf32>, vector<8x16xf32> -> vector<8x16xf32>
    %c6_458 = arith.constant 6 : index
    %c0_459 = arith.constant 0 : index
    %c0_460 = arith.constant 0 : index
    %783 = vector.load %arg13[%c6_458, %c0_459, %c0_460] : memref<9x8x16xf32, #tpu.memory_space<vmem>>, vector<1x8x16xf32>
    %784 = vector.shape_cast %783 : vector<1x8x16xf32> to vector<8x16xf32>
    %cst_461 = arith.constant dense<0.000000e+00> : vector<8x16xf32>
    %785 = tpu.matmul %784, %754, %cst_461 {dimension_numbers = #tpu.dot_dimension_numbers<[1], [0], [0], [1], [0, 0, 1, 1], [], []>} : vector<8x16xf32>, vector<16x16xf32>, vector<8x16xf32> -> vector<8x16xf32>
    %786 = arith.addf %782, %785 : vector<8x16xf32>
    %c2_462 = arith.constant 2 : index
    %c0_463 = arith.constant 0 : index
    %c0_464 = arith.constant 0 : index
    %787 = vector.load %arg13[%c2_462, %c0_463, %c0_464] : memref<9x8x16xf32, #tpu.memory_space<vmem>>, vector<1x8x16xf32>
    %788 = vector.shape_cast %787 : vector<1x8x16xf32> to vector<8x16xf32>
    %cst_465 = arith.constant dense<0.000000e+00> : vector<8x16xf32>
    %789 = tpu.matmul %788, %757, %cst_465 {dimension_numbers = #tpu.dot_dimension_numbers<[1], [0], [0], [1], [0, 0, 1, 1], [], []>} : vector<8x16xf32>, vector<16x16xf32>, vector<8x16xf32> -> vector<8x16xf32>
    %790 = arith.addf %786, %789 : vector<8x16xf32>
    %c0_466 = arith.constant 0 : index
    %c0_467 = arith.constant 0 : index
    %c0_468 = arith.constant 0 : index
    %791 = vector.load %arg13[%c0_466, %c0_467, %c0_468] : memref<9x8x16xf32, #tpu.memory_space<vmem>>, vector<1x8x16xf32>
    %792 = vector.shape_cast %791 : vector<1x8x16xf32> to vector<8x16xf32>
    %cst_469 = arith.constant dense<0.000000e+00> : vector<8x16xf32>
    %793 = tpu.matmul %792, %762, %cst_469 {dimension_numbers = #tpu.dot_dimension_numbers<[1], [0], [0], [1], [0, 0, 1, 1], [], []>} : vector<8x16xf32>, vector<16x16xf32>, vector<8x16xf32> -> vector<8x16xf32>
    %794 = arith.addf %790, %793 : vector<8x16xf32>
    %c0_470 = arith.constant 0 : index
    %c0_471 = arith.constant 0 : index
    %c0_472 = arith.constant 0 : index
    %795 = vector.load %arg6[%c0_470, %c0_471, %c0_472] : memref<4x16x64xf32, #tpu.memory_space<vmem>>, vector<1x16x64xf32>
    %796 = vector.shape_cast %795 : vector<1x16x64xf32> to vector<16x64xf32>
    %cst_473 = arith.constant dense<0.000000e+00> : vector<8x64xf32>
    %797 = tpu.matmul %765, %796, %cst_473 {dimension_numbers = #tpu.dot_dimension_numbers<[1], [0], [0], [1], [0, 0, 1, 1], [], []>} : vector<8x16xf32>, vector<16x64xf32>, vector<8x64xf32> -> vector<8x64xf32>
    %c1_474 = arith.constant 1 : index
    %c0_475 = arith.constant 0 : index
    %c0_476 = arith.constant 0 : index
    %798 = vector.load %arg6[%c1_474, %c0_475, %c0_476] : memref<4x16x64xf32, #tpu.memory_space<vmem>>, vector<1x16x64xf32>
    %799 = vector.shape_cast %798 : vector<1x16x64xf32> to vector<16x64xf32>
    %cst_477 = arith.constant dense<0.000000e+00> : vector<8x64xf32>
    %800 = tpu.matmul %772, %799, %cst_477 {dimension_numbers = #tpu.dot_dimension_numbers<[1], [0], [0], [1], [0, 0, 1, 1], [], []>} : vector<8x16xf32>, vector<16x64xf32>, vector<8x64xf32> -> vector<8x64xf32>
    %801 = arith.addf %797, %800 : vector<8x64xf32>
    %c2_478 = arith.constant 2 : index
    %c0_479 = arith.constant 0 : index
    %c0_480 = arith.constant 0 : index
    %802 = vector.load %arg6[%c2_478, %c0_479, %c0_480] : memref<4x16x64xf32, #tpu.memory_space<vmem>>, vector<1x16x64xf32>
    %803 = vector.shape_cast %802 : vector<1x16x64xf32> to vector<16x64xf32>
    %cst_481 = arith.constant dense<0.000000e+00> : vector<8x64xf32>
    %804 = tpu.matmul %779, %803, %cst_481 {dimension_numbers = #tpu.dot_dimension_numbers<[1], [0], [0], [1], [0, 0, 1, 1], [], []>} : vector<8x16xf32>, vector<16x64xf32>, vector<8x64xf32> -> vector<8x64xf32>
    %805 = arith.addf %801, %804 : vector<8x64xf32>
    %c3_482 = arith.constant 3 : index
    %c0_483 = arith.constant 0 : index
    %c0_484 = arith.constant 0 : index
    %806 = vector.load %arg6[%c3_482, %c0_483, %c0_484] : memref<4x16x64xf32, #tpu.memory_space<vmem>>, vector<1x16x64xf32>
    %807 = vector.shape_cast %806 : vector<1x16x64xf32> to vector<16x64xf32>
    %cst_485 = arith.constant dense<0.000000e+00> : vector<8x64xf32>
    %808 = tpu.matmul %794, %807, %cst_485 {dimension_numbers = #tpu.dot_dimension_numbers<[1], [0], [0], [1], [0, 0, 1, 1], [], []>} : vector<8x16xf32>, vector<16x64xf32>, vector<8x64xf32> -> vector<8x64xf32>
    %809 = arith.addf %805, %808 : vector<8x64xf32>
    %c144 = arith.constant 144 : index
    %c0_486 = arith.constant 0 : index
    %810 = vector.load %arg3[%c144, %c0_486] : memref<204x1xf32, #tpu.memory_space<vmem>>, vector<8x1xf32>
    %811 = vector.broadcast %810 : vector<8x1xf32> to vector<8x64xf32>
    %812 = arith.addf %809, %811 : vector<8x64xf32>
    %813 = arith.addf %812, %498 : vector<8x64xf32>
    %cst_487 = arith.constant 0.000000e+00 : f32
    %814 = vector.broadcast %cst_487 : f32 to vector<8x9xf32>
    %815 = vector.extract_strided_slice %813 {offsets = [0, 0], sizes = [8, 55], strides = [1, 1]} : vector<8x64xf32> to vector<8x55xf32>
    %816 = tpu.concatenate %814, %815 in 1 : vector<8x9xf32>, vector<8x55xf32> -> vector<8x64xf32>
    %817 = vector.broadcast %342 : vector<1x64xf32> to vector<8x64xf32>
    %818 = arith.mulf %816, %817 : vector<8x64xf32>
    %c0_488 = arith.constant 0 : index
    %c0_489 = arith.constant 0 : index
    %c0_490 = arith.constant 0 : index
    %819 = vector.load %arg15[%c0_488, %c0_489, %c0_490] : memref<9x8x8xf32, #tpu.memory_space<vmem>>, vector<1x8x8xf32>
    %820 = vector.shape_cast %819 : vector<1x8x8xf32> to vector<8x8xf32>
    %cst_491 = arith.constant dense<0.000000e+00> : vector<8x64xf32>
    %821 = tpu.matmul %820, %818, %cst_491 {dimension_numbers = #tpu.dot_dimension_numbers<[1], [0], [0], [1], [0, 0, 1, 1], [], []>} : vector<8x8xf32>, vector<8x64xf32>, vector<8x64xf32> -> vector<8x64xf32>
    %cst_492 = arith.constant 0.000000e+00 : f32
    %822 = vector.broadcast %cst_492 : f32 to vector<8x8xf32>
    %823 = vector.extract_strided_slice %813 {offsets = [0, 0], sizes = [8, 56], strides = [1, 1]} : vector<8x64xf32> to vector<8x56xf32>
    %824 = tpu.concatenate %822, %823 in 1 : vector<8x8xf32>, vector<8x56xf32> -> vector<8x64xf32>
    %c1_493 = arith.constant 1 : index
    %c0_494 = arith.constant 0 : index
    %c0_495 = arith.constant 0 : index
    %825 = vector.load %arg15[%c1_493, %c0_494, %c0_495] : memref<9x8x8xf32, #tpu.memory_space<vmem>>, vector<1x8x8xf32>
    %826 = vector.shape_cast %825 : vector<1x8x8xf32> to vector<8x8xf32>
    %cst_496 = arith.constant dense<0.000000e+00> : vector<8x64xf32>
    %827 = tpu.matmul %826, %824, %cst_496 {dimension_numbers = #tpu.dot_dimension_numbers<[1], [0], [0], [1], [0, 0, 1, 1], [], []>} : vector<8x8xf32>, vector<8x64xf32>, vector<8x64xf32> -> vector<8x64xf32>
    %828 = arith.addf %821, %827 : vector<8x64xf32>
    %cst_497 = arith.constant 0.000000e+00 : f32
    %829 = vector.broadcast %cst_497 : f32 to vector<8x7xf32>
    %830 = vector.extract_strided_slice %813 {offsets = [0, 0], sizes = [8, 57], strides = [1, 1]} : vector<8x64xf32> to vector<8x57xf32>
    %831 = tpu.concatenate %829, %830 in 1 : vector<8x7xf32>, vector<8x57xf32> -> vector<8x64xf32>
    %832 = vector.broadcast %338 : vector<1x64xf32> to vector<8x64xf32>
    %833 = arith.mulf %831, %832 : vector<8x64xf32>
    %c2_498 = arith.constant 2 : index
    %c0_499 = arith.constant 0 : index
    %c0_500 = arith.constant 0 : index
    %834 = vector.load %arg15[%c2_498, %c0_499, %c0_500] : memref<9x8x8xf32, #tpu.memory_space<vmem>>, vector<1x8x8xf32>
    %835 = vector.shape_cast %834 : vector<1x8x8xf32> to vector<8x8xf32>
    %cst_501 = arith.constant dense<0.000000e+00> : vector<8x64xf32>
    %836 = tpu.matmul %835, %833, %cst_501 {dimension_numbers = #tpu.dot_dimension_numbers<[1], [0], [0], [1], [0, 0, 1, 1], [], []>} : vector<8x8xf32>, vector<8x64xf32>, vector<8x64xf32> -> vector<8x64xf32>
    %837 = arith.addf %828, %836 : vector<8x64xf32>
    %cst_502 = arith.constant 0.000000e+00 : f32
    %838 = vector.broadcast %cst_502 : f32 to vector<8x1xf32>
    %839 = vector.extract_strided_slice %813 {offsets = [0, 0], sizes = [8, 63], strides = [1, 1]} : vector<8x64xf32> to vector<8x63xf32>
    %840 = tpu.concatenate %838, %839 in 1 : vector<8x1xf32>, vector<8x63xf32> -> vector<8x64xf32>
    %841 = vector.broadcast %342 : vector<1x64xf32> to vector<8x64xf32>
    %842 = arith.mulf %840, %841 : vector<8x64xf32>
    %c3_503 = arith.constant 3 : index
    %c0_504 = arith.constant 0 : index
    %c0_505 = arith.constant 0 : index
    %843 = vector.load %arg15[%c3_503, %c0_504, %c0_505] : memref<9x8x8xf32, #tpu.memory_space<vmem>>, vector<1x8x8xf32>
    %844 = vector.shape_cast %843 : vector<1x8x8xf32> to vector<8x8xf32>
    %cst_506 = arith.constant dense<0.000000e+00> : vector<8x64xf32>
    %845 = tpu.matmul %844, %842, %cst_506 {dimension_numbers = #tpu.dot_dimension_numbers<[1], [0], [0], [1], [0, 0, 1, 1], [], []>} : vector<8x8xf32>, vector<8x64xf32>, vector<8x64xf32> -> vector<8x64xf32>
    %846 = arith.addf %837, %845 : vector<8x64xf32>
    %c4_507 = arith.constant 4 : index
    %c0_508 = arith.constant 0 : index
    %c0_509 = arith.constant 0 : index
    %847 = vector.load %arg15[%c4_507, %c0_508, %c0_509] : memref<9x8x8xf32, #tpu.memory_space<vmem>>, vector<1x8x8xf32>
    %848 = vector.shape_cast %847 : vector<1x8x8xf32> to vector<8x8xf32>
    %cst_510 = arith.constant dense<0.000000e+00> : vector<8x64xf32>
    %849 = tpu.matmul %848, %813, %cst_510 {dimension_numbers = #tpu.dot_dimension_numbers<[1], [0], [0], [1], [0, 0, 1, 1], [], []>} : vector<8x8xf32>, vector<8x64xf32>, vector<8x64xf32> -> vector<8x64xf32>
    %850 = arith.addf %846, %849 : vector<8x64xf32>
    %851 = vector.extract_strided_slice %813 {offsets = [0, 1], sizes = [8, 63], strides = [1, 1]} : vector<8x64xf32> to vector<8x63xf32>
    %cst_511 = arith.constant 0.000000e+00 : f32
    %852 = vector.broadcast %cst_511 : f32 to vector<8x1xf32>
    %853 = tpu.concatenate %851, %852 in 1 : vector<8x63xf32>, vector<8x1xf32> -> vector<8x64xf32>
    %854 = vector.broadcast %338 : vector<1x64xf32> to vector<8x64xf32>
    %855 = arith.mulf %853, %854 : vector<8x64xf32>
    %c5_512 = arith.constant 5 : index
    %c0_513 = arith.constant 0 : index
    %c0_514 = arith.constant 0 : index
    %856 = vector.load %arg15[%c5_512, %c0_513, %c0_514] : memref<9x8x8xf32, #tpu.memory_space<vmem>>, vector<1x8x8xf32>
    %857 = vector.shape_cast %856 : vector<1x8x8xf32> to vector<8x8xf32>
    %cst_515 = arith.constant dense<0.000000e+00> : vector<8x64xf32>
    %858 = tpu.matmul %857, %855, %cst_515 {dimension_numbers = #tpu.dot_dimension_numbers<[1], [0], [0], [1], [0, 0, 1, 1], [], []>} : vector<8x8xf32>, vector<8x64xf32>, vector<8x64xf32> -> vector<8x64xf32>
    %859 = arith.addf %850, %858 : vector<8x64xf32>
    %860 = vector.extract_strided_slice %813 {offsets = [0, 7], sizes = [8, 57], strides = [1, 1]} : vector<8x64xf32> to vector<8x57xf32>
    %cst_516 = arith.constant 0.000000e+00 : f32
    %861 = vector.broadcast %cst_516 : f32 to vector<8x7xf32>
    %862 = tpu.concatenate %860, %861 in 1 : vector<8x57xf32>, vector<8x7xf32> -> vector<8x64xf32>
    %863 = vector.broadcast %342 : vector<1x64xf32> to vector<8x64xf32>
    %864 = arith.mulf %862, %863 : vector<8x64xf32>
    %c6_517 = arith.constant 6 : index
    %c0_518 = arith.constant 0 : index
    %c0_519 = arith.constant 0 : index
    %865 = vector.load %arg15[%c6_517, %c0_518, %c0_519] : memref<9x8x8xf32, #tpu.memory_space<vmem>>, vector<1x8x8xf32>
    %866 = vector.shape_cast %865 : vector<1x8x8xf32> to vector<8x8xf32>
    %cst_520 = arith.constant dense<0.000000e+00> : vector<8x64xf32>
    %867 = tpu.matmul %866, %864, %cst_520 {dimension_numbers = #tpu.dot_dimension_numbers<[1], [0], [0], [1], [0, 0, 1, 1], [], []>} : vector<8x8xf32>, vector<8x64xf32>, vector<8x64xf32> -> vector<8x64xf32>
    %868 = arith.addf %859, %867 : vector<8x64xf32>
    %869 = vector.extract_strided_slice %813 {offsets = [0, 8], sizes = [8, 56], strides = [1, 1]} : vector<8x64xf32> to vector<8x56xf32>
    %cst_521 = arith.constant 0.000000e+00 : f32
    %870 = vector.broadcast %cst_521 : f32 to vector<8x8xf32>
    %871 = tpu.concatenate %869, %870 in 1 : vector<8x56xf32>, vector<8x8xf32> -> vector<8x64xf32>
    %c7_522 = arith.constant 7 : index
    %c0_523 = arith.constant 0 : index
    %c0_524 = arith.constant 0 : index
    %872 = vector.load %arg15[%c7_522, %c0_523, %c0_524] : memref<9x8x8xf32, #tpu.memory_space<vmem>>, vector<1x8x8xf32>
    %873 = vector.shape_cast %872 : vector<1x8x8xf32> to vector<8x8xf32>
    %cst_525 = arith.constant dense<0.000000e+00> : vector<8x64xf32>
    %874 = tpu.matmul %873, %871, %cst_525 {dimension_numbers = #tpu.dot_dimension_numbers<[1], [0], [0], [1], [0, 0, 1, 1], [], []>} : vector<8x8xf32>, vector<8x64xf32>, vector<8x64xf32> -> vector<8x64xf32>
    %875 = arith.addf %868, %874 : vector<8x64xf32>
    %876 = vector.extract_strided_slice %813 {offsets = [0, 9], sizes = [8, 55], strides = [1, 1]} : vector<8x64xf32> to vector<8x55xf32>
    %cst_526 = arith.constant 0.000000e+00 : f32
    %877 = vector.broadcast %cst_526 : f32 to vector<8x9xf32>
    %878 = tpu.concatenate %876, %877 in 1 : vector<8x55xf32>, vector<8x9xf32> -> vector<8x64xf32>
    %879 = vector.broadcast %338 : vector<1x64xf32> to vector<8x64xf32>
    %880 = arith.mulf %878, %879 : vector<8x64xf32>
    %c8_527 = arith.constant 8 : index
    %c0_528 = arith.constant 0 : index
    %c0_529 = arith.constant 0 : index
    %881 = vector.load %arg15[%c8_527, %c0_528, %c0_529] : memref<9x8x8xf32, #tpu.memory_space<vmem>>, vector<1x8x8xf32>
    %882 = vector.shape_cast %881 : vector<1x8x8xf32> to vector<8x8xf32>
    %cst_530 = arith.constant dense<0.000000e+00> : vector<8x64xf32>
    %883 = tpu.matmul %882, %880, %cst_530 {dimension_numbers = #tpu.dot_dimension_numbers<[1], [0], [0], [1], [0, 0, 1, 1], [], []>} : vector<8x8xf32>, vector<8x64xf32>, vector<8x64xf32> -> vector<8x64xf32>
    %884 = arith.addf %875, %883 : vector<8x64xf32>
    %c152 = arith.constant 152 : index
    %c0_531 = arith.constant 0 : index
    %885 = vector.load %arg3[%c152, %c0_531] : memref<204x1xf32, #tpu.memory_space<vmem>>, vector<8x1xf32>
    %886 = vector.broadcast %885 : vector<8x1xf32> to vector<8x64xf32>
    %887 = arith.mulf %884, %886 : vector<8x64xf32>
    %c160 = arith.constant 160 : index
    %c0_532 = arith.constant 0 : index
    %888 = vector.load %arg3[%c160, %c0_532] : memref<204x1xf32, #tpu.memory_space<vmem>>, vector<8x1xf32>
    %889 = vector.broadcast %888 : vector<8x1xf32> to vector<8x64xf32>
    %890 = arith.addf %887, %889 : vector<8x64xf32>
    %cst_533 = arith.constant 0.000000e+00 : f32
    %891 = vector.broadcast %cst_533 : f32 to vector<8x64xf32>
    %892 = arith.maximumf %890, %891 : vector<8x64xf32>
    %cst_534 = arith.constant 0.000000e+00 : f32
    %893 = vector.broadcast %cst_534 : f32 to vector<8x9xf32>
    %894 = vector.extract_strided_slice %892 {offsets = [0, 0], sizes = [8, 55], strides = [1, 1]} : vector<8x64xf32> to vector<8x55xf32>
    %895 = tpu.concatenate %893, %894 in 1 : vector<8x9xf32>, vector<8x55xf32> -> vector<8x64xf32>
    %896 = vector.broadcast %342 : vector<1x64xf32> to vector<8x64xf32>
    %897 = arith.mulf %895, %896 : vector<8x64xf32>
    %c0_535 = arith.constant 0 : index
    %c0_536 = arith.constant 0 : index
    %c0_537 = arith.constant 0 : index
    %898 = vector.load %arg15[%c0_535, %c0_536, %c0_537] : memref<9x8x8xf32, #tpu.memory_space<vmem>>, vector<1x8x8xf32>
    %899 = vector.shape_cast %898 : vector<1x8x8xf32> to vector<8x8xf32>
    %cst_538 = arith.constant dense<0.000000e+00> : vector<8x64xf32>
    %900 = tpu.matmul %899, %897, %cst_538 {dimension_numbers = #tpu.dot_dimension_numbers<[1], [0], [0], [1], [0, 0, 1, 1], [], []>} : vector<8x8xf32>, vector<8x64xf32>, vector<8x64xf32> -> vector<8x64xf32>
    %cst_539 = arith.constant 0.000000e+00 : f32
    %901 = vector.broadcast %cst_539 : f32 to vector<8x8xf32>
    %902 = vector.extract_strided_slice %892 {offsets = [0, 0], sizes = [8, 56], strides = [1, 1]} : vector<8x64xf32> to vector<8x56xf32>
    %903 = tpu.concatenate %901, %902 in 1 : vector<8x8xf32>, vector<8x56xf32> -> vector<8x64xf32>
    %c1_540 = arith.constant 1 : index
    %c0_541 = arith.constant 0 : index
    %c0_542 = arith.constant 0 : index
    %904 = vector.load %arg15[%c1_540, %c0_541, %c0_542] : memref<9x8x8xf32, #tpu.memory_space<vmem>>, vector<1x8x8xf32>
    %905 = vector.shape_cast %904 : vector<1x8x8xf32> to vector<8x8xf32>
    %cst_543 = arith.constant dense<0.000000e+00> : vector<8x64xf32>
    %906 = tpu.matmul %905, %903, %cst_543 {dimension_numbers = #tpu.dot_dimension_numbers<[1], [0], [0], [1], [0, 0, 1, 1], [], []>} : vector<8x8xf32>, vector<8x64xf32>, vector<8x64xf32> -> vector<8x64xf32>
    %907 = arith.addf %900, %906 : vector<8x64xf32>
    %cst_544 = arith.constant 0.000000e+00 : f32
    %908 = vector.broadcast %cst_544 : f32 to vector<8x7xf32>
    %909 = vector.extract_strided_slice %892 {offsets = [0, 0], sizes = [8, 57], strides = [1, 1]} : vector<8x64xf32> to vector<8x57xf32>
    %910 = tpu.concatenate %908, %909 in 1 : vector<8x7xf32>, vector<8x57xf32> -> vector<8x64xf32>
    %911 = vector.broadcast %338 : vector<1x64xf32> to vector<8x64xf32>
    %912 = arith.mulf %910, %911 : vector<8x64xf32>
    %c2_545 = arith.constant 2 : index
    %c0_546 = arith.constant 0 : index
    %c0_547 = arith.constant 0 : index
    %913 = vector.load %arg15[%c2_545, %c0_546, %c0_547] : memref<9x8x8xf32, #tpu.memory_space<vmem>>, vector<1x8x8xf32>
    %914 = vector.shape_cast %913 : vector<1x8x8xf32> to vector<8x8xf32>
    %cst_548 = arith.constant dense<0.000000e+00> : vector<8x64xf32>
    %915 = tpu.matmul %914, %912, %cst_548 {dimension_numbers = #tpu.dot_dimension_numbers<[1], [0], [0], [1], [0, 0, 1, 1], [], []>} : vector<8x8xf32>, vector<8x64xf32>, vector<8x64xf32> -> vector<8x64xf32>
    %916 = arith.addf %907, %915 : vector<8x64xf32>
    %cst_549 = arith.constant 0.000000e+00 : f32
    %917 = vector.broadcast %cst_549 : f32 to vector<8x1xf32>
    %918 = vector.extract_strided_slice %892 {offsets = [0, 0], sizes = [8, 63], strides = [1, 1]} : vector<8x64xf32> to vector<8x63xf32>
    %919 = tpu.concatenate %917, %918 in 1 : vector<8x1xf32>, vector<8x63xf32> -> vector<8x64xf32>
    %920 = vector.broadcast %342 : vector<1x64xf32> to vector<8x64xf32>
    %921 = arith.mulf %919, %920 : vector<8x64xf32>
    %c3_550 = arith.constant 3 : index
    %c0_551 = arith.constant 0 : index
    %c0_552 = arith.constant 0 : index
    %922 = vector.load %arg15[%c3_550, %c0_551, %c0_552] : memref<9x8x8xf32, #tpu.memory_space<vmem>>, vector<1x8x8xf32>
    %923 = vector.shape_cast %922 : vector<1x8x8xf32> to vector<8x8xf32>
    %cst_553 = arith.constant dense<0.000000e+00> : vector<8x64xf32>
    %924 = tpu.matmul %923, %921, %cst_553 {dimension_numbers = #tpu.dot_dimension_numbers<[1], [0], [0], [1], [0, 0, 1, 1], [], []>} : vector<8x8xf32>, vector<8x64xf32>, vector<8x64xf32> -> vector<8x64xf32>
    %925 = arith.addf %916, %924 : vector<8x64xf32>
    %c4_554 = arith.constant 4 : index
    %c0_555 = arith.constant 0 : index
    %c0_556 = arith.constant 0 : index
    %926 = vector.load %arg15[%c4_554, %c0_555, %c0_556] : memref<9x8x8xf32, #tpu.memory_space<vmem>>, vector<1x8x8xf32>
    %927 = vector.shape_cast %926 : vector<1x8x8xf32> to vector<8x8xf32>
    %cst_557 = arith.constant dense<0.000000e+00> : vector<8x64xf32>
    %928 = tpu.matmul %927, %892, %cst_557 {dimension_numbers = #tpu.dot_dimension_numbers<[1], [0], [0], [1], [0, 0, 1, 1], [], []>} : vector<8x8xf32>, vector<8x64xf32>, vector<8x64xf32> -> vector<8x64xf32>
    %929 = arith.addf %925, %928 : vector<8x64xf32>
    %930 = vector.extract_strided_slice %892 {offsets = [0, 1], sizes = [8, 63], strides = [1, 1]} : vector<8x64xf32> to vector<8x63xf32>
    %cst_558 = arith.constant 0.000000e+00 : f32
    %931 = vector.broadcast %cst_558 : f32 to vector<8x1xf32>
    %932 = tpu.concatenate %930, %931 in 1 : vector<8x63xf32>, vector<8x1xf32> -> vector<8x64xf32>
    %933 = vector.broadcast %338 : vector<1x64xf32> to vector<8x64xf32>
    %934 = arith.mulf %932, %933 : vector<8x64xf32>
    %c5_559 = arith.constant 5 : index
    %c0_560 = arith.constant 0 : index
    %c0_561 = arith.constant 0 : index
    %935 = vector.load %arg15[%c5_559, %c0_560, %c0_561] : memref<9x8x8xf32, #tpu.memory_space<vmem>>, vector<1x8x8xf32>
    %936 = vector.shape_cast %935 : vector<1x8x8xf32> to vector<8x8xf32>
    %cst_562 = arith.constant dense<0.000000e+00> : vector<8x64xf32>
    %937 = tpu.matmul %936, %934, %cst_562 {dimension_numbers = #tpu.dot_dimension_numbers<[1], [0], [0], [1], [0, 0, 1, 1], [], []>} : vector<8x8xf32>, vector<8x64xf32>, vector<8x64xf32> -> vector<8x64xf32>
    %938 = arith.addf %929, %937 : vector<8x64xf32>
    %939 = vector.extract_strided_slice %892 {offsets = [0, 7], sizes = [8, 57], strides = [1, 1]} : vector<8x64xf32> to vector<8x57xf32>
    %cst_563 = arith.constant 0.000000e+00 : f32
    %940 = vector.broadcast %cst_563 : f32 to vector<8x7xf32>
    %941 = tpu.concatenate %939, %940 in 1 : vector<8x57xf32>, vector<8x7xf32> -> vector<8x64xf32>
    %942 = vector.broadcast %342 : vector<1x64xf32> to vector<8x64xf32>
    %943 = arith.mulf %941, %942 : vector<8x64xf32>
    %c6_564 = arith.constant 6 : index
    %c0_565 = arith.constant 0 : index
    %c0_566 = arith.constant 0 : index
    %944 = vector.load %arg15[%c6_564, %c0_565, %c0_566] : memref<9x8x8xf32, #tpu.memory_space<vmem>>, vector<1x8x8xf32>
    %945 = vector.shape_cast %944 : vector<1x8x8xf32> to vector<8x8xf32>
    %cst_567 = arith.constant dense<0.000000e+00> : vector<8x64xf32>
    %946 = tpu.matmul %945, %943, %cst_567 {dimension_numbers = #tpu.dot_dimension_numbers<[1], [0], [0], [1], [0, 0, 1, 1], [], []>} : vector<8x8xf32>, vector<8x64xf32>, vector<8x64xf32> -> vector<8x64xf32>
    %947 = arith.addf %938, %946 : vector<8x64xf32>
    %948 = vector.extract_strided_slice %892 {offsets = [0, 8], sizes = [8, 56], strides = [1, 1]} : vector<8x64xf32> to vector<8x56xf32>
    %cst_568 = arith.constant 0.000000e+00 : f32
    %949 = vector.broadcast %cst_568 : f32 to vector<8x8xf32>
    %950 = tpu.concatenate %948, %949 in 1 : vector<8x56xf32>, vector<8x8xf32> -> vector<8x64xf32>
    %c7_569 = arith.constant 7 : index
    %c0_570 = arith.constant 0 : index
    %c0_571 = arith.constant 0 : index
    %951 = vector.load %arg15[%c7_569, %c0_570, %c0_571] : memref<9x8x8xf32, #tpu.memory_space<vmem>>, vector<1x8x8xf32>
    %952 = vector.shape_cast %951 : vector<1x8x8xf32> to vector<8x8xf32>
    %cst_572 = arith.constant dense<0.000000e+00> : vector<8x64xf32>
    %953 = tpu.matmul %952, %950, %cst_572 {dimension_numbers = #tpu.dot_dimension_numbers<[1], [0], [0], [1], [0, 0, 1, 1], [], []>} : vector<8x8xf32>, vector<8x64xf32>, vector<8x64xf32> -> vector<8x64xf32>
    %954 = arith.addf %947, %953 : vector<8x64xf32>
    %955 = vector.extract_strided_slice %892 {offsets = [0, 9], sizes = [8, 55], strides = [1, 1]} : vector<8x64xf32> to vector<8x55xf32>
    %cst_573 = arith.constant 0.000000e+00 : f32
    %956 = vector.broadcast %cst_573 : f32 to vector<8x9xf32>
    %957 = tpu.concatenate %955, %956 in 1 : vector<8x55xf32>, vector<8x9xf32> -> vector<8x64xf32>
    %958 = vector.broadcast %338 : vector<1x64xf32> to vector<8x64xf32>
    %959 = arith.mulf %957, %958 : vector<8x64xf32>
    %c8_574 = arith.constant 8 : index
    %c0_575 = arith.constant 0 : index
    %c0_576 = arith.constant 0 : index
    %960 = vector.load %arg15[%c8_574, %c0_575, %c0_576] : memref<9x8x8xf32, #tpu.memory_space<vmem>>, vector<1x8x8xf32>
    %961 = vector.shape_cast %960 : vector<1x8x8xf32> to vector<8x8xf32>
    %cst_577 = arith.constant dense<0.000000e+00> : vector<8x64xf32>
    %962 = tpu.matmul %961, %959, %cst_577 {dimension_numbers = #tpu.dot_dimension_numbers<[1], [0], [0], [1], [0, 0, 1, 1], [], []>} : vector<8x8xf32>, vector<8x64xf32>, vector<8x64xf32> -> vector<8x64xf32>
    %963 = arith.addf %954, %962 : vector<8x64xf32>
    %c168 = arith.constant 168 : index
    %c0_578 = arith.constant 0 : index
    %964 = vector.load %arg3[%c168, %c0_578] : memref<204x1xf32, #tpu.memory_space<vmem>>, vector<8x1xf32>
    %965 = vector.broadcast %964 : vector<8x1xf32> to vector<8x64xf32>
    %966 = arith.mulf %963, %965 : vector<8x64xf32>
    %c176 = arith.constant 176 : index
    %c0_579 = arith.constant 0 : index
    %967 = vector.load %arg3[%c176, %c0_579] : memref<204x1xf32, #tpu.memory_space<vmem>>, vector<8x1xf32>
    %968 = vector.broadcast %967 : vector<8x1xf32> to vector<8x64xf32>
    %969 = arith.addf %966, %968 : vector<8x64xf32>
    %970 = arith.addf %969, %813 : vector<8x64xf32>
    %cst_580 = arith.constant 0.000000e+00 : f32
    %971 = vector.broadcast %cst_580 : f32 to vector<8x64xf32>
    %972 = arith.maximumf %970, %971 : vector<8x64xf32>
    %c0_581 = arith.constant 0 : index
    %c0_582 = arith.constant 0 : index
    %c0_583 = arith.constant 0 : index
    %973 = vector.load %arg18[%c0_581, %c0_582, %c0_583] : memref<1x8x64xf32, #tpu.memory_space<vmem>>, vector<1x8x64xf32>
    %974 = vector.shape_cast %973 : vector<1x8x64xf32> to vector<8x64xf32>
    %975 = vector.shape_cast %972 : vector<8x64xf32> to vector<1x8x64xf32>
    tpu.vector_store %arg18[%c0_581, %c0_582, %c0_583], %975 {strides = array<i32>} : memref<1x8x64xf32, #tpu.memory_space<vmem>>, vector<1x8x64xf32>,
    %976 = vector.extract_strided_slice %972 {offsets = [0, 1], sizes = [8, 63], strides = [1, 1]} : vector<8x64xf32> to vector<8x63xf32>
    %cst_584 = arith.constant 0.000000e+00 : f32
    %977 = vector.broadcast %cst_584 : f32 to vector<8x1xf32>
    %978 = tpu.concatenate %976, %977 in 1 : vector<8x63xf32>, vector<8x1xf32> -> vector<8x64xf32>
    %979 = vector.broadcast %338 : vector<1x64xf32> to vector<8x64xf32>
    %980 = arith.mulf %978, %979 : vector<8x64xf32>
    %981 = vector.extract_strided_slice %972 {offsets = [0, 8], sizes = [8, 56], strides = [1, 1]} : vector<8x64xf32> to vector<8x56xf32>
    %cst_585 = arith.constant 0.000000e+00 : f32
    %982 = vector.broadcast %cst_585 : f32 to vector<8x8xf32>
    %983 = tpu.concatenate %981, %982 in 1 : vector<8x56xf32>, vector<8x8xf32> -> vector<8x64xf32>
    %984 = vector.extract_strided_slice %972 {offsets = [0, 9], sizes = [8, 55], strides = [1, 1]} : vector<8x64xf32> to vector<8x55xf32>
    %cst_586 = arith.constant 0.000000e+00 : f32
    %985 = vector.broadcast %cst_586 : f32 to vector<8x9xf32>
    %986 = tpu.concatenate %984, %985 in 1 : vector<8x55xf32>, vector<8x9xf32> -> vector<8x64xf32>
    %987 = vector.broadcast %338 : vector<1x64xf32> to vector<8x64xf32>
    %988 = arith.mulf %986, %987 : vector<8x64xf32>
    %c4_587 = arith.constant 4 : index
    %c0_588 = arith.constant 0 : index
    %c0_589 = arith.constant 0 : index
    %989 = vector.load %arg14[%c4_587, %c0_588, %c0_589] : memref<9x4x8xf32, #tpu.memory_space<vmem>>, vector<1x4x8xf32>
    %990 = vector.shape_cast %989 : vector<1x4x8xf32> to vector<4x8xf32>
    %cst_590 = arith.constant dense<0.000000e+00> : vector<4x64xf32>
    %991 = tpu.matmul %990, %972, %cst_590 {dimension_numbers = #tpu.dot_dimension_numbers<[1], [0], [0], [1], [0, 0, 1, 1], [], []>} : vector<4x8xf32>, vector<8x64xf32>, vector<4x64xf32> -> vector<4x64xf32>
    %c5_591 = arith.constant 5 : index
    %c0_592 = arith.constant 0 : index
    %c0_593 = arith.constant 0 : index
    %992 = vector.load %arg14[%c5_591, %c0_592, %c0_593] : memref<9x4x8xf32, #tpu.memory_space<vmem>>, vector<1x4x8xf32>
    %993 = vector.shape_cast %992 : vector<1x4x8xf32> to vector<4x8xf32>
    %cst_594 = arith.constant dense<0.000000e+00> : vector<4x64xf32>
    %994 = tpu.matmul %993, %972, %cst_594 {dimension_numbers = #tpu.dot_dimension_numbers<[1], [0], [0], [1], [0, 0, 1, 1], [], []>} : vector<4x8xf32>, vector<8x64xf32>, vector<4x64xf32> -> vector<4x64xf32>
    %c3_595 = arith.constant 3 : index
    %c0_596 = arith.constant 0 : index
    %c0_597 = arith.constant 0 : index
    %995 = vector.load %arg14[%c3_595, %c0_596, %c0_597] : memref<9x4x8xf32, #tpu.memory_space<vmem>>, vector<1x4x8xf32>
    %996 = vector.shape_cast %995 : vector<1x4x8xf32> to vector<4x8xf32>
    %cst_598 = arith.constant dense<0.000000e+00> : vector<4x64xf32>
    %997 = tpu.matmul %996, %980, %cst_598 {dimension_numbers = #tpu.dot_dimension_numbers<[1], [0], [0], [1], [0, 0, 1, 1], [], []>} : vector<4x8xf32>, vector<8x64xf32>, vector<4x64xf32> -> vector<4x64xf32>
    %998 = arith.addf %994, %997 : vector<4x64xf32>
    %c7_599 = arith.constant 7 : index
    %c0_600 = arith.constant 0 : index
    %c0_601 = arith.constant 0 : index
    %999 = vector.load %arg14[%c7_599, %c0_600, %c0_601] : memref<9x4x8xf32, #tpu.memory_space<vmem>>, vector<1x4x8xf32>
    %1000 = vector.shape_cast %999 : vector<1x4x8xf32> to vector<4x8xf32>
    %cst_602 = arith.constant dense<0.000000e+00> : vector<4x64xf32>
    %1001 = tpu.matmul %1000, %972, %cst_602 {dimension_numbers = #tpu.dot_dimension_numbers<[1], [0], [0], [1], [0, 0, 1, 1], [], []>} : vector<4x8xf32>, vector<8x64xf32>, vector<4x64xf32> -> vector<4x64xf32>
    %c1_603 = arith.constant 1 : index
    %c0_604 = arith.constant 0 : index
    %c0_605 = arith.constant 0 : index
    %1002 = vector.load %arg14[%c1_603, %c0_604, %c0_605] : memref<9x4x8xf32, #tpu.memory_space<vmem>>, vector<1x4x8xf32>
    %1003 = vector.shape_cast %1002 : vector<1x4x8xf32> to vector<4x8xf32>
    %cst_606 = arith.constant dense<0.000000e+00> : vector<4x64xf32>
    %1004 = tpu.matmul %1003, %983, %cst_606 {dimension_numbers = #tpu.dot_dimension_numbers<[1], [0], [0], [1], [0, 0, 1, 1], [], []>} : vector<4x8xf32>, vector<8x64xf32>, vector<4x64xf32> -> vector<4x64xf32>
    %1005 = arith.addf %1001, %1004 : vector<4x64xf32>
    %c8_607 = arith.constant 8 : index
    %c0_608 = arith.constant 0 : index
    %c0_609 = arith.constant 0 : index
    %1006 = vector.load %arg14[%c8_607, %c0_608, %c0_609] : memref<9x4x8xf32, #tpu.memory_space<vmem>>, vector<1x4x8xf32>
    %1007 = vector.shape_cast %1006 : vector<1x4x8xf32> to vector<4x8xf32>
    %cst_610 = arith.constant dense<0.000000e+00> : vector<4x64xf32>
    %1008 = tpu.matmul %1007, %972, %cst_610 {dimension_numbers = #tpu.dot_dimension_numbers<[1], [0], [0], [1], [0, 0, 1, 1], [], []>} : vector<4x8xf32>, vector<8x64xf32>, vector<4x64xf32> -> vector<4x64xf32>
    %c6_611 = arith.constant 6 : index
    %c0_612 = arith.constant 0 : index
    %c0_613 = arith.constant 0 : index
    %1009 = vector.load %arg14[%c6_611, %c0_612, %c0_613] : memref<9x4x8xf32, #tpu.memory_space<vmem>>, vector<1x4x8xf32>
    %1010 = vector.shape_cast %1009 : vector<1x4x8xf32> to vector<4x8xf32>
    %cst_614 = arith.constant dense<0.000000e+00> : vector<4x64xf32>
    %1011 = tpu.matmul %1010, %980, %cst_614 {dimension_numbers = #tpu.dot_dimension_numbers<[1], [0], [0], [1], [0, 0, 1, 1], [], []>} : vector<4x8xf32>, vector<8x64xf32>, vector<4x64xf32> -> vector<4x64xf32>
    %1012 = arith.addf %1008, %1011 : vector<4x64xf32>
    %c2_615 = arith.constant 2 : index
    %c0_616 = arith.constant 0 : index
    %c0_617 = arith.constant 0 : index
    %1013 = vector.load %arg14[%c2_615, %c0_616, %c0_617] : memref<9x4x8xf32, #tpu.memory_space<vmem>>, vector<1x4x8xf32>
    %1014 = vector.shape_cast %1013 : vector<1x4x8xf32> to vector<4x8xf32>
    %cst_618 = arith.constant dense<0.000000e+00> : vector<4x64xf32>
    %1015 = tpu.matmul %1014, %983, %cst_618 {dimension_numbers = #tpu.dot_dimension_numbers<[1], [0], [0], [1], [0, 0, 1, 1], [], []>} : vector<4x8xf32>, vector<8x64xf32>, vector<4x64xf32> -> vector<4x64xf32>
    %1016 = arith.addf %1012, %1015 : vector<4x64xf32>
    %c0_619 = arith.constant 0 : index
    %c0_620 = arith.constant 0 : index
    %c0_621 = arith.constant 0 : index
    %1017 = vector.load %arg14[%c0_619, %c0_620, %c0_621] : memref<9x4x8xf32, #tpu.memory_space<vmem>>, vector<1x4x8xf32>
    %1018 = vector.shape_cast %1017 : vector<1x4x8xf32> to vector<4x8xf32>
    %cst_622 = arith.constant dense<0.000000e+00> : vector<4x64xf32>
    %1019 = tpu.matmul %1018, %988, %cst_622 {dimension_numbers = #tpu.dot_dimension_numbers<[1], [0], [0], [1], [0, 0, 1, 1], [], []>} : vector<4x8xf32>, vector<8x64xf32>, vector<4x64xf32> -> vector<4x64xf32>
    %1020 = arith.addf %1016, %1019 : vector<4x64xf32>
    %c0_623 = arith.constant 0 : index
    %c0_624 = arith.constant 0 : index
    %c0_625 = arith.constant 0 : index
    %1021 = vector.load %arg7[%c0_623, %c0_624, %c0_625] : memref<4x64x256xf32, #tpu.memory_space<vmem>>, vector<1x64x256xf32>
    %1022 = vector.shape_cast %1021 : vector<1x64x256xf32> to vector<64x256xf32>
    %cst_626 = arith.constant dense<0.000000e+00> : vector<4x256xf32>
    %1023 = tpu.matmul %991, %1022, %cst_626 {dimension_numbers = #tpu.dot_dimension_numbers<[1], [0], [0], [1], [0, 0, 1, 1], [], []>} : vector<4x64xf32>, vector<64x256xf32>, vector<4x256xf32> -> vector<4x256xf32>
    %c1_627 = arith.constant 1 : index
    %c0_628 = arith.constant 0 : index
    %c0_629 = arith.constant 0 : index
    %1024 = vector.load %arg7[%c1_627, %c0_628, %c0_629] : memref<4x64x256xf32, #tpu.memory_space<vmem>>, vector<1x64x256xf32>
    %1025 = vector.shape_cast %1024 : vector<1x64x256xf32> to vector<64x256xf32>
    %cst_630 = arith.constant dense<0.000000e+00> : vector<4x256xf32>
    %1026 = tpu.matmul %998, %1025, %cst_630 {dimension_numbers = #tpu.dot_dimension_numbers<[1], [0], [0], [1], [0, 0, 1, 1], [], []>} : vector<4x64xf32>, vector<64x256xf32>, vector<4x256xf32> -> vector<4x256xf32>
    %1027 = arith.addf %1023, %1026 : vector<4x256xf32>
    %c2_631 = arith.constant 2 : index
    %c0_632 = arith.constant 0 : index
    %c0_633 = arith.constant 0 : index
    %1028 = vector.load %arg7[%c2_631, %c0_632, %c0_633] : memref<4x64x256xf32, #tpu.memory_space<vmem>>, vector<1x64x256xf32>
    %1029 = vector.shape_cast %1028 : vector<1x64x256xf32> to vector<64x256xf32>
    %cst_634 = arith.constant dense<0.000000e+00> : vector<4x256xf32>
    %1030 = tpu.matmul %1005, %1029, %cst_634 {dimension_numbers = #tpu.dot_dimension_numbers<[1], [0], [0], [1], [0, 0, 1, 1], [], []>} : vector<4x64xf32>, vector<64x256xf32>, vector<4x256xf32> -> vector<4x256xf32>
    %1031 = arith.addf %1027, %1030 : vector<4x256xf32>
    %c3_635 = arith.constant 3 : index
    %c0_636 = arith.constant 0 : index
    %c0_637 = arith.constant 0 : index
    %1032 = vector.load %arg7[%c3_635, %c0_636, %c0_637] : memref<4x64x256xf32, #tpu.memory_space<vmem>>, vector<1x64x256xf32>
    %1033 = vector.shape_cast %1032 : vector<1x64x256xf32> to vector<64x256xf32>
    %cst_638 = arith.constant dense<0.000000e+00> : vector<4x256xf32>
    %1034 = tpu.matmul %1020, %1033, %cst_638 {dimension_numbers = #tpu.dot_dimension_numbers<[1], [0], [0], [1], [0, 0, 1, 1], [], []>} : vector<4x64xf32>, vector<64x256xf32>, vector<4x256xf32> -> vector<4x256xf32>
    %1035 = arith.addf %1031, %1034 : vector<4x256xf32>
    %c184 = arith.constant 184 : index
    %c0_639 = arith.constant 0 : index
    %1036 = vector.load %arg3[%c184, %c0_639] : memref<204x1xf32, #tpu.memory_space<vmem>>, vector<4x1xf32>
    %1037 = vector.broadcast %1036 : vector<4x1xf32> to vector<4x256xf32>
    %1038 = arith.addf %1035, %1037 : vector<4x256xf32>
    %1039 = arith.addf %1038, %250 : vector<4x256xf32>
    %cst_640 = arith.constant 0.000000e+00 : f32
    %1040 = vector.broadcast %cst_640 : f32 to vector<4x17xf32>
    %1041 = vector.extract_strided_slice %1039 {offsets = [0, 0], sizes = [4, 239], strides = [1, 1]} : vector<4x256xf32> to vector<4x239xf32>
    %1042 = tpu.concatenate %1040, %1041 in 1 : vector<4x17xf32>, vector<4x239xf32> -> vector<4x256xf32>
    %1043 = vector.broadcast %15 : vector<1x256xf32> to vector<4x256xf32>
    %1044 = arith.mulf %1042, %1043 : vector<4x256xf32>
    %c0_641 = arith.constant 0 : index
    %c0_642 = arith.constant 0 : index
    %c0_643 = arith.constant 0 : index
    %1045 = vector.load %arg16[%c0_641, %c0_642, %c0_643] : memref<9x4x4xf32, #tpu.memory_space<vmem>>, vector<1x4x4xf32>
    %1046 = vector.shape_cast %1045 : vector<1x4x4xf32> to vector<4x4xf32>
    %cst_644 = arith.constant dense<0.000000e+00> : vector<4x256xf32>
    %1047 = tpu.matmul %1046, %1044, %cst_644 {dimension_numbers = #tpu.dot_dimension_numbers<[1], [0], [0], [1], [0, 0, 1, 1], [], []>} : vector<4x4xf32>, vector<4x256xf32>, vector<4x256xf32> -> vector<4x256xf32>
    %cst_645 = arith.constant 0.000000e+00 : f32
    %1048 = vector.broadcast %cst_645 : f32 to vector<4x16xf32>
    %1049 = vector.extract_strided_slice %1039 {offsets = [0, 0], sizes = [4, 240], strides = [1, 1]} : vector<4x256xf32> to vector<4x240xf32>
    %1050 = tpu.concatenate %1048, %1049 in 1 : vector<4x16xf32>, vector<4x240xf32> -> vector<4x256xf32>
    %c1_646 = arith.constant 1 : index
    %c0_647 = arith.constant 0 : index
    %c0_648 = arith.constant 0 : index
    %1051 = vector.load %arg16[%c1_646, %c0_647, %c0_648] : memref<9x4x4xf32, #tpu.memory_space<vmem>>, vector<1x4x4xf32>
    %1052 = vector.shape_cast %1051 : vector<1x4x4xf32> to vector<4x4xf32>
    %cst_649 = arith.constant dense<0.000000e+00> : vector<4x256xf32>
    %1053 = tpu.matmul %1052, %1050, %cst_649 {dimension_numbers = #tpu.dot_dimension_numbers<[1], [0], [0], [1], [0, 0, 1, 1], [], []>} : vector<4x4xf32>, vector<4x256xf32>, vector<4x256xf32> -> vector<4x256xf32>
    %1054 = arith.addf %1047, %1053 : vector<4x256xf32>
    %cst_650 = arith.constant 0.000000e+00 : f32
    %1055 = vector.broadcast %cst_650 : f32 to vector<4x15xf32>
    %1056 = vector.extract_strided_slice %1039 {offsets = [0, 0], sizes = [4, 241], strides = [1, 1]} : vector<4x256xf32> to vector<4x241xf32>
    %1057 = tpu.concatenate %1055, %1056 in 1 : vector<4x15xf32>, vector<4x241xf32> -> vector<4x256xf32>
    %1058 = vector.broadcast %11 : vector<1x256xf32> to vector<4x256xf32>
    %1059 = arith.mulf %1057, %1058 : vector<4x256xf32>
    %c2_651 = arith.constant 2 : index
    %c0_652 = arith.constant 0 : index
    %c0_653 = arith.constant 0 : index
    %1060 = vector.load %arg16[%c2_651, %c0_652, %c0_653] : memref<9x4x4xf32, #tpu.memory_space<vmem>>, vector<1x4x4xf32>
    %1061 = vector.shape_cast %1060 : vector<1x4x4xf32> to vector<4x4xf32>
    %cst_654 = arith.constant dense<0.000000e+00> : vector<4x256xf32>
    %1062 = tpu.matmul %1061, %1059, %cst_654 {dimension_numbers = #tpu.dot_dimension_numbers<[1], [0], [0], [1], [0, 0, 1, 1], [], []>} : vector<4x4xf32>, vector<4x256xf32>, vector<4x256xf32> -> vector<4x256xf32>
    %1063 = arith.addf %1054, %1062 : vector<4x256xf32>
    %cst_655 = arith.constant 0.000000e+00 : f32
    %1064 = vector.broadcast %cst_655 : f32 to vector<4x1xf32>
    %1065 = vector.extract_strided_slice %1039 {offsets = [0, 0], sizes = [4, 255], strides = [1, 1]} : vector<4x256xf32> to vector<4x255xf32>
    %1066 = tpu.concatenate %1064, %1065 in 1 : vector<4x1xf32>, vector<4x255xf32> -> vector<4x256xf32>
    %1067 = vector.broadcast %15 : vector<1x256xf32> to vector<4x256xf32>
    %1068 = arith.mulf %1066, %1067 : vector<4x256xf32>
    %c3_656 = arith.constant 3 : index
    %c0_657 = arith.constant 0 : index
    %c0_658 = arith.constant 0 : index
    %1069 = vector.load %arg16[%c3_656, %c0_657, %c0_658] : memref<9x4x4xf32, #tpu.memory_space<vmem>>, vector<1x4x4xf32>
    %1070 = vector.shape_cast %1069 : vector<1x4x4xf32> to vector<4x4xf32>
    %cst_659 = arith.constant dense<0.000000e+00> : vector<4x256xf32>
    %1071 = tpu.matmul %1070, %1068, %cst_659 {dimension_numbers = #tpu.dot_dimension_numbers<[1], [0], [0], [1], [0, 0, 1, 1], [], []>} : vector<4x4xf32>, vector<4x256xf32>, vector<4x256xf32> -> vector<4x256xf32>
    %1072 = arith.addf %1063, %1071 : vector<4x256xf32>
    %c4_660 = arith.constant 4 : index
    %c0_661 = arith.constant 0 : index
    %c0_662 = arith.constant 0 : index
    %1073 = vector.load %arg16[%c4_660, %c0_661, %c0_662] : memref<9x4x4xf32, #tpu.memory_space<vmem>>, vector<1x4x4xf32>
    %1074 = vector.shape_cast %1073 : vector<1x4x4xf32> to vector<4x4xf32>
    %cst_663 = arith.constant dense<0.000000e+00> : vector<4x256xf32>
    %1075 = tpu.matmul %1074, %1039, %cst_663 {dimension_numbers = #tpu.dot_dimension_numbers<[1], [0], [0], [1], [0, 0, 1, 1], [], []>} : vector<4x4xf32>, vector<4x256xf32>, vector<4x256xf32> -> vector<4x256xf32>
    %1076 = arith.addf %1072, %1075 : vector<4x256xf32>
    %1077 = vector.extract_strided_slice %1039 {offsets = [0, 1], sizes = [4, 255], strides = [1, 1]} : vector<4x256xf32> to vector<4x255xf32>
    %cst_664 = arith.constant 0.000000e+00 : f32
    %1078 = vector.broadcast %cst_664 : f32 to vector<4x1xf32>
    %1079 = tpu.concatenate %1077, %1078 in 1 : vector<4x255xf32>, vector<4x1xf32> -> vector<4x256xf32>
    %1080 = vector.broadcast %11 : vector<1x256xf32> to vector<4x256xf32>
    %1081 = arith.mulf %1079, %1080 : vector<4x256xf32>
    %c5_665 = arith.constant 5 : index
    %c0_666 = arith.constant 0 : index
    %c0_667 = arith.constant 0 : index
    %1082 = vector.load %arg16[%c5_665, %c0_666, %c0_667] : memref<9x4x4xf32, #tpu.memory_space<vmem>>, vector<1x4x4xf32>
    %1083 = vector.shape_cast %1082 : vector<1x4x4xf32> to vector<4x4xf32>
    %cst_668 = arith.constant dense<0.000000e+00> : vector<4x256xf32>
    %1084 = tpu.matmul %1083, %1081, %cst_668 {dimension_numbers = #tpu.dot_dimension_numbers<[1], [0], [0], [1], [0, 0, 1, 1], [], []>} : vector<4x4xf32>, vector<4x256xf32>, vector<4x256xf32> -> vector<4x256xf32>
    %1085 = arith.addf %1076, %1084 : vector<4x256xf32>
    %1086 = vector.extract_strided_slice %1039 {offsets = [0, 15], sizes = [4, 241], strides = [1, 1]} : vector<4x256xf32> to vector<4x241xf32>
    %cst_669 = arith.constant 0.000000e+00 : f32
    %1087 = vector.broadcast %cst_669 : f32 to vector<4x15xf32>
    %1088 = tpu.concatenate %1086, %1087 in 1 : vector<4x241xf32>, vector<4x15xf32> -> vector<4x256xf32>
    %1089 = vector.broadcast %15 : vector<1x256xf32> to vector<4x256xf32>
    %1090 = arith.mulf %1088, %1089 : vector<4x256xf32>
    %c6_670 = arith.constant 6 : index
    %c0_671 = arith.constant 0 : index
    %c0_672 = arith.constant 0 : index
    %1091 = vector.load %arg16[%c6_670, %c0_671, %c0_672] : memref<9x4x4xf32, #tpu.memory_space<vmem>>, vector<1x4x4xf32>
    %1092 = vector.shape_cast %1091 : vector<1x4x4xf32> to vector<4x4xf32>
    %cst_673 = arith.constant dense<0.000000e+00> : vector<4x256xf32>
    %1093 = tpu.matmul %1092, %1090, %cst_673 {dimension_numbers = #tpu.dot_dimension_numbers<[1], [0], [0], [1], [0, 0, 1, 1], [], []>} : vector<4x4xf32>, vector<4x256xf32>, vector<4x256xf32> -> vector<4x256xf32>
    %1094 = arith.addf %1085, %1093 : vector<4x256xf32>
    %1095 = vector.extract_strided_slice %1039 {offsets = [0, 16], sizes = [4, 240], strides = [1, 1]} : vector<4x256xf32> to vector<4x240xf32>
    %cst_674 = arith.constant 0.000000e+00 : f32
    %1096 = vector.broadcast %cst_674 : f32 to vector<4x16xf32>
    %1097 = tpu.concatenate %1095, %1096 in 1 : vector<4x240xf32>, vector<4x16xf32> -> vector<4x256xf32>
    %c7_675 = arith.constant 7 : index
    %c0_676 = arith.constant 0 : index
    %c0_677 = arith.constant 0 : index
    %1098 = vector.load %arg16[%c7_675, %c0_676, %c0_677] : memref<9x4x4xf32, #tpu.memory_space<vmem>>, vector<1x4x4xf32>
    %1099 = vector.shape_cast %1098 : vector<1x4x4xf32> to vector<4x4xf32>
    %cst_678 = arith.constant dense<0.000000e+00> : vector<4x256xf32>
    %1100 = tpu.matmul %1099, %1097, %cst_678 {dimension_numbers = #tpu.dot_dimension_numbers<[1], [0], [0], [1], [0, 0, 1, 1], [], []>} : vector<4x4xf32>, vector<4x256xf32>, vector<4x256xf32> -> vector<4x256xf32>
    %1101 = arith.addf %1094, %1100 : vector<4x256xf32>
    %1102 = vector.extract_strided_slice %1039 {offsets = [0, 17], sizes = [4, 239], strides = [1, 1]} : vector<4x256xf32> to vector<4x239xf32>
    %cst_679 = arith.constant 0.000000e+00 : f32
    %1103 = vector.broadcast %cst_679 : f32 to vector<4x17xf32>
    %1104 = tpu.concatenate %1102, %1103 in 1 : vector<4x239xf32>, vector<4x17xf32> -> vector<4x256xf32>
    %1105 = vector.broadcast %11 : vector<1x256xf32> to vector<4x256xf32>
    %1106 = arith.mulf %1104, %1105 : vector<4x256xf32>
    %c8_680 = arith.constant 8 : index
    %c0_681 = arith.constant 0 : index
    %c0_682 = arith.constant 0 : index
    %1107 = vector.load %arg16[%c8_680, %c0_681, %c0_682] : memref<9x4x4xf32, #tpu.memory_space<vmem>>, vector<1x4x4xf32>
    %1108 = vector.shape_cast %1107 : vector<1x4x4xf32> to vector<4x4xf32>
    %cst_683 = arith.constant dense<0.000000e+00> : vector<4x256xf32>
    %1109 = tpu.matmul %1108, %1106, %cst_683 {dimension_numbers = #tpu.dot_dimension_numbers<[1], [0], [0], [1], [0, 0, 1, 1], [], []>} : vector<4x4xf32>, vector<4x256xf32>, vector<4x256xf32> -> vector<4x256xf32>
    %1110 = arith.addf %1101, %1109 : vector<4x256xf32>
    %c188 = arith.constant 188 : index
    %c0_684 = arith.constant 0 : index
    %1111 = vector.load %arg3[%c188, %c0_684] : memref<204x1xf32, #tpu.memory_space<vmem>>, vector<4x1xf32>
    %1112 = vector.broadcast %1111 : vector<4x1xf32> to vector<4x256xf32>
    %1113 = arith.mulf %1110, %1112 : vector<4x256xf32>
    %c192 = arith.constant 192 : index
    %c0_685 = arith.constant 0 : index
    %1114 = vector.load %arg3[%c192, %c0_685] : memref<204x1xf32, #tpu.memory_space<vmem>>, vector<4x1xf32>
    %1115 = vector.broadcast %1114 : vector<4x1xf32> to vector<4x256xf32>
    %1116 = arith.addf %1113, %1115 : vector<4x256xf32>
    %cst_686 = arith.constant 0.000000e+00 : f32
    %1117 = vector.broadcast %cst_686 : f32 to vector<4x256xf32>
    %1118 = arith.maximumf %1116, %1117 : vector<4x256xf32>
    %cst_687 = arith.constant 0.000000e+00 : f32
    %1119 = vector.broadcast %cst_687 : f32 to vector<4x17xf32>
    %1120 = vector.extract_strided_slice %1118 {offsets = [0, 0], sizes = [4, 239], strides = [1, 1]} : vector<4x256xf32> to vector<4x239xf32>
    %1121 = tpu.concatenate %1119, %1120 in 1 : vector<4x17xf32>, vector<4x239xf32> -> vector<4x256xf32>
    %1122 = vector.broadcast %15 : vector<1x256xf32> to vector<4x256xf32>
    %1123 = arith.mulf %1121, %1122 : vector<4x256xf32>
    %c0_688 = arith.constant 0 : index
    %c0_689 = arith.constant 0 : index
    %c0_690 = arith.constant 0 : index
    %1124 = vector.load %arg16[%c0_688, %c0_689, %c0_690] : memref<9x4x4xf32, #tpu.memory_space<vmem>>, vector<1x4x4xf32>
    %1125 = vector.shape_cast %1124 : vector<1x4x4xf32> to vector<4x4xf32>
    %cst_691 = arith.constant dense<0.000000e+00> : vector<4x256xf32>
    %1126 = tpu.matmul %1125, %1123, %cst_691 {dimension_numbers = #tpu.dot_dimension_numbers<[1], [0], [0], [1], [0, 0, 1, 1], [], []>} : vector<4x4xf32>, vector<4x256xf32>, vector<4x256xf32> -> vector<4x256xf32>
    %cst_692 = arith.constant 0.000000e+00 : f32
    %1127 = vector.broadcast %cst_692 : f32 to vector<4x16xf32>
    %1128 = vector.extract_strided_slice %1118 {offsets = [0, 0], sizes = [4, 240], strides = [1, 1]} : vector<4x256xf32> to vector<4x240xf32>
    %1129 = tpu.concatenate %1127, %1128 in 1 : vector<4x16xf32>, vector<4x240xf32> -> vector<4x256xf32>
    %c1_693 = arith.constant 1 : index
    %c0_694 = arith.constant 0 : index
    %c0_695 = arith.constant 0 : index
    %1130 = vector.load %arg16[%c1_693, %c0_694, %c0_695] : memref<9x4x4xf32, #tpu.memory_space<vmem>>, vector<1x4x4xf32>
    %1131 = vector.shape_cast %1130 : vector<1x4x4xf32> to vector<4x4xf32>
    %cst_696 = arith.constant dense<0.000000e+00> : vector<4x256xf32>
    %1132 = tpu.matmul %1131, %1129, %cst_696 {dimension_numbers = #tpu.dot_dimension_numbers<[1], [0], [0], [1], [0, 0, 1, 1], [], []>} : vector<4x4xf32>, vector<4x256xf32>, vector<4x256xf32> -> vector<4x256xf32>
    %1133 = arith.addf %1126, %1132 : vector<4x256xf32>
    %cst_697 = arith.constant 0.000000e+00 : f32
    %1134 = vector.broadcast %cst_697 : f32 to vector<4x15xf32>
    %1135 = vector.extract_strided_slice %1118 {offsets = [0, 0], sizes = [4, 241], strides = [1, 1]} : vector<4x256xf32> to vector<4x241xf32>
    %1136 = tpu.concatenate %1134, %1135 in 1 : vector<4x15xf32>, vector<4x241xf32> -> vector<4x256xf32>
    %1137 = vector.broadcast %11 : vector<1x256xf32> to vector<4x256xf32>
    %1138 = arith.mulf %1136, %1137 : vector<4x256xf32>
    %c2_698 = arith.constant 2 : index
    %c0_699 = arith.constant 0 : index
    %c0_700 = arith.constant 0 : index
    %1139 = vector.load %arg16[%c2_698, %c0_699, %c0_700] : memref<9x4x4xf32, #tpu.memory_space<vmem>>, vector<1x4x4xf32>
    %1140 = vector.shape_cast %1139 : vector<1x4x4xf32> to vector<4x4xf32>
    %cst_701 = arith.constant dense<0.000000e+00> : vector<4x256xf32>
    %1141 = tpu.matmul %1140, %1138, %cst_701 {dimension_numbers = #tpu.dot_dimension_numbers<[1], [0], [0], [1], [0, 0, 1, 1], [], []>} : vector<4x4xf32>, vector<4x256xf32>, vector<4x256xf32> -> vector<4x256xf32>
    %1142 = arith.addf %1133, %1141 : vector<4x256xf32>
    %cst_702 = arith.constant 0.000000e+00 : f32
    %1143 = vector.broadcast %cst_702 : f32 to vector<4x1xf32>
    %1144 = vector.extract_strided_slice %1118 {offsets = [0, 0], sizes = [4, 255], strides = [1, 1]} : vector<4x256xf32> to vector<4x255xf32>
    %1145 = tpu.concatenate %1143, %1144 in 1 : vector<4x1xf32>, vector<4x255xf32> -> vector<4x256xf32>
    %1146 = vector.broadcast %15 : vector<1x256xf32> to vector<4x256xf32>
    %1147 = arith.mulf %1145, %1146 : vector<4x256xf32>
    %c3_703 = arith.constant 3 : index
    %c0_704 = arith.constant 0 : index
    %c0_705 = arith.constant 0 : index
    %1148 = vector.load %arg16[%c3_703, %c0_704, %c0_705] : memref<9x4x4xf32, #tpu.memory_space<vmem>>, vector<1x4x4xf32>
    %1149 = vector.shape_cast %1148 : vector<1x4x4xf32> to vector<4x4xf32>
    %cst_706 = arith.constant dense<0.000000e+00> : vector<4x256xf32>
    %1150 = tpu.matmul %1149, %1147, %cst_706 {dimension_numbers = #tpu.dot_dimension_numbers<[1], [0], [0], [1], [0, 0, 1, 1], [], []>} : vector<4x4xf32>, vector<4x256xf32>, vector<4x256xf32> -> vector<4x256xf32>
    %1151 = arith.addf %1142, %1150 : vector<4x256xf32>
    %c4_707 = arith.constant 4 : index
    %c0_708 = arith.constant 0 : index
    %c0_709 = arith.constant 0 : index
    %1152 = vector.load %arg16[%c4_707, %c0_708, %c0_709] : memref<9x4x4xf32, #tpu.memory_space<vmem>>, vector<1x4x4xf32>
    %1153 = vector.shape_cast %1152 : vector<1x4x4xf32> to vector<4x4xf32>
    %cst_710 = arith.constant dense<0.000000e+00> : vector<4x256xf32>
    %1154 = tpu.matmul %1153, %1118, %cst_710 {dimension_numbers = #tpu.dot_dimension_numbers<[1], [0], [0], [1], [0, 0, 1, 1], [], []>} : vector<4x4xf32>, vector<4x256xf32>, vector<4x256xf32> -> vector<4x256xf32>
    %1155 = arith.addf %1151, %1154 : vector<4x256xf32>
    %1156 = vector.extract_strided_slice %1118 {offsets = [0, 1], sizes = [4, 255], strides = [1, 1]} : vector<4x256xf32> to vector<4x255xf32>
    %cst_711 = arith.constant 0.000000e+00 : f32
    %1157 = vector.broadcast %cst_711 : f32 to vector<4x1xf32>
    %1158 = tpu.concatenate %1156, %1157 in 1 : vector<4x255xf32>, vector<4x1xf32> -> vector<4x256xf32>
    %1159 = vector.broadcast %11 : vector<1x256xf32> to vector<4x256xf32>
    %1160 = arith.mulf %1158, %1159 : vector<4x256xf32>
    %c5_712 = arith.constant 5 : index
    %c0_713 = arith.constant 0 : index
    %c0_714 = arith.constant 0 : index
    %1161 = vector.load %arg16[%c5_712, %c0_713, %c0_714] : memref<9x4x4xf32, #tpu.memory_space<vmem>>, vector<1x4x4xf32>
    %1162 = vector.shape_cast %1161 : vector<1x4x4xf32> to vector<4x4xf32>
    %cst_715 = arith.constant dense<0.000000e+00> : vector<4x256xf32>
    %1163 = tpu.matmul %1162, %1160, %cst_715 {dimension_numbers = #tpu.dot_dimension_numbers<[1], [0], [0], [1], [0, 0, 1, 1], [], []>} : vector<4x4xf32>, vector<4x256xf32>, vector<4x256xf32> -> vector<4x256xf32>
    %1164 = arith.addf %1155, %1163 : vector<4x256xf32>
    %1165 = vector.extract_strided_slice %1118 {offsets = [0, 15], sizes = [4, 241], strides = [1, 1]} : vector<4x256xf32> to vector<4x241xf32>
    %cst_716 = arith.constant 0.000000e+00 : f32
    %1166 = vector.broadcast %cst_716 : f32 to vector<4x15xf32>
    %1167 = tpu.concatenate %1165, %1166 in 1 : vector<4x241xf32>, vector<4x15xf32> -> vector<4x256xf32>
    %1168 = vector.broadcast %15 : vector<1x256xf32> to vector<4x256xf32>
    %1169 = arith.mulf %1167, %1168 : vector<4x256xf32>
    %c6_717 = arith.constant 6 : index
    %c0_718 = arith.constant 0 : index
    %c0_719 = arith.constant 0 : index
    %1170 = vector.load %arg16[%c6_717, %c0_718, %c0_719] : memref<9x4x4xf32, #tpu.memory_space<vmem>>, vector<1x4x4xf32>
    %1171 = vector.shape_cast %1170 : vector<1x4x4xf32> to vector<4x4xf32>
    %cst_720 = arith.constant dense<0.000000e+00> : vector<4x256xf32>
    %1172 = tpu.matmul %1171, %1169, %cst_720 {dimension_numbers = #tpu.dot_dimension_numbers<[1], [0], [0], [1], [0, 0, 1, 1], [], []>} : vector<4x4xf32>, vector<4x256xf32>, vector<4x256xf32> -> vector<4x256xf32>
    %1173 = arith.addf %1164, %1172 : vector<4x256xf32>
    %1174 = vector.extract_strided_slice %1118 {offsets = [0, 16], sizes = [4, 240], strides = [1, 1]} : vector<4x256xf32> to vector<4x240xf32>
    %cst_721 = arith.constant 0.000000e+00 : f32
    %1175 = vector.broadcast %cst_721 : f32 to vector<4x16xf32>
    %1176 = tpu.concatenate %1174, %1175 in 1 : vector<4x240xf32>, vector<4x16xf32> -> vector<4x256xf32>
    %c7_722 = arith.constant 7 : index
    %c0_723 = arith.constant 0 : index
    %c0_724 = arith.constant 0 : index
    %1177 = vector.load %arg16[%c7_722, %c0_723, %c0_724] : memref<9x4x4xf32, #tpu.memory_space<vmem>>, vector<1x4x4xf32>
    %1178 = vector.shape_cast %1177 : vector<1x4x4xf32> to vector<4x4xf32>
    %cst_725 = arith.constant dense<0.000000e+00> : vector<4x256xf32>
    %1179 = tpu.matmul %1178, %1176, %cst_725 {dimension_numbers = #tpu.dot_dimension_numbers<[1], [0], [0], [1], [0, 0, 1, 1], [], []>} : vector<4x4xf32>, vector<4x256xf32>, vector<4x256xf32> -> vector<4x256xf32>
    %1180 = arith.addf %1173, %1179 : vector<4x256xf32>
    %1181 = vector.extract_strided_slice %1118 {offsets = [0, 17], sizes = [4, 239], strides = [1, 1]} : vector<4x256xf32> to vector<4x239xf32>
    %cst_726 = arith.constant 0.000000e+00 : f32
    %1182 = vector.broadcast %cst_726 : f32 to vector<4x17xf32>
    %1183 = tpu.concatenate %1181, %1182 in 1 : vector<4x239xf32>, vector<4x17xf32> -> vector<4x256xf32>
    %1184 = vector.broadcast %11 : vector<1x256xf32> to vector<4x256xf32>
    %1185 = arith.mulf %1183, %1184 : vector<4x256xf32>
    %c8_727 = arith.constant 8 : index
    %c0_728 = arith.constant 0 : index
    %c0_729 = arith.constant 0 : index
    %1186 = vector.load %arg16[%c8_727, %c0_728, %c0_729] : memref<9x4x4xf32, #tpu.memory_space<vmem>>, vector<1x4x4xf32>
    %1187 = vector.shape_cast %1186 : vector<1x4x4xf32> to vector<4x4xf32>
    %cst_730 = arith.constant dense<0.000000e+00> : vector<4x256xf32>
    %1188 = tpu.matmul %1187, %1185, %cst_730 {dimension_numbers = #tpu.dot_dimension_numbers<[1], [0], [0], [1], [0, 0, 1, 1], [], []>} : vector<4x4xf32>, vector<4x256xf32>, vector<4x256xf32> -> vector<4x256xf32>
    %1189 = arith.addf %1180, %1188 : vector<4x256xf32>
    %c196 = arith.constant 196 : index
    %c0_731 = arith.constant 0 : index
    %1190 = vector.load %arg3[%c196, %c0_731] : memref<204x1xf32, #tpu.memory_space<vmem>>, vector<4x1xf32>
    %1191 = vector.broadcast %1190 : vector<4x1xf32> to vector<4x256xf32>
    %1192 = arith.mulf %1189, %1191 : vector<4x256xf32>
    %c200 = arith.constant 200 : index
    %c0_732 = arith.constant 0 : index
    %1193 = vector.load %arg3[%c200, %c0_732] : memref<204x1xf32, #tpu.memory_space<vmem>>, vector<4x1xf32>
    %1194 = vector.broadcast %1193 : vector<4x1xf32> to vector<4x256xf32>
    %1195 = arith.addf %1192, %1194 : vector<4x256xf32>
    %1196 = arith.addf %1195, %1039 : vector<4x256xf32>
    %cst_733 = arith.constant 0.000000e+00 : f32
    %1197 = vector.broadcast %cst_733 : f32 to vector<4x256xf32>
    %1198 = arith.maximumf %1196, %1197 : vector<4x256xf32>
    %c0_734 = arith.constant 0 : index
    %c0_735 = arith.constant 0 : index
    %c0_736 = arith.constant 0 : index
    %1199 = vector.load %arg19[%c0_734, %c0_735, %c0_736] : memref<1x4x256xf32, #tpu.memory_space<vmem>>, vector<1x4x256xf32>
    %1200 = vector.shape_cast %1199 : vector<1x4x256xf32> to vector<4x256xf32>
    %1201 = vector.shape_cast %1198 : vector<4x256xf32> to vector<1x4x256xf32>
    tpu.vector_store %arg19[%c0_734, %c0_735, %c0_736], %1201 {strides = array<i32>} : memref<1x4x256xf32, #tpu.memory_space<vmem>>, vector<1x4x256xf32>,
    return
  }
  func.func @transform_0(%arg0: i32) -> (i32, i32, i32) {
    %c0_i32 = arith.constant 0 : i32
    %c0_i32_0 = arith.constant 0 : i32
    %c0_i32_1 = arith.constant 0 : i32
    return %arg0, %c0_i32, %c0_i32_0 : i32, i32, i32
  }
  func.func @transform_1(%arg0: i32) -> (i32, i32, i32) {
    %c0_i32 = arith.constant 0 : i32
    %c0_i32_0 = arith.constant 0 : i32
    %c0_i32_1 = arith.constant 0 : i32
    %c0_i32_2 = arith.constant 0 : i32
    return %c0_i32, %c0_i32_0, %c0_i32_1 : i32, i32, i32
  }
  func.func @transform_2(%arg0: i32) -> (i32, i32) {
    %c0_i32 = arith.constant 0 : i32
    %c0_i32_0 = arith.constant 0 : i32
    %c0_i32_1 = arith.constant 0 : i32
    return %c0_i32, %c0_i32_0 : i32, i32
  }
  func.func @transform_3(%arg0: i32) -> (i32, i32) {
    %c0_i32 = arith.constant 0 : i32
    %c0_i32_0 = arith.constant 0 : i32
    %c0_i32_1 = arith.constant 0 : i32
    return %c0_i32, %c0_i32_0 : i32, i32
  }
  func.func @transform_4(%arg0: i32) -> (i32, i32) {
    %c0_i32 = arith.constant 0 : i32
    %c0_i32_0 = arith.constant 0 : i32
    %c0_i32_1 = arith.constant 0 : i32
    return %c0_i32, %c0_i32_0 : i32, i32
  }
  func.func @transform_5(%arg0: i32) -> (i32, i32, i32) {
    %c0_i32 = arith.constant 0 : i32
    %c0_i32_0 = arith.constant 0 : i32
    %c0_i32_1 = arith.constant 0 : i32
    %c0_i32_2 = arith.constant 0 : i32
    return %c0_i32, %c0_i32_0, %c0_i32_1 : i32, i32, i32
  }
  func.func @transform_6(%arg0: i32) -> (i32, i32, i32) {
    %c0_i32 = arith.constant 0 : i32
    %c0_i32_0 = arith.constant 0 : i32
    %c0_i32_1 = arith.constant 0 : i32
    %c0_i32_2 = arith.constant 0 : i32
    return %c0_i32, %c0_i32_0, %c0_i32_1 : i32, i32, i32
  }
  func.func @transform_7(%arg0: i32) -> (i32, i32, i32) {
    %c0_i32 = arith.constant 0 : i32
    %c0_i32_0 = arith.constant 0 : i32
    %c0_i32_1 = arith.constant 0 : i32
    %c0_i32_2 = arith.constant 0 : i32
    return %c0_i32, %c0_i32_0, %c0_i32_1 : i32, i32, i32
  }
  func.func @transform_8(%arg0: i32) -> (i32, i32, i32) {
    %c0_i32 = arith.constant 0 : i32
    %c0_i32_0 = arith.constant 0 : i32
    %c0_i32_1 = arith.constant 0 : i32
    %c0_i32_2 = arith.constant 0 : i32
    return %c0_i32, %c0_i32_0, %c0_i32_1 : i32, i32, i32
  }
  func.func @transform_9(%arg0: i32) -> (i32, i32, i32) {
    %c0_i32 = arith.constant 0 : i32
    %c0_i32_0 = arith.constant 0 : i32
    %c0_i32_1 = arith.constant 0 : i32
    %c0_i32_2 = arith.constant 0 : i32
    return %c0_i32, %c0_i32_0, %c0_i32_1 : i32, i32, i32
  }
  func.func @transform_10(%arg0: i32) -> (i32, i32, i32) {
    %c0_i32 = arith.constant 0 : i32
    %c0_i32_0 = arith.constant 0 : i32
    %c0_i32_1 = arith.constant 0 : i32
    %c0_i32_2 = arith.constant 0 : i32
    return %c0_i32, %c0_i32_0, %c0_i32_1 : i32, i32, i32
  }
  func.func @transform_11(%arg0: i32) -> (i32, i32, i32) {
    %c0_i32 = arith.constant 0 : i32
    %c0_i32_0 = arith.constant 0 : i32
    %c0_i32_1 = arith.constant 0 : i32
    %c0_i32_2 = arith.constant 0 : i32
    return %c0_i32, %c0_i32_0, %c0_i32_1 : i32, i32, i32
  }
  func.func @transform_12(%arg0: i32) -> (i32, i32, i32) {
    %c0_i32 = arith.constant 0 : i32
    %c0_i32_0 = arith.constant 0 : i32
    %c0_i32_1 = arith.constant 0 : i32
    %c0_i32_2 = arith.constant 0 : i32
    return %c0_i32, %c0_i32_0, %c0_i32_1 : i32, i32, i32
  }
  func.func @transform_13(%arg0: i32) -> (i32, i32, i32) {
    %c0_i32 = arith.constant 0 : i32
    %c0_i32_0 = arith.constant 0 : i32
    %c0_i32_1 = arith.constant 0 : i32
    %c0_i32_2 = arith.constant 0 : i32
    return %c0_i32, %c0_i32_0, %c0_i32_1 : i32, i32, i32
  }
  func.func @transform_14(%arg0: i32) -> (i32, i32, i32) {
    %c0_i32 = arith.constant 0 : i32
    %c0_i32_0 = arith.constant 0 : i32
    %c0_i32_1 = arith.constant 0 : i32
    %c0_i32_2 = arith.constant 0 : i32
    return %c0_i32, %c0_i32_0, %c0_i32_1 : i32, i32, i32
  }
  func.func @transform_15(%arg0: i32) -> (i32, i32, i32) {
    %c0_i32 = arith.constant 0 : i32
    %c0_i32_0 = arith.constant 0 : i32
    %c0_i32_1 = arith.constant 0 : i32
    %c0_i32_2 = arith.constant 0 : i32
    return %c0_i32, %c0_i32_0, %c0_i32_1 : i32, i32, i32
  }
  func.func @transform_16(%arg0: i32) -> (i32, i32, i32) {
    %c0_i32 = arith.constant 0 : i32
    %c0_i32_0 = arith.constant 0 : i32
    %c0_i32_1 = arith.constant 0 : i32
    return %arg0, %c0_i32, %c0_i32_0 : i32, i32, i32
  }
  func.func @transform_17(%arg0: i32) -> (i32, i32, i32) {
    %c0_i32 = arith.constant 0 : i32
    %c0_i32_0 = arith.constant 0 : i32
    %c0_i32_1 = arith.constant 0 : i32
    return %arg0, %c0_i32, %c0_i32_0 : i32, i32, i32
  }
  func.func @transform_18(%arg0: i32) -> (i32, i32, i32) {
    %c0_i32 = arith.constant 0 : i32
    %c0_i32_0 = arith.constant 0 : i32
    %c0_i32_1 = arith.constant 0 : i32
    return %arg0, %c0_i32, %c0_i32_0 : i32, i32, i32
  }
}

</mosaic_0001>

<bundles_post_ra>
// kernel: initial_ladder_block_forward.1
= control target key start
LH: loop header
LB: loop body
LE: loop exit
PB: predicated region body
PF: predicated region fallthrough
CT: control target
= control target key end

     0   :  { %s7910_s27 = smov 0   ;;  %s9968_s0 = inlined_call_operand.vmem [shape: f32[2,3,256], index: 0, kind: input, shape index: {}]   ;;  %s9969_s1 = inlined_call_operand.vmem [shape: f32[9,4,3], index: 1, kind: input, shape index: {}]   ;;  %s9970_s2 = inlined_call_operand.vmem [shape: f32[204,1], index: 2, kind: input, shape index: {}]   ;;  %s9971_s3 = inlined_call_operand.vmem [shape: f32[256,64], index: 3, kind: input, shape index: {}]   ;;  %s9972_s4 = inlined_call_operand.vmem [shape: f32[64,16], index: 4, kind: input, shape index: {}]   ;;  %s9973_s5 = inlined_call_operand.vmem [shape: f32[4,16,64], index: 5, kind: input, shape index: {}]   ;;  %s9974_s6 = inlined_call_operand.vmem [shape: f32[4,64,256], index: 6, kind: input, shape index: {}]   ;;  %s9975_s7 = inlined_call_operand.vmem [shape: f32[9,4,4], index: 7, kind: input, shape index: {}]   ;;  %s9976_s8 = inlined_call_operand.vmem [shape: f32[9,8,8], index: 8, kind: input, shape index: {}]   ;;  %s9977_s9 = inlined_call_operand.vmem [shape: f32[9,8,4], index: 9, kind: input, shape index: {}]   ;;  %s9978_s10 = inlined_call_operand.vmem [shape: f32[9,16,8], index: 10, kind: input, shape index: {}]   ;;  %s9979_s11 = inlined_call_operand.vmem [shape: f32[9,16,16], index: 11, kind: input, shape index: {}]   ;;  %s9980_s12 = inlined_call_operand.vmem [shape: f32[9,8,16], index: 12, kind: input, shape index: {}]   ;;  %s9981_s13 = inlined_call_operand.vmem [shape: f32[9,4,8], index: 13, kind: input, shape index: {}]   ;;  %s9982_s14 = inlined_call_operand.vmem [shape: f32[9,8,8], index: 14, kind: input, shape index: {}]   ;;  %s9983_s15 = inlined_call_operand.vmem [shape: f32[9,4,4], index: 15, kind: input, shape index: {}]   ;;  %s9984_s16 = inlined_call_operand.vmem [shape: f32[2,16,16], index: 16, kind: output, shape index: {0}]   ;;  %s9985_s17 = inlined_call_operand.vmem [shape: f32[2,8,64], index: 17, kind: output, shape index: {1}]   ;;  %s9986_s18 = inlined_call_operand.vmem [shape: f32[2,4,256], index: 18, kind: output, shape index: {2}]  }
   0x1   :  { %10039 = sst [smem:[#allocation3_spill]] %s9968_s0 }
   0x2   :  { %10040 = sst [smem:[#allocation4_spill]] %s9969_s1 }
   0x3   :  { %10041 = sst [smem:[#allocation5_spill]] %s9970_s2 }
   0x4   :  { %10042 = sst [smem:[#allocation6_spill]] %s9971_s3 }
   0x5   :  { %10043 = sst [smem:[#allocation7_spill]] %s9975_s7 }
   0x6   :  { %10044 = sst [smem:[#allocation8_spill]] %s9976_s8 }
   0x7   :  { %10045 = sst [smem:[#allocation9_spill]] %s9977_s9 }
   0x8   :  { %10046 = sst [smem:[#allocation10_spill]] %s9983_s15 }
   0x9   :  { %10047 = sst [smem:[#allocation11_spill]] %s9986_s18 }
   0xa LB: > { %10048 = sst [smem:[#allocation2_spill]] %s7791_s27  ;;  %s7206_s28 = sadd.s32 4294967295, %s7791_s27   ;;  %s7791_s27 = sphi %s7910_s27, %s29_s27  }
   0xb   : > { %p7210_p0 = scmp.ge.s32.totalorder %s7791_s27, 1  ;;  %p517_p1 = scmp.lt.s32.totalorder %s7791_s27, 3 }
   0xd   : > { %p518_p2 = pnand %p7210_p0, %p517_p1 }
   0xe   : > { %p580_p3 = scmp.lt.s32.totalorder (!%p518_p2), %s7206_s28, 1  ;;  %s10049_s19 = sld [smem:[#allocation3_spill]] (!%p518_p2) }
   0xf   : > { %521 = sbr.rel (%p518_p2) target bundleno = 4887 (0x1317), region = 84  ;;  %s10003_s20 = smov (!%p518_p2), 17  }
  0x10   : > { %s10001_s21 = smov (!%p518_p2), 16   ;;  %s9999_s22 = smov (!%p518_p2), 15  }
  0x11   : > { %s9997_s2 = smov (!%p518_p2), 1   ;;  %s9993_s23 = smov (!%p518_p2), 127  }
  0x12   : > { %s9995_s24 = smov (!%p518_p2), 113   ;;  %s9989_s25 = smov (!%p518_p2), 112  }
  0x13   : > { %s9991_s26 = smov (!%p518_p2), 111   ;;  %s10051_s30 = sld [smem:[#allocation5_spill]] (!%p518_p2) }
  0x14   : > { %s10183_s28 = smov (!%p580_p3, %s7206_s28), 1  ;;  %v613_v19 = vlaneseq  ;;  %vm10025_vm1 = vcmask 138240   ;;  %v7801_v24 = vmov 0.0   ;;  %vm819_vm2 = vcmask 7168   ;;  %s10056_s7 = sld [smem:[#allocation7_spill]] }
  0x15   : > { %s7921_s29 = sshll.u32 %s10183_s28, 3  ;;  %vm752_vm3 = vcmask 121856   ;;  %vm650_vm4 = vcmask 1042432   ;;  %vm646_vm5 = vcmask 23552   ;;  %vm640_vm8 = vcmask 130048   ;;  %s10058_s0 = smov 16  }
  0x16   : > { %s584_s1 = scalar_lea.vmem %s10049_s19, %s7921_s29  ;;  %v7947_v20 = vand.u32 127, %v613_v19  ;;  %s10050_s19 = sld [smem:[#allocation4_spill]]  ;;  %vm10034_vm10 = vcmask 924672   ;;  %vm10012_vm11 = vcmask 1039360   ;;  %v7802_v62 = vmov 0  }
  0x17   : > { %v599_v0 = vld [vmem:[%s584_s1] sm:$0x77]  ;;  %7782 = vset.pattern.permute.xlu1 %v7802_v62  ;;  %7783 = vset.pattern.permute.xlu2 %v7802_v62  ;;  %vm10011_vm12 = vcmask 916480   ;;  %vm10010_vm13 = vcmask 908288   ;;  %vm10035_vm14 = vcmask 1043456   ;;  %vm10038_vm15 = vcmask 31744  }
  0x18   : > { %601 = vst [vmem:[#allocation1] ss:$2 sm:$0xff] %v599_v0  ;;  %v616_v21 = vand.u32 15, %v7947_v20  ;;  %v615_v23 = vadd.s32 128, %v7947_v20  ;;  %7784 = vset.pattern.permute.xlu0 %v7802_v62  ;;  %s10057_s1 = smov 17   ;;  %s10061_s9 = sld [smem:[#allocation9_spill]] }
  0x19   : > { %v1197_v60 = vld [vmem:[%s10051_s30] sm:$0xf]  ;;  %v1205_v61 = vld [vmem:[%s10051_s30 + $0x4] sm:$0xf]  ;;  %s10062_s3 = sld [smem:[#allocation6_spill]]  ;;  %s10019_s15 = smov 121  }
  0x1a   : > { %vm624_vm0 = vcmp.ge.s32.totalorder %v616_v21, 1  ;;  %v617_v27 = vand.u32 15, %v615_v23  ;;  %vm618_vm6 = vcmp.lt.s32.totalorder %v616_v21, 15  ;;  %s10063_s8 = sld [smem:[#allocation8_spill]]  ;;  %s7814_s27 = smov 123  }
  0x1b   : > { %v7952_v25 = vsel %vm624_vm0, 1.0, %v7801_v24  ;;  %v7965_v35 = vsel %vm618_vm6, 1.0, %v7801_v24  ;;  %vm2940_vm6 = vcmask 64512   ;;  %s10071_s18 = smov 3  }
  0x1c   : > { %v632_v31 = vld [vmem:[%s10050_s19] sm:$0xf]  ;;  %vm625_vm7 = vcmp.ge.s32.totalorder %v617_v27, 1  ;;  %v7222_v39 = vld [vmem:[%s10050_s19 + $0x4] sm:$0xf]  ;;  %vm619_vm9 = vcmp.lt.s32.totalorder %v617_v27, 15 }
  0x1d   : > { %v7969_v36 = vsel %vm625_vm7, 1.0, %v7801_v24  ;;  %v7236_v44 = vld [vmem:[%s10050_s19 + $0xc] sm:$0xf]  ;;  %v7990_v45 = vsel %vm619_vm9, 1.0, %v7801_v24  ;;  %v7231_v48 = vld [vmem:[%s10050_s19 + $0x8] sm:$0xf] }
  0x1e   : > { %v7241_v54 = vld [vmem:[%s10050_s19 + $0x10] sm:$0xf]  ;;  %v7261_v21 = vld [vmem:[%s10050_s19 + $0x20] sm:$0xf]  ;;  %vm2993_vm9 = vcmask 56320  }
  0x1f   : > { %v602_v1 = vld.sshfl [vmem:[#allocation1] sm:$0xff pattern:$0x75316420]  ;;  %v603_v2 = vld.sshfl [vmem:[#allocation1 + $0x8] sm:$0xff pattern:$0x75316420] }
  0x20   : > { %604 = vrot.lane.b32.xlu0 %v602_v1, %s10003_s20  ;;  %633 = vst [vmem:[#allocation1] ss:$2 sm:$0xff] %v599_v0 }
  0x27   : > { %v634_v3 = vld.sshfl [vmem:[#allocation1] sm:$0xff pattern:$0x75316420]  ;;  %v635_v4 = vld.sshfl [vmem:[#allocation1 + $0x8] sm:$0xff pattern:$0x75316420] }
  0x28   : > { %636 = vrot.lane.b32.xlu1 %v634_v3, %s10001_s21  ;;  %606 = vrot.lane.b32.xlu0 %v603_v2, %s10003_s20  ;;  %745 = vst [vmem:[#allocation1] ss:$2 sm:$0xff] %v599_v0 }
  0x2f   : > { %v747_v5 = vld.sshfl [vmem:[#allocation1 + $0x8] sm:$0xff pattern:$0x75316420]  ;;  %v746_v6 = vld.sshfl [vmem:[#allocation1] sm:$0xff pattern:$0x75316420] }
  0x30   : > { %638 = vrot.lane.b32.xlu1 %v635_v4, %s10001_s21  ;;  %750 = vrot.lane.b32.xlu0 %v747_v5, %s9999_s22  ;;  %812 = vst [vmem:[#allocation1] ss:$2 sm:$0xff] %v599_v0  ;;  %v7246_v5 = vld [vmem:[%s10050_s19 + $0x14] sm:$0xf] }
  0x31   : > { %748 = vrot.lane.b32.xlu2 %v746_v6, %s9999_s22 }
  0x37   : > { %v814_v7 = vld.sshfl [vmem:[#allocation1 + $0x8] sm:$0xff pattern:$0x75316420]  ;;  %v813_v8 = vld.sshfl [vmem:[#allocation1] sm:$0xff pattern:$0x75316420] }
  0x38   : > { %817 = vrot.lane.b32.xlu1 %v814_v7, %s9997_s2  ;;  %881 = vst [vmem:[#allocation1] ss:$2 sm:$0xff] %v599_v0 }
  0x39   : > { %815 = vrot.lane.b32.xlu2 %v813_v8, %s9997_s2 }
  0x3f   : > { %v7935_v9 = vld.sshfl [vmem:[#allocation1] sm:$0xff pattern:$0x75316420]  ;;  %v7937_v10 = vld.sshfl [vmem:[#allocation1 + $0x8] sm:$0xff pattern:$0x75316420] }
  0x40   : > { %933 = vst [vmem:[#allocation1] ss:$2 sm:$0xff] %v599_v0 }
  0x47   : > { %v935_v11 = vld.sshfl [vmem:[#allocation1 + $0x8] sm:$0xff pattern:$0x75316420]  ;;  %v934_v12 = vld.sshfl [vmem:[#allocation1] sm:$0xff pattern:$0x75316420] }
  0x48   : > { %938 = vrot.lane.b32.xlu0 %v935_v11, %s9993_s23  ;;  %1000 = vst [vmem:[#allocation1] ss:$2 sm:$0xff] %v599_v0  ;;  %936 = vrot.lane.b32.xlu2 %v934_v12, %s9993_s23  ;;  %v7256_v11 = vld [vmem:[%s10050_s19 + $0x1c] sm:$0xf]  ;;  %s10054_s23 = smov 111  }
  0x4f   : > { %v1001_v13 = vld.sshfl [vmem:[#allocation1] sm:$0xff pattern:$0x75316420]  ;;  %v1002_v14 = vld.sshfl [vmem:[#allocation1 + $0x8] sm:$0xff pattern:$0x75316420] }
  0x50   : > { %1003 = vrot.lane.b32.xlu1 %v1001_v13, %s9995_s24  ;;  %1067 = vst [vmem:[#allocation1] ss:$2 sm:$0xff] %v599_v0  ;;  %1005 = vrot.lane.b32.xlu2 %v1002_v14, %s9995_s24  ;;  %s10055_s24 = smov 112  }
  0x57   : > { %v1069_v15 = vld.sshfl [vmem:[#allocation1 + $0x8] sm:$0xff pattern:$0x75316420]  ;;  %v1068_v16 = vld.sshfl [vmem:[#allocation1] sm:$0xff pattern:$0x75316420] }
  0x58   : > { %1072 = vrot.lane.b32.xlu1 %v1069_v15, %s9989_s25  ;;  %1070 = vrot.lane.b32.xlu0 %v1068_v16, %s9989_s25  ;;  %1130 = vst [vmem:[#allocation1] ss:$2 sm:$0xff] %v599_v0  ;;  %v7251_v0 = vld [vmem:[%s10050_s19 + $0x18] sm:$0xf]  ;;  %s10053_s25 = smov 127   ;;  %s10015_s19 = smov 120  }
  0x5f   : > { %v1132_v17 = vld.sshfl [vmem:[#allocation1 + $0x8] sm:$0xff pattern:$0x75316420]  ;;  %v1131_v18 = vld.sshfl [vmem:[#allocation1] sm:$0xff pattern:$0x75316420] }
  0x60   : > { %1135 = vrot.lane.b32.xlu0 %v1132_v17, %s9991_s26  ;;  %1133 = vrot.lane.b32.xlu2 %v1131_v18, %s9991_s26  ;;  %s10052_s26 = smov 113  }
  0x61   : > { %1200 = vperm.xlu1 %7782, %v1197_v60  }
  0x68   : > { %1208 = vperm.xlu2 %7783, %v1205_v61  }
  0x8b   : > { %v749_v22 = vpop.permute.xlu2 %748 }
  0x8c   : > { %v756_v34 = vsel %vm752_vm3, 0.0, %v749_v22 }
  0x8d   : > { %v757_v40 = vmul.f32 %v7965_v35, %v756_v34 }
  0x92   : > { %v605_v26 = vpop.permute.xlu0 %604 }
  0x93   : > { %v612_v28 = vsel %vm10025_vm1, 0.0, %v605_v26  ;;  %v816_v29 = vpop.permute.xlu2 %815 }
  0x94   : > { %v630_v30 = vmul.f32 %v7952_v25, %v612_v28  ;;  %v823_v32 = vsel %vm819_vm2, 0.0, %v816_v29 }
  0x95   : > { %v824_v33 = vmul.f32 %v7952_v25, %v823_v32 }
  0x96   : > { %7227 = vmatpush.msk.msra.mxu2 %vm650_vm4, %v630_v30 }
  0x97   : > { %7228 = vmatmul.msk.f32.vlgmr.msra.gmra.mxu2 %vm646_vm5, %v632_v31 }
  0x98   : > { %7237 = vmatpush.msk.msrb.mxu2 %vm650_vm4, %v824_v33 }
  0x9a   : > { %v637_v37 = vpop.permute.xlu1 %636  ;;  %v607_v38 = vpop.permute.xlu0 %606 }
  0x9b   : > { %v609_v41 = vsel %vm10025_vm1, %v605_v26, %v607_v38  ;;  %v643_v42 = vsel %vm640_vm8, 0.0, %v637_v37 }
  0x9c   : > { %7223 = vmatpush.msk.msra.mxu0 %vm650_vm4, %v643_v42  ;;  %v631_v43 = vmul.f32 %v7969_v36, %v609_v41 }
  0x9d   : > { %7224 = vmatmul.msk.f32.vlgmr.msra.gmra.mxu0 %vm646_vm5, %v7222_v39 }
  0x9e   : > { %7229 = vmatpush.msk.msra.mxu3 %vm650_vm4, %v631_v43  ;;  %7232 = vmatpush.msk.msrb.mxu0 %vm650_vm4, %v757_v40 }
  0x9f   : > { %7230 = vmatmul.msk.f32.vlgmr.msra.gmra.mxu3 %vm646_vm5, %v632_v31  ;;  %7238 = vmatmul.msk.f32.vlgmr.msrb.gmra.mxu2 %vm646_vm5, %v7236_v44 }
  0xa0   : > { %7242 = vmatpush.msk.msra.mxu0 %vm650_vm4, %v7935_v9 }
  0xa2   : > { %v639_v46 = vpop.permute.xlu1 %638  ;;  %v751_v47 = vpop.permute.xlu0 %750 }
  0xa3   : > { %v641_v49 = vsel %vm640_vm8, %v637_v37, %v639_v46  ;;  %v753_v50 = vsel %vm752_vm3, %v749_v22, %v751_v47  ;;  %v937_v51 = vpop.permute.xlu2 %936 }
  0xa4   : > { %7225 = vmatpush.msk.msra.mxu1 %vm650_vm4, %v641_v49  ;;  %v758_v52 = vmul.f32 %v7990_v45, %v753_v50 }
  0xa5   : > { %7226 = vmatmul.msk.f32.vlgmr.msra.gmra.mxu1 %vm646_vm5, %v7222_v39  ;;  %7233 = vmatmul.msk.f32.vlgmr.msrb.gmra.mxu0 %vm646_vm5, %v7231_v48 }
  0xa6   : > { %7234 = vmatpush.msk.msrb.mxu1 %vm650_vm4, %v758_v52 }
  0xa8   : > { %7244 = vmatpush.msk.msra.mxu1 %vm650_vm4, %v7937_v10 }
  0xaa   : > { %v818_v53 = vpop.permute.xlu1 %817 }
  0xab   : > { %v820_v55 = vsel %vm819_vm2, %v816_v29, %v818_v53  ;;  %v1006_v56 = vpop.permute.xlu2 %1005 }
  0xac   : > { %v825_v57 = vmul.f32 %v7969_v36, %v820_v55  ;;  %v1011_v58 = vsel %vm10034_vm10, %v1006_v56, 0.0 }
  0xad   : > { %7235 = vmatmul.msk.f32.vlgmr.msrb.gmra.mxu1 %vm646_vm5, %v7231_v48  ;;  %7243 = vmatmul.msk.f32.vlgmr.msra.gmra.mxu0 %vm646_vm5, %v7241_v54  ;;  %v1013_v59 = vmul.f32 %v7969_v36, %v1011_v58 }
  0xae   : > { %7239 = vmatpush.msk.msrb.mxu3 %vm650_vm4, %v825_v57 }
  0xaf   : > { %7240 = vmatmul.msk.f32.vlgmr.msrb.gmra.mxu3 %vm646_vm5, %v7236_v44  ;;  %7254 = vmatpush.msk.msrb.mxu1 %vm650_vm4, %v1013_v59 }
  0xb5   : > { %7245 = vmatmul.msk.f32.vlgmr.msra.gmra.mxu1 %vm646_vm5, %v7241_v54 }
  0xba   : > { %v939_v63 = vpop.permute.xlu0 %938  ;;  %v1134_v14 = vpop.permute.xlu2 %1133 }
  0xbb   : > { %v944_v1 = vsel %vm10012_vm11, %v939_v63, 0.0  ;;  %v941_v2 = vsel %vm10012_vm11, %v937_v51, %v939_v63 }
  0xbc   : > { %v946_v3 = vmul.f32 %v7990_v45, %v944_v1  ;;  %v945_v4 = vmul.f32 %v7965_v35, %v941_v2 }
  0xbd   : > { %7255 = vmatmul.msk.f32.vlgmr.msrb.gmra.mxu1 %vm646_vm5, %v7251_v0 }
  0xbe   : > { %7247 = vmatpush.msk.msra.mxu2 %vm650_vm4, %v945_v4  ;;  %7249 = vmatpush.msk.msra.mxu3 %vm650_vm4, %v946_v3 }
  0xbf   : > { %7248 = vmatmul.msk.f32.vlgmr.msra.gmra.mxu2 %vm646_vm5, %v7246_v5  ;;  %7250 = vmatmul.msk.f32.vlgmr.msra.gmra.mxu3 %vm646_vm5, %v7246_v5  ;;  %v1761_v5 = vld [vmem:[%s10051_s30 + $0x8] sm:$0xf] }
  0xc2   : > { %v1004_v6 = vpop.permute.xlu1 %1003  ;;  %v1209_v62 = vpop.permute.xlu2 %1208 }
  0xc3   : > { %v1008_v7 = vsel %vm10034_vm10, %v1004_v6, %v1006_v56  ;;  %v1769_v6 = vld [vmem:[%s10051_s30 + $0xc] sm:$0xf] }
  0xc4   : > { %v1012_v8 = vmul.f32 %v7952_v25, %v1008_v7 }
  0xc6   : > { %7252 = vmatpush.msk.msrb.mxu0 %vm650_vm4, %v1012_v8 }
  0xc7   : > { %7253 = vmatmul.msk.f32.vlgmr.msrb.gmra.mxu0 %vm646_vm5, %v7251_v0 }
  0xca   : > { %v1073_v9 = vpop.permute.xlu1 %1072  ;;  %v1071_v10 = vpop.permute.xlu0 %1070 }
  0xcb   : > { %v1077_v12 = vsel %vm10011_vm12, %v1073_v9, 0.0  ;;  %v1075_v13 = vsel %vm10011_vm12, %v1071_v10, %v1073_v9 }
  0xcc   : > { %7257 = vmatpush.msk.msrb.mxu2 %vm650_vm4, %v1075_v13  ;;  %7259 = vmatpush.msk.msrb.mxu3 %vm650_vm4, %v1077_v12  ;;  %v8108_v12 = vld [vmem:[%s10056_s7 + $0x4] sm:$0xf] }
  0xcd   : > { %7258 = vmatmul.msk.f32.vlgmr.msrb.gmra.mxu2 %vm646_vm5, %v7256_v11  ;;  %7260 = vmatmul.msk.f32.vlgmr.msrb.gmra.mxu3 %vm646_vm5, %v7256_v11 }
  0xd2   : > { %v1136_v15 = vpop.permute.xlu0 %1135 }
  0xd3   : > { %v1141_v16 = vsel %vm10010_vm13, %v1136_v15, 0.0  ;;  %v1138_v17 = vsel %vm10010_vm13, %v1134_v14, %v1136_v15  ;;  %v1201_v57 = vpop.permute.xlu1 %1200 }
  0xd4   : > { %v1143_v18 = vmul.f32 %v7990_v45, %v1141_v16  ;;  %v1142_v19 = vmul.f32 %v7965_v35, %v1138_v17 }
  0xd6   : > { %7262 = vmatpush.msk.msra.mxu0 %vm650_vm4, %v1142_v19  ;;  %7264 = vmatpush.msk.msra.mxu1 %vm650_vm4, %v1143_v18  ;;  %vm2926_vm4 = vcmask 72704  }
  0xd7   : > { %7263 = vmatmul.msk.f32.vlgmr.msra.gmra.mxu0 %vm646_vm5, %v7261_v21  ;;  %7265 = vmatmul.msk.f32.vlgmr.msra.gmra.mxu1 %vm646_vm5, %v7261_v21 }
 0x11a   : > { %v673_v23 = vpop.f32.mrf.mxu0  ;;  %v722_v27 = vpop.f32.mrf.mxu2 }
 0x11b   : > { %v723_v31 = vadd.f32 %v722_v27, %v673_v23 }
 0x122   : > { %v693_v22 = vpop.f32.mrf.mxu1  ;;  %v742_v26 = vpop.f32.mrf.mxu3 }
 0x123   : > { %v787_v29 = vpop.f32.mrf.mxu0  ;;  %v743_v32 = vadd.f32 %v742_v26, %v693_v22  ;;  %v854_v33 = vpop.f32.mrf.mxu2  ;;  %v8127_v22 = vld [vmem:[%s10056_s7 + $0x8] sm:$0xf] }
 0x124   : > { %v810_v37 = vadd.f32 %v787_v29, %v723_v31  ;;  %v8136_v29 = vld [vmem:[%s10056_s7] sm:$0xf] }
 0x126   : > { %v877_v40 = vadd.f32 %v854_v33, %v810_v37  ;;  %v8154_v33 = vld [vmem:[%s10056_s7 + $0x10] sm:$0xf] }
 0x12a   : > { %v807_v28 = vpop.f32.mrf.mxu1 }
 0x12b   : > { %v811_v38 = vadd.f32 %v807_v28, %v743_v32  ;;  %v908_v39 = vpop.f32.mrf.mxu0 }
 0x12c   : > { %v931_v44 = vadd.f32 %v908_v39, %v877_v40 }
 0x132   : > { %v874_v30 = vpop.f32.mrf.mxu3  ;;  %v928_v34 = vpop.f32.mrf.mxu1 }
 0x133   : > { %v878_v41 = vadd.f32 %v874_v30, %v811_v38 }
 0x135   : > { %v932_v46 = vadd.f32 %v928_v34, %v878_v41  ;;  %v8164_v41 = vld [vmem:[%s10056_s7 + $0xc] sm:$0xf] }
 0x13a   : > { %v1062_v48 = vpop.f32.mrf.mxu1 }
 0x142   : > { %v975_v42 = vpop.f32.mrf.mxu2  ;;  %v995_v43 = vpop.f32.mrf.mxu3 }
 0x143   : > { %v998_v49 = vadd.f32 %v975_v42, %v931_v44  ;;  %v999_v50 = vadd.f32 %v995_v43, %v932_v46 }
 0x144   : > { %v1042_v47 = vpop.f32.mrf.mxu0 }
 0x145   : > { %v1065_v53 = vadd.f32 %v1042_v47, %v998_v49  ;;  %v1066_v54 = vadd.f32 %v1062_v48, %v999_v50 }
 0x150   : > { %v1105_v51 = vpop.f32.mrf.mxu2  ;;  %v1125_v52 = vpop.f32.mrf.mxu3 }
 0x151   : > { %v1128_v55 = vadd.f32 %v1105_v51, %v1065_v53  ;;  %v1129_v56 = vadd.f32 %v1125_v52, %v1066_v54  ;;  %v8187_v52 = vld [vmem:[%s10056_s7 + $0x14] sm:$0xf]  ;;  %v8193_v53 = vld [vmem:[%s10056_s7 + $0x18] sm:$0xf] }
 0x154   : > { %v1172_v58 = vpop.f32.mrf.mxu0  ;;  %v1192_v59 = vpop.f32.mrf.mxu1 }
 0x155   : > { %v1195_v60 = vadd.f32 %v1172_v58, %v1128_v55  ;;  %v1196_v61 = vadd.f32 %v1192_v59, %v1129_v56 }
 0x157   : > { %v1203_v63 = vmul.f32 %v1201_v57, %v1195_v60  ;;  %v1204_v0 = vmul.f32 %v1201_v57, %v1196_v61  ;;  %v8213_v60 = vld [vmem:[%s10056_s7 + $0x20] sm:$0xf] }
 0x159   : > { %v1211_v1 = vadd.f32 %v1209_v62, %v1203_v63  ;;  %v1212_v2 = vadd.f32 %v1209_v62, %v1204_v0  ;;  %v8223_v63 = vld [vmem:[%s10056_s7 + $0x1c] sm:$0xf]  ;;  %s10013_s7 = smov 119  }
 0x15b   : > { %v8062_v3 = vmax.f32 %v1211_v1, 0.0  ;;  %v8064_v4 = vmax.f32 %v1212_v2, 0.0 }
 0x15d   : > { %1230 = vrot.lane.b32.xlu1 %v8064_v4, %s10001_s21  ;;  %1336 = vrot.lane.b32.xlu2 %v8062_v3, %s9999_s22 }
 0x15e   : > { %1228 = vrot.lane.b32.xlu0 %v8062_v3, %s10001_s21  ;;  %s10060_s21 = smov 1  }
 0x165   : > { %1217 = vrot.lane.b32.xlu1 %v8062_v3, %s10003_s20  ;;  %1219 = vrot.lane.b32.xlu2 %v8064_v4, %s10003_s20  ;;  %s10059_s20 = smov 15  }
 0x166   : > { %1338 = vrot.lane.b32.xlu0 %v8064_v4, %s9999_s22  ;;  %s10017_s22 = smov 7  }
 0x16d   : > { %1401 = vrot.lane.b32.xlu1 %v8064_v4, %s9997_s2  ;;  %1576 = vrot.lane.b32.xlu2 %v8062_v3, %s10052_s26 }
 0x16e   : > { %1399 = vrot.lane.b32.xlu0 %v8062_v3, %s9997_s2  ;;  %s10021_s2 = smov 8  }
 0x175   : > { %1513 = vrot.lane.b32.xlu1 %v8062_v3, %s10053_s25  ;;  %1515 = vrot.lane.b32.xlu2 %v8064_v4, %s10053_s25 }
 0x176   : > { %1578 = vrot.lane.b32.xlu0 %v8064_v4, %s10052_s26 }
 0x17d   : > { %1700 = vrot.lane.b32.xlu1 %v8064_v4, %s10054_s23  ;;  %1639 = vrot.lane.b32.xlu2 %v8062_v3, %s10055_s24 }
 0x17e   : > { %1698 = vrot.lane.b32.xlu0 %v8062_v3, %s10054_s23 }
 0x185   : > { %1764 = vperm.xlu1 %7782, %v1761_v5   ;;  %1772 = vperm.xlu2 %7783, %v1769_v6  }
 0x186   : > { %1641 = vrot.lane.b32.xlu0 %v8064_v4, %s10055_s24 }
 0x1b7   : > { %v1337_v7 = vpop.permute.xlu2 %1336 }
 0x1b8   : > { %v1343_v9 = vsel %vm752_vm3, 0.0, %v1337_v7 }
 0x1b9   : > { %v1344_v15 = vmul.f32 %v7965_v35, %v1343_v9 }
 0x1bf   : > { %v1220_v8 = vpop.permute.xlu2 %1219 }
 0x1c7   : > { %v1577_v16 = vpop.permute.xlu2 %1576 }
 0x1cf   : > { %v1231_v10 = vpop.permute.xlu1 %1230  ;;  %v1516_v30 = vpop.permute.xlu2 %1515 }
 0x1d0   : > { %v1229_v11 = vpop.permute.xlu0 %1228  ;;  %v1520_v34 = vsel %vm10012_vm11, %v1516_v30, 0.0 }
 0x1d1   : > { %v1232_v13 = vsel %vm640_vm8, %v1229_v11, %v1231_v10  ;;  %v1234_v14 = vsel %vm640_vm8, 0.0, %v1229_v11  ;;  %v1522_v42 = vmul.f32 %v7990_v45, %v1520_v34 }
 0x1d2   : > { %7267 = vmatpush.msk.msra.mxu2 %vm10035_vm14, %v1234_v14  ;;  %7269 = vmatpush.msk.msra.mxu3 %vm10035_vm14, %v1232_v13 }
 0x1d3   : > { %7268 = vmatmul.msk.f32.vlgmr.msra.gmra.mxu2 %vm10038_vm15, %v8108_v12  ;;  %7270 = vmatmul.msk.f32.vlgmr.msra.gmra.mxu3 %vm10038_vm15, %v8108_v12 }
 0x1d4   : > { %7276 = vmatpush.msk.msrb.mxu2 %vm10035_vm14, %v1344_v15 }
 0x1d6   : > { %7286 = vmatpush.msk.msra.mxu2 %vm10035_vm14, %v8062_v3 }
 0x1d7   : > { %v1218_v17 = vpop.permute.xlu1 %1217  ;;  %v1640_v61 = vpop.permute.xlu2 %1639 }
 0x1d8   : > { %v1221_v18 = vsel %vm10025_vm1, %v1218_v17, %v1220_v8  ;;  %v1224_v19 = vsel %vm10025_vm1, 0.0, %v1218_v17  ;;  %v1339_v21 = vpop.permute.xlu0 %1338 }
 0x1d9   : > { %v1225_v23 = vmul.f32 %v7952_v25, %v1224_v19  ;;  %v1226_v26 = vmul.f32 %v7969_v36, %v1221_v18  ;;  %v1340_v27 = vsel %vm752_vm3, %v1337_v7, %v1339_v21 }
 0x1da   : > { %v1345_v28 = vmul.f32 %v7990_v45, %v1340_v27 }
 0x1db   : > { %7277 = vmatmul.msk.f32.vlgmr.msrb.gmra.mxu2 %vm10038_vm15, %v8127_v22  ;;  %7271 = vmatpush.msk.msrb.mxu0 %vm10035_vm14, %v1225_v23 }
 0x1dc   : > { %7273 = vmatpush.msk.msrb.mxu1 %vm10035_vm14, %v1226_v26  ;;  %7278 = vmatpush.msk.msrb.mxu3 %vm10035_vm14, %v1345_v28 }
 0x1dd   : > { %7272 = vmatmul.msk.f32.vlgmr.msrb.gmra.mxu0 %vm10038_vm15, %v8136_v29  ;;  %7274 = vmatmul.msk.f32.vlgmr.msrb.gmra.mxu1 %vm10038_vm15, %v8136_v29 }
 0x1de   : > { %7279 = vmatmul.msk.f32.vlgmr.msrb.gmra.mxu3 %vm10038_vm15, %v8127_v22 }
 0x1df   : > { %7288 = vmatpush.msk.msra.mxu3 %vm10035_vm14, %v8064_v4  ;;  %v1402_v31 = vpop.permute.xlu1 %1401 }
 0x1e0   : > { %v1400_v32 = vpop.permute.xlu0 %1399 }
 0x1e1   : > { %v1403_v37 = vsel %vm819_vm2, %v1400_v32, %v1402_v31  ;;  %v1406_v38 = vsel %vm819_vm2, 0.0, %v1400_v32 }
 0x1e2   : > { %v1407_v39 = vmul.f32 %v7952_v25, %v1406_v38  ;;  %v1408_v40 = vmul.f32 %v7969_v36, %v1403_v37 }
 0x1e3   : > { %7287 = vmatmul.msk.f32.vlgmr.msra.gmra.mxu2 %vm10038_vm15, %v8154_v33 }
 0x1e4   : > { %7281 = vmatpush.msk.msra.mxu0 %vm10035_vm14, %v1407_v39  ;;  %7283 = vmatpush.msk.msra.mxu1 %vm10035_vm14, %v1408_v40 }
 0x1e5   : > { %7282 = vmatmul.msk.f32.vlgmr.msra.gmra.mxu0 %vm10038_vm15, %v8164_v41  ;;  %7284 = vmatmul.msk.f32.vlgmr.msra.gmra.mxu1 %vm10038_vm15, %v8164_v41 }
 0x1e6   : > { %7289 = vmatmul.msk.f32.vlgmr.msra.gmra.mxu3 %vm10038_vm15, %v8154_v33  ;;  %7293 = vmatpush.msk.msrb.mxu1 %vm10035_vm14, %v1522_v42 }
 0x1e7   : > { %v1514_v43 = vpop.permute.xlu1 %1513 }
 0x1e8   : > { %v1517_v44 = vsel %vm10012_vm11, %v1514_v43, %v1516_v30  ;;  %v1579_v46 = vpop.permute.xlu0 %1578 }
 0x1e9   : > { %v1521_v47 = vmul.f32 %v7965_v35, %v1517_v44  ;;  %v1580_v48 = vsel %vm10034_vm10, %v1577_v16, %v1579_v46  ;;  %v1583_v49 = vsel %vm10034_vm10, %v1579_v46, 0.0 }
 0x1ea   : > { %v1584_v50 = vmul.f32 %v7952_v25, %v1580_v48  ;;  %v1585_v51 = vmul.f32 %v7969_v36, %v1583_v49 }
 0x1eb   : > { %7291 = vmatpush.msk.msrb.mxu0 %vm10035_vm14, %v1521_v47 }
 0x1ec   : > { %7296 = vmatpush.msk.msrb.mxu2 %vm10035_vm14, %v1584_v50  ;;  %7298 = vmatpush.msk.msrb.mxu3 %vm10035_vm14, %v1585_v51 }
 0x1ed   : > { %7292 = vmatmul.msk.f32.vlgmr.msrb.gmra.mxu0 %vm10038_vm15, %v8187_v52  ;;  %7294 = vmatmul.msk.f32.vlgmr.msrb.gmra.mxu1 %vm10038_vm15, %v8187_v52 }
 0x1ee   : > { %7297 = vmatmul.msk.f32.vlgmr.msrb.gmra.mxu2 %vm10038_vm15, %v8193_v53  ;;  %7299 = vmatmul.msk.f32.vlgmr.msrb.gmra.mxu3 %vm10038_vm15, %v8193_v53 }
 0x1ef   : > { %v1701_v54 = vpop.permute.xlu1 %1700 }
 0x1f0   : > { %v1705_v55 = vsel %vm10010_vm13, %v1701_v54, 0.0  ;;  %v1699_v56 = vpop.permute.xlu0 %1698 }
 0x1f1   : > { %v1707_v57 = vmul.f32 %v7990_v45, %v1705_v55  ;;  %v1702_v58 = vsel %vm10010_vm13, %v1699_v56, %v1701_v54  ;;  %v1773_v54 = vpop.permute.xlu2 %1772 }
 0x1f2   : > { %v1706_v59 = vmul.f32 %v7965_v35, %v1702_v58 }
 0x1f3   : > { %7308 = vmatpush.msk.msra.mxu3 %vm10035_vm14, %v1707_v57 }
 0x1f4   : > { %7306 = vmatpush.msk.msra.mxu2 %vm10035_vm14, %v1706_v59  ;;  %v2279_v59 = vld [vmem:[%s10051_s30 + $0x10] sm:$0xf] }
 0x1f6   : > { %7307 = vmatmul.msk.f32.vlgmr.msra.gmra.mxu2 %vm10038_vm15, %v8213_v60  ;;  %7309 = vmatmul.msk.f32.vlgmr.msra.gmra.mxu3 %vm10038_vm15, %v8213_v60 }
 0x1f7   : > { %v1765_v49 = vpop.permute.xlu1 %1764 }
 0x1f8   : > { %v1642_v62 = vpop.permute.xlu0 %1641 }
 0x1f9   : > { %v1643_v0 = vsel %vm10011_vm12, %v1640_v61, %v1642_v62  ;;  %v1645_v1 = vsel %vm10011_vm12, %v1642_v62, 0.0  ;;  %v2287_v61 = vld [vmem:[%s10051_s30 + $0x14] sm:$0xf] }
 0x1fa   : > { %7301 = vmatpush.msk.msra.mxu0 %vm10035_vm14, %v1643_v0  ;;  %7303 = vmatpush.msk.msra.mxu1 %vm10035_vm14, %v1645_v1 }
 0x1fb   : > { %7302 = vmatmul.msk.f32.vlgmr.msra.gmra.mxu0 %vm10038_vm15, %v8223_v63  ;;  %7304 = vmatmul.msk.f32.vlgmr.msra.gmra.mxu1 %vm10038_vm15, %v8223_v63 }
 0x256   : > { %v1264_v2 = vpop.f32.mrf.mxu2  ;;  %v1284_v5 = vpop.f32.mrf.mxu3 }
 0x25a   : > { %v1313_v6 = vpop.f32.mrf.mxu0  ;;  %v1333_v7 = vpop.f32.mrf.mxu1 }
 0x25b   : > { %v1334_v13 = vadd.f32 %v1333_v7, %v1284_v5  ;;  %v1314_v17 = vadd.f32 %v1313_v6, %v1264_v2 }
 0x25e   : > { %v1374_v8 = vpop.f32.mrf.mxu2 }
 0x25f   : > { %v1397_v18 = vadd.f32 %v1374_v8, %v1314_v17 }
 0x261   : > { %v1394_v9 = vpop.f32.mrf.mxu3 }
 0x262   : > { %v1437_v10 = vpop.f32.mrf.mxu0  ;;  %v1457_v11 = vpop.f32.mrf.mxu1  ;;  %v1398_v16 = vadd.f32 %v1394_v9, %v1334_v13 }
 0x263   : > { %v1460_v26 = vadd.f32 %v1437_v10, %v1397_v18 }
 0x264   : > { %v1461_v19 = vadd.f32 %v1457_v11, %v1398_v16 }
 0x266   : > { %v1488_v14 = vpop.f32.mrf.mxu2 }
 0x267   : > { %v1511_v31 = vadd.f32 %v1488_v14, %v1460_v26 }
 0x269   : > { %v1508_v15 = vpop.f32.mrf.mxu3 }
 0x26a   : > { %v1551_v21 = vpop.f32.mrf.mxu0  ;;  %v1571_v23 = vpop.f32.mrf.mxu1  ;;  %v1512_v27 = vadd.f32 %v1508_v15, %v1461_v19 }
 0x26b   : > { %v1574_v32 = vadd.f32 %v1551_v21, %v1511_v31 }
 0x26c   : > { %v1575_v34 = vadd.f32 %v1571_v23, %v1512_v27 }
 0x271   : > { %v1614_v28 = vpop.f32.mrf.mxu2  ;;  %v1634_v30 = vpop.f32.mrf.mxu3 }
 0x272   : > { %v1637_v37 = vadd.f32 %v1614_v28, %v1574_v32  ;;  %v1638_v38 = vadd.f32 %v1634_v30, %v1575_v34 }
 0x278   : > { %v1673_v39 = vpop.f32.mrf.mxu0  ;;  %v1693_v40 = vpop.f32.mrf.mxu1 }
 0x279   : > { %v1696_v42 = vadd.f32 %v1673_v39, %v1637_v37  ;;  %v1697_v43 = vadd.f32 %v1693_v40, %v1638_v38  ;;  %v1736_v44 = vpop.f32.mrf.mxu2  ;;  %v1756_v46 = vpop.f32.mrf.mxu3 }
 0x27b   : > { %v1759_v47 = vadd.f32 %v1736_v44, %v1696_v42  ;;  %v1760_v48 = vadd.f32 %v1756_v46, %v1697_v43 }
 0x27d   : > { %v1767_v50 = vmul.f32 %v1765_v49, %v1759_v47  ;;  %v1768_v51 = vmul.f32 %v1765_v49, %v1760_v48 }
 0x27f   : > { %v1775_v55 = vadd.f32 %v1773_v54, %v1767_v50  ;;  %v1776_v56 = vadd.f32 %v1773_v54, %v1768_v51 }
 0x281   : > { %v1777_v57 = vmax.f32 %v1775_v55, 0.0  ;;  %v8233_v58 = vmax.f32 %v1776_v56, 0.0 }
 0x283   : > { %1783 = vrot.lane.b32.xlu1 %v8233_v58, %s10057_s1  ;;  %1791 = vrot.lane.b32.xlu2 %v1777_v57, %s10058_s0 }
 0x284   : > { %1781 = vrot.lane.b32.xlu0 %v1777_v57, %s10057_s1 }
 0x28b   : > { %1889 = vrot.lane.b32.xlu1 %v1777_v57, %s10059_s20  ;;  %1947 = vrot.lane.b32.xlu2 %v1777_v57, %s10060_s21 }
 0x28c   : > { %1793 = vrot.lane.b32.xlu0 %v8233_v58, %s10058_s0 }
 0x293   : > { %1949 = vrot.lane.b32.xlu1 %v8233_v58, %s10060_s21  ;;  %2051 = vrot.lane.b32.xlu2 %v1777_v57, %s10053_s25 }
 0x294   : > { %1891 = vrot.lane.b32.xlu0 %v8233_v58, %s10059_s20 }
 0x29b   : > { %2109 = vrot.lane.b32.xlu1 %v1777_v57, %s10052_s26  ;;  %2111 = vrot.lane.b32.xlu2 %v8233_v58, %s10052_s26 }
 0x29c   : > { %2053 = vrot.lane.b32.xlu0 %v8233_v58, %s10053_s25 }
 0x2a3   : > { %2169 = vrot.lane.b32.xlu1 %v8233_v58, %s10055_s24  ;;  %2221 = vrot.lane.b32.xlu2 %v1777_v57, %s10054_s23 }
 0x2a4   : > { %2167 = vrot.lane.b32.xlu0 %v1777_v57, %s10055_s24 }
 0x2ab   : > { %2282 = vperm.xlu1 %7782, %v2279_v59   ;;  %2290 = vperm.xlu2 %7783, %v2287_v61  }
 0x2ac   : > { %2223 = vrot.lane.b32.xlu0 %v8233_v58, %s10054_s23 }
 0x2dd   : > { %v1792_v62 = vpop.permute.xlu2 %1791 }
 0x2de   : > { %v1797_v0 = vsel %vm640_vm8, 0.0, %v1792_v62 }
 0x2df   : > { %7310 = vmatpush.msk.msrb.mxu0 %vm10035_vm14, %v1797_v0 }
 0x2e0   : > { %7311 = vmatmul.msk.f32.vlgmr.msrb.gmra.mxu0 %vm10038_vm15, %v8108_v12 }
 0x2e5   : > { %v1948_v1 = vpop.permute.xlu2 %1947 }
 0x2e6   : > { %v1954_v6 = vsel %vm819_vm2, 0.0, %v1948_v1 }
 0x2e7   : > { %v1955_v11 = vmul.f32 %v7952_v25, %v1954_v6 }
 0x2ed   : > { %v2052_v13 = vpop.permute.xlu2 %2051 }
 0x2f5   : > { %v1784_v2 = vpop.permute.xlu1 %1783 }
 0x2f6   : > { %v1782_v5 = vpop.permute.xlu0 %1781 }
 0x2f7   : > { %v1785_v7 = vsel %vm10025_vm1, %v1782_v5, %v1784_v2  ;;  %v1788_v8 = vsel %vm10025_vm1, 0.0, %v1782_v5 }
 0x2f8   : > { %v1789_v9 = vmul.f32 %v7952_v25, %v1788_v8  ;;  %v1790_v10 = vmul.f32 %v7969_v36, %v1785_v7 }
 0x2fa   : > { %7314 = vmatpush.msk.msrb.mxu2 %vm10035_vm14, %v1789_v9  ;;  %7316 = vmatpush.msk.msrb.mxu3 %vm10035_vm14, %v1790_v10 }
 0x2fb   : > { %7315 = vmatmul.msk.f32.vlgmr.msrb.gmra.mxu2 %vm10038_vm15, %v8136_v29  ;;  %7317 = vmatmul.msk.f32.vlgmr.msrb.gmra.mxu3 %vm10038_vm15, %v8136_v29  ;;  %v2112_v29 = vpop.permute.xlu2 %2111 }
 0x2fc   : > { %7322 = vmatpush.msk.msra.mxu2 %vm10035_vm14, %v1955_v11  ;;  %v2116_v28 = vsel %vm10034_vm10, %v2112_v29, 0.0 }
 0x2fd   : > { %v1890_v14 = vpop.permute.xlu1 %1889  ;;  %v2118_v30 = vmul.f32 %v7969_v36, %v2116_v28 }
 0x2fe   : > { %v1896_v15 = vsel %vm752_vm3, 0.0, %v1890_v14  ;;  %v1794_v16 = vpop.permute.xlu0 %1793 }
 0x2ff   : > { %v1897_v17 = vmul.f32 %v7965_v35, %v1896_v15  ;;  %v1795_v18 = vsel %vm640_vm8, %v1792_v62, %v1794_v16 }
 0x300   : > { %7312 = vmatpush.msk.msrb.mxu1 %vm10035_vm14, %v1795_v18 }
 0x301   : > { %7318 = vmatpush.msk.msra.mxu0 %vm10035_vm14, %v1897_v17  ;;  %7313 = vmatmul.msk.f32.vlgmr.msrb.gmra.mxu1 %vm10038_vm15, %v8108_v12 }
 0x302   : > { %7319 = vmatmul.msk.f32.vlgmr.msra.gmra.mxu0 %vm10038_vm15, %v8127_v22 }
 0x303   : > { %7323 = vmatmul.msk.f32.vlgmr.msra.gmra.mxu2 %vm10038_vm15, %v8164_v41  ;;  %7326 = vmatpush.msk.msrb.mxu0 %vm10035_vm14, %v1777_v57 }
 0x305   : > { %v1950_v19 = vpop.permute.xlu1 %1949 }
 0x306   : > { %v1951_v21 = vsel %vm819_vm2, %v1948_v1, %v1950_v19  ;;  %v1892_v23 = vpop.permute.xlu0 %1891 }
 0x307   : > { %v1956_v26 = vmul.f32 %v7969_v36, %v1951_v21  ;;  %v1893_v27 = vsel %vm752_vm3, %v1890_v14, %v1892_v23 }
 0x308   : > { %v1898_v12 = vmul.f32 %v7990_v45, %v1893_v27 }
 0x309   : > { %7324 = vmatpush.msk.msra.mxu3 %vm10035_vm14, %v1956_v26 }
 0x30a   : > { %7320 = vmatpush.msk.msra.mxu1 %vm10035_vm14, %v1898_v12  ;;  %7325 = vmatmul.msk.f32.vlgmr.msra.gmra.mxu3 %vm10038_vm15, %v8164_v41 }
 0x30b   : > { %7321 = vmatmul.msk.f32.vlgmr.msra.gmra.mxu1 %vm10038_vm15, %v8127_v22  ;;  %7327 = vmatmul.msk.f32.vlgmr.msrb.gmra.mxu0 %vm10038_vm15, %v8154_v33 }
 0x30c   : > { %7328 = vmatpush.msk.msrb.mxu1 %vm10035_vm14, %v8233_v58 }
 0x30d   : > { %v2110_v31 = vpop.permute.xlu1 %2109 }
 0x30e   : > { %7336 = vmatpush.msk.msra.mxu1 %vm10035_vm14, %v2118_v30  ;;  %v2113_v32 = vsel %vm10034_vm10, %v2110_v31, %v2112_v29  ;;  %v2054_v34 = vpop.permute.xlu0 %2053 }
 0x30f   : > { %v2117_v37 = vmul.f32 %v7952_v25, %v2113_v32  ;;  %v2055_v41 = vsel %vm10012_vm11, %v2052_v13, %v2054_v34  ;;  %v2058_v38 = vsel %vm10012_vm11, %v2054_v34, 0.0 }
 0x310   : > { %v2059_v22 = vmul.f32 %v7965_v35, %v2055_v41  ;;  %v2060_v39 = vmul.f32 %v7990_v45, %v2058_v38 }
 0x311   : > { %7334 = vmatpush.msk.msra.mxu0 %vm10035_vm14, %v2117_v37 }
 0x312   : > { %7330 = vmatpush.msk.msrb.mxu2 %vm10035_vm14, %v2059_v22  ;;  %7332 = vmatpush.msk.msrb.mxu3 %vm10035_vm14, %v2060_v39 }
 0x313   : > { %7329 = vmatmul.msk.f32.vlgmr.msrb.gmra.mxu1 %vm10038_vm15, %v8154_v33  ;;  %7331 = vmatmul.msk.f32.vlgmr.msrb.gmra.mxu2 %vm10038_vm15, %v8187_v52  ;;  %v2222_v33 = vpop.permute.xlu2 %2221 }
 0x314   : > { %7333 = vmatmul.msk.f32.vlgmr.msrb.gmra.mxu3 %vm10038_vm15, %v8187_v52  ;;  %7335 = vmatmul.msk.f32.vlgmr.msra.gmra.mxu0 %vm10038_vm15, %v8193_v53 }
 0x315   : > { %v2170_v40 = vpop.permute.xlu1 %2169 }
 0x316   : > { %v2173_v42 = vsel %vm10011_vm12, %v2170_v40, 0.0  ;;  %v2168_v43 = vpop.permute.xlu0 %2167 }
 0x317   : > { %v2171_v44 = vsel %vm10011_vm12, %v2168_v43, %v2170_v40  ;;  %7340 = vmatpush.msk.msra.mxu3 %vm10035_vm14, %v2173_v42  ;;  %v7346_v42 = vld [vmem:[%s10061_s9 + $0x8] sm:$0xff] }
 0x318   : > { %7338 = vmatpush.msk.msra.mxu2 %vm10035_vm14, %v2171_v44 }
 0x31b   : > { %7337 = vmatmul.msk.f32.vlgmr.msra.gmra.mxu1 %vm10038_vm15, %v8193_v53  ;;  %7339 = vmatmul.msk.f32.vlgmr.msra.gmra.mxu2 %vm10038_vm15, %v8223_v63  ;;  %v2291_v12 = vpop.permute.xlu2 %2290 }
 0x31c   : > { %7341 = vmatmul.msk.f32.vlgmr.msra.gmra.mxu3 %vm10038_vm15, %v8223_v63 }
 0x31d   : > { %v2283_v26 = vpop.permute.xlu1 %2282 }
 0x31e   : > { %v2224_v52 = vpop.permute.xlu0 %2223 }
 0x31f   : > { %v2225_v46 = vsel %vm10010_vm13, %v2222_v33, %v2224_v52  ;;  %v2228_v47 = vsel %vm10010_vm13, %v2224_v52, 0.0 }
 0x320   : > { %v2229_v48 = vmul.f32 %v7965_v35, %v2225_v46  ;;  %v2230_v49 = vmul.f32 %v7990_v45, %v2228_v47 }
 0x322   : > { %7342 = vmatpush.msk.msrb.mxu0 %vm10035_vm14, %v2229_v48  ;;  %7344 = vmatpush.msk.msrb.mxu1 %vm10035_vm14, %v2230_v49  ;;  %v7355_v48 = vld [vmem:[%s10061_s9 + $0x10] sm:$0xff] }
 0x323   : > { %7343 = vmatmul.msk.f32.vlgmr.msrb.gmra.mxu0 %vm10038_vm15, %v8213_v60  ;;  %7345 = vmatmul.msk.f32.vlgmr.msrb.gmra.mxu1 %vm10038_vm15, %v8213_v60 }
 0x35d   : > { %v1820_v53 = vpop.f32.mrf.mxu0 }
 0x37e   : > { %v1840_v63 = vpop.f32.mrf.mxu1  ;;  %v1866_v50 = vpop.f32.mrf.mxu2 }
 0x37f   : > { %v1922_v51 = vpop.f32.mrf.mxu0  ;;  %v1886_v54 = vpop.f32.mrf.mxu3  ;;  %v1867_v56 = vadd.f32 %v1866_v50, %v1820_v53 }
 0x380   : > { %v1887_v61 = vadd.f32 %v1886_v54, %v1840_v63 }
 0x381   : > { %v1945_v0 = vadd.f32 %v1922_v51, %v1867_v56  ;;  %v2311_v56 = vld [vmem:[%s10061_s9] sm:$0xff] }
 0x386   : > { %v1980_v58 = vpop.f32.mrf.mxu2 }
 0x387   : > { %v2003_v2 = vadd.f32 %v1980_v58, %v1945_v0 }
 0x388   : > { %v1942_v55 = vpop.f32.mrf.mxu1  ;;  %v2026_v59 = vpop.f32.mrf.mxu0 }
 0x389   : > { %v1946_v1 = vadd.f32 %v1942_v55, %v1887_v61  ;;  %v2049_v8 = vadd.f32 %v2026_v59, %v2003_v2  ;;  %v7365_v59 = vld [vmem:[%s10061_s9 + $0x20] sm:$0xff] }
 0x38d   : > { %v2000_v57 = vpop.f32.mrf.mxu3 }
 0x38e   : > { %v2004_v5 = vadd.f32 %v2000_v57, %v1946_v1 }
 0x390   : > { %v2046_v62 = vpop.f32.mrf.mxu1 }
 0x391   : > { %v2142_v7 = vpop.f32.mrf.mxu0  ;;  %v2050_v9 = vadd.f32 %v2046_v62, %v2004_v5 }
 0x396   : > { %v2084_v6 = vpop.f32.mrf.mxu2 }
 0x397   : > { %v2104_v60 = vpop.f32.mrf.mxu3  ;;  %v2107_v11 = vadd.f32 %v2084_v6, %v2049_v8  ;;  %v7360_v6 = vld [vmem:[%s10061_s9 + $0x18] sm:$0xff] }
 0x398   : > { %v2162_v10 = vpop.f32.mrf.mxu1  ;;  %v2108_v13 = vadd.f32 %v2104_v60, %v2050_v9 }
 0x399   : > { %v2165_v14 = vadd.f32 %v2142_v7, %v2107_v11 }
 0x39a   : > { %v2166_v15 = vadd.f32 %v2162_v10, %v2108_v13 }
 0x39e   : > { %v2196_v16 = vpop.f32.mrf.mxu2 }
 0x39f   : > { %v2219_v17 = vadd.f32 %v2196_v16, %v2165_v14  ;;  %v2216_v18 = vpop.f32.mrf.mxu3 }
 0x3a0   : > { %v2220_v29 = vadd.f32 %v2216_v18, %v2166_v15  ;;  %v2254_v19 = vpop.f32.mrf.mxu0  ;;  %v2274_v21 = vpop.f32.mrf.mxu1  ;;  %v7375_v15 = vld [vmem:[%s10061_s9 + $0x30] sm:$0xff] }
 0x3a1   : > { %v2277_v23 = vadd.f32 %v2254_v19, %v2219_v17  ;;  %v7370_v17 = vld [vmem:[%s10061_s9 + $0x28] sm:$0xff] }
 0x3a2   : > { %v2278_v27 = vadd.f32 %v2274_v21, %v2220_v29 }
 0x3a3   : > { %v2285_v28 = vmul.f32 %v2283_v26, %v2277_v23 }
 0x3a4   : > { %v2286_v30 = vmul.f32 %v2283_v26, %v2278_v27  ;;  %v7385_v27 = vld [vmem:[%s10061_s9 + $0x40] sm:$0xff] }
 0x3a5   : > { %v2293_v31 = vadd.f32 %v2291_v12, %v2285_v28 }
 0x3a6   : > { %v2294_v32 = vadd.f32 %v2291_v12, %v2286_v30  ;;  %v7380_v30 = vld [vmem:[%s10061_s9 + $0x38] sm:$0xff]  ;;  %s10023_s9 = smov 9  }
 0x3a7   : > { %v2295_v34 = vadd.f32 %v2293_v31, %v8062_v3  ;;  %v2875_v3 = vld [vmem:[%s10051_s30 + $0x18] sm:$0xff] }
 0x3a8   : > { %v2296_v37 = vadd.f32 %v2294_v32, %v8064_v4 }
 0x3a9   : > { %v8350_v41 = vmax.f32 %v2295_v34, 0.0  ;;  %v2858_v34 = vld [vmem:[%s10062_s3 + $0x78] sm:$0xff] }
 0x3aa   : > { %v8352_v38 = vmax.f32 %v2296_v37, 0.0  ;;  %v2874_v37 = vld [vmem:[%s10062_s3 + $0xf8] sm:$0xff] }
 0x3ab   : > { %2418 = vrot.lane.b32.xlu2 %v8350_v41, %s10059_s20  ;;  %2312 = vrot.lane.b32.xlu0 %v8350_v41, %s10058_s0 }
 0x3ac   : > { %2314 = vrot.lane.b32.xlu1 %v8352_v38, %s10058_s0 }
 0x3b3   : > { %2303 = vrot.lane.b32.xlu2 %v8352_v38, %s10057_s1  ;;  %2420 = vrot.lane.b32.xlu0 %v8352_v38, %s10059_s20 }
 0x3b4   : > { %2301 = vrot.lane.b32.xlu1 %v8350_v41, %s10057_s1 }
 0x3bb   : > { %2658 = vrot.lane.b32.xlu2 %v8350_v41, %s10052_s26  ;;  %2481 = vrot.lane.b32.xlu0 %v8350_v41, %s10060_s21 }
 0x3bc   : > { %2483 = vrot.lane.b32.xlu1 %v8352_v38, %s10060_s21 }
 0x3c3   : > { %2597 = vrot.lane.b32.xlu2 %v8352_v38, %s10053_s25  ;;  %2660 = vrot.lane.b32.xlu0 %v8352_v38, %s10052_s26 }
 0x3c4   : > { %2595 = vrot.lane.b32.xlu1 %v8350_v41, %s10053_s25 }
 0x3cb   : > { %2721 = vrot.lane.b32.xlu2 %v8350_v41, %s10055_s24  ;;  %2780 = vrot.lane.b32.xlu0 %v8350_v41, %s10054_s23 }
 0x3cc   : > { %2782 = vrot.lane.b32.xlu1 %v8352_v38, %s10054_s23  ;;  %s10066_s23 = smov 120  }
 0x3d3   : > { %2723 = vrot.lane.b32.xlu0 %v8352_v38, %s10055_s24  ;;  %s10067_s24 = smov 119  }
 0x3d4   : > { %2878 = vperm.xlu1 %7782, %v2875_v3   ;;  %v2857_v3 = vld [vmem:[%s10062_s3 + $0x70] sm:$0xff] }
 0x405   : > { %v2419_v4 = vpop.permute.xlu2 %2418 }
 0x406   : > { %v2425_v39 = vsel %vm752_vm3, 0.0, %v2419_v4 }
 0x407   : > { %v2426_v33 = vmul.f32 %v7965_v35, %v2425_v39  ;;  %v2872_v39 = vld [vmem:[%s10062_s3 + $0xe8] sm:$0xff] }
 0x40d   : > { %v2304_v22 = vpop.permute.xlu2 %2303 }
 0x415   : > { %v2659_v46 = vpop.permute.xlu2 %2658 }
 0x41d   : > { %v2313_v40 = vpop.permute.xlu0 %2312  ;;  %v2598_v57 = vpop.permute.xlu2 %2597 }
 0x41e   : > { %v2315_v43 = vpop.permute.xlu1 %2314  ;;  %v2318_v44 = vsel %vm640_vm8, 0.0, %v2313_v40  ;;  %v2602_v0 = vsel %vm10012_vm11, %v2598_v57, 0.0 }
 0x41f   : > { %v2316_v52 = vsel %vm640_vm8, %v2313_v40, %v2315_v43  ;;  %7347 = vmatpush.msk.msrb.mxu2 %vm10035_vm14, %v2318_v44  ;;  %v2604_v7 = vmul.f32 %v7990_v45, %v2602_v0  ;;  %v2855_v40 = vld [vmem:[%s10062_s3 + $0x60] sm:$0xff]  ;;  %v2854_v43 = vld [vmem:[%s10062_s3 + $0x58] sm:$0xff]  ;;  %v2845_v0 = vld [vmem:[%s10062_s3 + $0x10] sm:$0xff] }
 0x420   : > { %7349 = vmatpush.msk.msrb.mxu3 %vm10035_vm14, %v2316_v52  ;;  %7348 = vmatmul.msk.f32.vlgmr.msrb.gmra.mxu2 %vm10038_vm15, %v7346_v42  ;;  %v2870_v44 = vld [vmem:[%s10062_s3 + $0xd8] sm:$0xff]  ;;  %v2869_v52 = vld [vmem:[%s10062_s3 + $0xd0] sm:$0xff] }
 0x421   : > { %7356 = vmatpush.msk.msra.mxu2 %vm10035_vm14, %v2426_v33  ;;  %7350 = vmatmul.msk.f32.vlgmr.msrb.gmra.mxu3 %vm10038_vm15, %v7346_v42  ;;  %v2871_v42 = vld [vmem:[%s10062_s3 + $0xe0] sm:$0xff]  ;;  %v2853_v33 = vld [vmem:[%s10062_s3 + $0x50] sm:$0xff] }
 0x423   : > { %7366 = vmatpush.msk.msrb.mxu2 %vm10035_vm14, %v8350_v41 }
 0x425   : > { %v2421_v47 = vpop.permute.xlu0 %2420  ;;  %v2722_v28 = vpop.permute.xlu2 %2721 }
 0x426   : > { %v2302_v49 = vpop.permute.xlu1 %2301  ;;  %v2422_v53 = vsel %vm752_vm3, %v2419_v4, %v2421_v47  ;;  %v2873_v4 = vld [vmem:[%s10062_s3 + $0xf0] sm:$0xff]  ;;  %v2868_v47 = vld [vmem:[%s10062_s3 + $0xc8] sm:$0xff] }
 0x427   : > { %v2305_v63 = vsel %vm10025_vm1, %v2302_v49, %v2304_v22  ;;  %v2308_v50 = vsel %vm10025_vm1, 0.0, %v2302_v49  ;;  %v2427_v51 = vmul.f32 %v7990_v45, %v2422_v53  ;;  %v2856_v22 = vld [vmem:[%s10062_s3 + $0x68] sm:$0xff]  ;;  %v2867_v49 = vld [vmem:[%s10062_s3 + $0xc0] sm:$0xff]  ;;  %v2850_v53 = vld [vmem:[%s10062_s3 + $0x38] sm:$0xff]  ;;  %vm10036_vm1 = vcmask 523264  }
 0x428   : > { %v2309_v54 = vmul.f32 %v7952_v25, %v2308_v50  ;;  %v2310_v55 = vmul.f32 %v7969_v36, %v2305_v63  ;;  %7357 = vmatmul.msk.f32.vlgmr.msra.gmra.mxu2 %vm10038_vm15, %v7355_v48  ;;  %v2866_v63 = vld [vmem:[%s10062_s3 + $0xb8] sm:$0xff]  ;;  %v2849_v50 = vld [vmem:[%s10062_s3 + $0x30] sm:$0xff] }
 0x429   : > { %7358 = vmatpush.msk.msra.mxu3 %vm10035_vm14, %v2427_v51  ;;  %v2865_v51 = vld [vmem:[%s10062_s3 + $0xb0] sm:$0xff] }
 0x42a   : > { %7351 = vmatpush.msk.msra.mxu0 %vm10035_vm14, %v2309_v54  ;;  %7353 = vmatpush.msk.msra.mxu1 %vm10035_vm14, %v2310_v55  ;;  %v2848_v54 = vld [vmem:[%s10062_s3 + $0x28] sm:$0xff] }
 0x42b   : > { %7352 = vmatmul.msk.f32.vlgmr.msra.gmra.mxu0 %vm10038_vm15, %v2311_v56  ;;  %7354 = vmatmul.msk.f32.vlgmr.msra.gmra.mxu1 %vm10038_vm15, %v2311_v56  ;;  %v2864_v55 = vld [vmem:[%s10062_s3 + $0xa8] sm:$0xff]  ;;  %v2847_v56 = vld [vmem:[%s10062_s3 + $0x20] sm:$0xff] }
 0x42c   : > { %7359 = vmatmul.msk.f32.vlgmr.msra.gmra.mxu3 %vm10038_vm15, %v7355_v48  ;;  %v2851_v48 = vld [vmem:[%s10062_s3 + $0x40] sm:$0xff] }
 0x42d   : > { %7368 = vmatpush.msk.msrb.mxu3 %vm10035_vm14, %v8352_v38  ;;  %v2482_v58 = vpop.permute.xlu0 %2481 }
 0x42e   : > { %v2484_v61 = vpop.permute.xlu1 %2483  ;;  %v2488_v62 = vsel %vm819_vm2, 0.0, %v2482_v58 }
 0x42f   : > { %v2485_v1 = vsel %vm819_vm2, %v2482_v58, %v2484_v61  ;;  %v2489_v2 = vmul.f32 %v7952_v25, %v2488_v62  ;;  %v2862_v61 = vld [vmem:[%s10062_s3 + $0x98] sm:$0xff] }
 0x430   : > { %v2490_v5 = vmul.f32 %v7969_v36, %v2485_v1  ;;  %7367 = vmatmul.msk.f32.vlgmr.msrb.gmra.mxu2 %vm10038_vm15, %v7365_v59  ;;  %v2861_v1 = vld [vmem:[%s10062_s3 + $0x90] sm:$0xff] }
 0x431   : > { %7361 = vmatpush.msk.msrb.mxu0 %vm10035_vm14, %v2489_v2  ;;  %v2844_v2 = vld [vmem:[%s10062_s3 + $0x8] sm:$0xff] }
 0x432   : > { %7363 = vmatpush.msk.msrb.mxu1 %vm10035_vm14, %v2490_v5  ;;  %v2860_v5 = vld [vmem:[%s10062_s3 + $0x88] sm:$0xff] }
 0x433   : > { %7362 = vmatmul.msk.f32.vlgmr.msrb.gmra.mxu0 %vm10038_vm15, %v7360_v6  ;;  %7364 = vmatmul.msk.f32.vlgmr.msrb.gmra.mxu1 %vm10038_vm15, %v7360_v6 }
 0x434   : > { %7369 = vmatmul.msk.f32.vlgmr.msrb.gmra.mxu3 %vm10038_vm15, %v7365_v59  ;;  %7373 = vmatpush.msk.msra.mxu1 %vm10035_vm14, %v2604_v7  ;;  %v2846_v59 = vld [vmem:[%s10062_s3 + $0x18] sm:$0xff] }
 0x435   : > { %v2661_v8 = vpop.permute.xlu0 %2660 }
 0x436   : > { %v2596_v60 = vpop.permute.xlu1 %2595  ;;  %v2662_v9 = vsel %vm10034_vm10, %v2659_v46, %v2661_v8  ;;  %v2665_v10 = vsel %vm10034_vm10, %v2661_v8, 0.0  ;;  %v2852_v46 = vld [vmem:[%s10062_s3 + $0x48] sm:$0xff]  ;;  %v2843_v8 = vld [vmem:[%s10062_s3] sm:$0xff] }
 0x437   : > { %v2599_v11 = vsel %vm10012_vm11, %v2596_v60, %v2598_v57  ;;  %v2666_v13 = vmul.f32 %v7952_v25, %v2662_v9  ;;  %v2667_v14 = vmul.f32 %v7969_v36, %v2665_v10  ;;  %v2863_v57 = vld [vmem:[%s10062_s3 + $0xa0] sm:$0xff]  ;;  %vm3177_vm11 = vcmask 449536  }
 0x438   : > { %v2603_v16 = vmul.f32 %v7965_v35, %v2599_v11  ;;  %v2859_v60 = vld [vmem:[%s10062_s3 + $0x80] sm:$0xff]  ;;  %s10072_s3 = smov 125  }
 0x439   : > { %7376 = vmatpush.msk.msra.mxu2 %vm10035_vm14, %v2666_v13  ;;  %7378 = vmatpush.msk.msra.mxu3 %vm10035_vm14, %v2667_v14 }
 0x43a   : > { %7371 = vmatpush.msk.msra.mxu0 %vm10035_vm14, %v2603_v16  ;;  %7377 = vmatmul.msk.f32.vlgmr.msra.gmra.mxu2 %vm10038_vm15, %v7375_v15 }
 0x43b   : > { %7372 = vmatmul.msk.f32.vlgmr.msra.gmra.mxu0 %vm10038_vm15, %v7370_v17  ;;  %7374 = vmatmul.msk.f32.vlgmr.msra.gmra.mxu1 %vm10038_vm15, %v7370_v17 }
 0x43c   : > { %7379 = vmatmul.msk.f32.vlgmr.msra.gmra.mxu3 %vm10038_vm15, %v7375_v15 }
 0x43d   : > { %v2781_v18 = vpop.permute.xlu0 %2780 }
 0x43e   : > { %v2783_v29 = vpop.permute.xlu1 %2782 }
 0x43f   : > { %v2787_v19 = vsel %vm10010_vm13, %v2783_v29, 0.0  ;;  %v2784_v21 = vsel %vm10010_vm13, %v2781_v18, %v2783_v29  ;;  %vm3082_vm13 = vcmask 515072  }
 0x440   : > { %v2789_v23 = vmul.f32 %v7990_v45, %v2787_v19  ;;  %v2788_v26 = vmul.f32 %v7965_v35, %v2784_v21 }
 0x442   : > { %7386 = vmatpush.msk.msrb.mxu2 %vm10035_vm14, %v2788_v26  ;;  %7388 = vmatpush.msk.msrb.mxu3 %vm10035_vm14, %v2789_v23 }
 0x443   : > { %7387 = vmatmul.msk.f32.vlgmr.msrb.gmra.mxu2 %vm10038_vm15, %v7385_v27 }
 0x444   : > { %7389 = vmatmul.msk.f32.vlgmr.msrb.gmra.mxu3 %vm10038_vm15, %v7385_v27 }
 0x445   : > { %v2724_v12 = vpop.permute.xlu0 %2723 }
 0x446   : > { %v2725_v31 = vsel %vm10011_vm12, %v2722_v28, %v2724_v12  ;;  %v2727_v32 = vsel %vm10011_vm12, %v2724_v12, 0.0  ;;  %vm3146_vm12 = vcmask 457728  }
 0x447   : > { %7381 = vmatpush.msk.msrb.mxu0 %vm10035_vm14, %v2725_v31  ;;  %7383 = vmatpush.msk.msrb.mxu1 %vm10035_vm14, %v2727_v32 }
 0x448   : > { %7382 = vmatmul.msk.f32.vlgmr.msrb.gmra.mxu0 %vm10038_vm15, %v7380_v30  ;;  %7384 = vmatmul.msk.f32.vlgmr.msrb.gmra.mxu1 %vm10038_vm15, %v7380_v30 }
 0x449   : > { %2881 = vmatpush.msra.mxu0 %v2858_v34  ;;  %2901 = vmatpush.msra.mxu1 %v2874_v37 }
 0x44b   : > { %2882 = vmatpush.msra.mxu0 %v2857_v3  ;;  %2902 = vmatpush.msra.mxu1 %v2873_v4 }
 0x44d   : > { %2883 = vmatpush.msra.mxu0 %v2856_v22  ;;  %2903 = vmatpush.msra.mxu1 %v2872_v39 }
 0x44f   : > { %2884 = vmatpush.msra.mxu0 %v2855_v40  ;;  %2904 = vmatpush.msra.mxu1 %v2871_v42 }
 0x451   : > { %2885 = vmatpush.msra.mxu0 %v2854_v43  ;;  %2905 = vmatpush.msra.mxu1 %v2870_v44 }
 0x453   : > { %2886 = vmatpush.msra.mxu0 %v2853_v33  ;;  %2906 = vmatpush.msra.mxu1 %v2869_v52  ;;  %v2879_v33 = vpop.permute.xlu1 %2878 }
 0x455   : > { %2887 = vmatpush.msra.mxu0 %v2852_v46  ;;  %2907 = vmatpush.msra.mxu1 %v2868_v47 }
 0x457   : > { %2888 = vmatpush.msra.mxu0 %v2851_v48  ;;  %2908 = vmatpush.msra.mxu1 %v2867_v49 }
 0x459   : > { %2889 = vmatpush.msra.mxu0 %v2850_v53  ;;  %2909 = vmatpush.msra.mxu1 %v2866_v63  ;;  %v3206_v53 = vld [vmem:[%s10051_s30 + $0x20] sm:$0xff]  ;;  %v3213_v63 = vld [vmem:[%s10051_s30 + $0x28] sm:$0xff] }
 0x45b   : > { %2890 = vmatpush.msra.mxu0 %v2849_v50  ;;  %2910 = vmatpush.msra.mxu1 %v2865_v51  ;;  %v2928_v50 = vand.u32 7, %v7947_v20 }
 0x45d   : > { %2891 = vmatpush.msra.mxu0 %v2848_v54  ;;  %2911 = vmatpush.msra.mxu1 %v2864_v55  ;;  %vm2932_vm0 = vcmp.ge.s32.totalorder %v2928_v50, 1  ;;  %vm2929_vm7 = vcmp.lt.s32.totalorder %v2928_v50, 7  ;;  %v3447_v50 = vld [vmem:[%s10051_s30 + $0x30] sm:$0xff] }
 0x45e   : > { %v8604_v51 = vsel %vm2932_vm0, 1.0, %v7801_v24  ;;  %vm8625_vm0 = vmneg %vm2940_vm6 }
 0x45f   : > { %2892 = vmatpush.msra.mxu0 %v2847_v56  ;;  %2912 = vmatpush.msra.mxu1 %v2863_v57  ;;  %v8611_v57 = vld [vmem:[%s10063_s8] sm:$0xff] }
 0x461   : > { %2893 = vmatpush.msra.mxu0 %v2846_v59  ;;  %2913 = vmatpush.msra.mxu1 %v2862_v61 }
 0x463   : > { %2894 = vmatpush.msra.mxu0 %v2845_v0  ;;  %2914 = vmatpush.msra.mxu1 %v2861_v1  ;;  %v8630_v1 = vsel %vm2929_vm7, 1.0, %v7801_v24  ;;  %vm10037_vm7 = vcmask 465920  }
 0x465   : > { %2895 = vmatpush.msra.mxu0 %v2844_v2  ;;  %2915 = vmatpush.msra.mxu1 %v2860_v5  ;;  %v8635_v2 = vld [vmem:[%s10063_s8 + $0x8] sm:$0xff] }
 0x467   : > { %2896 = vmatpush.msra.mxu0 %v2843_v8  ;;  %2916 = vmatpush.msra.mxu1 %v2859_v60  ;;  %v8647_v60 = vld [vmem:[%s10063_s8 + $0x10] sm:$0xff] }
 0x4a3   : > { %v2346_v58 = vpop.f32.mrf.mxu2 }
 0x4a4   : > { %v2366_v62 = vpop.f32.mrf.mxu3 }
 0x4a8   : > { %v2395_v6 = vpop.f32.mrf.mxu0  ;;  %v2415_v7 = vpop.f32.mrf.mxu1 }
 0x4a9   : > { %v2416_v14 = vadd.f32 %v2415_v7, %v2366_v62  ;;  %v2396_v18 = vadd.f32 %v2395_v6, %v2346_v58  ;;  %v8620_v62 = vld [vmem:[%s10063_s8 + $0x18] sm:$0xff] }
 0x4ab   : > { %v2456_v9 = vpop.f32.mrf.mxu2 }
 0x4ac   : > { %v2479_v29 = vadd.f32 %v2456_v9, %v2396_v18  ;;  %v7401_v18 = vld [vmem:[%s10063_s8 + $0x20] sm:$0xff] }
 0x4af   : > { %v2476_v10 = vpop.f32.mrf.mxu3 }
 0x4b0   : > { %v2519_v11 = vpop.f32.mrf.mxu0  ;;  %v2539_v13 = vpop.f32.mrf.mxu1  ;;  %v2480_v17 = vadd.f32 %v2476_v10, %v2416_v14 }
 0x4b1   : > { %v2542_v26 = vadd.f32 %v2519_v11, %v2479_v29 }
 0x4b2   : > { %v2543_v19 = vadd.f32 %v2539_v13, %v2480_v17 }
 0x4b3   : > { %v2570_v15 = vpop.f32.mrf.mxu2 }
 0x4b4   : > { %v2593_v30 = vadd.f32 %v2570_v15, %v2542_v26  ;;  %v8677_v26 = vld [vmem:[%s10063_s8 + $0x38] sm:$0xff] }
 0x4b7   : > { %v2590_v16 = vpop.f32.mrf.mxu3 }
 0x4b8   : > { %v2633_v21 = vpop.f32.mrf.mxu0  ;;  %v2653_v23 = vpop.f32.mrf.mxu1  ;;  %v2594_v27 = vadd.f32 %v2590_v16, %v2543_v19  ;;  %v8658_v16 = vld [vmem:[%s10063_s8 + $0x28] sm:$0xff] }
 0x4b9   : > { %v2656_v31 = vadd.f32 %v2633_v21, %v2593_v30 }
 0x4ba   : > { %v2657_v32 = vadd.f32 %v2653_v23, %v2594_v27  ;;  %v8672_v23 = vld [vmem:[%s10063_s8 + $0x40] sm:$0xff]  ;;  %v8686_v27 = vld [vmem:[%s10063_s8 + $0x30] sm:$0xff]  ;;  %s10030_s8 = smov 3  }
 0x4bd   : > { %v2696_v28 = vpop.f32.mrf.mxu2 }
 0x4be   : > { %v2719_v34 = vadd.f32 %v2696_v28, %v2656_v31 }
 0x4bf   : > { %v2716_v12 = vpop.f32.mrf.mxu3 }
 0x4c0   : > { %v2720_v37 = vadd.f32 %v2716_v12, %v2657_v32 }
 0x4c5   : > { %v2755_v3 = vpop.f32.mrf.mxu0  ;;  %v2775_v4 = vpop.f32.mrf.mxu1 }
 0x4c6   : > { %v2778_v22 = vadd.f32 %v2755_v3, %v2719_v34  ;;  %v2779_v39 = vadd.f32 %v2775_v4, %v2720_v37  ;;  %v2818_v40 = vpop.f32.mrf.mxu2 }
 0x4c7   : > { %v2838_v42 = vpop.f32.mrf.mxu3 }
 0x4c8   : > { %v2841_v43 = vadd.f32 %v2818_v40, %v2778_v22  ;;  %v2842_v44 = vadd.f32 %v2838_v42, %v2779_v39 }
 0x4ca   : > { %2897 = vmatmul.f32.vlgmr.msra.gmra.mxu0 %v2841_v43  ;;  %2917 = vmatmul.f32.vlgmr.msra.gmra.mxu1 %v2842_v44 }
 0x547   : > { %v2898_v52 = vpop.f32.mrf.mxu0  ;;  %v2918_v47 = vpop.f32.mrf.mxu1 }
 0x548   : > { %v2899_v46 = vadd.f32 %v2898_v52, %v2879_v33 }
 0x54a   : > { %v2919_v48 = vadd.f32 %v2918_v47, %v2899_v46 }
 0x54c   : > { %v8578_v49 = vmax.f32 %v2919_v48, 0.0 }
 0x54e   : > { %2990 = vrot.lane.b32.xlu1 %v8578_v49, %s10017_s22  ;;  %2937 = vrot.lane.b32.xlu0 %v8578_v49, %s10021_s2 }
 0x54f   : > { %2923 = vrot.lane.b32.xlu2 %v8578_v49, %s10023_s9 }
 0x556   : > { %3111 = vrot.lane.b32.xlu1 %v8578_v49, %s10019_s15  ;;  %3079 = vrot.lane.b32.xlu0 %v8578_v49, %s10053_s25 }
 0x557   : > { %3022 = vrot.lane.b32.xlu2 %v8578_v49, %s10060_s21 }
 0x55e   : > { %3209 = vperm.xlu1 %7782, %v3206_v53   ;;  %3174 = vrot.lane.b32.xlu0 %v8578_v49, %s10013_s7  ;;  %s7811_s7 = smov 5  }
 0x55f   : > { %3143 = vrot.lane.b32.xlu2 %v8578_v49, %s10015_s19  ;;  %s10028_s19 = smov 125  }
 0x567   : > { %3216 = vperm.xlu2 %7783, %v3213_v63  }
 0x5a9   : > { %v2924_v54 = vpop.permute.xlu2 %2923 }
 0x5aa   : > { %v2927_v55 = vsel %vm2926_vm4, 0.0, %v2924_v54 }
 0x5ab   : > { %v2935_v56 = vmul.f32 %v8604_v51, %v2927_v55  ;;  %v3454_v55 = vld [vmem:[%s10051_s30 + $0x38] sm:$0xff] }
 0x5ad   : > { %2985 = vmatpush.msra.mxu3 %v2935_v56 }
 0x5ae   : > { %7396 = vmatmul.msk.f32.vlgmr.msra.gmra.mxu3 %vm2940_vm6, %v8611_v57 }
 0x5b1   : > { %v3023_v58 = vpop.permute.xlu2 %3022 }
 0x5b2   : > { %v3025_v59 = vsel %vm819_vm2, 0.0, %v3023_v58 }
 0x5b3   : > { %v3026_v61 = vmul.f32 %v8604_v51, %v3025_v59 }
 0x5b5   : > { %3047 = vmatpush.msrb.mxu3 %v3026_v61 }
 0x5b6   : > { %7400 = vmatmul.msk.f32.vlgmr.msrb.gmra.mxu3 %vm2940_vm6, %v8620_v62 }
 0x5b9   : > { %v3144_v17 = vpop.permute.xlu2 %3143 }
 0x5c0   : > { %v2991_v5 = vpop.permute.xlu1 %2990  ;;  %v2938_v6 = vpop.permute.xlu0 %2937 }
 0x5c1   : > { %v2994_v7 = vsel %vm2993_vm9, 0.0, %v2991_v5  ;;  %7394 = vmatpush.msk.msra.mxu2 %vm8625_vm0, %v2938_v6  ;;  %v3217_v48 = vpop.permute.xlu2 %3216 }
 0x5c2   : > { %v2995_v8 = vmul.f32 %v8630_v1, %v2994_v7  ;;  %7395 = vmatmul.msk.f32.vlgmr.msra.gmra.mxu2 %vm2940_vm6, %v8635_v2 }
 0x5c4   : > { %3016 = vmatpush.msrb.mxu2 %v2995_v8 }
 0x5c6   : > { %3073 = vmatpush.msra.mxu2 %v8578_v49 }
 0x5c8   : > { %v3112_v9 = vpop.permute.xlu1 %3111  ;;  %v3080_v10 = vpop.permute.xlu0 %3079 }
 0x5c9   : > { %v3115_v11 = vsel %vm10037_vm7, %v3112_v9, 0.0  ;;  %v3083_v13 = vsel %vm3082_vm13, %v3080_v10, 0.0 }
 0x5ca   : > { %v3116_v14 = vmul.f32 %v8604_v51, %v3115_v11  ;;  %v3084_v15 = vmul.f32 %v8630_v1, %v3083_v13  ;;  %7398 = vmatmul.msk.f32.vlgmr.msrb.gmra.mxu2 %vm2940_vm6, %v8647_v60 }
 0x5cc   : > { %3105 = vmatpush.msra.mxu3 %v3084_v15  ;;  %3137 = vmatpush.msrb.mxu2 %v3116_v14 }
 0x5cd   : > { %7404 = vmatmul.msk.f32.vlgmr.msra.gmra.mxu3 %vm2940_vm6, %v8658_v16 }
 0x5ce   : > { %7408 = vmatpush.msk.msrb.mxu3 %vm3146_vm12, %v3144_v17 }
 0x5d0   : > { %v3175_v29 = vpop.permute.xlu0 %3174  ;;  %v3210_v46 = vpop.permute.xlu1 %3209 }
 0x5d1   : > { %v3178_v19 = vsel %vm3177_vm11, %v3175_v29, 0.0 }
 0x5d2   : > { %v3179_v21 = vmul.f32 %v8630_v1, %v3178_v19  ;;  %7402 = vmatmul.msk.f32.vlgmr.msra.gmra.mxu2 %vm2940_vm6, %v7401_v18 }
 0x5d4   : > { %3200 = vmatpush.msrb.mxu0 %v3179_v21 }
 0x5d5   : > { %7411 = vmatmul.msk.f32.vlgmr.msrb.gmra.mxu0 %vm2940_vm6, %v8672_v23  ;;  %7409 = vmatmul.msk.f32.vlgmr.msrb.gmra.mxu3 %vm2940_vm6, %v8677_v26 }
 0x5da   : > { %7406 = vmatmul.msk.f32.vlgmr.msrb.gmra.mxu2 %vm2940_vm6, %v8686_v27 }
 0x631   : > { %v2987_v28 = vpop.f32.mrf.mxu3 }
 0x639   : > { %v3049_v30 = vpop.f32.mrf.mxu3 }
 0x645   : > { %v2964_v12 = vpop.f32.mrf.mxu2 }
 0x646   : > { %v2988_v32 = vadd.f32 %v2987_v28, %v2964_v12 }
 0x64d   : > { %v3018_v31 = vpop.f32.mrf.mxu2 }
 0x64e   : > { %v3021_v34 = vadd.f32 %v3018_v31, %v2988_v32 }
 0x650   : > { %v3107_v37 = vpop.f32.mrf.mxu3  ;;  %v3052_v4 = vadd.f32 %v3049_v30, %v3021_v34 }
 0x652   : > { %v3202_v44 = vpop.f32.mrf.mxu0 }
 0x655   : > { %v3075_v3 = vpop.f32.mrf.mxu2 }
 0x656   : > { %v3078_v22 = vadd.f32 %v3075_v3, %v3052_v4 }
 0x658   : > { %v3110_v39 = vadd.f32 %v3107_v37, %v3078_v22  ;;  %v3170_v42 = vpop.f32.mrf.mxu3 }
 0x65d   : > { %v3139_v40 = vpop.f32.mrf.mxu2 }
 0x65e   : > { %v3142_v43 = vadd.f32 %v3139_v40, %v3110_v39 }
 0x660   : > { %v3173_v33 = vadd.f32 %v3170_v42, %v3142_v43 }
 0x662   : > { %v3205_v52 = vadd.f32 %v3202_v44, %v3173_v33  ;;  %v3812_v33 = vld [vmem:[%s10051_s30 + $0x48] sm:$0xff] }
 0x664   : > { %v3212_v47 = vmul.f32 %v3210_v46, %v3205_v52 }
 0x666   : > { %v3219_v53 = vadd.f32 %v3217_v48, %v3212_v47  ;;  %v3469_v48 = vld [vmem:[%s9978_s10] sm:$0xff] }
 0x668   : > { %v3220_v63 = vmax.f32 %v3219_v53, 0.0 }
 0x66a   : > { %3227 = vrot.lane.b32.xlu2 %v3220_v63, %s10021_s2  ;;  %3271 = vrot.lane.b32.xlu1 %v3220_v63, %s10017_s22 }
 0x66b   : > { %3222 = vrot.lane.b32.xlu0 %v3220_v63, %s10023_s9 }
 0x672   : > { %3370 = vrot.lane.b32.xlu2 %v3220_v63, %s10019_s15  ;;  %3297 = vrot.lane.b32.xlu1 %v3220_v63, %s10060_s21 }
 0x673   : > { %3344 = vrot.lane.b32.xlu0 %v3220_v63, %s10053_s25 }
 0x67a   : > { %3450 = vperm.xlu2 %7783, %v3447_v50   ;;  %3396 = vrot.lane.b32.xlu1 %v3220_v63, %s10066_s23 }
 0x67b   : > { %3421 = vrot.lane.b32.xlu0 %v3220_v63, %s10067_s24 }
 0x683   : > { %3457 = vperm.xlu0 %7784, %v3454_v55   ;;  %v7436_v55 = vld [vmem:[%s9978_s10 + $0x30] sm:$0xff] }
 0x6c4   : > { %v3228_v54 = vpop.permute.xlu2 %3227 }
 0x6c5   : > { %7413 = vmatpush.msk.msrb.mxu1 %vm8625_vm0, %v3228_v54  ;;  %v3470_v54 = vld [vmem:[%s9978_s10 + $0x8] sm:$0xff] }
 0x6c6   : > { %7414 = vmatmul.msk.f32.vlgmr.msrb.gmra.mxu1 %vm2940_vm6, %v8635_v2 }
 0x6c7   : > { %3338 = vmatpush.msra.mxu1 %v3220_v63 }
 0x6cc   : > { %v3371_v56 = vpop.permute.xlu2 %3370 }
 0x6cd   : > { %v3373_v58 = vsel %vm10037_vm7, %v3371_v56, 0.0  ;;  %v7437_v56 = vld [vmem:[%s9978_s10 + $0x38] sm:$0xff] }
 0x6ce   : > { %7418 = vmatmul.msk.f32.vlgmr.msra.gmra.mxu1 %vm2940_vm6, %v7401_v18  ;;  %v3374_v2 = vmul.f32 %v8604_v51, %v3373_v58 }
 0x6d4   : > { %v3451_v39 = vpop.permute.xlu2 %3450 }
 0x6dc   : > { %v3272_v59 = vpop.permute.xlu1 %3271 }
 0x6dd   : > { %v3274_v61 = vsel %vm2993_vm9, 0.0, %v3272_v59  ;;  %v3223_v5 = vpop.permute.xlu0 %3222  ;;  %v7424_v59 = vld [vmem:[%s9978_s10 + $0x10] sm:$0xff] }
 0x6de   : > { %v3275_v6 = vmul.f32 %v8630_v1, %v3274_v61  ;;  %v3225_v7 = vsel %vm2926_vm4, 0.0, %v3223_v5 }
 0x6df   : > { %v3226_v8 = vmul.f32 %v8604_v51, %v3225_v7  ;;  %v7444_v7 = vld [vmem:[%s9978_s10 + $0x50] sm:$0xff] }
 0x6e0   : > { %3291 = vmatpush.msra.mxu3 %v3275_v6 }
 0x6e1   : > { %3266 = vmatpush.msra.mxu2 %v3226_v8  ;;  %7416 = vmatmul.msk.f32.vlgmr.msra.gmra.mxu3 %vm2940_vm6, %v8647_v60  ;;  %v7452_v8 = vld [vmem:[%s9978_s10 + $0x70] sm:$0xff] }
 0x6e2   : > { %3390 = vmatpush.msrb.mxu3 %v3374_v2  ;;  %7415 = vmatmul.msk.f32.vlgmr.msra.gmra.mxu2 %vm2940_vm6, %v8611_v57 }
 0x6e4   : > { %v3298_v9 = vpop.permute.xlu1 %3297 }
 0x6e5   : > { %v3300_v10 = vsel %vm819_vm2, 0.0, %v3298_v9  ;;  %v3345_v11 = vpop.permute.xlu0 %3344 }
 0x6e6   : > { %v3301_v13 = vmul.f32 %v8604_v51, %v3300_v10  ;;  %v3347_v14 = vsel %vm3082_vm13, %v3345_v11, 0.0  ;;  %v7425_v10 = vld [vmem:[%s9978_s10 + $0x18] sm:$0xff] }
 0x6e7   : > { %v3348_v15 = vmul.f32 %v8630_v1, %v3347_v14 }
 0x6e8   : > { %3317 = vmatpush.msra.mxu0 %v3301_v13 }
 0x6e9   : > { %3364 = vmatpush.msrb.mxu2 %v3348_v15  ;;  %7417 = vmatmul.msk.f32.vlgmr.msra.gmra.mxu0 %vm2940_vm6, %v8620_v62  ;;  %v7445_v15 = vld [vmem:[%s9978_s10 + $0x58] sm:$0xff] }
 0x6ea   : > { %7419 = vmatmul.msk.f32.vlgmr.msrb.gmra.mxu2 %vm2940_vm6, %v8658_v16  ;;  %7420 = vmatmul.msk.f32.vlgmr.msrb.gmra.mxu3 %vm2940_vm6, %v8686_v27 }
 0x6ec   : > { %v3397_v57 = vpop.permute.xlu1 %3396 }
 0x6ed   : > { %v3422_v60 = vpop.permute.xlu0 %3421  ;;  %7421 = vmatpush.msk.msrb.mxu0 %vm3146_vm12, %v3397_v57 }
 0x6ee   : > { %v3424_v17 = vsel %vm3177_vm11, %v3422_v60, 0.0  ;;  %v7432_v60 = vld [vmem:[%s9978_s10 + $0x20] sm:$0xff] }
 0x6ef   : > { %v3425_v18 = vmul.f32 %v8630_v1, %v3424_v17 }
 0x6f1   : > { %3441 = vmatpush.msrb.mxu1 %v3425_v18  ;;  %7422 = vmatmul.msk.f32.vlgmr.msrb.gmra.mxu0 %vm2940_vm6, %v8677_v26  ;;  %v7453_v18 = vld [vmem:[%s9978_s10 + $0x78] sm:$0xff] }
 0x6f2   : > { %7423 = vmatmul.msk.f32.vlgmr.msrb.gmra.mxu1 %vm2940_vm6, %v8672_v23 }
 0x6f5   : > { %v3458_v40 = vpop.permute.xlu0 %3457 }
 0x743   : > { %v3248_v62 = vpop.f32.mrf.mxu1 }
 0x74b   : > { %v3340_v27 = vpop.f32.mrf.mxu1 }
 0x764   : > { %v3293_v29 = vpop.f32.mrf.mxu3 }
 0x765   : > { %v3268_v16 = vpop.f32.mrf.mxu2 }
 0x766   : > { %v3269_v19 = vadd.f32 %v3268_v16, %v3248_v62  ;;  %v3319_v21 = vpop.f32.mrf.mxu0  ;;  %v7440_v62 = vld [vmem:[%s9978_s10 + $0x40] sm:$0xff] }
 0x768   : > { %v3296_v28 = vadd.f32 %v3293_v29, %v3269_v19 }
 0x76a   : > { %v3322_v12 = vadd.f32 %v3319_v21, %v3296_v28  ;;  %v7433_v21 = vld [vmem:[%s9978_s10 + $0x28] sm:$0xff]  ;;  %v7448_v28 = vld [vmem:[%s9978_s10 + $0x60] sm:$0xff] }
 0x76c   : > { %v3343_v30 = vadd.f32 %v3340_v27, %v3322_v12  ;;  %v7441_v27 = vld [vmem:[%s9978_s10 + $0x48] sm:$0xff]  ;;  %v7457_v12 = vld [vmem:[%s9978_s10 + $0x80] sm:$0xff] }
 0x76d   : > { %v3366_v31 = vpop.f32.mrf.mxu2  ;;  %v3392_v32 = vpop.f32.mrf.mxu3 }
 0x76e   : > { %v3369_v34 = vadd.f32 %v3366_v31, %v3343_v30  ;;  %v3417_v37 = vpop.f32.mrf.mxu0  ;;  %v7449_v30 = vld [vmem:[%s9978_s10 + $0x68] sm:$0xff] }
 0x76f   : > { %v3443_v4 = vpop.f32.mrf.mxu1  ;;  %v7458_v31 = vld [vmem:[%s9978_s10 + $0x88] sm:$0xff] }
 0x770   : > { %v3395_v3 = vadd.f32 %v3392_v32, %v3369_v34  ;;  %v3810_v32 = vld [vmem:[%s9972_s4 + $0x38] sm:$0xff]  ;;  %v3809_v34 = vld [vmem:[%s9972_s4 + $0x30] sm:$0xff] }
 0x772   : > { %v3420_v22 = vadd.f32 %v3417_v37, %v3395_v3  ;;  %v3808_v37 = vld [vmem:[%s9972_s4 + $0x28] sm:$0xff]  ;;  %v3807_v3 = vld [vmem:[%s9972_s4 + $0x20] sm:$0xff] }
 0x774   : > { %v3446_v26 = vadd.f32 %v3443_v4, %v3420_v22  ;;  %v3806_v4 = vld [vmem:[%s9972_s4 + $0x18] sm:$0xff]  ;;  %v3805_v22 = vld [vmem:[%s9972_s4 + $0x10] sm:$0xff] }
 0x776   : > { %v3453_v23 = vmul.f32 %v3451_v39, %v3446_v26 }
 0x778   : > { %v3460_v42 = vadd.f32 %v3458_v40, %v3453_v23  ;;  %v3804_v40 = vld [vmem:[%s9972_s4 + $0x8] sm:$0xff]  ;;  %v3803_v23 = vld [vmem:[%s9972_s4] sm:$0xff] }
 0x77a   : > { %v3461_v43 = vadd.f32 %v3460_v42, %v8578_v49  ;;  %v3811_v49 = vld [vmem:[%s10051_s30 + $0x40] sm:$0xff] }
 0x77c   : > { %v8737_v44 = vmax.f32 %v3461_v43, 0.0 }
 0x77e   : > { %3648 = vrot.lane.b32.xlu0 %v8737_v44, %s10053_s25  ;;  %3464 = vrot.lane.b32.xlu2 %v8737_v44, %s10023_s9  ;;  %s10070_s9 = smov 4  }
 0x77f   : > { %3471 = vrot.lane.b32.xlu1 %v8737_v44, %s10021_s2  ;;  %s10026_s2 = smov 124  }
 0x786   : > { %3726 = vrot.lane.b32.xlu0 %v8737_v44, %s10066_s23  ;;  %3575 = vrot.lane.b32.xlu2 %v8737_v44, %s10060_s21 }
 0x787   : > { %3536 = vrot.lane.b32.xlu1 %v8737_v44, %s10017_s22  ;;  %s10089_s22 = smov 111  }
 0x78e   : > { %3687 = vrot.lane.b32.xlu2 %v8737_v44, %s10019_s15  ;;  %s10032_s15 = smov 4  }
 0x78f   : > { %3764 = vrot.lane.b32.xlu1 %v8737_v44, %s10067_s24 }
 0x796   : > { %3815 = vperm.xlu2 %7783, %v3811_v49  }
 0x797   : > { %3820 = vperm.xlu1 %7782, %v3812_v33  }
 0x7d8   : > { %v3465_v52 = vpop.permute.xlu2 %3464 }
 0x7d9   : > { %v3467_v46 = vsel %vm2926_vm4, 0.0, %v3465_v52 }
 0x7da   : > { %v3468_v47 = vmul.f32 %v8604_v51, %v3467_v46 }
 0x7dc   : > { %3528 = vmatpush.msra.mxu3 %v3468_v47 }
 0x7dd   : > { %7430 = vmatmul.msk.f32.vlgmr.msra.gmra.mxu3 %vm2940_vm6, %v3469_v48 }
 0x7e0   : > { %v3576_v53 = vpop.permute.xlu2 %3575 }
 0x7e1   : > { %v3578_v63 = vsel %vm819_vm2, 0.0, %v3576_v53 }
 0x7e2   : > { %v3579_v50 = vmul.f32 %v8604_v51, %v3578_v63 }
 0x7e4   : > { %3604 = vmatpush.msra.mxu1 %v3579_v50 }
 0x7e5   : > { %7431 = vmatmul.msk.f32.gmra.mxu3 %vm2940_vm6, %v3470_v54  ;;  %7438 = vmatmul.msk.f32.vlgmr.msra.gmra.mxu1 %vm2940_vm6, %v7436_v55 }
 0x7e8   : > { %v3688_v2 = vpop.permute.xlu2 %3687 }
 0x7e9   : > { %v3690_v13 = vsel %vm10037_vm7, %v3688_v2, 0.0  ;;  %vm4118_vm7 = vcmask 105472  }
 0x7ea   : > { %v3691_v17 = vmul.f32 %v8604_v51, %v3690_v13 }
 0x7ed   : > { %7439 = vmatmul.msk.f32.gmra.mxu1 %vm2940_vm6, %v7437_v56 }
 0x7f0   : > { %v3649_v58 = vpop.permute.xlu0 %3648 }
 0x7f1   : > { %v3651_v61 = vsel %vm3082_vm13, %v3649_v58, 0.0  ;;  %v3472_v5 = vpop.permute.xlu1 %3471 }
 0x7f2   : > { %v3652_v6 = vmul.f32 %v8630_v1, %v3651_v61  ;;  %7427 = vmatpush.msk.msra.mxu2 %vm8625_vm0, %v3472_v5 }
 0x7f3   : > { %7428 = vmatmul.msk.f32.vlgmr.msra.gmra.mxu2 %vm2940_vm6, %v7424_v59 }
 0x7f4   : > { %3638 = vmatpush.msrb.mxu2 %v8737_v44  ;;  %3677 = vmatpush.msrb.mxu3 %v3652_v6 }
 0x7f5   : > { %7446 = vmatmul.msk.f32.vlgmr.msrb.gmra.mxu3 %vm2940_vm6, %v7444_v7 }
 0x7f6   : > { %3838 = vmatpush.msra.mxu3 %v3810_v32  ;;  %v4245_v32 = vld [vmem:[%s10051_s30 + $0x50] sm:$0xff] }
 0x7f8   : > { %v3727_v9 = vpop.permute.xlu0 %3726  ;;  %3839 = vmatpush.msra.mxu3 %v3809_v34  ;;  %v4260_v34 = vld [vmem:[%s10051_s30 + $0x68] sm:$0xff] }
 0x7f9   : > { %v3537_v11 = vpop.permute.xlu1 %3536  ;;  %7454 = vmatpush.msk.msrb.mxu1 %vm3146_vm12, %v3727_v9 }
 0x7fa   : > { %v3539_v14 = vsel %vm2993_vm9, 0.0, %v3537_v11  ;;  %7455 = vmatmul.msk.f32.vlgmr.msrb.gmra.mxu1 %vm2940_vm6, %v7452_v8  ;;  %3840 = vmatpush.msra.mxu3 %v3808_v37  ;;  %v3866_v37 = vand.u32 3, %v7947_v20 }
 0x7fb   : > { %v3540_v57 = vmul.f32 %v8630_v1, %v3539_v14  ;;  %7429 = vmatmul.msk.f32.gmra.mxu2 %vm2940_vm6, %v7425_v10 }
 0x7fc   : > { %3841 = vmatpush.msra.mxu3 %v3807_v3  ;;  %vm3867_vm10 = vcmp.lt.s32.totalorder %v3866_v37, 3  ;;  %vm3870_vm14 = vcmp.ge.s32.totalorder %v3866_v37, 1  ;;  %v9043_v37 = vld [vmem:[%s9979_s11 + $0x50] sm:$0xff] }
 0x7fd   : > { %3565 = vmatpush.msra.mxu0 %v3540_v57  ;;  %7447 = vmatmul.msk.f32.gmra.mxu3 %vm2940_vm6, %v7445_v15  ;;  %v8925_v3 = vsel %vm3867_vm10, 1.0, %v7801_v24  ;;  %vm8946_vm10 = vmneg %vm10038_vm15  ;;  %vm4163_vm15 = vcmask 97280  }
 0x7fe   : > { %7434 = vmatmul.msk.f32.vlgmr.msra.gmra.mxu0 %vm2940_vm6, %v7432_v60  ;;  %3842 = vmatpush.msra.mxu3 %v3806_v4 }
 0x7ff   : > { %3716 = vmatpush.msrb.mxu0 %v3691_v17 }
 0x800   : > { %3843 = vmatpush.msra.mxu3 %v3805_v22 }
 0x801   : > { %v3765_v16 = vpop.permute.xlu1 %3764 }
 0x802   : > { %v3767_v29 = vsel %vm3177_vm11, %v3765_v16, 0.0  ;;  %7456 = vmatmul.msk.f32.gmra.mxu1 %vm2940_vm6, %v7453_v18  ;;  %3844 = vmatpush.msra.mxu3 %v3804_v40 }
 0x803   : > { %v3768_v19 = vmul.f32 %v8630_v1, %v3767_v29  ;;  %7442 = vmatmul.msk.f32.vlgmr.msrb.gmra.mxu2 %vm2940_vm6, %v7440_v62  ;;  %v3816_v62 = vpop.permute.xlu2 %3815 }
 0x804   : > { %3845 = vmatpush.msra.mxu3 %v3803_v23 }
 0x805   : > { %3793 = vmatpush.msra.mxu2 %v3768_v19 }
 0x806   : > { %7435 = vmatmul.msk.f32.gmra.mxu0 %vm2940_vm6, %v7433_v21 }
 0x809   : > { %v3821_v21 = vpop.permute.xlu1 %3820 }
 0x80b   : > { %7443 = vmatmul.msk.f32.gmra.mxu2 %vm2940_vm6, %v7441_v27 }
 0x80e   : > { %7450 = vmatmul.msk.f32.vlgmr.msrb.gmra.mxu0 %vm2940_vm6, %v7448_v28 }
 0x813   : > { %7459 = vmatmul.msk.f32.vlgmr.msra.gmra.mxu2 %vm2940_vm6, %v7457_v12 }
 0x816   : > { %7451 = vmatmul.msk.f32.gmra.mxu0 %vm2940_vm6, %v7449_v30  ;;  %v4246_v30 = vld [vmem:[%s10051_s30 + $0x58] sm:$0xff] }
 0x81b   : > { %7460 = vmatmul.msk.f32.gmra.mxu2 %vm2940_vm6, %v7458_v31  ;;  %v4259_v31 = vld [vmem:[%s10051_s30 + $0x60] sm:$0xff] }
 0x860   : > { %v3530_v39 = vpop.f32.mrf.mxu3 }
 0x862   : > { %v3606_v43 = vpop.f32.mrf.mxu1 }
 0x868   : > { %v3533_v33 = vpop.f32.mrf.mxu3 }
 0x86a   : > { %v3609_v48 = vpop.f32.mrf.mxu1 }
 0x876   : > { %v3501_v26 = vpop.f32.mrf.mxu2 }
 0x877   : > { %v3531_v52 = vadd.f32 %v3530_v39, %v3501_v26  ;;  %v3756_v6 = vpop.f32.mrf.mxu1  ;;  %v8930_v39 = vsel %vm3870_vm14, 1.0, %v7801_v24  ;;  %v8941_v24 = vld [vmem:[%s9979_s11 + $0x20] sm:$0xff]  ;;  %vm4206_vm14 = vcmask 89088  }
 0x878   : > { %v3679_v50 = vpop.f32.mrf.mxu3 }
 0x87b   : > { %v3567_v42 = vpop.f32.mrf.mxu0 }
 0x87c   : > { %v3573_v46 = vadd.f32 %v3567_v42, %v3531_v52 }
 0x87e   : > { %v3504_v49 = vpop.f32.mrf.mxu2  ;;  %v3612_v63 = vadd.f32 %v3606_v43, %v3573_v46 }
 0x87f   : > { %v3534_v54 = vadd.f32 %v3533_v33, %v3504_v49  ;;  %v3759_v57 = vpop.f32.mrf.mxu1 }
 0x880   : > { %v3682_v8 = vpop.f32.mrf.mxu3 }
 0x883   : > { %v3570_v47 = vpop.f32.mrf.mxu0 }
 0x884   : > { %v3574_v56 = vadd.f32 %v3570_v47, %v3534_v54 }
 0x886   : > { %v3640_v53 = vpop.f32.mrf.mxu2  ;;  %v3613_v5 = vadd.f32 %v3609_v48, %v3574_v56  ;;  %v8957_v56 = vld [vmem:[%s9979_s11 + $0x10] sm:$0xff] }
 0x887   : > { %v3646_v55 = vadd.f32 %v3640_v53, %v3612_v63 }
 0x889   : > { %v3685_v59 = vadd.f32 %v3679_v50, %v3646_v55 }
 0x88b   : > { %v3718_v58 = vpop.f32.mrf.mxu0 }
 0x88c   : > { %v3724_v7 = vadd.f32 %v3718_v58, %v3685_v59  ;;  %v8962_v58 = vld [vmem:[%s9979_s11 + $0x28] sm:$0xff] }
 0x88e   : > { %v3643_v61 = vpop.f32.mrf.mxu2  ;;  %v3762_v9 = vadd.f32 %v3756_v6, %v3724_v7 }
 0x88f   : > { %v3647_v2 = vadd.f32 %v3643_v61, %v3613_v5 }
 0x891   : > { %v3686_v10 = vadd.f32 %v3682_v8, %v3647_v2 }
 0x893   : > { %v3721_v11 = vpop.f32.mrf.mxu0 }
 0x894   : > { %v3725_v15 = vadd.f32 %v3721_v11, %v3686_v10  ;;  %v8981_v11 = vld [vmem:[%s9979_s11 + $0x18] sm:$0xff] }
 0x896   : > { %v3795_v13 = vpop.f32.mrf.mxu2  ;;  %v3763_v60 = vadd.f32 %v3759_v57, %v3725_v15 }
 0x897   : > { %v3801_v14 = vadd.f32 %v3795_v13, %v3762_v9  ;;  %v8986_v13 = vld [vmem:[%s9979_s11] sm:$0xff] }
 0x899   : > { %7461 = vmatmul.msk.f32.vlgmr.msra.gmra.mxu3 %vm10036_vm1, %v3801_v14  ;;  %v8991_v14 = vld [vmem:[%s9979_s11 + $0x30] sm:$0xff] }
 0x89e   : > { %v3798_v17 = vpop.f32.mrf.mxu2 }
 0x89f   : > { %v3802_v18 = vadd.f32 %v3798_v17, %v3763_v60 }
 0x8a1   : > { %7462 = vmatmul.msk.f32.gmra.mxu3 %vm10036_vm1, %v3802_v18  ;;  %vm3863_vm1 = vcmask 39936  }
 0x91c   : > { %v3847_v16 = vpop.f32.mrf.mxu3 }
 0x91d   : > { %v3848_v29 = vadd.f32 %v3847_v16, %v3816_v62  ;;  %v9007_v16 = vld [vmem:[%s9979_s11 + $0x8] sm:$0xff] }
 0x91f   : > { %v8875_v19 = vmax.f32 %v3848_v29, 0.0  ;;  %v9012_v29 = vld [vmem:[%s9979_s11 + $0x40] sm:$0xff] }
 0x921   : > { %3946 = vrot.lane.b32.xlu0 %v8875_v19, %s10030_s8  ;;  %3877 = vrot.lane.b32.xlu1 %v8875_v19, %s10032_s15 }
 0x924   : > { %v3850_v27 = vpop.f32.mrf.mxu3 }
 0x925   : > { %v3851_v28 = vadd.f32 %v3850_v27, %v3821_v21  ;;  %v9017_v21 = vld [vmem:[%s9979_s11 + $0x38] sm:$0xff]  ;;  %v9022_v27 = vld [vmem:[%s9979_s11 + $0x60] sm:$0xff] }
 0x927   : > { %v8881_v12 = vmax.f32 %v3851_v28, 0.0 }
 0x929   : > { %3992 = vrot.lane.b32.xlu1 %v8881_v12, %s10060_s21  ;;  %3948 = vrot.lane.b32.xlu2 %v8881_v12, %s10030_s8  ;;  %s10073_s8 = smov 124  }
 0x92a   : > { %3879 = vrot.lane.b32.xlu0 %v8881_v12, %s10032_s15 }
 0x931   : > { %3857 = vrot.lane.b32.xlu1 %v8875_v19, %s7811_s7  ;;  %3859 = vrot.lane.b32.xlu2 %v8881_v12, %s7811_s7 }
 0x932   : > { %3990 = vrot.lane.b32.xlu0 %v8875_v19, %s10060_s21 }
 0x939   : > { %4070 = vrot.lane.b32.xlu1 %v8881_v12, %s10053_s25  ;;  %4114 = vrot.lane.b32.xlu2 %v8881_v12, %s10028_s19 }
 0x93a   : > { %4112 = vrot.lane.b32.xlu0 %v8875_v19, %s10028_s19 }
 0x941   : > { %4157 = vrot.lane.b32.xlu1 %v8875_v19, %s10026_s2  ;;  %4159 = vrot.lane.b32.xlu2 %v8881_v12, %s10026_s2 }
 0x942   : > { %4068 = vrot.lane.b32.xlu0 %v8875_v19, %s10053_s25 }
 0x949   : > { %4254 = vperm.xlu1 %7782, %v4246_v30   ;;  %4202 = vrot.lane.b32.xlu2 %v8881_v12, %s7814_s27 }
 0x94a   : > { %4200 = vrot.lane.b32.xlu0 %v8875_v19, %s7814_s27 }
 0x951   : > { %4263 = vperm.xlu1 %7782, %v4259_v31   ;;  %4249 = vperm.xlu2 %7783, %v4245_v32  }
 0x952   : > { %4268 = vperm.xlu0 %7784, %v4260_v34   ;;  %v9038_v34 = vld [vmem:[%s9979_s11 + $0x48] sm:$0xff] }
 0x983   : > { %v3949_v4 = vpop.permute.xlu2 %3948 }
 0x984   : > { %v3953_v22 = vsel %vm646_vm5, 0.0, %v3949_v4  ;;  %v9048_v4 = vld [vmem:[%s9979_s11 + $0x70] sm:$0xff] }
 0x985   : > { %v3955_v26 = vmul.f32 %v8925_v3, %v3953_v22  ;;  %v9053_v22 = vld [vmem:[%s9979_s11 + $0x68] sm:$0xff] }
 0x987   : > { %3979 = vmatpush.msrb.mxu2 %v3955_v26 }
 0x98b   : > { %v3860_v40 = vpop.permute.xlu2 %3859 }
 0x98c   : > { %v3865_v23 = vsel %vm3863_vm1, 0.0, %v3860_v40 }
 0x98d   : > { %v3874_v20 = vmul.f32 %v8930_v39, %v3865_v23 }
 0x98f   : > { %3937 = vmatpush.msra.mxu1 %v3874_v20  ;;  %v9068_v20 = vld [vmem:[%s9979_s11 + $0x58] sm:$0xff] }
 0x993   : > { %v3947_v42 = vpop.permute.xlu0 %3946  ;;  %v4115_v43 = vpop.permute.xlu2 %4114 }
 0x994   : > { %v3952_v49 = vsel %vm646_vm5, 0.0, %v3947_v42  ;;  %v4120_v33 = vsel %vm4118_vm7, %v4115_v43, 0.0  ;;  %v3878_v52 = vpop.permute.xlu1 %3877  ;;  %v9073_v42 = vld [vmem:[%s9979_s11 + $0x80] sm:$0xff]  ;;  %v9078_v43 = vld [vmem:[%s9979_s11 + $0x78] sm:$0xff] }
 0x995   : > { %v3954_v46 = vmul.f32 %v8925_v3, %v3952_v49  ;;  %v4122_v47 = vmul.f32 %v8930_v39, %v4120_v33  ;;  %v9089_v49 = vld [vmem:[%s9979_s11 + $0x88] sm:$0xff] }
 0x997   : > { %3980 = vmatpush.msrb.mxu2 %v3954_v46 }
 0x998   : > { %7477 = vmatmul.msk.f32.vlgmr.msrb.gmra.mxu2 %vm640_vm8, %v8941_v24 }
 0x999   : > { %4146 = vmatpush.msra.mxu2 %v4122_v47 }
 0x99b   : > { %v4160_v53 = vpop.permute.xlu2 %4159 }
 0x99c   : > { %v3880_v63 = vpop.permute.xlu0 %3879  ;;  %v3993_v50 = vpop.permute.xlu1 %3992 }
 0x99d   : > { %v3997_v54 = vsel %vm819_vm2, 0.0, %v3993_v50  ;;  %7468 = vmatpush.msk.msra.mxu0 %vm8946_vm10, %v3880_v63 }
 0x99e   : > { %v3999_v55 = vmul.f32 %v8930_v39, %v3997_v54 }
 0x99f   : > { %7470 = vmatpush.msk.msra.mxu0 %vm8946_vm10, %v3878_v52 }
 0x9a0   : > { %4023 = vmatpush.msrb.mxu3 %v3999_v55  ;;  %7471 = vmatmul.msk.f32.vlgmr.msra.gmra.mxu0 %vm640_vm8, %v8957_v56 }
 0x9a1   : > { %4057 = vmatpush.msrb.mxu0 %v8881_v12  ;;  %7478 = vmatmul.msk.f32.gmra.mxu2 %vm640_vm8, %v8962_v58 }
 0x9a3   : > { %4058 = vmatpush.msrb.mxu0 %v8875_v19  ;;  %v4203_v59 = vpop.permute.xlu2 %4202 }
 0x9a4   : > { %v4208_v61 = vsel %vm4206_vm14, %v4203_v59, 0.0  ;;  %v3991_v5 = vpop.permute.xlu0 %3990  ;;  %v3858_v6 = vpop.permute.xlu1 %3857 }
 0x9a5   : > { %v4210_v7 = vmul.f32 %v8925_v3, %v4208_v61  ;;  %v3996_v2 = vsel %vm819_vm2, 0.0, %v3991_v5  ;;  %v3864_v8 = vsel %vm3863_vm1, 0.0, %v3858_v6 }
 0x9a6   : > { %v3998_v9 = vmul.f32 %v8930_v39, %v3996_v2  ;;  %v3873_v10 = vmul.f32 %v8930_v39, %v3864_v8 }
 0x9a7   : > { %4234 = vmatpush.msra.mxu0 %v4210_v7 }
 0x9a8   : > { %3938 = vmatpush.msra.mxu1 %v3873_v10  ;;  %4024 = vmatpush.msrb.mxu3 %v3998_v9 }
 0x9a9   : > { %7472 = vmatmul.msk.f32.gmra.mxu0 %vm640_vm8, %v8981_v11  ;;  %7473 = vmatmul.msk.f32.vlgmr.msra.gmra.mxu1 %vm640_vm8, %v8986_v13 }
 0x9aa   : > { %7481 = vmatmul.msk.f32.vlgmr.msrb.gmra.mxu3 %vm640_vm8, %v8991_v14 }
 0x9ab   : > { %7497 = vmatpush.msk.msra.mxu3 %vm4163_vm15, %v4160_v53 }
 0x9ac   : > { %v4113_v15 = vpop.permute.xlu0 %4112  ;;  %v4071_v57 = vpop.permute.xlu1 %4070 }
 0x9ad   : > { %v4119_v60 = vsel %vm4118_vm7, %v4113_v15, 0.0  ;;  %v4075_v17 = vsel %vm752_vm3, %v4071_v57, 0.0 }
 0x9ae   : > { %v4121_v18 = vmul.f32 %v8930_v39, %v4119_v60  ;;  %v4077_v62 = vmul.f32 %v8925_v3, %v4075_v17 }
 0x9b0   : > { %4101 = vmatpush.msrb.mxu1 %v4077_v62  ;;  %4147 = vmatpush.msra.mxu2 %v4121_v18 }
 0x9b1   : > { %7474 = vmatmul.msk.f32.gmra.mxu1 %vm640_vm8, %v9007_v16  ;;  %7485 = vmatmul.msk.f32.vlgmr.msrb.gmra.mxu0 %vm640_vm8, %v9012_v29 }
 0x9b2   : > { %7482 = vmatmul.msk.f32.gmra.mxu3 %vm640_vm8, %v9017_v21  ;;  %7493 = vmatmul.msk.f32.vlgmr.msra.gmra.mxu2 %vm640_vm8, %v9022_v27 }
 0x9b4   : > { %v4069_v28 = vpop.permute.xlu0 %4068  ;;  %v4158_v30 = vpop.permute.xlu1 %4157 }
 0x9b5   : > { %v4074_v31 = vsel %vm752_vm3, %v4069_v28, 0.0  ;;  %7498 = vmatpush.msk.msra.mxu3 %vm4163_vm15, %v4158_v30 }
 0x9b6   : > { %v4076_v32 = vmul.f32 %v8925_v3, %v4074_v31 }
 0x9b8   : > { %4102 = vmatpush.msrb.mxu1 %v4076_v32 }
 0x9b9   : > { %7486 = vmatmul.msk.f32.gmra.mxu0 %vm640_vm8, %v9038_v34  ;;  %7489 = vmatmul.msk.f32.vlgmr.msrb.gmra.mxu1 %vm640_vm8, %v9043_v37 }
 0x9ba   : > { %7499 = vmatmul.msk.f32.vlgmr.msra.gmra.mxu3 %vm640_vm8, %v9048_v4  ;;  %7494 = vmatmul.msk.f32.gmra.mxu2 %vm640_vm8, %v9053_v22 }
 0x9bc   : > { %v4201_v26 = vpop.permute.xlu0 %4200  ;;  %v4255_v57 = vpop.permute.xlu1 %4254 }
 0x9bd   : > { %v4207_v40 = vsel %vm4206_vm14, %v4201_v26, 0.0 }
 0x9be   : > { %v4209_v23 = vmul.f32 %v8925_v3, %v4207_v40  ;;  %v4250_v40 = vpop.permute.xlu2 %4249 }
 0x9c0   : > { %4235 = vmatpush.msra.mxu0 %v4209_v23 }
 0x9c1   : > { %7490 = vmatmul.msk.f32.gmra.mxu1 %vm640_vm8, %v9068_v20  ;;  %7503 = vmatmul.msk.f32.vlgmr.msra.gmra.mxu0 %vm640_vm8, %v9073_v42 }
 0x9c2   : > { %7500 = vmatmul.msk.f32.gmra.mxu3 %vm640_vm8, %v9078_v43 }
 0x9c9   : > { %7504 = vmatmul.msk.f32.gmra.mxu0 %vm640_vm8, %v9089_v49 }
 0xa1b   : > { %v3982_v52 = vpop.f32.mrf.mxu2 }
 0xa1d   : > { %v3911_v33 = vpop.f32.mrf.mxu0 }
 0xa24   : > { %v3985_v50 = vpop.f32.mrf.mxu2 }
 0xa26   : > { %v3914_v46 = vpop.f32.mrf.mxu0  ;;  %v3940_v47 = vpop.f32.mrf.mxu1 }
 0xa27   : > { %v3941_v53 = vadd.f32 %v3940_v47, %v3911_v33 }
 0xa29   : > { %v3988_v59 = vadd.f32 %v3982_v52, %v3941_v53  ;;  %v4264_v52 = vpop.permute.xlu1 %4263 }
 0xa2d   : > { %v4026_v63 = vpop.f32.mrf.mxu3 }
 0xa2e   : > { %v3943_v54 = vpop.f32.mrf.mxu1  ;;  %v4060_v55 = vpop.f32.mrf.mxu0  ;;  %v4032_v61 = vadd.f32 %v4026_v63, %v3988_v59 }
 0xa2f   : > { %v3944_v5 = vadd.f32 %v3943_v54, %v3914_v46 }
 0xa30   : > { %v4066_v7 = vadd.f32 %v4060_v55, %v4032_v61  ;;  %v4269_v61 = vpop.permute.xlu0 %4268 }
 0xa31   : > { %v3989_v10 = vadd.f32 %v3985_v50, %v3944_v5 }
 0xa35   : > { %v4029_v6 = vpop.f32.mrf.mxu3  ;;  %v4149_v9 = vpop.f32.mrf.mxu2 }
 0xa36   : > { %v4063_v2 = vpop.f32.mrf.mxu0  ;;  %v4104_v8 = vpop.f32.mrf.mxu1  ;;  %v4033_v60 = vadd.f32 %v4029_v6, %v3989_v10 }
 0xa37   : > { %v4110_v15 = vadd.f32 %v4104_v8, %v4066_v7  ;;  %v4574_v7 = vld [vmem:[%s10051_s30 + $0x70] sm:$0xff]  ;;  %v4589_v8 = vld [vmem:[%s10051_s30 + $0x88] sm:$0xff] }
 0xa38   : > { %v4067_v62 = vadd.f32 %v4063_v2, %v4033_v60  ;;  %v4575_v2 = vld [vmem:[%s10051_s30 + $0x78] sm:$0xff] }
 0xa39   : > { %v4155_v17 = vadd.f32 %v4149_v9, %v4110_v15  ;;  %v4588_v9 = vld [vmem:[%s10051_s30 + $0x80] sm:$0xff] }
 0xa3d   : > { %v4192_v18 = vpop.f32.mrf.mxu3  ;;  %v4152_v23 = vpop.f32.mrf.mxu2 }
 0xa3e   : > { %v4198_v28 = vadd.f32 %v4192_v18, %v4155_v17  ;;  %v4107_v30 = vpop.f32.mrf.mxu1  ;;  %v4237_v31 = vpop.f32.mrf.mxu0 }
 0xa3f   : > { %v4111_v32 = vadd.f32 %v4107_v30, %v4067_v62 }
 0xa40   : > { %v4243_v26 = vadd.f32 %v4237_v31, %v4198_v28 }
 0xa41   : > { %v4156_v47 = vadd.f32 %v4152_v23, %v4111_v32 }
 0xa42   : > { %v4257_v33 = vmul.f32 %v4250_v40, %v4243_v26 }
 0xa44   : > { %v4271_v46 = vadd.f32 %v4264_v52, %v4257_v33 }
 0xa45   : > { %v4195_v53 = vpop.f32.mrf.mxu3 }
 0xa46   : > { %v4273_v63 = vmax.f32 %v4271_v46, 0.0  ;;  %v4199_v50 = vadd.f32 %v4195_v53, %v4156_v47  ;;  %v4240_v54 = vpop.f32.mrf.mxu0 }
 0xa48   : > { %v4244_v55 = vadd.f32 %v4240_v54, %v4199_v50  ;;  %4277 = vrot.lane.b32.xlu2 %v4273_v63, %s7811_s7  ;;  %4287 = vrot.lane.b32.xlu1 %v4273_v63, %s10070_s9 }
 0xa4a   : > { %v4258_v59 = vmul.f32 %v4255_v57, %v4244_v55 }
 0xa4c   : > { %v4272_v5 = vadd.f32 %v4269_v61, %v4258_v59 }
 0xa4e   : > { %v4274_v6 = vmax.f32 %v4272_v5, 0.0 }
 0xa50   : > { %4279 = vrot.lane.b32.xlu0 %v4274_v6, %s7811_s7  ;;  %4289 = vrot.lane.b32.xlu2 %v4274_v6, %s10070_s9  ;;  %s7750_s7 = sshll.u32 %s10183_s28, 4  ;;  %s10091_s28 = sld [smem:[#allocation10_spill]] }
 0xa51   : > { %4341 = vrot.lane.b32.xlu1 %v4273_v63, %s10071_s18  ;;  %s589_s19 = scalar_lea.vmem %s9984_s16, %s7750_s7 }
 0xa58   : > { %4343 = vrot.lane.b32.xlu0 %v4274_v6, %s10071_s18  ;;  %4378 = vrot.lane.b32.xlu2 %v4274_v6, %s10060_s21  ;;  %s10074_s18 = smov 9  }
 0xa59   : > { %4438 = vrot.lane.b32.xlu1 %v4274_v6, %s10053_s25 }
 0xa60   : > { %4376 = vrot.lane.b32.xlu0 %v4273_v63, %s10060_s21  ;;  %4436 = vrot.lane.b32.xlu2 %v4273_v63, %s10053_s25 }
 0xa61   : > { %4471 = vrot.lane.b32.xlu1 %v4273_v63, %s10072_s3 }
 0xa68   : > { %4473 = vrot.lane.b32.xlu0 %v4274_v6, %s10072_s3  ;;  %4541 = vrot.lane.b32.xlu2 %v4274_v6, %s7814_s27  ;;  %s10076_s3 = smov 7  }
 0xa69   : > { %4539 = vrot.lane.b32.xlu1 %v4273_v63, %s7814_s27 }
 0xa70   : > { %4508 = vrot.lane.b32.xlu0 %v4274_v6, %s10073_s8  ;;  %4506 = vrot.lane.b32.xlu2 %v4273_v63, %s10073_s8 }
 0xa71   : > { %4578 = vperm.xlu1 %7782, %v4574_v7  }
 0xa78   : > { %4583 = vperm.xlu0 %7784, %v4575_v2   ;;  %4597 = vperm.xlu2 %7783, %v4589_v8  }
 0xa80   : > { %4592 = vperm.xlu0 %7784, %v4588_v9  }
 0xaa2   : > { %v4278_v10 = vpop.permute.xlu2 %4277 }
 0xaa3   : > { %v4283_v31 = vsel %vm3863_vm1, 0.0, %v4278_v10 }
 0xaa4   : > { %v4285_v48 = vmul.f32 %v8930_v39, %v4283_v31 }
 0xaaa   : > { %v4290_v15 = vpop.permute.xlu2 %4289 }
 0xaab   : > { %7506 = vmatpush.msk.msra.mxu1 %vm8946_vm10, %v4290_v15 }
 0xab2   : > { %v4379_v57 = vpop.permute.xlu2 %4378 }
 0xab3   : > { %v4383_v60 = vsel %vm819_vm2, 0.0, %v4379_v57 }
 0xab4   : > { %v4385_v17 = vmul.f32 %v8930_v39, %v4383_v60 }
 0xab6   : > { %4400 = vmatpush.msrb.mxu0 %v4385_v17 }
 0xaba   : > { %v4437_v18 = vpop.permute.xlu2 %4436  ;;  %v4288_v62 = vpop.permute.xlu1 %4287 }
 0xabb   : > { %7508 = vmatpush.msk.msra.mxu1 %vm8946_vm10, %v4288_v62  ;;  %v4442_v53 = vsel %vm752_vm3, %v4437_v18, 0.0  ;;  %vm10092_vm10 = vcmask 1043456  }
 0xabc   : > { %7509 = vmatmul.msk.f32.vlgmr.msra.gmra.mxu1 %vm640_vm8, %v8957_v56 }
 0xabd   : > { %4425 = vmatpush.msrb.mxu1 %v4274_v6 }
 0xabf   : > { %4426 = vmatpush.msrb.mxu1 %v4273_v63 }
 0xac2   : > { %v4280_v28 = vpop.permute.xlu0 %4279  ;;  %v4542_v30 = vpop.permute.xlu2 %4541 }
 0xac3   : > { %v4284_v32 = vsel %vm3863_vm1, 0.0, %v4280_v28  ;;  %v4546_v26 = vsel %vm4206_vm14, %v4542_v30, 0.0  ;;  %v4342_v40 = vpop.permute.xlu1 %4341  ;;  %vm10078_vm1 = vcmask 465920  }
 0xac4   : > { %v4286_v23 = vmul.f32 %v8930_v39, %v4284_v32  ;;  %v4548_v33 = vmul.f32 %v8925_v3, %v4546_v26  ;;  %7510 = vmatmul.msk.f32.gmra.mxu1 %vm640_vm8, %v8981_v11  ;;  %v4347_v52 = vsel %vm646_vm5, 0.0, %v4342_v40 }
 0xac5   : > { %v4349_v54 = vmul.f32 %v8925_v3, %v4347_v52 }
 0xac6   : > { %4332 = vmatpush.msrb.mxu2 %v4286_v23  ;;  %4563 = vmatpush.msra.mxu1 %v4548_v33 }
 0xac8   : > { %4333 = vmatpush.msrb.mxu2 %v4285_v48 }
 0xac9   : > { %7511 = vmatmul.msk.f32.vlgmr.msrb.gmra.mxu2 %vm640_vm8, %v8986_v13  ;;  %v4444_v13 = vmul.f32 %v8925_v3, %v4442_v53 }
 0xaca   : > { %v4344_v56 = vpop.permute.xlu0 %4343 }
 0xacb   : > { %v4348_v46 = vsel %vm646_vm5, 0.0, %v4344_v56  ;;  %v4439_v47 = vpop.permute.xlu1 %4438  ;;  %vm10079_vm5 = vmmov %vm10078_vm1 }
 0xacc   : > { %v4350_v63 = vmul.f32 %v8925_v3, %v4348_v46  ;;  %v4443_v11 = vsel %vm752_vm3, %v4439_v47, 0.0  ;;  %7517 = vmatmul.msk.f32.vlgmr.msrb.gmra.mxu1 %vm640_vm8, %v9012_v29 }
 0xacd   : > { %v4445_v50 = vmul.f32 %v8925_v3, %v4443_v11 }
 0xace   : > { %4365 = vmatpush.msrb.mxu3 %v4350_v63 }
 0xacf   : > { %4460 = vmatpush.msra.mxu2 %v4445_v50 }
 0xad0   : > { %4366 = vmatpush.msrb.mxu3 %v4349_v54 }
 0xad1   : > { %4461 = vmatpush.msra.mxu2 %v4444_v13  ;;  %7513 = vmatmul.msk.f32.vlgmr.msrb.gmra.mxu3 %vm640_vm8, %v8941_v24 }
 0xad2   : > { %7512 = vmatmul.msk.f32.gmra.mxu2 %vm640_vm8, %v9007_v16  ;;  %v4377_v55 = vpop.permute.xlu0 %4376 }
 0xad3   : > { %v4382_v59 = vsel %vm819_vm2, 0.0, %v4377_v55  ;;  %v4472_v61 = vpop.permute.xlu1 %4471 }
 0xad4   : > { %v4384_v29 = vmul.f32 %v8930_v39, %v4382_v59  ;;  %7518 = vmatmul.msk.f32.gmra.mxu1 %vm640_vm8, %v9038_v34  ;;  %v4477_v16 = vsel %vm4118_vm7, %v4472_v61, 0.0 }
 0xad6   : > { %4401 = vmatpush.msrb.mxu0 %v4384_v29 }
 0xad7   : > { %7515 = vmatmul.msk.f32.vlgmr.msrb.gmra.mxu0 %vm640_vm8, %v8991_v14  ;;  %v4479_v14 = vmul.f32 %v8930_v39, %v4477_v16 }
 0xad9   : > { %7514 = vmatmul.msk.f32.gmra.mxu3 %vm640_vm8, %v8962_v58 }
 0xada   : > { %7519 = vmatmul.msk.f32.vlgmr.msra.gmra.mxu2 %vm640_vm8, %v9043_v37  ;;  %v4474_v24 = vpop.permute.xlu0 %4473  ;;  %v4507_v37 = vpop.permute.xlu2 %4506 }
 0xadb   : > { %v4478_v5 = vsel %vm4118_vm7, %v4474_v24, 0.0  ;;  %v4540_v6 = vpop.permute.xlu1 %4539 }
 0xadc   : > { %v4480_v7 = vmul.f32 %v8930_v39, %v4478_v5  ;;  %v4545_v34 = vsel %vm4206_vm14, %v4540_v6, 0.0 }
 0xadd   : > { %v4547_v2 = vmul.f32 %v8925_v3, %v4545_v34  ;;  %v7535_v34 = vld [vmem:[%s9980_s12 + $0x38] sm:$0xff] }
 0xade   : > { %4495 = vmatpush.msra.mxu3 %v4480_v7 }
 0xadf   : > { %4564 = vmatpush.msra.mxu1 %v4547_v2  ;;  %7516 = vmatmul.msk.f32.gmra.mxu0 %vm640_vm8, %v9017_v21  ;;  %v7531_v2 = vld [vmem:[%s9980_s12 + $0x28] sm:$0xff] }
 0xae0   : > { %4496 = vmatpush.msra.mxu3 %v4479_v14  ;;  %7527 = vmatmul.msk.f32.vlgmr.msra.gmra.mxu1 %vm640_vm8, %v9073_v42  ;;  %v7541_v14 = vld [vmem:[%s9980_s12 + $0x40] sm:$0xff] }
 0xae1   : > { %7521 = vmatmul.msk.f32.vlgmr.msra.gmra.mxu3 %vm640_vm8, %v9022_v27 }
 0xae2   : > { %7520 = vmatmul.msk.f32.gmra.mxu2 %vm640_vm8, %v9068_v20  ;;  %v4509_v58 = vpop.permute.xlu0 %4508  ;;  %v4598_v16 = vpop.permute.xlu2 %4597 }
 0xae3   : > { %7523 = vmatpush.msk.msra.mxu0 %vm4163_vm15, %v4509_v58  ;;  %v4579_v52 = vpop.permute.xlu1 %4578 }
 0xae5   : > { %7524 = vmatpush.msk.msra.mxu0 %vm4163_vm15, %v4507_v37 }
 0xae7   : > { %7525 = vmatmul.msk.f32.vlgmr.msra.gmra.mxu0 %vm640_vm8, %v9048_v4 }
 0xae8   : > { %7528 = vmatmul.msk.f32.gmra.mxu1 %vm640_vm8, %v9089_v49 }
 0xae9   : > { %7522 = vmatmul.msk.f32.gmra.mxu3 %vm640_vm8, %v9053_v22 }
 0xaea   : > { %v4584_v62 = vpop.permute.xlu0 %4583 }
 0xaef   : > { %7526 = vmatmul.msk.f32.gmra.mxu0 %vm640_vm8, %v9078_v43 }
 0xaf2   : > { %v4593_v46 = vpop.permute.xlu0 %4592 }
 0xb39   : > { %v4312_v39 = vpop.f32.mrf.mxu1 }
 0xb41   : > { %v4315_v21 = vpop.f32.mrf.mxu1 }
 0xb49   : > { %v4428_v20 = vpop.f32.mrf.mxu1 }
 0xb4c   : > { %v4335_v27 = vpop.f32.mrf.mxu2 }
 0xb4d   : > { %v4336_v10 = vadd.f32 %v4335_v27, %v4312_v39 }
 0xb51   : > { %v4431_v57 = vpop.f32.mrf.mxu1 }
 0xb54   : > { %v4368_v42 = vpop.f32.mrf.mxu3  ;;  %v4403_v8 = vpop.f32.mrf.mxu0 }
 0xb55   : > { %v4338_v9 = vpop.f32.mrf.mxu2  ;;  %v4374_v15 = vadd.f32 %v4368_v42, %v4336_v10  ;;  %v7532_v10 = vld [vmem:[%s9980_s12 + $0x18] sm:$0xff] }
 0xb56   : > { %v4339_v18 = vadd.f32 %v4338_v9, %v4315_v21 }
 0xb57   : > { %v4409_v17 = vadd.f32 %v4403_v8, %v4374_v15  ;;  %v7536_v8 = vld [vmem:[%s9980_s12 + $0x8] sm:$0xff] }
 0xb59   : > { %v4434_v22 = vadd.f32 %v4428_v20, %v4409_v17 }
 0xb5c   : > { %v4371_v4 = vpop.f32.mrf.mxu3  ;;  %v4406_v60 = vpop.f32.mrf.mxu0 }
 0xb5d   : > { %v4463_v49 = vpop.f32.mrf.mxu2  ;;  %v4375_v28 = vadd.f32 %v4371_v4, %v4339_v18  ;;  %v4566_v43 = vpop.f32.mrf.mxu1 }
 0xb5e   : > { %v4469_v30 = vadd.f32 %v4463_v49, %v4434_v22  ;;  %v7545_v49 = vld [vmem:[%s9980_s12 + $0x10] sm:$0xff]  ;;  %v4839_v22 = vld [vmem:[%s9980_s12] sm:$0xff] }
 0xb5f   : > { %v4410_v26 = vadd.f32 %v4406_v60, %v4375_v28  ;;  %v4864_v28 = vld [vmem:[%s9973_s5] sm:$0xff] }
 0xb61   : > { %v4435_v48 = vadd.f32 %v4431_v57, %v4410_v26  ;;  %v7554_v26 = vld [vmem:[%s9973_s5 + $0x20] sm:$0xff] }
 0xb64   : > { %v4498_v31 = vpop.f32.mrf.mxu3  ;;  %v4531_v32 = vpop.f32.mrf.mxu0 }
 0xb65   : > { %v4504_v40 = vadd.f32 %v4498_v31, %v4469_v30  ;;  %v4466_v33 = vpop.f32.mrf.mxu2  ;;  %v4569_v13 = vpop.f32.mrf.mxu1  ;;  %v7550_v31 = vld [vmem:[%s9973_s5 + $0x10] sm:$0xff] }
 0xb66   : > { %v4470_v47 = vadd.f32 %v4466_v33, %v4435_v48 }
 0xb67   : > { %v4537_v23 = vadd.f32 %v4531_v32, %v4504_v40  ;;  %v7555_v32 = vld [vmem:[%s9973_s5 + $0x28] sm:$0xff]  ;;  %v7558_v40 = vld [vmem:[%s9973_s5 + $0x38] sm:$0xff] }
 0xb69   : > { %v4572_v56 = vadd.f32 %v4566_v43, %v4537_v23  ;;  %v7551_v43 = vld [vmem:[%s9973_s5 + $0x18] sm:$0xff]  ;;  %v7557_v23 = vld [vmem:[%s9973_s5 + $0x30] sm:$0xff] }
 0xb6b   : > { %v4586_v53 = vmul.f32 %v4579_v52, %v4572_v56 }
 0xb6c   : > { %v4501_v63 = vpop.f32.mrf.mxu3  ;;  %v4534_v11 = vpop.f32.mrf.mxu0 }
 0xb6d   : > { %v4600_v50 = vadd.f32 %v4593_v46, %v4586_v53  ;;  %v4505_v54 = vadd.f32 %v4501_v63, %v4470_v47 }
 0xb6f   : > { %v4602_v55 = vadd.f32 %v4600_v50, %v8875_v19  ;;  %v4538_v59 = vadd.f32 %v4534_v11, %v4505_v54  ;;  %v4969_v19 = vld [vmem:[%s10051_s30 + $0x90] sm:$0xff] }
 0xb71   : > { %v4604_v61 = vmax.f32 %v4602_v55, 0.0  ;;  %v4573_v29 = vadd.f32 %v4569_v13, %v4538_v59 }
 0xb73   : > { %4606 = vst.msk [vmem:[%s589_s19] sm:$0xff] %vm640_vm8, %v4604_v61  ;;  %v4587_v24 = vmul.f32 %v4584_v62, %v4573_v29  ;;  %4610 = vrot.lane.b32.xlu2 %v4604_v61, %s10053_s25  ;;  %v7542_v62 = vld [vmem:[%s9980_s12 + $0x30] sm:$0xff] }
 0xb75   : > { %v4601_v5 = vadd.f32 %v4598_v16, %v4587_v24 }
 0xb77   : > { %v4603_v6 = vadd.f32 %v4601_v5, %v8881_v12  ;;  %v7529_v12 = vld [vmem:[%s9980_s12 + $0x20] sm:$0xff] }
 0xb79   : > { %v4605_v7 = vmax.f32 %v4603_v6, 0.0 }
 0xb7b   : > { %4607 = vst.msk [vmem:[%s589_s19 + $0x8] sm:$0xff] %vm640_vm8, %v4605_v7  ;;  %4622 = vrot.lane.b32.xlu0 %v4605_v7, %s10073_s8  ;;  %4612 = vrot.lane.b32.xlu1 %v4605_v7, %s10053_s25 }
 0xb7c   : > { %4657 = vmatpush.msrb.mxu2 %v4605_v7  ;;  %4707 = vmatpush.msrb.mxu0 %v4605_v7 }
 0xb7d   : > { %4620 = vrot.lane.b32.xlu2 %v4604_v61, %s10073_s8  ;;  %s10075_s8 = smov 8  }
 0xb7e   : > { %4658 = vmatpush.msrb.mxu2 %v4604_v61  ;;  %4708 = vmatpush.msrb.mxu0 %v4604_v61 }
 0xb7f   : > { %7530 = vmatmul.msk.f32.vlgmr.msrb.gmra.mxu2 %vm640_vm8, %v7529_v12  ;;  %7534 = vmatmul.msk.f32.vlgmr.msrb.gmra.mxu0 %vm640_vm8, %v7531_v2 }
 0xb80   : > { %4757 = vmatpush.msra.mxu2 %v4605_v7  ;;  %4807 = vmatpush.msra.mxu0 %v4605_v7 }
 0xb82   : > { %4758 = vmatpush.msra.mxu2 %v4604_v61  ;;  %4808 = vmatpush.msra.mxu0 %v4604_v61 }
 0xb83   : > { %4630 = vrot.lane.b32.xlu1 %v4605_v7, %s7814_s27  ;;  %4628 = vrot.lane.b32.xlu0 %v4604_v61, %s7814_s27  ;;  %s10077_s27 = smov 121  }
 0xb87   : > { %7540 = vmatmul.msk.f32.vlgmr.msra.gmra.mxu2 %vm640_vm8, %v7535_v34  ;;  %7544 = vmatmul.msk.f32.vlgmr.msra.gmra.mxu0 %vm640_vm8, %v7541_v14  ;;  %v5254_v34 = vld [vmem:[%s10051_s30 + $0xa0] sm:$0xff]  ;;  %v9308_v14 = vld [vmem:[%s9982_s14 + $0x8] sm:$0xff] }
 0xb8b   : > { %4972 = vperm.xlu1 %7782, %v4969_v19  }
 0xbcd   : > { %v4611_v58 = vpop.permute.xlu2 %4610 }
 0xbce   : > { %v4616_v21 = vsel %vm752_vm3, %v4611_v58, 0.0 }
 0xbcf   : > { %v4618_v9 = vmul.f32 %v8925_v3, %v4616_v21 }
 0xbd7   : > { %v4621_v20 = vpop.permute.xlu2 %4620 }
 0xbed   : > { %v4623_v37 = vpop.permute.xlu0 %4622  ;;  %v4613_v39 = vpop.permute.xlu1 %4612 }
 0xbee   : > { %v4617_v27 = vsel %vm752_vm3, %v4613_v39, 0.0  ;;  %7537 = vmatpush.msk.msrb.mxu1 %vm4163_vm15, %v4623_v37 }
 0xbef   : > { %v4619_v42 = vmul.f32 %v8925_v3, %v4617_v27  ;;  %v9325_v27 = vld [vmem:[%s9982_s14 + $0x10] sm:$0xff] }
 0xbf0   : > { %7538 = vmatpush.msk.msrb.mxu1 %vm4163_vm15, %v4621_v20 }
 0xbf1   : > { %4684 = vmatpush.msrb.mxu3 %v4619_v42  ;;  %7539 = vmatmul.msk.f32.vlgmr.msrb.gmra.mxu1 %vm640_vm8, %v7536_v8 }
 0xbf2   : > { %7546 = vmatpush.msk.msra.mxu1 %vm4163_vm15, %v4623_v37  ;;  %v9318_v37 = vld [vmem:[%s9982_s14 + $0x20] sm:$0xff] }
 0xbf3   : > { %4685 = vmatpush.msrb.mxu3 %v4618_v9 }
 0xbf4   : > { %7547 = vmatpush.msk.msra.mxu1 %vm4163_vm15, %v4621_v20  ;;  %7533 = vmatmul.msk.f32.vlgmr.msrb.gmra.mxu3 %vm640_vm8, %v7532_v10  ;;  %vm10080_vm15 = vcmask 523264  }
 0xbf5   : > { %4784 = vmatpush.msra.mxu3 %v4619_v42  ;;  %v4629_v15 = vpop.permute.xlu0 %4628  ;;  %v4631_v57 = vpop.permute.xlu1 %4630 }
 0xbf6   : > { %v4634_v4 = vsel %vm4206_vm14, %v4629_v15, 0.0  ;;  %v4635_v60 = vsel %vm4206_vm14, %v4631_v57, 0.0  ;;  %4935 = vmatpush.msrb.mxu1 %v7555_v32  ;;  %v9338_v57 = vld [vmem:[%s9982_s14] sm:$0xff]  ;;  %vm10093_vm14 = vcmask 31744  }
 0xbf7   : > { %v4637_v17 = vmul.f32 %v8925_v3, %v4635_v60  ;;  %4785 = vmatpush.msra.mxu3 %v4618_v9  ;;  %v4636_v18 = vmul.f32 %v8925_v3, %v4634_v4  ;;  %v4865_v3 = vld [vmem:[%s9973_s5 + $0x8] sm:$0xff]  ;;  %v9343_v4 = vld [vmem:[%s9982_s14 + $0x18] sm:$0xff] }
 0xbf8   : > { %4909 = vmatpush.msrb.mxu0 %v4865_v3  ;;  %4936 = vmatpush.msrb.mxu1 %v7554_v26 }
 0xbf9   : > { %4857 = vmatpush.msrb.mxu2 %v4637_v17  ;;  %7548 = vmatmul.msk.f32.vlgmr.msra.gmra.mxu1 %vm640_vm8, %v7545_v49 }
 0xbfa   : > { %4910 = vmatpush.msrb.mxu0 %v4864_v28  ;;  %4886 = vmatpush.msrb.mxu3 %v7551_v43  ;;  %v7571_v28 = vld [vmem:[%s9982_s14 + $0x28] sm:$0xff]  ;;  %v9365_v43 = vld [vmem:[%s9982_s14 + $0x38] sm:$0xff] }
 0xbfb   : > { %4858 = vmatpush.msrb.mxu2 %v4636_v18 }
 0xbfc   : > { %7543 = vmatmul.msk.f32.vlgmr.msra.gmra.mxu3 %vm640_vm8, %v7542_v62  ;;  %7549 = vmatmul.msk.f32.vlgmr.msrb.gmra.mxu2 %vm640_vm8, %v4839_v22  ;;  %v4710_v52 = vpop.f32.mrf.mxu0 }
 0xbfd   : > { %4887 = vmatpush.msrb.mxu3 %v7550_v31  ;;  %4962 = vmatpush.msra.mxu2 %v7558_v40  ;;  %v4973_v7 = vpop.permute.xlu1 %4972  ;;  %v9377_v40 = vld [vmem:[%s9982_s14 + $0x30] sm:$0xff] }
 0xbff   : > { %4963 = vmatpush.msra.mxu2 %v7557_v23 }
 0xc02   : > { %v4660_v30 = vpop.f32.mrf.mxu2 }
 0xc03   : > { %7553 = vmatmul.msk.f32.vlgmr.msrb.gmra.mxu0 %vm640_vm8, %v4660_v30  ;;  %v9360_v30 = vld [vmem:[%s9982_s14 + $0x40] sm:$0xff] }
 0xc04   : > { %v4810_v53 = vpop.f32.mrf.mxu0 }
 0xc0a   : > { %v4760_v33 = vpop.f32.mrf.mxu2 }
 0xc6e   : > { %v4737_v48 = vpop.f32.mrf.mxu1 }
 0xc6f   : > { %v4761_v56 = vadd.f32 %v4760_v33, %v4737_v48 }
 0xc71   : > { %7556 = vmatmul.msk.f32.vlgmr.msrb.gmra.mxu1 %vm640_vm8, %v4761_v56 }
 0xc76   : > { %v4835_v11 = vpop.f32.mrf.mxu1 }
 0xc77   : > { %v4687_v46 = vpop.f32.mrf.mxu3 }
 0xc78   : > { %v4711_v47 = vadd.f32 %v4710_v52, %v4687_v46 }
 0xc7a   : > { %7552 = vmatmul.msk.f32.vlgmr.msrb.gmra.mxu3 %vm640_vm8, %v4711_v47 }
 0xc7f   : > { %v4787_v63 = vpop.f32.mrf.mxu3  ;;  %v4860_v54 = vpop.f32.mrf.mxu2 }
 0xc80   : > { %v4811_v50 = vadd.f32 %v4810_v53, %v4787_v63  ;;  %v4912_v61 = vpop.f32.mrf.mxu0 }
 0xc82   : > { %v4838_v13 = vadd.f32 %v4835_v11, %v4811_v50 }
 0xc84   : > { %v4863_v55 = vadd.f32 %v4860_v54, %v4838_v13 }
 0xc86   : > { %7559 = vmatmul.msk.f32.vlgmr.msra.gmra.mxu2 %vm640_vm8, %v4863_v55 }
 0xcee   : > { %v4938_v24 = vpop.f32.mrf.mxu1 }
 0xcfd   : > { %v4889_v59 = vpop.f32.mrf.mxu3 }
 0xcfe   : > { %v4913_v29 = vadd.f32 %v4912_v61, %v4889_v59 }
 0xd00   : > { %v4941_v16 = vadd.f32 %v4938_v24, %v4913_v29 }
 0xd09   : > { %v4965_v5 = vpop.f32.mrf.mxu2 }
 0xd0a   : > { %v4968_v6 = vadd.f32 %v4965_v5, %v4941_v16 }
 0xd0c   : > { %v4975_v19 = vadd.f32 %v4973_v7, %v4968_v6 }
 0xd0e   : > { %v9281_v12 = vadd.f32 %v4975_v19, %v8737_v44  ;;  %v5247_v44 = vld [vmem:[%s10051_s30 + $0x98] sm:$0xff]  ;;  %v5488_v19 = vld [vmem:[%s10051_s30 + $0xa8] sm:$0xff] }
 0xd10   : > { %4978 = vrot.lane.b32.xlu1 %v9281_v12, %s10074_s18  ;;  %5067 = vrot.lane.b32.xlu0 %v9281_v12, %s10060_s21 }
 0xd11   : > { %4984 = vrot.lane.b32.xlu2 %v9281_v12, %s10075_s8 }
 0xd18   : > { %5216 = vrot.lane.b32.xlu1 %v9281_v12, %s10067_s24  ;;  %5124 = vrot.lane.b32.xlu0 %v9281_v12, %s10053_s25 }
 0xd19   : > { %5036 = vrot.lane.b32.xlu2 %v9281_v12, %s10076_s3 }
 0xd20   : > { %5250 = vperm.xlu1 %7782, %v5247_v44   ;;  %5155 = vrot.lane.b32.xlu0 %v9281_v12, %s10077_s27  ;;  %v5495_v44 = vld [vmem:[%s10051_s30 + $0xb0] sm:$0xff] }
 0xd21   : > { %5186 = vrot.lane.b32.xlu2 %v9281_v12, %s10066_s23 }
 0xd29   : > { %5257 = vperm.xlu2 %7783, %v5254_v34  }
 0xd6b   : > { %v4985_v2 = vpop.permute.xlu2 %4984 }
 0xd6c   : > { %7562 = vmatpush.msk.msra.mxu3 %vm8625_vm0, %v4985_v2 }
 0xd6d   : > { %7563 = vmatmul.msk.f32.vlgmr.msra.gmra.mxu3 %vm2940_vm6, %v9308_v14 }
 0xd6e   : > { %5118 = vmatpush.msrb.mxu3 %v9281_v12 }
 0xd73   : > { %v5037_v58 = vpop.permute.xlu2 %5036 }
 0xd74   : > { %v5039_v39 = vsel %vm2993_vm9, 0.0, %v5037_v58 }
 0xd75   : > { %v5040_v21 = vmul.f32 %v8630_v1, %v5039_v39  ;;  %7570 = vmatmul.msk.f32.vlgmr.msrb.gmra.mxu3 %vm2940_vm6, %v9318_v37 }
 0xd77   : > { %5061 = vmatpush.msra.mxu1 %v5040_v21 }
 0xd78   : > { %7566 = vmatmul.msk.f32.vlgmr.msra.gmra.mxu1 %vm2940_vm6, %v9325_v27 }
 0xd7b   : > { %v5187_v60 = vpop.permute.xlu2 %5186 }
 0xd82   : > { %v4979_v20 = vpop.permute.xlu1 %4978  ;;  %v5068_v42 = vpop.permute.xlu0 %5067 }
 0xd83   : > { %v4981_v8 = vsel %vm2926_vm4, 0.0, %v4979_v20  ;;  %v5070_v9 = vsel %vm819_vm2, 0.0, %v5068_v42  ;;  %v5258_v5 = vpop.permute.xlu2 %5257 }
 0xd84   : > { %v4982_v10 = vmul.f32 %v8604_v51, %v4981_v8  ;;  %v5071_v15 = vmul.f32 %v8604_v51, %v5070_v9 }
 0xd86   : > { %5031 = vmatpush.msra.mxu0 %v4982_v10  ;;  %5092 = vmatpush.msrb.mxu2 %v5071_v15 }
 0xd87   : > { %7564 = vmatmul.msk.f32.vlgmr.msra.gmra.mxu0 %vm2940_vm6, %v9338_v57  ;;  %7568 = vmatmul.msk.f32.vlgmr.msrb.gmra.mxu2 %vm2940_vm6, %v9343_v4 }
 0xd88   : > { %7576 = vmatpush.msk.msra.mxu2 %vm3146_vm12, %v5187_v60 }
 0xd8a   : > { %v5217_v17 = vpop.permute.xlu1 %5216  ;;  %v5125_v49 = vpop.permute.xlu0 %5124 }
 0xd8b   : > { %v5219_v18 = vsel %vm3177_vm11, %v5217_v17, 0.0  ;;  %v5127_v62 = vsel %vm3082_vm13, %v5125_v49, 0.0 }
 0xd8c   : > { %v5220_v22 = vmul.f32 %v8630_v1, %v5219_v18  ;;  %v5128_v3 = vmul.f32 %v8630_v1, %v5127_v62 }
 0xd8e   : > { %5149 = vmatpush.msrb.mxu0 %v5128_v3  ;;  %5241 = vmatpush.msra.mxu3 %v5220_v22 }
 0xd8f   : > { %7572 = vmatmul.msk.f32.vlgmr.msrb.gmra.mxu0 %vm2940_vm6, %v7571_v28  ;;  %7579 = vmatmul.msk.f32.vlgmr.msra.gmra.mxu3 %vm2940_vm6, %v9360_v30 }
 0xd90   : > { %7577 = vmatmul.msk.f32.vlgmr.msra.gmra.mxu2 %vm2940_vm6, %v9365_v43 }
 0xd92   : > { %v5156_v31 = vpop.permute.xlu0 %5155  ;;  %v5251_v24 = vpop.permute.xlu1 %5250 }
 0xd93   : > { %v5158_v32 = vsel %vm10078_vm1, %v5156_v31, 0.0  ;;  %vm10094_vm1 = vmmov %vm10092_vm10 }
 0xd94   : > { %v5159_v26 = vmul.f32 %v8604_v51, %v5158_v32 }
 0xd96   : > { %5180 = vmatpush.msrb.mxu1 %v5159_v26 }
 0xd97   : > { %7574 = vmatmul.msk.f32.vlgmr.msrb.gmra.mxu1 %vm2940_vm6, %v9377_v40 }
 0xdf0   : > { %v5010_v23 = vpop.f32.mrf.mxu3 }
 0xdf5   : > { %v5063_v56 = vpop.f32.mrf.mxu1 }
 0xdf8   : > { %v5120_v53 = vpop.f32.mrf.mxu3 }
 0xe04   : > { %v5033_v33 = vpop.f32.mrf.mxu0 }
 0xe05   : > { %v5034_v48 = vadd.f32 %v5033_v33, %v5010_v23 }
 0xe07   : > { %v5066_v52 = vadd.f32 %v5063_v56, %v5034_v48 }
 0xe0a   : > { %v5094_v46 = vpop.f32.mrf.mxu2 }
 0xe0b   : > { %v5097_v47 = vadd.f32 %v5094_v46, %v5066_v52 }
 0xe0c   : > { %v5151_v11 = vpop.f32.mrf.mxu0 }
 0xe0d   : > { %v5123_v63 = vadd.f32 %v5120_v53, %v5097_v47 }
 0xe0f   : > { %v5154_v50 = vadd.f32 %v5151_v11, %v5123_v63 }
 0xe12   : > { %v5243_v59 = vpop.f32.mrf.mxu3 }
 0xe13   : > { %v5212_v13 = vpop.f32.mrf.mxu2 }
 0xe14   : > { %v5182_v54 = vpop.f32.mrf.mxu1 }
 0xe15   : > { %v5185_v55 = vadd.f32 %v5182_v54, %v5154_v50  ;;  %v7592_v54 = vld [vmem:[%s9981_s13 + $0x10] sm:$0xf] }
 0xe17   : > { %v5215_v61 = vadd.f32 %v5212_v13, %v5185_v55  ;;  %v7594_v13 = vld [vmem:[%s9981_s13 + $0x14] sm:$0xf] }
 0xe19   : > { %v5246_v29 = vadd.f32 %v5243_v59, %v5215_v61  ;;  %v7599_v59 = vld [vmem:[%s9981_s13 + $0x4] sm:$0xf]  ;;  %v7603_v61 = vld [vmem:[%s9981_s13 + $0x20] sm:$0xf] }
 0xe1b   : > { %v5253_v16 = vmul.f32 %v5251_v24, %v5246_v29  ;;  %v7598_v29 = vld [vmem:[%s9981_s13 + $0x1c] sm:$0xf] }
 0xe1c   : > { %v7626_v24 = vld [vmem:[%s9974_s6 + $0xf8] sm:$0xff] }
 0xe1d   : > { %v5260_v6 = vadd.f32 %v5258_v5, %v5253_v16  ;;  %v7607_v16 = vld [vmem:[%s9981_s13 + $0x8] sm:$0xf] }
 0xe1e   : > { %v7624_v5 = vld [vmem:[%s9974_s6 + $0xe8] sm:$0xff] }
 0xe1f   : > { %v5261_v7 = vmax.f32 %v5260_v6, 0.0  ;;  %v7622_v6 = vld [vmem:[%s9974_s6 + $0xd8] sm:$0xff] }
 0xe21   : > { %5263 = vrot.lane.b32.xlu2 %v5261_v7, %s10074_s18  ;;  %5338 = vrot.lane.b32.xlu1 %v5261_v7, %s10060_s21 }
 0xe22   : > { %5312 = vrot.lane.b32.xlu0 %v5261_v7, %s10076_s3 }
 0xe29   : > { %5385 = vrot.lane.b32.xlu2 %v5261_v7, %s10053_s25  ;;  %5411 = vrot.lane.b32.xlu1 %v5261_v7, %s10077_s27  ;;  %s593_s27 = scalar_lea.vmem %s9985_s17, %s7921_s29 }
 0xe2a   : > { %5268 = vrot.lane.b32.xlu0 %v5261_v7, %s10075_s8 }
 0xe31   : > { %5491 = vperm.xlu2 %7783, %v5488_v19   ;;  %5462 = vrot.lane.b32.xlu1 %v5261_v7, %s10067_s24  ;;  %v7620_v19 = vld [vmem:[%s9974_s6 + $0xc8] sm:$0xff] }
 0xe32   : > { %5437 = vrot.lane.b32.xlu0 %v5261_v7, %s10066_s23 }
 0xe3a   : > { %5498 = vperm.xlu0 %7784, %v5495_v44   ;;  %v5758_v44 = vld [vmem:[%s9974_s6 + $0x60] sm:$0xff] }
 0xe7b   : > { %v5264_v34 = vpop.permute.xlu2 %5263 }
 0xe7c   : > { %v5266_v2 = vsel %vm2926_vm4, 0.0, %v5264_v34  ;;  %v7618_v34 = vld [vmem:[%s9974_s6 + $0xb8] sm:$0xff] }
 0xe7d   : > { %v5267_v58 = vmul.f32 %v8604_v51, %v5266_v2  ;;  %v5756_v2 = vld [vmem:[%s9974_s6 + $0x50] sm:$0xff] }
 0xe7f   : > { %5307 = vmatpush.msra.mxu1 %v5267_v58  ;;  %v7616_v58 = vld [vmem:[%s9974_s6 + $0xa8] sm:$0xff] }
 0xe80   : > { %7583 = vmatmul.msk.f32.vlgmr.msra.gmra.mxu1 %vm2940_vm6, %v9338_v57 }
 0xe83   : > { %v5386_v39 = vpop.permute.xlu2 %5385 }
 0xe84   : > { %v5388_v21 = vsel %vm3082_vm13, %v5386_v39, 0.0  ;;  %v5754_v39 = vld [vmem:[%s9974_s6 + $0x40] sm:$0xff] }
 0xe85   : > { %v5389_v20 = vmul.f32 %v8630_v1, %v5388_v21  ;;  %v7614_v21 = vld [vmem:[%s9974_s6 + $0x98] sm:$0xff] }
 0xe87   : > { %5405 = vmatpush.msrb.mxu1 %v5389_v20  ;;  %v5752_v20 = vld [vmem:[%s9974_s6 + $0x30] sm:$0xff] }
 0xe88   : > { %7587 = vmatmul.msk.f32.vlgmr.msrb.gmra.mxu1 %vm2940_vm6, %v7571_v28 }
 0xe8b   : > { %v5492_v47 = vpop.permute.xlu2 %5491 }
 0xe93   : > { %v5339_v42 = vpop.permute.xlu1 %5338 }
 0xe94   : > { %v5341_v8 = vsel %vm819_vm2, 0.0, %v5339_v42  ;;  %v5313_v9 = vpop.permute.xlu0 %5312  ;;  %v7612_v42 = vld [vmem:[%s9974_s6 + $0x88] sm:$0xff] }
 0xe95   : > { %v5342_v10 = vmul.f32 %v8604_v51, %v5341_v8  ;;  %v5315_v15 = vsel %vm2993_vm9, 0.0, %v5313_v9  ;;  %v5750_v8 = vld [vmem:[%s9974_s6 + $0x20] sm:$0xff]  ;;  %v7646_v9 = vld [vmem:[%s9974_s6 + $0x178] sm:$0xff] }
 0xe96   : > { %v5316_v60 = vmul.f32 %v8630_v1, %v5315_v15 }
 0xe97   : > { %5358 = vmatpush.msrb.mxu3 %v5342_v10  ;;  %v7644_v10 = vld [vmem:[%s9974_s6 + $0x168] sm:$0xff] }
 0xe98   : > { %5332 = vmatpush.msrb.mxu2 %v5316_v60  ;;  %7585 = vmatmul.msk.f32.vlgmr.msrb.gmra.mxu3 %vm2940_vm6, %v9343_v4 }
 0xe99   : > { %7584 = vmatmul.msk.f32.vlgmr.msrb.gmra.mxu2 %vm2940_vm6, %v9325_v27 }
 0xe9b   : > { %v5412_v57 = vpop.permute.xlu1 %5411 }
 0xe9c   : > { %v5414_v17 = vsel %vm10079_vm5, %v5412_v57, 0.0  ;;  %v5269_v49 = vpop.permute.xlu0 %5268  ;;  %vm10095_vm5 = vmmov %vm10093_vm14 }
 0xe9d   : > { %v5415_v18 = vmul.f32 %v8604_v51, %v5414_v17  ;;  %7581 = vmatpush.msk.msra.mxu0 %vm8625_vm0, %v5269_v49 }
 0xe9e   : > { %7582 = vmatmul.msk.f32.vlgmr.msra.gmra.mxu0 %vm2940_vm6, %v9308_v14 }
 0xe9f   : > { %5379 = vmatpush.msrb.mxu0 %v5261_v7  ;;  %5431 = vmatpush.msra.mxu2 %v5415_v18  ;;  %v5760_v7 = vld [vmem:[%s9974_s6 + $0x70] sm:$0xff]  ;;  %v5721_v18 = vld [vmem:[%s9981_s13] sm:$0xf] }
 0xea1   : > { %7588 = vmatmul.msk.f32.vlgmr.msra.gmra.mxu2 %vm2940_vm6, %v9377_v40 }
 0xea3   : > { %v5463_v4 = vpop.permute.xlu1 %5462 }
 0xea4   : > { %v5465_v27 = vsel %vm3177_vm11, %v5463_v4, 0.0  ;;  %v5438_v62 = vpop.permute.xlu0 %5437 }
 0xea5   : > { %v5466_v22 = vmul.f32 %v8630_v1, %v5465_v27  ;;  %7589 = vmatpush.msk.msra.mxu3 %vm3146_vm12, %v5438_v62  ;;  %v7595_v27 = vld [vmem:[%s9981_s13 + $0xc] sm:$0xf]  ;;  %v5761_v62 = vld [vmem:[%s9974_s6 + $0x78] sm:$0xff] }
 0xea6   : > { %7586 = vmatmul.msk.f32.vlgmr.msrb.gmra.mxu0 %vm2940_vm6, %v9318_v37  ;;  %7590 = vmatmul.msk.f32.vlgmr.msra.gmra.mxu3 %vm2940_vm6, %v9365_v43 }
 0xea7   : > { %5482 = vmatpush.msra.mxu0 %v5466_v22  ;;  %v7625_v22 = vld [vmem:[%s9974_s6 + $0xf0] sm:$0xff] }
 0xeac   : > { %v5499_v53 = vpop.permute.xlu0 %5498 }
 0xeae   : > { %7591 = vmatmul.msk.f32.vlgmr.msra.gmra.mxu0 %vm2940_vm6, %v9360_v30 }
 0xefd   : > { %v5309_v51 = vpop.f32.mrf.mxu1 }
 0xf05   : > { %v5407_v40 = vpop.f32.mrf.mxu1 }
 0xf1b   : > { %v5289_v0 = vpop.f32.mrf.mxu0  ;;  %v5360_v31 = vpop.f32.mrf.mxu3 }
 0xf1c   : > { %v5310_v14 = vadd.f32 %v5309_v51, %v5289_v0  ;;  %v5334_v3 = vpop.f32.mrf.mxu2  ;;  %v7623_v51 = vld [vmem:[%s9974_s6 + $0xe0] sm:$0xff]  ;;  %v5757_v0 = vld [vmem:[%s9974_s6 + $0x58] sm:$0xff] }
 0xf1e   : > { %v5337_v28 = vadd.f32 %v5334_v3, %v5310_v14  ;;  %v7621_v14 = vld [vmem:[%s9974_s6 + $0xd0] sm:$0xff]  ;;  %v5755_v3 = vld [vmem:[%s9974_s6 + $0x48] sm:$0xff] }
 0xf20   : > { %v5363_v32 = vadd.f32 %v5360_v31, %v5337_v28  ;;  %v7604_v28 = vld [vmem:[%s9981_s13 + $0x18] sm:$0xf] }
 0xf21   : > { %v5753_v31 = vld [vmem:[%s9974_s6 + $0x38] sm:$0xff] }
 0xf23   : > { %v5381_v26 = vpop.f32.mrf.mxu0 }
 0xf24   : > { %v5384_v23 = vadd.f32 %v5381_v26, %v5363_v32  ;;  %v5433_v33 = vpop.f32.mrf.mxu2  ;;  %v7619_v32 = vld [vmem:[%s9974_s6 + $0xc0] sm:$0xff]  ;;  %v5751_v26 = vld [vmem:[%s9974_s6 + $0x28] sm:$0xff] }
 0xf26   : > { %v5410_v37 = vadd.f32 %v5407_v40, %v5384_v23  ;;  %v7617_v40 = vld [vmem:[%s9974_s6 + $0xb0] sm:$0xff]  ;;  %v7615_v23 = vld [vmem:[%s9974_s6 + $0xa0] sm:$0xff] }
 0xf28   : > { %v5436_v48 = vadd.f32 %v5433_v33, %v5410_v37  ;;  %v7613_v33 = vld [vmem:[%s9974_s6 + $0x90] sm:$0xff]  ;;  %v7611_v37 = vld [vmem:[%s9974_s6 + $0x80] sm:$0xff] }
 0xf29   : > { %v5458_v56 = vpop.f32.mrf.mxu3 }
 0xf2a   : > { %v5461_v43 = vadd.f32 %v5458_v56, %v5436_v48  ;;  %v7645_v48 = vld [vmem:[%s9974_s6 + $0x170] sm:$0xff]  ;;  %v7643_v56 = vld [vmem:[%s9974_s6 + $0x160] sm:$0xff] }
 0xf2b   : > { %v5484_v52 = vpop.f32.mrf.mxu0 }
 0xf2c   : > { %v5487_v46 = vadd.f32 %v5484_v52, %v5461_v43  ;;  %v5748_v43 = vld [vmem:[%s9974_s6 + $0x10] sm:$0xff]  ;;  %v5749_v52 = vld [vmem:[%s9974_s6 + $0x18] sm:$0xff] }
 0xf2e   : > { %v5494_v30 = vmul.f32 %v5492_v47, %v5487_v46  ;;  %v7641_v46 = vld [vmem:[%s9974_s6 + $0x150] sm:$0xff]  ;;  %v7642_v47 = vld [vmem:[%s9974_s6 + $0x158] sm:$0xff] }
 0xf30   : > { %v5501_v63 = vadd.f32 %v5499_v53, %v5494_v30  ;;  %v5746_v30 = vld [vmem:[%s9974_s6] sm:$0xff] }
 0xf31   : > { %v7639_v53 = vld [vmem:[%s9974_s6 + $0x140] sm:$0xff] }
 0xf32   : > { %v5502_v11 = vadd.f32 %v5501_v63, %v9281_v12  ;;  %v5989_v12 = vld [vmem:[%s10051_s30 + $0xb8] sm:$0xf]  ;;  %v7640_v63 = vld [vmem:[%s9974_s6 + $0x148] sm:$0xff] }
 0xf34   : > { %v5503_v50 = vmax.f32 %v5502_v11, 0.0  ;;  %v5747_v11 = vld [vmem:[%s9974_s6 + $0x8] sm:$0xff] }
 0xf36   : > { %5504 = vst.msk [vmem:[%s593_s27] sm:$0xff] %vm10080_vm15, %v5503_v50  ;;  %5515 = vrot.lane.b32.xlu0 %v5503_v50, %s10067_s24  ;;  %5511 = vrot.lane.b32.xlu2 %v5503_v50, %s10066_s23  ;;  %s10090_s23 = smov 112  }
 0xf37   : > { %5506 = vrot.lane.b32.xlu1 %v5503_v50, %s10053_s25  ;;  %5540 = vmatpush.msra.mxu1 %v5503_v50 }
 0xf38   : > { %5590 = vmatpush.msrb.mxu3 %v5503_v50  ;;  %7593 = vmatmul.msk.f32.vlgmr.msra.gmra.mxu1 %vm2940_vm6, %v7592_v54  ;;  %v7638_v54 = vld [vmem:[%s9974_s6 + $0x138] sm:$0xff] }
 0xf39   : > { %5640 = vmatpush.msrb.mxu1 %v5503_v50  ;;  %7597 = vmatmul.msk.f32.vlgmr.msrb.gmra.mxu3 %vm2940_vm6, %v7594_v13  ;;  %v7663_v13 = vld [vmem:[%s9974_s6 + $0x1f0] sm:$0xff] }
 0xf3a   : > { %5690 = vmatpush.msra.mxu3 %v5503_v50 }
 0xf3c   : > { %5810 = vmatpush.msrb.mxu3 %v7626_v24  ;;  %v7662_v24 = vld [vmem:[%s9974_s6 + $0x1e8] sm:$0xff] }
 0xf3e   : > { %5811 = vmatpush.msrb.mxu3 %v7624_v5  ;;  %v7634_v5 = vld [vmem:[%s9974_s6 + $0x118] sm:$0xff] }
 0xf3f   : > { %5992 = vperm.xlu1 %7782, %v5989_v12   ;;  %v7637_v12 = vld [vmem:[%s9974_s6 + $0x130] sm:$0xff] }
 0xf40   : > { %7602 = vmatmul.msk.f32.vlgmr.msrb.gmra.mxu1 %vm2940_vm6, %v7598_v29  ;;  %5812 = vmatpush.msrb.mxu3 %v7622_v6  ;;  %v7661_v29 = vld [vmem:[%s9974_s6 + $0x1e0] sm:$0xff]  ;;  %v7659_v6 = vld [vmem:[%s9974_s6 + $0x1d0] sm:$0xff] }
 0xf41   : > { %7606 = vmatmul.msk.f32.vlgmr.msra.gmra.mxu3 %vm2940_vm6, %v7603_v61  ;;  %v7636_v61 = vld [vmem:[%s9974_s6 + $0x128] sm:$0xff] }
 0xf42   : > { %5813 = vmatpush.msrb.mxu3 %v7620_v19  ;;  %v7631_v19 = vld [vmem:[%s9974_s6 + $0x100] sm:$0xff] }
 0xf44   : > { %5814 = vmatpush.msrb.mxu3 %v7618_v34  ;;  %v7657_v34 = vld [vmem:[%s9974_s6 + $0x1c0] sm:$0xff] }
 0xf46   : > { %5815 = vmatpush.msrb.mxu3 %v7616_v58  ;;  %v7655_v58 = vld [vmem:[%s9974_s6 + $0x1b0] sm:$0xff] }
 0xf48   : > { %5816 = vmatpush.msrb.mxu3 %v7614_v21  ;;  %v7653_v21 = vld [vmem:[%s9974_s6 + $0x1a0] sm:$0xff] }
 0xf4a   : > { %5817 = vmatpush.msrb.mxu3 %v7612_v42  ;;  %v7651_v42 = vld [vmem:[%s9974_s6 + $0x190] sm:$0xff] }
 0xf4c   : > { %5913 = vmatpush.msra.mxu3 %v7646_v9  ;;  %v7649_v9 = vld [vmem:[%s9974_s6 + $0x180] sm:$0xff] }
 0xf4e   : > { %5914 = vmatpush.msra.mxu3 %v7644_v10  ;;  %v7650_v10 = vld [vmem:[%s9974_s6 + $0x188] sm:$0xff] }
 0xf50   : > { %5915 = vmatpush.msra.mxu3 %v7642_v47 }
 0xf52   : > { %5916 = vmatpush.msra.mxu3 %v7640_v63 }
 0xf54   : > { %5917 = vmatpush.msra.mxu3 %v7638_v54 }
 0xf56   : > { %5918 = vmatpush.msra.mxu3 %v7636_v61 }
 0xf58   : > { %5919 = vmatpush.msra.mxu3 %v7634_v5 }
 0xf90   : > { %v5512_v55 = vpop.permute.xlu2 %5511 }
 0xf91   : > { %7600 = vmatpush.msk.msrb.mxu0 %vm3146_vm12, %v5512_v55 }
 0xf92   : > { %7601 = vmatmul.msk.f32.vlgmr.msrb.gmra.mxu0 %vm2940_vm6, %v7599_v59  ;;  %v7635_v59 = vld [vmem:[%s9974_s6 + $0x120] sm:$0xff] }
 0xf93   : > { %7608 = vmatpush.msk.msra.mxu0 %vm3146_vm12, %v5512_v55  ;;  %v7664_v55 = vld [vmem:[%s9974_s6 + $0x1f8] sm:$0xff] }
 0xf95   : > { %5833 = vmatpush.msrb.mxu0 %v5760_v7  ;;  %v7660_v7 = vld [vmem:[%s9974_s6 + $0x1d8] sm:$0xff] }
 0xf97   : > { %5834 = vmatpush.msrb.mxu0 %v5758_v44  ;;  %v7632_v44 = vld [vmem:[%s9974_s6 + $0x108] sm:$0xff] }
 0xf98   : > { %5920 = vmatpush.msra.mxu3 %v7632_v44 }
 0xf99   : > { %5835 = vmatpush.msrb.mxu0 %v5756_v2  ;;  %v7658_v2 = vld [vmem:[%s9974_s6 + $0x1c8] sm:$0xff] }
 0xf9a   : > { %7609 = vmatmul.msk.f32.vlgmr.msra.gmra.mxu0 %vm2940_vm6, %v7607_v16  ;;  %v7633_v16 = vld [vmem:[%s9974_s6 + $0x110] sm:$0xff] }
 0xf9b   : > { %5836 = vmatpush.msrb.mxu0 %v5754_v39  ;;  %v7656_v39 = vld [vmem:[%s9974_s6 + $0x1b8] sm:$0xff] }
 0xf9d   : > { %5837 = vmatpush.msrb.mxu0 %v5752_v20  ;;  %v7654_v20 = vld [vmem:[%s9974_s6 + $0x1a8] sm:$0xff] }
 0xf9f   : > { %5838 = vmatpush.msrb.mxu0 %v5750_v8  ;;  %v7652_v8 = vld [vmem:[%s9974_s6 + $0x198] sm:$0xff] }
 0xfa1   : > { %5839 = vmatpush.msrb.mxu0 %v5748_v43 }
 0xfa3   : > { %5840 = vmatpush.msrb.mxu0 %v5746_v30 }
 0xfa5   : > { %5955 = vmatpush.msra.mxu0 %v7663_v13 }
 0xfa7   : > { %5956 = vmatpush.msra.mxu0 %v7661_v29 }
 0xfa8   : > { %v5516_v15 = vpop.permute.xlu0 %5515 }
 0xfa9   : > { %v5518_v60 = vsel %vm3177_vm11, %v5516_v15, 0.0  ;;  %v5507_v57 = vpop.permute.xlu1 %5506  ;;  %vm10081_vm11 = vmmov %vm10080_vm15  ;;  %5957 = vmatpush.msra.mxu0 %v7659_v6  ;;  %v9745_v6 = vld [vmem:[%s10091_s28 + $0x8] sm:$0xf] }
 0xfaa   : > { %v5519_v17 = vmul.f32 %v8630_v1, %v5518_v60  ;;  %v5509_v49 = vsel %vm3082_vm13, %v5507_v57, 0.0  ;;  %vm10082_vm12 = vmmov %vm10081_vm11 }
 0xfab   : > { %v5510_v4 = vmul.f32 %v8630_v1, %v5509_v49  ;;  %v5759_v1 = vld [vmem:[%s9974_s6 + $0x68] sm:$0xff]  ;;  %5958 = vmatpush.msra.mxu0 %v7657_v34  ;;  %vm10083_vm13 = vmmov %vm10081_vm11 }
 0xfac   : > { %5740 = vmatpush.msra.mxu1 %v5519_v17  ;;  %vm10084_vm4 = vmmov %vm10081_vm11 }
 0xfad   : > { %5567 = vmatpush.msrb.mxu2 %v5510_v4  ;;  %7610 = vmatmul.msk.f32.vlgmr.msra.gmra.mxu1 %vm2940_vm6, %v5721_v18  ;;  %vm10086_vm9 = vmmov %vm10084_vm4 }
 0xfae   : > { %7596 = vmatmul.msk.f32.vlgmr.msrb.gmra.mxu2 %vm2940_vm6, %v7595_v27  ;;  %5853 = vmatpush.msrb.mxu1 %v5761_v62  ;;  %vm10087_vm0 = vmmov %vm10084_vm4 }
 0xfaf   : > { %5667 = vmatpush.msra.mxu2 %v5510_v4  ;;  %5959 = vmatpush.msra.mxu0 %v7655_v58  ;;  %vm10088_vm7 = vmmov %vm10087_vm0 }
 0xfb0   : > { %5854 = vmatpush.msrb.mxu1 %v5759_v1  ;;  %vm10096_vm15 = vmmov %vm10094_vm1 }
 0xfb1   : > { %5790 = vmatpush.msrb.mxu2 %v7625_v22  ;;  %5960 = vmatpush.msra.mxu0 %v7653_v21 }
 0xfb2   : > { %5855 = vmatpush.msrb.mxu1 %v5757_v0 }
 0xfb3   : > { %5791 = vmatpush.msrb.mxu2 %v7623_v51  ;;  %5961 = vmatpush.msra.mxu0 %v7651_v42 }
 0xfb4   : > { %5856 = vmatpush.msrb.mxu1 %v5755_v3 }
 0xfb5   : > { %5792 = vmatpush.msrb.mxu2 %v7621_v14  ;;  %v5542_v50 = vpop.f32.mrf.mxu1  ;;  %5962 = vmatpush.msra.mxu0 %v7649_v9 }
 0xfb6   : > { %7605 = vmatmul.msk.f32.vlgmr.msra.gmra.mxu2 %vm2940_vm6, %v7604_v28  ;;  %5857 = vmatpush.msrb.mxu1 %v5753_v31  ;;  %vm10085_vm6 = vmmov %vm10084_vm4 }
 0xfb7   : > { %5793 = vmatpush.msrb.mxu2 %v7619_v32  ;;  %7629 = vmatmul.msk.f32.vlgmr.msrb.gmra.mxu0 %vm10082_vm12, %v5542_v50  ;;  %vm10098_vm12 = vmmov %vm10094_vm1 }
 0xfb8   : > { %5858 = vmatpush.msrb.mxu1 %v5751_v26 }
 0xfb9   : > { %5794 = vmatpush.msrb.mxu2 %v7617_v40 }
 0xfba   : > { %5859 = vmatpush.msrb.mxu1 %v5749_v52 }
 0xfbb   : > { %5795 = vmatpush.msrb.mxu2 %v7615_v23 }
 0xfbc   : > { %5860 = vmatpush.msrb.mxu1 %v5747_v11  ;;  %v5592_v15 = vpop.f32.mrf.mxu3 }
 0xfbd   : > { %5796 = vmatpush.msrb.mxu2 %v7613_v33  ;;  %7630 = vmatmul.msk.f32.vlgmr.msrb.gmra.mxu1 %vm10081_vm11, %v5542_v50  ;;  %v5642_v49 = vpop.f32.mrf.mxu1  ;;  %v9728_v50 = vld [vmem:[%s10091_s28 + $0x4] sm:$0xf]  ;;  %vm10097_vm11 = vmmov %vm10094_vm1 }
 0xfbe   : > { %5975 = vmatpush.msra.mxu1 %v7664_v55 }
 0xfbf   : > { %5797 = vmatpush.msrb.mxu2 %v7611_v37 }
 0xfc0   : > { %5976 = vmatpush.msra.mxu1 %v7662_v24 }
 0xfc1   : > { %5893 = vmatpush.msra.mxu2 %v7645_v48 }
 0xfc2   : > { %5977 = vmatpush.msra.mxu1 %v7660_v7 }
 0xfc3   : > { %5894 = vmatpush.msra.mxu2 %v7643_v56 }
 0xfc4   : > { %5978 = vmatpush.msra.mxu1 %v7658_v2  ;;  %v5692_v18 = vpop.f32.mrf.mxu3 }
 0xfc5   : > { %5895 = vmatpush.msra.mxu2 %v7641_v46  ;;  %v5993_v46 = vpop.permute.xlu1 %5992 }
 0xfc6   : > { %5979 = vmatpush.msra.mxu1 %v7656_v39 }
 0xfc7   : > { %5896 = vmatpush.msra.mxu2 %v7639_v53 }
 0xfc8   : > { %5980 = vmatpush.msra.mxu1 %v7654_v20 }
 0xfc9   : > { %5897 = vmatpush.msra.mxu2 %v7637_v12 }
 0xfca   : > { %5981 = vmatpush.msra.mxu1 %v7652_v8  ;;  %v9765_v8 = vld [vmem:[%s10091_s28] sm:$0xf] }
 0xfcb   : > { %5898 = vmatpush.msra.mxu2 %v7635_v59 }
 0xfcc   : > { %5982 = vmatpush.msra.mxu1 %v7650_v10  ;;  %v9775_v10 = vld [vmem:[%s10091_s28 + $0x10] sm:$0xf] }
 0xfcd   : > { %5899 = vmatpush.msra.mxu2 %v7633_v16 }
 0xfcf   : > { %5900 = vmatpush.msra.mxu2 %v7631_v19 }
0x100f   : > { %v5619_v60 = vpop.f32.mrf.mxu0 }
0x1010   : > { %v5643_v62 = vadd.f32 %v5642_v49, %v5619_v60 }
0x1017   : > { %v5717_v27 = vpop.f32.mrf.mxu0 }
0x102a   : > { %v5742_v1 = vpop.f32.mrf.mxu1 }
0x1031   : > { %v5569_v57 = vpop.f32.mrf.mxu2 }
0x1032   : > { %v5593_v17 = vadd.f32 %v5592_v15, %v5569_v57 }
0x1034   : > { %7627 = vmatmul.msk.f32.vlgmr.msrb.gmra.mxu2 %vm10083_vm13, %v5593_v17  ;;  %7628 = vmatmul.msk.f32.vlgmr.msrb.gmra.mxu3 %vm10084_vm4, %v5593_v17  ;;  %v5842_v14 = vpop.f32.mrf.mxu0  ;;  %vm10099_vm13 = vmmov %vm10094_vm1 }
0x1035   : > { %vm10100_vm4 = vmmov %vm10095_vm5 }
0x1039   : > { %v5669_v4 = vpop.f32.mrf.mxu2 }
0x103a   : > { %v5693_v22 = vadd.f32 %v5692_v18, %v5669_v4  ;;  %v5862_v3 = vpop.f32.mrf.mxu1 }
0x103c   : > { %7647 = vmatmul.msk.f32.vlgmr.msra.gmra.mxu2 %vm10085_vm6, %v5643_v62  ;;  %7648 = vmatmul.msk.f32.vlgmr.msra.gmra.mxu3 %vm10086_vm9, %v5643_v62  ;;  %v5720_v51 = vadd.f32 %v5717_v27, %v5693_v22  ;;  %vm10101_vm6 = vcmask 924672   ;;  %vm10102_vm9 = vcmask 138240   ;;  %v9792_v27 = vld [vmem:[%s10091_s28 + $0xc] sm:$0xf]  ;;  %v9801_v62 = vld [vmem:[%s10091_s28 + $0x18] sm:$0xf] }
0x103e   : > { %v5745_v0 = vadd.f32 %v5742_v1, %v5720_v51 }
0x1040   : > { %7665 = vmatmul.msk.f32.vlgmr.msra.gmra.mxu0 %vm10087_vm0, %v5745_v0  ;;  %7666 = vmatmul.msk.f32.vlgmr.msra.gmra.mxu1 %vm10088_vm7, %v5745_v0  ;;  %vm10103_vm0 = vmmov %vm10102_vm9 }
0x1041   : > { %vm10104_vm7 = vmmov %vm10100_vm4 }
0x10b7   : > { %v5799_v28 = vpop.f32.mrf.mxu2  ;;  %v5819_v31 = vpop.f32.mrf.mxu3 }
0x10b8   : > { %v5843_v32 = vadd.f32 %v5842_v14, %v5799_v28  ;;  %v5863_v26 = vadd.f32 %v5862_v3, %v5819_v31  ;;  %v9816_v31 = vld [vmem:[%s10091_s28 + $0x14] sm:$0xf] }
0x10bd   : > { %v5964_v40 = vpop.f32.mrf.mxu0  ;;  %v5984_v23 = vpop.f32.mrf.mxu1 }
0x10bf   : > { %v5902_v33 = vpop.f32.mrf.mxu2  ;;  %v5922_v37 = vpop.f32.mrf.mxu3 }
0x10c0   : > { %v5925_v48 = vadd.f32 %v5902_v33, %v5843_v32  ;;  %v5926_v56 = vadd.f32 %v5922_v37, %v5863_v26 }
0x10c2   : > { %v5987_v43 = vadd.f32 %v5964_v40, %v5925_v48  ;;  %v5988_v52 = vadd.f32 %v5984_v23, %v5926_v56 }
0x10c4   : > { %v5995_v47 = vadd.f32 %v5993_v46, %v5987_v43  ;;  %v5996_v30 = vadd.f32 %v5993_v46, %v5988_v52  ;;  %v9837_v43 = vld [vmem:[%s10091_s28 + $0x1c] sm:$0xf]  ;;  %v9842_v52 = vld [vmem:[%s10091_s28 + $0x20] sm:$0xf] }
0x10c6   : > { %v9682_v53 = vadd.f32 %v5995_v47, %v8350_v41  ;;  %v9685_v63 = vadd.f32 %v5996_v30, %v8352_v38  ;;  %v6543_v41 = vld [vmem:[%s10051_s30 + $0xbc] sm:$0xf]  ;;  %v6551_v38 = vld [vmem:[%s10051_s30 + $0xc0] sm:$0xf] }
0x10c8   : > { %6014 = vrot.lane.b32.xlu0 %v9685_v63, %s10058_s0  ;;  %6118 = vrot.lane.b32.xlu1 %v9682_v53, %s10059_s20 }
0x10c9   : > { %6012 = vrot.lane.b32.xlu2 %v9682_v53, %s10058_s0 }
0x10d0   : > { %6001 = vrot.lane.b32.xlu0 %v9682_v53, %s10057_s1  ;;  %6003 = vrot.lane.b32.xlu1 %v9685_v63, %s10057_s1 }
0x10d1   : > { %6120 = vrot.lane.b32.xlu2 %v9685_v63, %s10059_s20 }
0x10d8   : > { %6183 = vrot.lane.b32.xlu0 %v9685_v63, %s10060_s21  ;;  %6358 = vrot.lane.b32.xlu1 %v9682_v53, %s10052_s26 }
0x10d9   : > { %6181 = vrot.lane.b32.xlu2 %v9682_v53, %s10060_s21 }
0x10e0   : > { %6295 = vrot.lane.b32.xlu0 %v9682_v53, %s10053_s25  ;;  %6297 = vrot.lane.b32.xlu1 %v9685_v63, %s10053_s25 }
0x10e1   : > { %6360 = vrot.lane.b32.xlu2 %v9685_v63, %s10052_s26 }
0x10e8   : > { %6482 = vrot.lane.b32.xlu0 %v9685_v63, %s10089_s22  ;;  %6421 = vrot.lane.b32.xlu1 %v9682_v53, %s10090_s23 }
0x10e9   : > { %6480 = vrot.lane.b32.xlu2 %v9682_v53, %s10089_s22 }
0x10f0   : > { %6546 = vperm.xlu0 %7784, %v6543_v41   ;;  %6554 = vperm.xlu1 %7782, %v6551_v38  }
0x10f1   : > { %6423 = vrot.lane.b32.xlu2 %v9685_v63, %s10090_s23 }
0x1123   : > { %v6013_v11 = vpop.permute.xlu2 %6012 }
0x1124   : > { %v6018_v12 = vsel %vm640_vm8, 0.0, %v6013_v11 }
0x1125   : > { %7668 = vmatpush.msk.msrb.mxu2 %vm10092_vm10, %v6018_v12  ;;  %vm10105_vm10 = vmmov %vm10094_vm1 }
0x1126   : > { %7669 = vmatmul.msk.f32.vlgmr.msrb.gmra.mxu2 %vm10093_vm14, %v9728_v50  ;;  %vm10106_vm14 = vmmov %vm10094_vm1 }
0x112b   : > { %v6121_v54 = vpop.permute.xlu2 %6120 }
0x1133   : > { %v6182_v13 = vpop.permute.xlu2 %6181 }
0x1134   : > { %v6188_v2 = vsel %vm819_vm2, 0.0, %v6182_v13 }
0x1135   : > { %v6189_v9 = vmul.f32 %v7952_v25, %v6188_v2 }
0x113a   : > { %v6015_v55 = vpop.permute.xlu0 %6014  ;;  %v6119_v59 = vpop.permute.xlu1 %6118 }
0x113b   : > { %v6016_v61 = vsel %vm640_vm8, %v6013_v11, %v6015_v55  ;;  %v6122_v29 = vsel %vm752_vm3, %v6119_v59, %v6121_v54  ;;  %v6125_v24 = vsel %vm752_vm3, 0.0, %v6119_v59  ;;  %v6361_v7 = vpop.permute.xlu2 %6360 }
0x113c   : > { %v6126_v16 = vmul.f32 %v7965_v35, %v6125_v24  ;;  %v6127_v5 = vmul.f32 %v7990_v45, %v6122_v29  ;;  %7670 = vmatpush.msk.msrb.mxu3 %vm10094_vm1, %v6016_v61  ;;  %v6365_v19 = vsel %vm10101_vm6, %v6361_v7, 0.0 }
0x113d   : > { %7671 = vmatmul.msk.f32.vlgmr.msrb.gmra.mxu3 %vm10095_vm5, %v9728_v50  ;;  %v6367_v21 = vmul.f32 %v7969_v36, %v6365_v19  ;;  %vm10107_vm5 = vmmov %vm10100_vm4 }
0x113e   : > { %7677 = vmatpush.msk.msra.mxu2 %vm10096_vm15, %v6126_v16  ;;  %7679 = vmatpush.msk.msra.mxu3 %vm10097_vm11, %v6127_v5  ;;  %vm10108_vm15 = vmmov %vm10100_vm4 }
0x113f   : > { %7678 = vmatmul.msk.f32.vlgmr.msra.gmra.mxu2 %vm10100_vm4, %v9745_v6  ;;  %vm10109_vm11 = vmmov %vm10094_vm1 }
0x1140   : > { %7687 = vmatpush.msk.msrb.mxu2 %vm10098_vm12, %v9682_v53  ;;  %7689 = vmatpush.msk.msrb.mxu3 %vm10099_vm13, %v9685_v63  ;;  %vm10110_vm12 = vmmov %vm10100_vm4 }
0x1141   : > { %vm10111_vm13 = vmmov %vm10101_vm6 }
0x1142   : > { %v6002_v44 = vpop.permute.xlu0 %6001  ;;  %v6004_v34 = vpop.permute.xlu1 %6003  ;;  %vm10112_vm6 = vmmov %vm10094_vm1 }
0x1143   : > { %v6008_v58 = vsel %vm10102_vm9, 0.0, %v6002_v44  ;;  %v6005_v39 = vsel %vm10103_vm0, %v6002_v44, %v6004_v34  ;;  %v6481_v15 = vpop.permute.xlu2 %6480  ;;  %vm10113_vm9 = vmmov %vm10094_vm1 }
0x1144   : > { %v6009_v20 = vmul.f32 %v7952_v25, %v6008_v58  ;;  %v6010_v42 = vmul.f32 %v7969_v36, %v6005_v39  ;;  %vm10114_vm0 = vmmov %vm10100_vm4 }
0x1145   : > { %7680 = vmatmul.msk.f32.vlgmr.msra.gmra.mxu3 %vm10104_vm7, %v9745_v6  ;;  %vm10115_vm7 = vmmov %vm10114_vm0 }
0x1146   : > { %7699 = vmatpush.msk.msra.mxu3 %vm10105_vm10, %v6367_v21  ;;  %7672 = vmatpush.msk.msrb.mxu0 %vm10106_vm14, %v6009_v20  ;;  %vm10116_vm10 = vmmov %vm10114_vm0  ;;  %vm10117_vm14 = vcmask 1039360  }
0x1147   : > { %7674 = vmatpush.msk.msrb.mxu1 %vm10094_vm1, %v6010_v42  ;;  %7673 = vmatmul.msk.f32.vlgmr.msrb.gmra.mxu0 %vm10107_vm5, %v9765_v8  ;;  %vm10118_vm1 = vmmov %vm10117_vm14 }
0x1148   : > { %7675 = vmatmul.msk.f32.vlgmr.msrb.gmra.mxu1 %vm10108_vm15, %v9765_v8  ;;  %7682 = vmatpush.msk.msra.mxu0 %vm10109_vm11, %v6189_v9  ;;  %vm10119_vm5 = vmmov %vm10114_vm0  ;;  %vm10120_vm15 = vcmask 916480  }
0x1149   : > { %7688 = vmatmul.msk.f32.vlgmr.msrb.gmra.mxu2 %vm10110_vm12, %v9775_v10  ;;  %vm10121_vm11 = vmmov %vm10112_vm6 }
0x114a   : > { %v6184_v60 = vpop.permute.xlu0 %6183  ;;  %v6359_v57 = vpop.permute.xlu1 %6358  ;;  %vm10122_vm12 = vmmov %vm10112_vm6 }
0x114b   : > { %v6185_v17 = vsel %vm819_vm2, %v6182_v13, %v6184_v60  ;;  %v6362_v49 = vsel %vm10111_vm13, %v6359_v57, %v6361_v7  ;;  %v6424_v51 = vpop.permute.xlu2 %6423  ;;  %vm10123_vm13 = vmmov %vm10114_vm0 }
0x114c   : > { %v6190_v18 = vmul.f32 %v7969_v36, %v6185_v17  ;;  %v6366_v4 = vmul.f32 %v7952_v25, %v6362_v49  ;;  %v6427_v32 = vsel %vm10120_vm15, %v6424_v51, 0.0 }
0x114d   : > { %7690 = vmatmul.msk.f32.vlgmr.msrb.gmra.mxu3 %vm10100_vm4, %v9775_v10  ;;  %vm10124_vm4 = vmmov %vm10112_vm6 }
0x114e   : > { %7684 = vmatpush.msk.msra.mxu1 %vm10112_vm6, %v6190_v18  ;;  %7697 = vmatpush.msk.msra.mxu2 %vm10113_vm9, %v6366_v4  ;;  %vm10125_vm6 = vmmov %vm10114_vm0  ;;  %vm10126_vm9 = vcmask 908288  }
0x114f   : > { %7683 = vmatmul.msk.f32.vlgmr.msra.gmra.mxu0 %vm10114_vm0, %v9792_v27  ;;  %vm10127_vm0 = vmmov %vm10126_vm9 }
0x1150   : > { %7685 = vmatmul.msk.f32.vlgmr.msra.gmra.mxu1 %vm10115_vm7, %v9792_v27  ;;  %vm10128_vm7 = vmmov %vm10120_vm15 }
0x1151   : > { %7698 = vmatmul.msk.f32.vlgmr.msra.gmra.mxu2 %vm10116_vm10, %v9801_v62  ;;  %vm10129_vm10 = vmmov %vm10124_vm4 }
0x1152   : > { %v6296_v22 = vpop.permute.xlu0 %6295  ;;  %v6298_v1 = vpop.permute.xlu1 %6297  ;;  %vm10132_vm15 = vmmov %vm10119_vm5 }
0x1153   : > { %v6299_v0 = vsel %vm10117_vm14, %v6296_v22, %v6298_v1  ;;  %v6302_v14 = vsel %vm10118_vm1, %v6298_v1, 0.0  ;;  %vm10130_vm14 = vmmov %vm10124_vm4 }
0x1154   : > { %v6303_v3 = vmul.f32 %v7965_v35, %v6299_v0  ;;  %v6304_v28 = vmul.f32 %v7990_v45, %v6302_v14  ;;  %vm10131_vm1 = vmmov %vm10124_vm4 }
0x1155   : > { %7700 = vmatmul.msk.f32.vlgmr.msra.gmra.mxu3 %vm10119_vm5, %v9801_v62 }
0x1156   : > { %7692 = vmatpush.msk.msrb.mxu0 %vm10121_vm11, %v6303_v3  ;;  %7694 = vmatpush.msk.msrb.mxu1 %vm10122_vm12, %v6304_v28  ;;  %vm10133_vm11 = vmmov %vm10119_vm5 }
0x1157   : > { %7693 = vmatmul.msk.f32.vlgmr.msrb.gmra.mxu0 %vm10123_vm13, %v9816_v31  ;;  %vm10134_vm12 = vmmov %vm10119_vm5  ;;  %vm10135_vm13 = vcmask 138240  }
0x1158   : > { %7704 = vmatpush.msk.msra.mxu1 %vm10124_vm4, %v6427_v32  ;;  %vm10136_vm4 = vmmov %vm10131_vm1 }
0x1159   : > { %7695 = vmatmul.msk.f32.vlgmr.msrb.gmra.mxu1 %vm10125_vm6, %v9816_v31  ;;  %vm10137_vm6 = vmmov %vm10119_vm5 }
0x115a   : > { %v6483_v26 = vpop.permute.xlu0 %6482  ;;  %v6422_v40 = vpop.permute.xlu1 %6421 }
0x115b   : > { %v6484_v23 = vsel %vm10126_vm9, %v6481_v15, %v6483_v26  ;;  %v6487_v33 = vsel %vm10127_vm0, %v6483_v26, 0.0  ;;  %v6425_v37 = vsel %vm10128_vm7, %v6422_v40, %v6424_v51  ;;  %v7069_v26 = vld [vmem:[%s10051_s30 + $0xc8] sm:$0xf]  ;;  %v7061_v40 = vld [vmem:[%s10051_s30 + $0xc4] sm:$0xf]  ;;  %vm10138_vm9 = vmmov %vm10131_vm1 }
0x115c   : > { %v6488_v48 = vmul.f32 %v7965_v35, %v6484_v23  ;;  %v6489_v56 = vmul.f32 %v7990_v45, %v6487_v33  ;;  %7702 = vmatpush.msk.msra.mxu0 %vm10129_vm10, %v6425_v37  ;;  %vm10139_vm0 = vmmov %vm10119_vm5 }
0x115d   : > { %vm10140_vm7 = vmmov %vm10135_vm13 }
0x115e   : > { %7707 = vmatpush.msk.msrb.mxu2 %vm10130_vm14, %v6488_v48  ;;  %7709 = vmatpush.msk.msrb.mxu3 %vm10131_vm1, %v6489_v56  ;;  %vm10141_vm10 = vmmov %vm10131_vm1 }
0x115f   : > { %7703 = vmatmul.msk.f32.vlgmr.msra.gmra.mxu0 %vm10119_vm5, %v9837_v43  ;;  %7708 = vmatmul.msk.f32.vlgmr.msrb.gmra.mxu2 %vm10132_vm15, %v9842_v52  ;;  %vm10142_vm14 = vmmov %vm10131_vm1 }
0x1160   : > { %7710 = vmatmul.msk.f32.vlgmr.msrb.gmra.mxu3 %vm10134_vm12, %v9842_v52  ;;  %vm10143_vm1 = vmmov %vm10139_vm0 }
0x1161   : > { %7705 = vmatmul.msk.f32.vlgmr.msra.gmra.mxu1 %vm10133_vm11, %v9837_v43  ;;  %vm10144_vm5 = vmmov %vm10139_vm0 }
0x1162   : > { %v6547_v4 = vpop.permute.xlu0 %6546  ;;  %v6555_v51 = vpop.permute.xlu1 %6554  ;;  %vm10145_vm15 = vmmov %vm10136_vm4 }
0x1163   : > { %vm10146_vm11 = vmmov %vm10139_vm0 }
0x1164   : > { %vm10148_vm12 = vmmov %vm10136_vm4 }
0x11a9   : > { %v6046_v46 = vpop.f32.mrf.mxu2 }
0x11c0   : > { %v6066_v47 = vpop.f32.mrf.mxu3 }
0x11c2   : > { %v6156_v38 = vpop.f32.mrf.mxu2 }
0x11c4   : > { %v6095_v30 = vpop.f32.mrf.mxu0 }
0x11c5   : > { %v6115_v41 = vpop.f32.mrf.mxu1  ;;  %v6096_v54 = vadd.f32 %v6095_v30, %v6046_v46 }
0x11c6   : > { %v6116_v5 = vadd.f32 %v6115_v41, %v6066_v47 }
0x11c7   : > { %v6179_v59 = vadd.f32 %v6156_v38, %v6096_v54 }
0x11c8   : > { %v6176_v11 = vpop.f32.mrf.mxu3 }
0x11c9   : > { %v6180_v7 = vadd.f32 %v6176_v11, %v6116_v5 }
0x11cc   : > { %v6219_v12 = vpop.f32.mrf.mxu0  ;;  %v6270_v55 = vpop.f32.mrf.mxu2 }
0x11cd   : > { %v6239_v13 = vpop.f32.mrf.mxu1  ;;  %v6242_v24 = vadd.f32 %v6219_v12, %v6179_v59 }
0x11ce   : > { %v6243_v44 = vadd.f32 %v6239_v13, %v6180_v7 }
0x11cf   : > { %v6293_v19 = vadd.f32 %v6270_v55, %v6242_v24 }
0x11d0   : > { %v6290_v61 = vpop.f32.mrf.mxu3 }
0x11d1   : > { %v6294_v39 = vadd.f32 %v6290_v61, %v6243_v44 }
0x11d4   : > { %v6333_v29 = vpop.f32.mrf.mxu0  ;;  %v6396_v34 = vpop.f32.mrf.mxu2 }
0x11d5   : > { %v6356_v2 = vadd.f32 %v6333_v29, %v6293_v19 }
0x11d6   : > { %v6353_v16 = vpop.f32.mrf.mxu1 }
0x11d7   : > { %v6357_v21 = vadd.f32 %v6353_v16, %v6294_v39  ;;  %v6419_v42 = vadd.f32 %v6396_v34, %v6356_v2 }
0x11d8   : > { %v6416_v58 = vpop.f32.mrf.mxu3 }
0x11d9   : > { %v6420_v15 = vadd.f32 %v6416_v58, %v6357_v21 }
0x11dc   : > { %v6455_v20 = vpop.f32.mrf.mxu0 }
0x11dd   : > { %v6478_v60 = vadd.f32 %v6455_v20, %v6419_v42 }
0x11de   : > { %v6475_v9 = vpop.f32.mrf.mxu1 }
0x11df   : > { %v6479_v57 = vadd.f32 %v6475_v9, %v6420_v15 }
0x11e2   : > { %v6518_v17 = vpop.f32.mrf.mxu2 }
0x11e3   : > { %v6541_v49 = vadd.f32 %v6518_v17, %v6478_v60  ;;  %v6538_v18 = vpop.f32.mrf.mxu3 }
0x11e4   : > { %v6542_v22 = vadd.f32 %v6538_v18, %v6479_v57 }
0x11e5   : > { %v6549_v1 = vmul.f32 %v6547_v4, %v6541_v49 }
0x11e6   : > { %v6550_v0 = vmul.f32 %v6547_v4, %v6542_v22 }
0x11e7   : > { %v6557_v14 = vadd.f32 %v6555_v51, %v6549_v1 }
0x11e8   : > { %v6558_v3 = vadd.f32 %v6555_v51, %v6550_v0 }
0x11e9   : > { %v6559_v28 = vmax.f32 %v6557_v14, 0.0 }
0x11ea   : > { %v6560_v32 = vmax.f32 %v6558_v3, 0.0 }
0x11eb   : > { %6573 = vrot.lane.b32.xlu1 %v6559_v28, %s10058_s0  ;;  %6563 = vrot.lane.b32.xlu2 %v6559_v28, %s10057_s1 }
0x11ec   : > { %6565 = vrot.lane.b32.xlu0 %v6560_v32, %s10057_s1 }
0x11f3   : > { %6673 = vrot.lane.b32.xlu1 %v6560_v32, %s10059_s20  ;;  %6575 = vrot.lane.b32.xlu2 %v6560_v32, %s10058_s0 }
0x11f4   : > { %6671 = vrot.lane.b32.xlu0 %v6559_v28, %s10059_s20 }
0x11fb   : > { %6835 = vrot.lane.b32.xlu1 %v6560_v32, %s10053_s25  ;;  %6729 = vrot.lane.b32.xlu2 %v6559_v28, %s10060_s21 }
0x11fc   : > { %6731 = vrot.lane.b32.xlu0 %v6560_v32, %s10060_s21  ;;  %s10179_s21 = sld [smem:[#allocation11_spill]] }
0x1203   : > { %6891 = vrot.lane.b32.xlu1 %v6559_v28, %s10052_s26  ;;  %6833 = vrot.lane.b32.xlu2 %v6559_v28, %s10053_s25 }
0x1204   : > { %6893 = vrot.lane.b32.xlu0 %v6560_v32, %s10052_s26 }
0x120b   : > { %7005 = vrot.lane.b32.xlu1 %v6560_v32, %s10089_s22  ;;  %6951 = vrot.lane.b32.xlu2 %v6560_v32, %s10090_s23 }
0x120c   : > { %6949 = vrot.lane.b32.xlu0 %v6559_v28, %s10090_s23 }
0x1213   : > { %7072 = vperm.xlu1 %7782, %v7069_v26   ;;  %7003 = vrot.lane.b32.xlu2 %v6559_v28, %s10089_s22  ;;  %s598_s22 = scalar_lea.vmem %s10179_s21, %s7921_s29 }
0x1214   : > { %7064 = vperm.xlu0 %7784, %v7061_v40  }
0x1245   : > { %v6564_v23 = vpop.permute.xlu2 %6563 }
0x1246   : > { %v6570_v33 = vsel %vm10135_vm13, 0.0, %v6564_v23  ;;  %vm10149_vm13 = vmmov %vm10136_vm4 }
0x1247   : > { %v6571_v37 = vmul.f32 %v7952_v25, %v6570_v33 }
0x1249   : > { %7715 = vmatpush.msk.msra.mxu2 %vm10136_vm4, %v6571_v37 }
0x124a   : > { %7716 = vmatmul.msk.f32.vlgmr.msra.gmra.mxu2 %vm10137_vm6, %v9765_v8  ;;  %vm10150_vm6 = vmmov %vm10139_vm0 }
0x124d   : > { %v6576_v48 = vpop.permute.xlu2 %6575 }
0x1255   : > { %v6730_v56 = vpop.permute.xlu2 %6729 }
0x1256   : > { %v6736_v46 = vsel %vm819_vm2, 0.0, %v6730_v56 }
0x1257   : > { %v6737_v47 = vmul.f32 %v7952_v25, %v6736_v46 }
0x1259   : > { %7723 = vmatpush.msk.msrb.mxu2 %vm10138_vm9, %v6737_v47  ;;  %vm10151_vm9 = vmmov %vm10139_vm0 }
0x125a   : > { %7724 = vmatmul.msk.f32.vlgmr.msrb.gmra.mxu2 %vm10139_vm0, %v9792_v27 }
0x125d   : > { %v6574_v30 = vpop.permute.xlu1 %6573  ;;  %v6834_v59 = vpop.permute.xlu2 %6833 }
0x125e   : > { %v6566_v41 = vpop.permute.xlu0 %6565  ;;  %v6577_v38 = vsel %vm640_vm8, %v6574_v30, %v6576_v48  ;;  %v6579_v11 = vsel %vm640_vm8, 0.0, %v6574_v30  ;;  %vm10147_vm8 = vmmov %vm10136_vm4 }
0x125f   : > { %v6567_v12 = vsel %vm10140_vm7, %v6564_v23, %v6566_v41  ;;  %7711 = vmatpush.msk.msrb.mxu0 %vm10141_vm10, %v6579_v11  ;;  %7713 = vmatpush.msk.msrb.mxu1 %vm10142_vm14, %v6577_v38  ;;  %vm10154_vm7 = vmmov %vm10136_vm4 }
0x1260   : > { %v6572_v54 = vmul.f32 %v7969_v36, %v6567_v12  ;;  %7712 = vmatmul.msk.f32.vlgmr.msrb.gmra.mxu0 %vm10143_vm1, %v9728_v50  ;;  %7714 = vmatmul.msk.f32.vlgmr.msrb.gmra.mxu1 %vm10144_vm5, %v9728_v50  ;;  %vm10155_vm10 = vmmov %vm10136_vm4  ;;  %vm10157_vm5 = vcmask 916480  }
0x1261   : > { %vm10156_vm14 = vmmov %vm10143_vm1 }
0x1262   : > { %7717 = vmatpush.msk.msra.mxu3 %vm10145_vm15, %v6572_v54  ;;  %vm10159_vm15 = vmmov %vm10143_vm1 }
0x1263   : > { %7718 = vmatmul.msk.f32.vlgmr.msra.gmra.mxu3 %vm10146_vm11, %v9765_v8 }
0x1265   : > { %v6674_v13 = vpop.permute.xlu1 %6673  ;;  %v6952_v58 = vpop.permute.xlu2 %6951 }
0x1266   : > { %v6672_v55 = vpop.permute.xlu0 %6671 }
0x1267   : > { %v6678_v61 = vsel %vm752_vm3, 0.0, %v6672_v55  ;;  %v6675_v29 = vsel %vm752_vm3, %v6672_v55, %v6674_v13  ;;  %vm10152_vm3 = vcmask 1039360  }
0x1268   : > { %v6679_v24 = vmul.f32 %v7965_v35, %v6678_v61  ;;  %v6680_v16 = vmul.f32 %v7990_v45, %v6675_v29  ;;  %vm10153_vm0 = vmmov %vm10152_vm3 }
0x126a   : > { %7719 = vmatpush.msk.msra.mxu0 %vm10147_vm8, %v6679_v24  ;;  %7721 = vmatpush.msk.msra.mxu1 %vm10148_vm12, %v6680_v16  ;;  %vm10161_vm8 = vmmov %vm10143_vm1  ;;  %vm10162_vm12 = vcmask 924672  }
0x126b   : > { %7720 = vmatmul.msk.f32.vlgmr.msra.gmra.mxu0 %vm10150_vm6, %v9745_v6  ;;  %7722 = vmatmul.msk.f32.vlgmr.msra.gmra.mxu1 %vm10151_vm9, %v9745_v6  ;;  %v6955_v6 = vsel %vm10157_vm5, %v6952_v58, 0.0  ;;  %vm10166_vm9 = vmmov %vm10143_vm1 }
0x126c   : > { %7727 = vmatpush.msk.msrb.mxu0 %vm10149_vm13, %v6559_v28  ;;  %7729 = vmatpush.msk.msrb.mxu1 %vm10136_vm4, %v6560_v32  ;;  %vm10163_vm13 = vmmov %vm10162_vm12 }
0x126d   : > { %v6836_v50 = vpop.permute.xlu1 %6835 }
0x126e   : > { %v6732_v8 = vpop.permute.xlu0 %6731  ;;  %v6837_v5 = vsel %vm10152_vm3, %v6834_v59, %v6836_v50  ;;  %v6840_v7 = vsel %vm10153_vm0, %v6836_v50, 0.0  ;;  %vm10167_vm3 = vmmov %vm10143_vm1 }
0x126f   : > { %v6733_v19 = vsel %vm819_vm2, %v6730_v56, %v6732_v8  ;;  %v6841_v44 = vmul.f32 %v7965_v35, %v6837_v5  ;;  %v6842_v2 = vmul.f32 %v7990_v45, %v6840_v7  ;;  %vm10158_vm2 = vmmov %vm10136_vm4 }
0x1270   : > { %v6738_v34 = vmul.f32 %v7969_v36, %v6733_v19  ;;  %vm10160_vm11 = vmmov %vm10158_vm2 }
0x1271   : > { %7731 = vmatpush.msk.msra.mxu2 %vm10154_vm7, %v6841_v44  ;;  %vm10164_vm4 = vmmov %vm10158_vm2  ;;  %vm10169_vm7 = vcmask 908288  }
0x1272   : > { %7725 = vmatpush.msk.msrb.mxu3 %vm10155_vm10, %v6738_v34  ;;  %7732 = vmatmul.msk.f32.vlgmr.msra.gmra.mxu2 %vm10156_vm14, %v9816_v31  ;;  %vm10165_vm6 = vmmov %vm10158_vm2 }
0x1273   : > { %7726 = vmatmul.msk.f32.vlgmr.msrb.gmra.mxu3 %vm10143_vm1, %v9792_v27  ;;  %7728 = vmatmul.msk.f32.vlgmr.msrb.gmra.mxu0 %vm10159_vm15, %v9775_v10  ;;  %vm10168_vm0 = vmmov %vm10143_vm1 }
0x1274   : > { %7733 = vmatpush.msk.msra.mxu3 %vm10158_vm2, %v6842_v2  ;;  %7730 = vmatmul.msk.f32.vlgmr.msrb.gmra.mxu1 %vm10161_vm8, %v9775_v10  ;;  %v7004_v10 = vpop.permute.xlu2 %7003  ;;  %vm10170_vm10 = vmmov %vm10169_vm7 }
0x1275   : > { %v6892_v39 = vpop.permute.xlu1 %6891  ;;  %vm10171_vm14 = vmmov %vm10157_vm5 }
0x1276   : > { %7741 = vmatpush.msk.msrb.mxu3 %vm10160_vm11, %v6955_v6  ;;  %v6894_v21 = vpop.permute.xlu0 %6893  ;;  %vm10172_vm1 = vmmov %vm10158_vm2 }
0x1277   : > { %v6898_v20 = vsel %vm10162_vm12, %v6894_v21, 0.0  ;;  %v6895_v42 = vsel %vm10163_vm13, %v6892_v39, %v6894_v21  ;;  %vm10173_vm5 = vmmov %vm10168_vm0 }
0x1278   : > { %v6900_v27 = vmul.f32 %v7969_v36, %v6898_v20  ;;  %v6899_v9 = vmul.f32 %v7952_v25, %v6895_v42  ;;  %vm10174_vm2 = vmmov %vm10172_vm1 }
0x1279   : > { %vm10175_vm15 = vmmov %vm10172_vm1 }
0x127a   : > { %7735 = vmatpush.msk.msra.mxu0 %vm10164_vm4, %v6899_v9  ;;  %7737 = vmatpush.msk.msra.mxu1 %vm10165_vm6, %v6900_v27  ;;  %vm10176_vm11 = vmmov %vm10168_vm0 }
0x127b   : > { %7734 = vmatmul.msk.f32.vlgmr.msra.gmra.mxu3 %vm10166_vm9, %v9816_v31  ;;  %7736 = vmatmul.msk.f32.vlgmr.msra.gmra.mxu0 %vm10167_vm3, %v9801_v62  ;;  %vm10177_vm8 = vmmov %vm10168_vm0 }
0x127c   : > { %7738 = vmatmul.msk.f32.vlgmr.msra.gmra.mxu1 %vm10168_vm0, %v9801_v62  ;;  %vm10178_vm12 = vmmov %vm10168_vm0 }
0x127d   : > { %v7006_v15 = vpop.permute.xlu1 %7005  ;;  %vm10180_vm13 = vmmov %vm10172_vm1 }
0x127e   : > { %v6950_v60 = vpop.permute.xlu0 %6949  ;;  %v7007_v36 = vsel %vm10169_vm7, %v7004_v10, %v7006_v15  ;;  %v7010_v25 = vsel %vm10170_vm10, %v7006_v15, 0.0 }
0x127f   : > { %v6953_v57 = vsel %vm10171_vm14, %v6950_v60, %v6952_v58  ;;  %v7011_v17 = vmul.f32 %v7965_v35, %v7007_v36  ;;  %v7012_v49 = vmul.f32 %v7990_v45, %v7010_v25 }
0x1280   : > { %7739 = vmatpush.msk.msrb.mxu2 %vm10172_vm1, %v6953_v57 }
0x1281   : > { %7740 = vmatmul.msk.f32.vlgmr.msrb.gmra.mxu2 %vm10173_vm5, %v9837_v43  ;;  %7743 = vmatpush.msk.msrb.mxu0 %vm10174_vm2, %v7011_v17 }
0x1282   : > { %7745 = vmatpush.msk.msrb.mxu1 %vm10175_vm15, %v7012_v49 }
0x1283   : > { %7742 = vmatmul.msk.f32.vlgmr.msrb.gmra.mxu3 %vm10176_vm11, %v9837_v43  ;;  %7744 = vmatmul.msk.f32.vlgmr.msrb.gmra.mxu0 %vm10177_vm8, %v9842_v52 }
0x1284   : > { %7746 = vmatmul.msk.f32.vlgmr.msrb.gmra.mxu1 %vm10178_vm12, %v9842_v52 }
0x1285   : > { %v7073_v24 = vpop.permute.xlu1 %7072 }
0x1286   : > { %v7065_v59 = vpop.permute.xlu0 %7064 }
0x12cd   : > { %v6648_v62 = vpop.f32.mrf.mxu2 }
0x12dd   : > { %v6602_v35 = vpop.f32.mrf.mxu0  ;;  %v6622_v45 = vpop.f32.mrf.mxu1 }
0x12de   : > { %v6649_v22 = vadd.f32 %v6648_v62, %v6602_v35  ;;  %v6762_v1 = vpop.f32.mrf.mxu2 }
0x12e6   : > { %v6668_v4 = vpop.f32.mrf.mxu3 }
0x12e7   : > { %v6669_v14 = vadd.f32 %v6668_v4, %v6622_v45 }
0x12e8   : > { %v6704_v31 = vpop.f32.mrf.mxu0  ;;  %v6724_v18 = vpop.f32.mrf.mxu1 }
0x12e9   : > { %v6727_v3 = vadd.f32 %v6704_v31, %v6649_v22  ;;  %v6728_v43 = vadd.f32 %v6724_v18, %v6669_v14 }
0x12eb   : > { %v6785_v32 = vadd.f32 %v6762_v1, %v6727_v3 }
0x12f0   : > { %v6808_v51 = vpop.f32.mrf.mxu0 }
0x12f1   : > { %v6828_v0 = vpop.f32.mrf.mxu1  ;;  %v6831_v52 = vadd.f32 %v6808_v51, %v6785_v32 }
0x12f5   : > { %v6866_v40 = vpop.f32.mrf.mxu2 }
0x12f6   : > { %v6782_v28 = vpop.f32.mrf.mxu3  ;;  %v6889_v56 = vadd.f32 %v6866_v40, %v6831_v52 }
0x12f7   : > { %v6786_v26 = vadd.f32 %v6782_v28, %v6728_v43 }
0x12f8   : > { %v6924_v23 = vpop.f32.mrf.mxu0 }
0x12f9   : > { %v6944_v33 = vpop.f32.mrf.mxu1  ;;  %v6832_v48 = vadd.f32 %v6828_v0, %v6786_v26  ;;  %v6947_v47 = vadd.f32 %v6924_v23, %v6889_v56 }
0x12fe   : > { %v6886_v37 = vpop.f32.mrf.mxu3 }
0x12ff   : > { %v6890_v46 = vadd.f32 %v6886_v37, %v6832_v48 }
0x1300   : > { %v7036_v41 = vpop.f32.mrf.mxu0 }
0x1301   : > { %v6948_v38 = vadd.f32 %v6944_v33, %v6890_v46  ;;  %v7056_v54 = vpop.f32.mrf.mxu1 }
0x1304   : > { %v6978_v30 = vpop.f32.mrf.mxu2 }
0x1305   : > { %v7001_v11 = vadd.f32 %v6978_v30, %v6947_v47 }
0x1306   : > { %v6998_v12 = vpop.f32.mrf.mxu3 }
0x1307   : > { %v7002_v13 = vadd.f32 %v6998_v12, %v6948_v38  ;;  %v7059_v55 = vadd.f32 %v7036_v41, %v7001_v11 }
0x1309   : > { %v7067_v61 = vmul.f32 %v7065_v59, %v7059_v55  ;;  %v7060_v29 = vadd.f32 %v7056_v54, %v7002_v13 }
0x130b   : > { %v7075_v16 = vadd.f32 %v7073_v24, %v7067_v61  ;;  %v7068_v50 = vmul.f32 %v7065_v59, %v7060_v29 }
0x130d   : > { %v7076_v8 = vadd.f32 %v7073_v24, %v7068_v50  ;;  %v7077_v5 = vadd.f32 %v7075_v16, %v9682_v53 }
0x130f   : > { %v7078_v7 = vadd.f32 %v7076_v8, %v9685_v63  ;;  %v7079_v44 = vmax.f32 %v7077_v5, 0.0 }
0x1311   : > { %v7080_v19 = vmax.f32 %v7078_v7, 0.0 }
0x1313   : > { %v7083_v34 = vrot.slane %v7080_v19, 4 }
0x1315   : > { %v7084_v2 = vsel %vm10180_vm13, %v7079_v44, %v7083_v34 }
0x1316   : > { %7086 = vst [vmem:[%s598_s22] sm:$0xff] %v7084_v2 }
0x1317 PF: > { %s10181_s23 = sld [smem:[#allocation2_spill]] }
0x131d   : > { %s29_s27 = sadd.s32 1, %s10181_s23  }
0x131e   : > { %p26_p4 = scmp.ge.s32.totalorder %s29_s27, 4  }
0x1320   :  { %28 = sbr.rel (!%p26_p4) target bundleno = 10 (0xa), region = 224 }

</bundles_post_ra>
